<compile_context>
chip_gen: v5e
topology: v5e:2x2
jax: 0.10.0
libtpu: 0.0.40
codegen_flags: <defaults>
</compile_context>

<pallas_src>
import functools

import jax
import jax.numpy as jnp
from jax.experimental import pallas as pl
from jax.experimental.pallas import tpu as pltpu


VMEM_LIMIT = 32 * 1024 * 1024          # fits v7x's 64 MiB physical VMEM
LANE = 128


def _round_up(v, m):
    return ((v + m - 1) // m) * m


# ----------------------------------------------------------------------------
# Pallas kernel 1: fused matmul + bias (+ ReLU), M-tiled
# ----------------------------------------------------------------------------
def _matmul_bias_kernel(x_ref, w_ref, b_ref, o_ref, *, apply_relu):
    acc = jnp.dot(x_ref[...], w_ref[...], preferred_element_type=jnp.float32)
    acc = acc + b_ref[...].astype(jnp.float32)      # (1, N) broadcast
    if apply_relu:
        acc = jnp.maximum(acc, 0.0)
    o_ref[...] = acc.astype(o_ref.dtype)


def pallas_matmul_bias(x, w, b2, *, apply_relu, out_dtype, tm_cap=512):
    """x: (M, K) bf16, w: (K, N) bf16, b2: (1, N) f32 -> (M, N) out_dtype."""
    M, K = x.shape
    K2, N = w.shape
    assert K == K2, (K, K2)
    tm = min(tm_cap, _round_up(M, 16))
    grid = (pl.cdiv(M, tm),)
    kernel = functools.partial(_matmul_bias_kernel, apply_relu=apply_relu)
    flops = 2 * M * K * N
    bytes_accessed = (M * K * x.dtype.itemsize + K * N * w.dtype.itemsize
                      + N * 4 + M * N * jnp.dtype(out_dtype).itemsize)
    return pl.pallas_call(
        kernel,
        out_shape=jax.ShapeDtypeStruct((M, N), out_dtype),
        grid=grid,
        in_specs=[
            pl.BlockSpec((tm, K), lambda i: (i, 0)),
            pl.BlockSpec((K, N), lambda i: (0, 0)),
            pl.BlockSpec((1, N), lambda i: (0, 0)),
        ],
        out_specs=pl.BlockSpec((tm, N), lambda i: (i, 0)),
        compiler_params=pltpu.CompilerParams(
            dimension_semantics=("parallel",),
            vmem_limit_bytes=VMEM_LIMIT),
        cost_estimate=pl.CostEstimate(flops=flops, transcendentals=0,
                                      bytes_accessed=bytes_accessed),
    )(x, w, b2)


# ----------------------------------------------------------------------------
# Pallas kernel 2: fused FC (3136->512) + ReLU + both heads (lane-dense 128)
# ----------------------------------------------------------------------------
def _fc_heads_kernel(x_ref, fw_ref, fb_ref, hw_ref, hb_ref, o_ref):
    feat = jnp.dot(x_ref[...], fw_ref[...], preferred_element_type=jnp.float32)
    feat = jnp.maximum(feat + fb_ref[...].astype(jnp.float32), 0.0)
    heads = jnp.dot(feat.astype(hw_ref.dtype), hw_ref[...],
                    preferred_element_type=jnp.float32)
    o_ref[...] = (heads + hb_ref[...].astype(jnp.float32)).astype(o_ref.dtype)


def pallas_fc_heads(flat, fc_w, fc_b2, head_w, head_b2, *, tm_cap=256):
    """flat: (M, 3136) bf16 -> (M, 128) f32 (both heads, zero-padded lanes)."""
    M, K = flat.shape
    K2, F = fc_w.shape
    F2, NH = head_w.shape
    assert K == K2 and F == F2, (K, K2, F, F2)
    tm = min(tm_cap, _round_up(M, 16))
    grid = (pl.cdiv(M, tm),)
    flops = 2 * M * K * F + 2 * M * F * NH
    bytes_accessed = (M * K * 2 + K * F * 2 + F * NH * 2
                      + F * 4 + NH * 4 + M * NH * 4)
    return pl.pallas_call(
        _fc_heads_kernel,
        out_shape=jax.ShapeDtypeStruct((M, NH), jnp.float32),
        grid=grid,
        in_specs=[
            pl.BlockSpec((tm, K), lambda i: (i, 0)),
            pl.BlockSpec((K, F), lambda i: (0, 0)),
            pl.BlockSpec((1, F), lambda i: (0, 0)),
            pl.BlockSpec((F, NH), lambda i: (0, 0)),
            pl.BlockSpec((1, NH), lambda i: (0, 0)),
        ],
        out_specs=pl.BlockSpec((tm, NH), lambda i: (i, 0)),
        compiler_params=pltpu.CompilerParams(
            dimension_semantics=("parallel",),
            vmem_limit_bytes=VMEM_LIMIT),
        cost_estimate=pl.CostEstimate(flops=flops, transcendentals=0,
                                      bytes_accessed=bytes_accessed),
    )(flat, fc_w, fc_b2, head_w, head_b2)


# ----------------------------------------------------------------------------
# Glue: channels-last im2col (pure slicing/stack, no transposes of major dims)
# ----------------------------------------------------------------------------
def _im2col_nhwc(x, kh, kw, stride):
    # x: (N, H, W, C) -> (N*oh*ow, kh*kw*C), K ordered (kh, kw, C)
    n, h, w, c = x.shape
    oh = (h - kh) // stride + 1
    ow = (w - kw) // stride + 1
    cols = [x[:, i:i + stride * oh:stride, j:j + stride * ow:stride, :]
            for i in range(kh) for j in range(kw)]
    p = jnp.stack(cols, axis=3)                  # (N, oh, ow, kh*kw, C)
    return p.reshape(n * oh * ow, kh * kw * c), oh, ow


def conv2d_relu(x, wmat, b2, kh, kw, stride):
    # x: (N, H, W, C) bf16, wmat: (kh*kw*C, OC) bf16 -> (N, OH, OW, OC) bf16
    n = x.shape[0]
    patches, oh, ow = _im2col_nhwc(x, kh, kw, stride)
    oc = wmat.shape[1]
    out = pallas_matmul_bias(patches, wmat, b2, apply_relu=True,
                             out_dtype=jnp.bfloat16)
    return out.reshape(n, oh, ow, oc)


# ----------------------------------------------------------------------------
# One-time weight re-layout: PyTorch layout -> kernel-ready layout
# ----------------------------------------------------------------------------
def prepare_params(p, motor_n, sensory_n):
    def conv_w(w):
        # (OC, C, KH, KW) -> (KH, KW, C, OC) -> (KH*KW*C, OC), matches im2col K
        oc, c, kh, kw = w.shape
        return w.transpose(2, 3, 1, 0).reshape(kh * kw * c, oc).astype(jnp.bfloat16)

    q = {}
    q["c1_w"] = conv_w(p["c1_w"]); q["c1_b"] = p["c1_b"].reshape(1, -1).astype(jnp.float32)
    q["c2_w"] = conv_w(p["c2_w"]); q["c2_b"] = p["c2_b"].reshape(1, -1).astype(jnp.float32)
    q["c3_w"] = conv_w(p["c3_w"]); q["c3_b"] = p["c3_b"].reshape(1, -1).astype(jnp.float32)

    # fc_w stored (in=3136, out=512) with `in` ordered (C=64, H=7, W=7) as in
    # nn.Flatten(NCHW); re-order rows to the NHWC flatten (H, W, C) we produce.
    fc_w = p["fc_w"].reshape(64, 7, 7, 512).transpose(1, 2, 0, 3).reshape(3136, 512)
    q["fc_w"] = fc_w.astype(jnp.bfloat16)
    q["fc_b"] = p["fc_b"].reshape(1, -1).astype(jnp.float32)

    # Heads: concat along output dim, zero-pad to a lane multiple (128) so the
    # fused-head output store is lane-dense; slices are taken in the wrapper.
    nh = motor_n + sensory_n
    nh_pad = _round_up(nh, LANE)
    head_w = jnp.concatenate([p["mh_w"], p["sh_w"]], axis=1)       # (512, nh)
    head_b = jnp.concatenate([p["mh_b"], p["sh_b"]], axis=0)       # (nh,)
    q["head_w"] = jnp.pad(head_w, ((0, 0), (0, nh_pad - nh))).astype(jnp.bfloat16)
    q["head_b"] = jnp.pad(head_b, (0, nh_pad - nh)).reshape(1, -1).astype(jnp.float32)
    return q


# ----------------------------------------------------------------------------
# QNetwork forward (NCHW input, PyTorch convention)
# ----------------------------------------------------------------------------
def qnetwork_forward(params, x, *, motor_n, sensory_n):
    xh = x.transpose(0, 2, 3, 1).astype(jnp.bfloat16)              # (N,84,84,4) NHWC
    h = conv2d_relu(xh, params["c1_w"], params["c1_b"], 8, 8, 4)   # (N,20,20,32)
    h = conv2d_relu(h, params["c2_w"], params["c2_b"], 4, 4, 2)    # (N, 9, 9,64)
    h = conv2d_relu(h, params["c3_w"], params["c3_b"], 3, 3, 1)    # (N, 7, 7,64)
    n = h.shape[0]
    flat = h.reshape(n, -1)                                        # (N, 3136) HWC order
    heads = pallas_fc_heads(flat, params["fc_w"], params["fc_b"],
                            params["head_w"], params["head_b"])    # (N, 128) f32
    motor = heads[:, :motor_n]
    sensory = heads[:, motor_n:motor_n + sensory_n]
    return motor, sensory


# ----------------------------------------------------------------------------
# Deterministic parameter init (PyTorch-style uniform(-1/sqrt(fan_in), ...))
# ----------------------------------------------------------------------------
def _init_params(key, motor_n, sensory_n):
    def uinit(k, shape, fan_in):
        bound = 1.0 / jnp.sqrt(fan_in)
        return jax.random.uniform(k, shape, jnp.float32, -bound, bound)

    ks = jax.random.split(key, 12)
    p = {}
    p["c1_w"] = uinit(ks[0], (32, 4, 8, 8), 4 * 8 * 8)
    p["c1_b"] = uinit(ks[1], (32,), 4 * 8 * 8)
    p["c2_w"] = uinit(ks[2], (64, 32, 4, 4), 32 * 4 * 4)
    p["c2_b"] = uinit(ks[3], (64,), 32 * 4 * 4)
    p["c3_w"] = uinit(ks[4], (64, 64, 3, 3), 64 * 3 * 3)
    p["c3_b"] = uinit(ks[5], (64,), 64 * 3 * 3)
    p["fc_w"] = uinit(ks[6], (3136, 512), 3136)      # stored (in, out), CHW rows
    p["fc_b"] = uinit(ks[7], (512,), 3136)
    p["mh_w"] = uinit(ks[8], (512, motor_n), 512)
    p["mh_b"] = uinit(ks[9], (motor_n,), 512)
    p["sh_w"] = uinit(ks[10], (512, sensory_n), 512)
    p["sh_b"] = uinit(ks[11], (sensory_n,), 512)
    return p


if __name__ == "__main__":
    MOTOR_N = 6        # env.single_action_space['motor_action'].n
    SENSORY_N = 16     # env.single_action_space['sensory_action'].n
    BATCH = 2

    key = jax.random.PRNGKey(0)
    k_params, k_x = jax.random.split(key)
    raw = _init_params(k_params, MOTOR_N, SENSORY_N)
    params = prepare_params(raw, MOTOR_N, SENSORY_N)

    # 84x84 frames are required by the architecture (64*7*7 == 3136 flatten).
    x = jax.random.normal(k_x, (BATCH, 4, 84, 84), jnp.float32)

    fwd = jax.jit(functools.partial(qnetwork_forward,
                                    motor_n=MOTOR_N, sensory_n=SENSORY_N))
    motor, sensory = fwd(params, x)
    jax.block_until_ready((motor, sensory))

    assert motor.shape == (BATCH, MOTOR_N), motor.shape
    assert sensory.shape == (BATCH, SENSORY_N), sensory.shape
    assert jnp.all(jnp.isfinite(motor)) and jnp.all(jnp.isfinite(sensory))
    print("KERNEL_OK")
</pallas_src>

<mosaic_0001>
module attributes {stable_mosaic.version = 11 : i64} {
  func.func @_matmul_bias_kernel(%arg0: i32, %arg1: memref<512x256xbf16, #tpu.memory_space<vmem>>, %arg2: memref<256x32xbf16, #tpu.memory_space<vmem>>, %arg3: memref<1x32xf32, #tpu.memory_space<vmem>>, %arg4: memref<512x32xbf16, #tpu.memory_space<vmem>>) attributes {dimension_semantics = [#tpu.dimension_semantics<parallel>], iteration_bounds = array<i64: 2>, scalar_prefetch = 0 : i64, scratch_operands = 0 : i64, tpu.core_type = #tpu.core_type<tc>, window_params = [{transform_indices = @transform_0, window_bounds = array<i64: 512, 256>}, {pipeline_mode = #tpu.pipeline_mode<synchronous>, transform_indices = @transform_1, window_bounds = array<i64: 256, 32>}, {pipeline_mode = #tpu.pipeline_mode<synchronous>, transform_indices = @transform_2, window_bounds = array<i64: 1, 32>}, {transform_indices = @transform_3, window_bounds = array<i64: 512, 32>}]} {
    %c0 = arith.constant 0 : index
    %c0_0 = arith.constant 0 : index
    %0 = vector.load %arg1[%c0, %c0_0] : memref<512x256xbf16, #tpu.memory_space<vmem>>, vector<512x256xbf16>
    %c0_1 = arith.constant 0 : index
    %c0_2 = arith.constant 0 : index
    %1 = vector.load %arg2[%c0_1, %c0_2] : memref<256x32xbf16, #tpu.memory_space<vmem>>, vector<256x32xbf16>
    %cst = arith.constant dense<0.000000e+00> : vector<512x32xf32>
    %2 = tpu.matmul %0, %1, %cst {dimension_numbers = #tpu.dot_dimension_numbers<[1], [0], [0], [1], [0, 0, 1, 1], [], []>} : vector<512x256xbf16>, vector<256x32xbf16>, vector<512x32xf32> -> vector<512x32xf32>
    %c0_3 = arith.constant 0 : index
    %c0_4 = arith.constant 0 : index
    %3 = vector.load %arg3[%c0_3, %c0_4] : memref<1x32xf32, #tpu.memory_space<vmem>>, vector<1x32xf32>
    %4 = vector.broadcast %3 : vector<1x32xf32> to vector<512x32xf32>
    %5 = arith.addf %2, %4 : vector<512x32xf32>
    %cst_5 = arith.constant 0.000000e+00 : f32
    %6 = vector.broadcast %cst_5 : f32 to vector<512x32xf32>
    %7 = arith.maximumf %5, %6 : vector<512x32xf32>
    %8 = arith.truncf %7 : vector<512x32xf32> to vector<512x32xbf16>
    %c0_6 = arith.constant 0 : index
    %c0_7 = arith.constant 0 : index
    %9 = vector.load %arg4[%c0_6, %c0_7] : memref<512x32xbf16, #tpu.memory_space<vmem>>, vector<512x32xbf16>
    tpu.vector_store %arg4[%c0_6, %c0_7], %8 {strides = array<i32>} : memref<512x32xbf16, #tpu.memory_space<vmem>>, vector<512x32xbf16>,
    return
  }
  func.func @transform_0(%arg0: i32) -> (i32, i32) {
    %c0_i32 = arith.constant 0 : i32
    %c0_i32_0 = arith.constant 0 : i32
    return %arg0, %c0_i32 : i32, i32
  }
  func.func @transform_1(%arg0: i32) -> (i32, i32) {
    %c0_i32 = arith.constant 0 : i32
    %c0_i32_0 = arith.constant 0 : i32
    %c0_i32_1 = arith.constant 0 : i32
    return %c0_i32, %c0_i32_0 : i32, i32
  }
  func.func @transform_2(%arg0: i32) -> (i32, i32) {
    %c0_i32 = arith.constant 0 : i32
    %c0_i32_0 = arith.constant 0 : i32
    %c0_i32_1 = arith.constant 0 : i32
    return %c0_i32, %c0_i32_0 : i32, i32
  }
  func.func @transform_3(%arg0: i32) -> (i32, i32) {
    %c0_i32 = arith.constant 0 : i32
    %c0_i32_0 = arith.constant 0 : i32
    return %arg0, %c0_i32 : i32, i32
  }
}

module attributes {stable_mosaic.version = 11 : i64} {
  func.func @_matmul_bias_kernel(%arg0: i32, %arg1: memref<176x512xbf16, #tpu.memory_space<vmem>>, %arg2: memref<512x64xbf16, #tpu.memory_space<vmem>>, %arg3: memref<1x64xf32, #tpu.memory_space<vmem>>, %arg4: memref<176x64xbf16, #tpu.memory_space<vmem>>) attributes {dimension_semantics = [#tpu.dimension_semantics<parallel>], iteration_bounds = array<i64: 1>, scalar_prefetch = 0 : i64, scratch_operands = 0 : i64, tpu.core_type = #tpu.core_type<tc>, window_params = [{transform_indices = @transform_0, window_bounds = array<i64: 176, 512>}, {pipeline_mode = #tpu.pipeline_mode<synchronous>, transform_indices = @transform_1, window_bounds = array<i64: 512, 64>}, {pipeline_mode = #tpu.pipeline_mode<synchronous>, transform_indices = @transform_2, window_bounds = array<i64: 1, 64>}, {transform_indices = @transform_3, window_bounds = array<i64: 176, 64>}]} {
    %c0 = arith.constant 0 : index
    %c0_0 = arith.constant 0 : index
    %0 = vector.load %arg1[%c0, %c0_0] : memref<176x512xbf16, #tpu.memory_space<vmem>>, vector<176x512xbf16>
    %c0_1 = arith.constant 0 : index
    %c0_2 = arith.constant 0 : index
    %1 = vector.load %arg2[%c0_1, %c0_2] : memref<512x64xbf16, #tpu.memory_space<vmem>>, vector<512x64xbf16>
    %cst = arith.constant dense<0.000000e+00> : vector<176x64xf32>
    %2 = tpu.matmul %0, %1, %cst {dimension_numbers = #tpu.dot_dimension_numbers<[1], [0], [0], [1], [0, 0, 1, 1], [], []>} : vector<176x512xbf16>, vector<512x64xbf16>, vector<176x64xf32> -> vector<176x64xf32>
    %c0_3 = arith.constant 0 : index
    %c0_4 = arith.constant 0 : index
    %3 = vector.load %arg3[%c0_3, %c0_4] : memref<1x64xf32, #tpu.memory_space<vmem>>, vector<1x64xf32>
    %4 = vector.broadcast %3 : vector<1x64xf32> to vector<176x64xf32>
    %5 = arith.addf %2, %4 : vector<176x64xf32>
    %cst_5 = arith.constant 0.000000e+00 : f32
    %6 = vector.broadcast %cst_5 : f32 to vector<176x64xf32>
    %7 = arith.maximumf %5, %6 : vector<176x64xf32>
    %8 = arith.truncf %7 : vector<176x64xf32> to vector<176x64xbf16>
    %c0_6 = arith.constant 0 : index
    %c0_7 = arith.constant 0 : index
    %9 = vector.load %arg4[%c0_6, %c0_7] : memref<176x64xbf16, #tpu.memory_space<vmem>>, vector<176x64xbf16>
    tpu.vector_store %arg4[%c0_6, %c0_7], %8 {strides = array<i32>} : memref<176x64xbf16, #tpu.memory_space<vmem>>, vector<176x64xbf16>,
    return
  }
  func.func @transform_0(%arg0: i32) -> (i32, i32) {
    %c0_i32 = arith.constant 0 : i32
    %c0_i32_0 = arith.constant 0 : i32
    return %arg0, %c0_i32 : i32, i32
  }
  func.func @transform_1(%arg0: i32) -> (i32, i32) {
    %c0_i32 = arith.constant 0 : i32
    %c0_i32_0 = arith.constant 0 : i32
    %c0_i32_1 = arith.constant 0 : i32
    return %c0_i32, %c0_i32_0 : i32, i32
  }
  func.func @transform_2(%arg0: i32) -> (i32, i32) {
    %c0_i32 = arith.constant 0 : i32
    %c0_i32_0 = arith.constant 0 : i32
    %c0_i32_1 = arith.constant 0 : i32
    return %c0_i32, %c0_i32_0 : i32, i32
  }
  func.func @transform_3(%arg0: i32) -> (i32, i32) {
    %c0_i32 = arith.constant 0 : i32
    %c0_i32_0 = arith.constant 0 : i32
    return %arg0, %c0_i32 : i32, i32
  }
}

module attributes {stable_mosaic.version = 11 : i64} {
  func.func @_matmul_bias_kernel(%arg0: i32, %arg1: memref<112x576xbf16, #tpu.memory_space<vmem>>, %arg2: memref<576x64xbf16, #tpu.memory_space<vmem>>, %arg3: memref<1x64xf32, #tpu.memory_space<vmem>>, %arg4: memref<112x64xbf16, #tpu.memory_space<vmem>>) attributes {dimension_semantics = [#tpu.dimension_semantics<parallel>], iteration_bounds = array<i64: 1>, scalar_prefetch = 0 : i64, scratch_operands = 0 : i64, tpu.core_type = #tpu.core_type<tc>, window_params = [{transform_indices = @transform_0, window_bounds = array<i64: 112, 576>}, {pipeline_mode = #tpu.pipeline_mode<synchronous>, transform_indices = @transform_1, window_bounds = array<i64: 576, 64>}, {pipeline_mode = #tpu.pipeline_mode<synchronous>, transform_indices = @transform_2, window_bounds = array<i64: 1, 64>}, {transform_indices = @transform_3, window_bounds = array<i64: 112, 64>}]} {
    %c0 = arith.constant 0 : index
    %c0_0 = arith.constant 0 : index
    %0 = vector.load %arg1[%c0, %c0_0] : memref<112x576xbf16, #tpu.memory_space<vmem>>, vector<112x576xbf16>
    %c0_1 = arith.constant 0 : index
    %c0_2 = arith.constant 0 : index
    %1 = vector.load %arg2[%c0_1, %c0_2] : memref<576x64xbf16, #tpu.memory_space<vmem>>, vector<576x64xbf16>
    %cst = arith.constant dense<0.000000e+00> : vector<112x64xf32>
    %2 = tpu.matmul %0, %1, %cst {dimension_numbers = #tpu.dot_dimension_numbers<[1], [0], [0], [1], [0, 0, 1, 1], [], []>} : vector<112x576xbf16>, vector<576x64xbf16>, vector<112x64xf32> -> vector<112x64xf32>
    %c0_3 = arith.constant 0 : index
    %c0_4 = arith.constant 0 : index
    %3 = vector.load %arg3[%c0_3, %c0_4] : memref<1x64xf32, #tpu.memory_space<vmem>>, vector<1x64xf32>
    %4 = vector.broadcast %3 : vector<1x64xf32> to vector<112x64xf32>
    %5 = arith.addf %2, %4 : vector<112x64xf32>
    %cst_5 = arith.constant 0.000000e+00 : f32
    %6 = vector.broadcast %cst_5 : f32 to vector<112x64xf32>
    %7 = arith.maximumf %5, %6 : vector<112x64xf32>
    %8 = arith.truncf %7 : vector<112x64xf32> to vector<112x64xbf16>
    %c0_6 = arith.constant 0 : index
    %c0_7 = arith.constant 0 : index
    %9 = vector.load %arg4[%c0_6, %c0_7] : memref<112x64xbf16, #tpu.memory_space<vmem>>, vector<112x64xbf16>
    tpu.vector_store %arg4[%c0_6, %c0_7], %8 {strides = array<i32>} : memref<112x64xbf16, #tpu.memory_space<vmem>>, vector<112x64xbf16>,
    return
  }
  func.func @transform_0(%arg0: i32) -> (i32, i32) {
    %c0_i32 = arith.constant 0 : i32
    %c0_i32_0 = arith.constant 0 : i32
    return %arg0, %c0_i32 : i32, i32
  }
  func.func @transform_1(%arg0: i32) -> (i32, i32) {
    %c0_i32 = arith.constant 0 : i32
    %c0_i32_0 = arith.constant 0 : i32
    %c0_i32_1 = arith.constant 0 : i32
    return %c0_i32, %c0_i32_0 : i32, i32
  }
  func.func @transform_2(%arg0: i32) -> (i32, i32) {
    %c0_i32 = arith.constant 0 : i32
    %c0_i32_0 = arith.constant 0 : i32
    %c0_i32_1 = arith.constant 0 : i32
    return %c0_i32, %c0_i32_0 : i32, i32
  }
  func.func @transform_3(%arg0: i32) -> (i32, i32) {
    %c0_i32 = arith.constant 0 : i32
    %c0_i32_0 = arith.constant 0 : i32
    return %arg0, %c0_i32 : i32, i32
  }
}

module attributes {stable_mosaic.version = 11 : i64} {
  func.func @_fc_heads_kernel(%arg0: i32, %arg1: memref<16x3136xbf16, #tpu.memory_space<vmem>>, %arg2: memref<3136x512xbf16, #tpu.memory_space<vmem>>, %arg3: memref<1x512xf32, #tpu.memory_space<vmem>>, %arg4: memref<512x128xbf16, #tpu.memory_space<vmem>>, %arg5: memref<1x128xf32, #tpu.memory_space<vmem>>, %arg6: memref<16x128xf32, #tpu.memory_space<vmem>>) attributes {dimension_semantics = [#tpu.dimension_semantics<parallel>], iteration_bounds = array<i64: 1>, scalar_prefetch = 0 : i64, scratch_operands = 0 : i64, tpu.core_type = #tpu.core_type<tc>, window_params = [{transform_indices = @transform_0, window_bounds = array<i64: 16, 3136>}, {pipeline_mode = #tpu.pipeline_mode<synchronous>, transform_indices = @transform_1, window_bounds = array<i64: 3136, 512>}, {pipeline_mode = #tpu.pipeline_mode<synchronous>, transform_indices = @transform_2, window_bounds = array<i64: 1, 512>}, {pipeline_mode = #tpu.pipeline_mode<synchronous>, transform_indices = @transform_3, window_bounds = array<i64: 512, 128>}, {pipeline_mode = #tpu.pipeline_mode<synchronous>, transform_indices = @transform_4, window_bounds = array<i64: 1, 128>}, {transform_indices = @transform_5, window_bounds = array<i64: 16, 128>}]} {
    %c0 = arith.constant 0 : index
    %c0_0 = arith.constant 0 : index
    %0 = vector.load %arg1[%c0, %c0_0] : memref<16x3136xbf16, #tpu.memory_space<vmem>>, vector<16x3136xbf16>
    %c0_1 = arith.constant 0 : index
    %c0_2 = arith.constant 0 : index
    %1 = vector.load %arg2[%c0_1, %c0_2] : memref<3136x512xbf16, #tpu.memory_space<vmem>>, vector<3136x512xbf16>
    %cst = arith.constant dense<0.000000e+00> : vector<16x512xf32>
    %2 = tpu.matmul %0, %1, %cst {dimension_numbers = #tpu.dot_dimension_numbers<[1], [0], [0], [1], [0, 0, 1, 1], [], []>} : vector<16x3136xbf16>, vector<3136x512xbf16>, vector<16x512xf32> -> vector<16x512xf32>
    %c0_3 = arith.constant 0 : index
    %c0_4 = arith.constant 0 : index
    %3 = vector.load %arg3[%c0_3, %c0_4] : memref<1x512xf32, #tpu.memory_space<vmem>>, vector<1x512xf32>
    %4 = vector.broadcast %3 : vector<1x512xf32> to vector<16x512xf32>
    %5 = arith.addf %2, %4 : vector<16x512xf32>
    %cst_5 = arith.constant 0.000000e+00 : f32
    %6 = vector.broadcast %cst_5 : f32 to vector<16x512xf32>
    %7 = arith.maximumf %5, %6 : vector<16x512xf32>
    %8 = arith.truncf %7 : vector<16x512xf32> to vector<16x512xbf16>
    %c0_6 = arith.constant 0 : index
    %c0_7 = arith.constant 0 : index
    %9 = vector.load %arg4[%c0_6, %c0_7] : memref<512x128xbf16, #tpu.memory_space<vmem>>, vector<512x128xbf16>
    %cst_8 = arith.constant dense<0.000000e+00> : vector<16x128xf32>
    %10 = tpu.matmul %8, %9, %cst_8 {dimension_numbers = #tpu.dot_dimension_numbers<[1], [0], [0], [1], [0, 0, 1, 1], [], []>} : vector<16x512xbf16>, vector<512x128xbf16>, vector<16x128xf32> -> vector<16x128xf32>
    %c0_9 = arith.constant 0 : index
    %c0_10 = arith.constant 0 : index
    %11 = vector.load %arg5[%c0_9, %c0_10] : memref<1x128xf32, #tpu.memory_space<vmem>>, vector<1x128xf32>
    %12 = vector.broadcast %11 : vector<1x128xf32> to vector<16x128xf32>
    %13 = arith.addf %10, %12 : vector<16x128xf32>
    %c0_11 = arith.constant 0 : index
    %c0_12 = arith.constant 0 : index
    %14 = vector.load %arg6[%c0_11, %c0_12] : memref<16x128xf32, #tpu.memory_space<vmem>>, vector<16x128xf32>
    tpu.vector_store %arg6[%c0_11, %c0_12], %13 {strides = array<i32>} : memref<16x128xf32, #tpu.memory_space<vmem>>, vector<16x128xf32>,
    return
  }
  func.func @transform_0(%arg0: i32) -> (i32, i32) {
    %c0_i32 = arith.constant 0 : i32
    %c0_i32_0 = arith.constant 0 : i32
    return %arg0, %c0_i32 : i32, i32
  }
  func.func @transform_1(%arg0: i32) -> (i32, i32) {
    %c0_i32 = arith.constant 0 : i32
    %c0_i32_0 = arith.constant 0 : i32
    %c0_i32_1 = arith.constant 0 : i32
    return %c0_i32, %c0_i32_0 : i32, i32
  }
  func.func @transform_2(%arg0: i32) -> (i32, i32) {
    %c0_i32 = arith.constant 0 : i32
    %c0_i32_0 = arith.constant 0 : i32
    %c0_i32_1 = arith.constant 0 : i32
    return %c0_i32, %c0_i32_0 : i32, i32
  }
  func.func @transform_3(%arg0: i32) -> (i32, i32) {
    %c0_i32 = arith.constant 0 : i32
    %c0_i32_0 = arith.constant 0 : i32
    %c0_i32_1 = arith.constant 0 : i32
    return %c0_i32, %c0_i32_0 : i32, i32
  }
  func.func @transform_4(%arg0: i32) -> (i32, i32) {
    %c0_i32 = arith.constant 0 : i32
    %c0_i32_0 = arith.constant 0 : i32
    %c0_i32_1 = arith.constant 0 : i32
    return %c0_i32, %c0_i32_0 : i32, i32
  }
  func.func @transform_5(%arg0: i32) -> (i32, i32) {
    %c0_i32 = arith.constant 0 : i32
    %c0_i32_0 = arith.constant 0 : i32
    return %arg0, %c0_i32 : i32, i32
  }
}

</mosaic_0001>

<bundles_post_ra>
// kernel: qnetwork_forward.4
= control target key start
LH: loop header
LB: loop body
LE: loop exit
PB: predicated region body
PF: predicated region fallthrough
CT: control target
= control target key end

     0   :  { %s2230_s12 = smov 0   ;;  %s2232_s13 = smov 0   ;;  %s2781_s0 = inlined_call_operand.vmem [shape: bf16[800,256], index: 0, kind: input, shape index: {}]   ;;  %s2782_s1 = inlined_call_operand.vmem [shape: bf16[256,32], index: 1, kind: input, shape index: {}]   ;;  %s2783_s2 = inlined_call_operand.vmem [shape: f32[1,32], index: 2, kind: input, shape index: {}]   ;;  %s2784_s3 = inlined_call_operand.vmem [shape: bf16[800,32], index: 3, kind: output, shape index: {}]  }
   0x1   :  { %s2234_s14 = smov 0  }
   0x2 LB: > { %s2243_s15 = sadd.s32 4294967295, %s2176_s14   ;;  %s2245_s16 = sadd.s32 1, %s2176_s14   ;;  %s2176_s14 = sphi %s2234_s14, %s2793_s14   ;;  %s2172_s13 = sphi %s2232_s13, %s2792_s13   ;;  %s2168_s12 = sphi %s2230_s12, %s2791_s12  }
   0x3   : > { %s85_s17 = ssub.s32 %s2176_s14, %s2245_s16  ;;  %s88_s18 = sadd.s32 1, %s2172_s13 }
   0x4   : > { %p86_p0 = scmp.eq.s32.totalorder %s85_s17, 0  ;;  %p98_p1 = scmp.ne.s32.totalorder %s2172_s13, %s2168_s12 }
   0x5   : > { %p99_p2 = scmp.eq.s32.totalorder %s2243_s15, 1  ;;  %p1590_p3 = scmp.ge.s32.totalorder %s2176_s14, 1 }
   0x6   : > { %s2253_s19 = scalar_select %p86_p0, %s2172_s13, %s88_s18  }
   0x7   : > { %p2255_p4 = por %p99_p2, %p98_p1  ;;  %p149_p5 = scmp.lt.s32.totalorder %s2176_s14, 3 }
   0x9   : > { %p150_p6 = pnand %p1590_p3, %p149_p5 }
   0xa   : > { %s2278_s6 = sshll.u32 (!%p150_p6), %s2243_s15, 6  ;;  %s175_s18 = sand.u32 (!%p150_p6), 1, %s2168_s12  }
   0xb   : > { %153 = sbr.rel (%p150_p6) target bundleno = 501 (0x1f5), region = 32  ;;  %p184_p7 = scmp.lt.s32.totalorder (!%p150_p6), %s2278_s6, 99 }
  0x10   : > { %v2004_v0 = vld [vmem:[%s2782_s1 + $0x38] sm:$0xff]  ;;  %v2003_v2 = vld [vmem:[%s2782_s1 + $0x30] sm:$0xff]  ;;  %v2002_v4 = vld [vmem:[%s2782_s1 + $0x28] sm:$0xff]  ;;  %s185_s21 = scalar_select %p184_p7, %s2278_s6, 99  ;;  %vm1182_vm0 = vcmask 257024  }
  0x11   : > { %v2012_v1 = vld [vmem:[%s2782_s1 + $0x78] sm:$0xff]  ;;  %716 = vmatpush.bf16.msra.mxu0 %v2004_v0  ;;  %2016 = vmatpush.bf16.msra.mxu2 %v2004_v0  ;;  %v2011_v3 = vld [vmem:[%s2782_s1 + $0x70] sm:$0xff]  ;;  %v2010_v5 = vld [vmem:[%s2782_s1 + $0x68] sm:$0xff]  ;;  %s1255_s24 = ssub.s32 (%p2255_p4), 100, %s2278_s6  ;;  %s2013_s25 = sshll.u32 (%p2255_p4), %s2243_s15, 8 }
  0x12   : > { %885 = vmatpush.bf16.msra.mxu1 %v2012_v1  ;;  %2024 = vmatpush.bf16.msra.mxu3 %v2012_v1  ;;  %v2001_v6 = vld [vmem:[%s2782_s1 + $0x20] sm:$0xff]  ;;  %v2000_v8 = vld [vmem:[%s2782_s1 + $0x18] sm:$0xff]  ;;  %v1999_v10 = vld [vmem:[%s2782_s1 + $0x10] sm:$0xff]  ;;  %s1932_s26 = sshll.u32 %s185_s21, 3  ;;  %s1591_s21 = sshll.u32 %s175_s18, 8 }
  0x13   : > { %v2009_v7 = vld [vmem:[%s2782_s1 + $0x60] sm:$0xff]  ;;  %v2008_v9 = vld [vmem:[%s2782_s1 + $0x58] sm:$0xff]  ;;  %v2007_v11 = vld [vmem:[%s2782_s1 + $0x50] sm:$0xff]  ;;  %s2306_s4 = scalar_lea.vmem %s2781_s0, %s1932_s26  ;;  %s2397_s12 = scalar_lea.vmem [#allocation2], %s1591_s21  }
  0x14   : > { %v1998_v12 = vld [vmem:[%s2782_s1 + $0x8] sm:$0xff]  ;;  %v1997_v14 = vld [vmem:[%s2782_s1] sm:$0xff]  ;;  %v1605_v28 = vld [vmem:[%s2306_s4 + $0x10] sm:$0xf]  ;;  %p1256_p8 = scmp.lt.s32.totalorder (%p2255_p4), %s1255_s24, 64  ;;  %s2646_s28 = scalar_lea.vmem (%p2255_p4), %s2784_s3, %s2013_s25  }
  0x15   : > { %717 = vmatpush.bf16.msra.mxu0 %v2003_v2  ;;  %2017 = vmatpush.bf16.msra.mxu2 %v2003_v2  ;;  %v2006_v13 = vld [vmem:[%s2782_s1 + $0x48] sm:$0xff]  ;;  %v2005_v15 = vld [vmem:[%s2782_s1 + $0x40] sm:$0xff]  ;;  %v1936_v29 = vld [vmem:[%s2306_s4 + $0x14] sm:$0xf0] }
  0x16   : > { %886 = vmatpush.bf16.msra.mxu1 %v2011_v3  ;;  %2025 = vmatpush.bf16.msra.mxu3 %v2011_v3  ;;  %v1597_v16 = vld [vmem:[%s2306_s4] sm:$0xf]  ;;  %v1934_v17 = vld [vmem:[%s2306_s4 + $0x4] sm:$0xf0]  ;;  %v1933_v20 = vld [vmem:[%s2306_s4 + $0x4] sm:$0xf]  ;;  %v1606_v36 = vor.u32 %v1936_v29, %v1605_v28 }
  0x17   : > { %v1725_v18 = vld [vmem:[%s2306_s4 + $0x100] sm:$0xf]  ;;  %v1966_v19 = vld [vmem:[%s2306_s4 + $0x104] sm:$0xf0]  ;;  %v1599_v21 = vld [vmem:[%s2306_s4 + $0x8] sm:$0xf0]  ;;  %v1598_v24 = vor.u32 %v1934_v17, %v1597_v16 }
  0x18   : > { %v1965_v22 = vld [vmem:[%s2306_s4 + $0x104] sm:$0xf]  ;;  %v1727_v23 = vld [vmem:[%s2306_s4 + $0x108] sm:$0xf0]  ;;  %v1726_v25 = vor.u32 %v1966_v19, %v1725_v18  ;;  %v1602_v26 = vor.u32 %v1933_v20, %v1599_v21  ;;  %v1733_v30 = vld [vmem:[%s2306_s4 + $0x110] sm:$0xf] }
  0x19   : > { %718 = vmatpush.bf16.msra.mxu0 %v2002_v4  ;;  %2018 = vmatpush.bf16.msra.mxu2 %v2002_v4  ;;  %v1730_v27 = vor.u32 %v1965_v22, %v1727_v23  ;;  %v1968_v31 = vld [vmem:[%s2306_s4 + $0x114] sm:$0xf0]  ;;  %v1935_v32 = vld [vmem:[%s2306_s4 + $0x14] sm:$0xf]  ;;  %v1607_v33 = vld [vmem:[%s2306_s4 + $0x18] sm:$0xf0] }
  0x1a   : > { %887 = vmatpush.bf16.msra.mxu1 %v2010_v5  ;;  %2026 = vmatpush.bf16.msra.mxu3 %v2010_v5  ;;  %v1967_v34 = vld [vmem:[%s2306_s4 + $0x114] sm:$0xf]  ;;  %v1735_v35 = vld [vmem:[%s2306_s4 + $0x118] sm:$0xf0]  ;;  %v1734_v37 = vor.u32 %v1968_v31, %v1733_v30  ;;  %v1610_v38 = vor.u32 %v1935_v32, %v1607_v33  ;;  %v1613_v40 = vld [vmem:[%s2306_s4 + $0x20] sm:$0xf] }
  0x1b   : > { %v1738_v39 = vor.u32 %v1967_v34, %v1735_v35  ;;  %v1938_v41 = vld [vmem:[%s2306_s4 + $0x24] sm:$0xf0]  ;;  %v1741_v42 = vld [vmem:[%s2306_s4 + $0x120] sm:$0xf]  ;;  %v1937_v44 = vld [vmem:[%s2306_s4 + $0x24] sm:$0xf] }
  0x1c   : > { %v1970_v43 = vld [vmem:[%s2306_s4 + $0x124] sm:$0xf0]  ;;  %v1615_v45 = vld [vmem:[%s2306_s4 + $0x28] sm:$0xf0]  ;;  %v1969_v46 = vld [vmem:[%s2306_s4 + $0x124] sm:$0xf]  ;;  %v1614_v48 = vor.u32 %v1938_v41, %v1613_v40 }
  0x1d   : > { %719 = vmatpush.bf16.msra.mxu0 %v2001_v6  ;;  %2019 = vmatpush.bf16.msra.mxu2 %v2001_v6  ;;  %v1743_v47 = vld [vmem:[%s2306_s4 + $0x128] sm:$0xf0]  ;;  %v1742_v49 = vor.u32 %v1970_v43, %v1741_v42  ;;  %v1618_v50 = vor.u32 %v1937_v44, %v1615_v45  ;;  %v1621_v52 = vld [vmem:[%s2306_s4 + $0x30] sm:$0xf]  ;;  %v1940_v53 = vld [vmem:[%s2306_s4 + $0x34] sm:$0xf0] }
  0x1e   : > { %888 = vmatpush.bf16.msra.mxu1 %v2009_v7  ;;  %2027 = vmatpush.bf16.msra.mxu3 %v2009_v7  ;;  %v1746_v51 = vor.u32 %v1969_v46, %v1743_v47  ;;  %v1749_v54 = vld [vmem:[%s2306_s4 + $0x130] sm:$0xf]  ;;  %v1972_v55 = vld [vmem:[%s2306_s4 + $0x134] sm:$0xf0]  ;;  %v1939_v56 = vld [vmem:[%s2306_s4 + $0x34] sm:$0xf]  ;;  %v1622_v60 = vor.u32 %v1940_v53, %v1621_v52 }
  0x1f   : > { %v1623_v57 = vld [vmem:[%s2306_s4 + $0x38] sm:$0xf0]  ;;  %v1971_v58 = vld [vmem:[%s2306_s4 + $0x134] sm:$0xf]  ;;  %v1750_v61 = vor.u32 %v1972_v55, %v1749_v54  ;;  %v1629_v0 = vld [vmem:[%s2306_s4 + $0x40] sm:$0xf] }
  0x20   : > { %v1751_v59 = vld [vmem:[%s2306_s4 + $0x138] sm:$0xf0]  ;;  %v1626_v62 = vor.u32 %v1939_v56, %v1623_v57  ;;  %v1942_v1 = vld [vmem:[%s2306_s4 + $0x44] sm:$0xf0]  ;;  %v1757_v2 = vld [vmem:[%s2306_s4 + $0x140] sm:$0xf] }
  0x21   : > { %720 = vmatpush.bf16.msra.mxu0 %v2000_v8  ;;  %2020 = vmatpush.bf16.msra.mxu2 %v2000_v8  ;;  %v1754_v63 = vor.u32 %v1971_v58, %v1751_v59  ;;  %v1974_v3 = vld [vmem:[%s2306_s4 + $0x144] sm:$0xf0]  ;;  %v1941_v4 = vld [vmem:[%s2306_s4 + $0x44] sm:$0xf]  ;;  %v1631_v5 = vld [vmem:[%s2306_s4 + $0x48] sm:$0xf0]  ;;  %v1630_v8 = vor.u32 %v1942_v1, %v1629_v0 }
  0x22   : > { %889 = vmatpush.bf16.msra.mxu1 %v2008_v9  ;;  %2028 = vmatpush.bf16.msra.mxu3 %v2008_v9  ;;  %v1973_v6 = vld [vmem:[%s2306_s4 + $0x144] sm:$0xf]  ;;  %v1759_v7 = vld [vmem:[%s2306_s4 + $0x148] sm:$0xf0]  ;;  %v1758_v9 = vor.u32 %v1974_v3, %v1757_v2  ;;  %v1943_v16 = vld [vmem:[%s2306_s4 + $0x54] sm:$0xf] }
  0x23   : > { %v1639_v17 = vld [vmem:[%s2306_s4 + $0x58] sm:$0xf0]  ;;  %v1975_v18 = vld [vmem:[%s2306_s4 + $0x154] sm:$0xf]  ;;  %v1945_v28 = vld [vmem:[%s2306_s4 + $0x64] sm:$0xf] }
  0x24   : > { %v1767_v19 = vld [vmem:[%s2306_s4 + $0x158] sm:$0xf0]  ;;  %v1642_v22 = vor.u32 %v1943_v16, %v1639_v17  ;;  %v1647_v29 = vld [vmem:[%s2306_s4 + $0x68] sm:$0xf0]  ;;  %v1977_v30 = vld [vmem:[%s2306_s4 + $0x164] sm:$0xf] }
  0x25   : > { %721 = vmatpush.bf16.msra.mxu0 %v1999_v10  ;;  %2021 = vmatpush.bf16.msra.mxu2 %v1999_v10  ;;  %v1634_v10 = vor.u32 %v1941_v4, %v1631_v5  ;;  %v1770_v23 = vor.u32 %v1975_v18, %v1767_v19  ;;  %v1775_v31 = vld [vmem:[%s2306_s4 + $0x168] sm:$0xf0]  ;;  %v1650_v34 = vor.u32 %v1945_v28, %v1647_v29  ;;  %v1947_v40 = vld [vmem:[%s2306_s4 + $0x74] sm:$0xf]  ;;  %v1655_v41 = vld [vmem:[%s2306_s4 + $0x78] sm:$0xf0] }
  0x26   : > { %890 = vmatpush.bf16.msra.mxu1 %v2007_v11  ;;  %2029 = vmatpush.bf16.msra.mxu3 %v2007_v11  ;;  %v1762_v11 = vor.u32 %v1973_v6, %v1759_v7  ;;  %v1778_v35 = vor.u32 %v1977_v30, %v1775_v31  ;;  %v1979_v42 = vld [vmem:[%s2306_s4 + $0x174] sm:$0xf]  ;;  %v1783_v43 = vld [vmem:[%s2306_s4 + $0x178] sm:$0xf0]  ;;  %v1658_v46 = vor.u32 %v1947_v40, %v1655_v41  ;;  %v1982_v52 = vld [vmem:[%s2306_s4 + $0x184] sm:$0xf0] }
  0x27   : > { %v1786_v47 = vor.u32 %v1979_v42, %v1783_v43  ;;  %v1949_v53 = vld [vmem:[%s2306_s4 + $0x84] sm:$0xf]  ;;  %v1663_v54 = vld [vmem:[%s2306_s4 + $0x88] sm:$0xf0]  ;;  %v1951_v16 = vld [vmem:[%s2306_s4 + $0x94] sm:$0xf] }
  0x28   : > { %v1981_v55 = vld [vmem:[%s2306_s4 + $0x184] sm:$0xf]  ;;  %v1791_v56 = vld [vmem:[%s2306_s4 + $0x188] sm:$0xf0]  ;;  %v1671_v17 = vld [vmem:[%s2306_s4 + $0x98] sm:$0xf0] }
  0x29   : > { %722 = vmatpush.bf16.msra.mxu0 %v1998_v12  ;;  %2022 = vmatpush.bf16.msra.mxu2 %v1998_v12  ;;  %v1637_v12 = vld [vmem:[%s2306_s4 + $0x50] sm:$0xf]  ;;  %v1674_v29 = vor.u32 %v1951_v16, %v1671_v17 }
  0x2a   : > { %891 = vmatpush.bf16.msra.mxu1 %v2006_v13  ;;  %2030 = vmatpush.bf16.msra.mxu3 %v2006_v13  ;;  %v1944_v13 = vld [vmem:[%s2306_s4 + $0x54] sm:$0xf0] }
  0x2b   : > { %v1638_v20 = vor.u32 %v1944_v13, %v1637_v12  ;;  %v1952_v13 = vld [vmem:[%s2306_s4 + $0x94] sm:$0xf0] }
  0x2d   : > { %723 = vmatpush.bf16.msra.mxu0 %v1997_v14  ;;  %2023 = vmatpush.bf16.msra.mxu2 %v1997_v14  ;;  %v1765_v14 = vld [vmem:[%s2306_s4 + $0x150] sm:$0xf] }
  0x2e   : > { %892 = vmatpush.bf16.msra.mxu1 %v2005_v15  ;;  %2031 = vmatpush.bf16.msra.mxu3 %v2005_v15  ;;  %v1976_v15 = vld [vmem:[%s2306_s4 + $0x154] sm:$0xf0] }
  0x2f   : > { %v1766_v21 = vor.u32 %v1976_v15, %v1765_v14  ;;  %v1797_v14 = vld [vmem:[%s2306_s4 + $0x190] sm:$0xf]  ;;  %v1984_v15 = vld [vmem:[%s2306_s4 + $0x194] sm:$0xf0] }
  0x30   : > { %724 = vmatmul.bf16.vlgmr.msra.gmra.mxu0 %v1598_v24  ;;  %804 = vmatmul.bf16.vlgmr.msra.gmra.mxu2 %v1726_v25  ;;  %v1645_v24 = vld [vmem:[%s2306_s4 + $0x60] sm:$0xf]  ;;  %v1946_v25 = vld [vmem:[%s2306_s4 + $0x64] sm:$0xf0] }
  0x31   : > { %893 = vmatmul.bf16.vlgmr.msra.gmra.mxu1 %v1602_v26  ;;  %973 = vmatmul.bf16.vlgmr.msra.gmra.mxu3 %v1730_v27  ;;  %v1773_v26 = vld [vmem:[%s2306_s4 + $0x160] sm:$0xf]  ;;  %v1978_v27 = vld [vmem:[%s2306_s4 + $0x164] sm:$0xf0]  ;;  %v1646_v32 = vor.u32 %v1946_v25, %v1645_v24 }
  0x32   : > { %v1774_v33 = vor.u32 %v1978_v27, %v1773_v26  ;;  %v1798_v27 = vor.u32 %v1984_v15, %v1797_v14 }
  0x40   : > { %729 = vmatmul.bf16.gmra.mxu0 %v1606_v36  ;;  %809 = vmatmul.bf16.gmra.mxu2 %v1734_v37  ;;  %v1653_v36 = vld [vmem:[%s2306_s4 + $0x70] sm:$0xf]  ;;  %v1948_v37 = vld [vmem:[%s2306_s4 + $0x74] sm:$0xf0] }
  0x41   : > { %898 = vmatmul.bf16.gmra.mxu1 %v1610_v38  ;;  %978 = vmatmul.bf16.gmra.mxu3 %v1738_v39  ;;  %v1781_v38 = vld [vmem:[%s2306_s4 + $0x170] sm:$0xf]  ;;  %v1980_v39 = vld [vmem:[%s2306_s4 + $0x174] sm:$0xf0]  ;;  %v1654_v44 = vor.u32 %v1948_v37, %v1653_v36 }
  0x42   : > { %v1782_v45 = vor.u32 %v1980_v39, %v1781_v38 }
  0x50   : > { %734 = vmatmul.bf16.gmra.mxu0 %v1614_v48  ;;  %814 = vmatmul.bf16.gmra.mxu2 %v1742_v49  ;;  %v2384_v48 = vld [vmem:[%s2783_s2] ss:$0 sm:$0xff] }
  0x51   : > { %903 = vmatmul.bf16.gmra.mxu1 %v1618_v50  ;;  %983 = vmatmul.bf16.gmra.mxu3 %v1746_v51  ;;  %v1661_v49 = vld [vmem:[%s2306_s4 + $0x80] sm:$0xf]  ;;  %v1950_v50 = vld [vmem:[%s2306_s4 + $0x84] sm:$0xf0] }
  0x52   : > { %v1789_v51 = vld [vmem:[%s2306_s4 + $0x180] sm:$0xf]  ;;  %v1662_v57 = vor.u32 %v1950_v50, %v1661_v49  ;;  %v1954_v50 = vld [vmem:[%s2306_s4 + $0xa4] sm:$0xf0] }
  0x53   : > { %v1790_v58 = vor.u32 %v1982_v52, %v1789_v51  ;;  %v1805_v51 = vld [vmem:[%s2306_s4 + $0x1a0] sm:$0xf]  ;;  %v1986_v52 = vld [vmem:[%s2306_s4 + $0x1a4] sm:$0xf0] }
  0x60   : > { %739 = vmatmul.bf16.gmra.mxu0 %v1622_v60  ;;  %819 = vmatmul.bf16.gmra.mxu2 %v1750_v61  ;;  %v1666_v60 = vor.u32 %v1949_v53, %v1663_v54  ;;  %v1794_v61 = vor.u32 %v1981_v55, %v1791_v56  ;;  %v1953_v53 = vld [vmem:[%s2306_s4 + $0xa4] sm:$0xf]  ;;  %v1679_v54 = vld [vmem:[%s2306_s4 + $0xa8] sm:$0xf0] }
  0x61   : > { %908 = vmatmul.bf16.gmra.mxu1 %v1626_v62  ;;  %988 = vmatmul.bf16.gmra.mxu3 %v1754_v63 }
  0x70   : > { %744 = vmatmul.bf16.gmra.mxu0 %v1630_v8  ;;  %824 = vmatmul.bf16.gmra.mxu2 %v1758_v9 }
  0x71   : > { %913 = vmatmul.bf16.gmra.mxu1 %v1634_v10  ;;  %993 = vmatmul.bf16.gmra.mxu3 %v1762_v11  ;;  %v1669_v10 = vld [vmem:[%s2306_s4 + $0x90] sm:$0xf] }
  0x72   : > { %v1670_v26 = vor.u32 %v1952_v13, %v1669_v10 }
  0x80   : > { %749 = vmatmul.bf16.gmra.mxu0 %v1638_v20  ;;  %829 = vmatmul.bf16.gmra.mxu2 %v1766_v21  ;;  %v1983_v20 = vld [vmem:[%s2306_s4 + $0x194] sm:$0xf]  ;;  %v1799_v21 = vld [vmem:[%s2306_s4 + $0x198] sm:$0xf0] }
  0x81   : > { %918 = vmatmul.bf16.gmra.mxu1 %v1642_v22  ;;  %998 = vmatmul.bf16.gmra.mxu3 %v1770_v23  ;;  %v1802_v30 = vor.u32 %v1983_v20, %v1799_v21 }
  0x90   : > { %754 = vmatmul.bf16.gmra.mxu0 %v1646_v32  ;;  %834 = vmatmul.bf16.gmra.mxu2 %v1774_v33 }
  0x91   : > { %923 = vmatmul.bf16.gmra.mxu1 %v1650_v34  ;;  %1003 = vmatmul.bf16.gmra.mxu3 %v1778_v35 }
  0xa0   : > { %759 = vmatmul.bf16.gmra.mxu0 %v1654_v44  ;;  %839 = vmatmul.bf16.gmra.mxu2 %v1782_v45 }
  0xa1   : > { %928 = vmatmul.bf16.gmra.mxu1 %v1658_v46  ;;  %1008 = vmatmul.bf16.gmra.mxu3 %v1786_v47  ;;  %v1677_v46 = vld [vmem:[%s2306_s4 + $0xa0] sm:$0xf] }
  0xad   : > { %v725_v59 = vpop.f32.mrf.mxu0 }
  0xae   : > { %v726_v62 = vadd.f32 %v2384_v48, %v725_v59  ;;  %v894_v63 = vpop.f32.mrf.mxu1 }
  0xb0   : > { %v895_v0 = vadd.f32 %v894_v63, %v726_v62  ;;  %764 = vmatmul.bf16.gmra.mxu0 %v1662_v57  ;;  %844 = vmatmul.bf16.gmra.mxu2 %v1790_v58  ;;  %v1985_v57 = vld [vmem:[%s2306_s4 + $0x1a4] sm:$0xf]  ;;  %v1807_v58 = vld [vmem:[%s2306_s4 + $0x1a8] sm:$0xf0]  ;;  %v1678_v63 = vor.u32 %v1954_v50, %v1677_v46 }
  0xb1   : > { %933 = vmatmul.bf16.gmra.mxu1 %v1666_v60  ;;  %1013 = vmatmul.bf16.gmra.mxu3 %v1794_v61 }
  0xb2   : > { %v1054_v1 = vmax.f32 %v895_v0, 0.0  ;;  %v1806_v0 = vor.u32 %v1986_v52, %v1805_v51 }
  0xb3   : > { %v805_v2 = vpop.f32.mrf.mxu2 }
  0xb4   : > { %v1118_v3 = vpack.c.bf16 %v1054_v1, %v1054_v1  ;;  %v806_v4 = vadd.f32 %v2384_v48, %v805_v2  ;;  %v974_v5 = vpop.f32.mrf.mxu3  ;;  %v1682_v2 = vor.u32 %v1953_v53, %v1679_v54 }
  0xb5   : > { %v727_v6 = vpop.f32.mrf.mxu0 }
  0xb6   : > { %1183 = vst.msk [vmem:[%s2397_s12] sm:$0xf] %vm1182_vm0, %v1118_v3  ;;  %v975_v7 = vadd.f32 %v974_v5, %v806_v4  ;;  %v728_v8 = vadd.f32 %v2384_v48, %v727_v6  ;;  %v896_v9 = vpop.f32.mrf.mxu1  ;;  %v1810_v3 = vor.u32 %v1985_v57, %v1807_v58 }
  0xb8   : > { %v1086_v11 = vmax.f32 %v975_v7, 0.0  ;;  %v897_v12 = vadd.f32 %v896_v9, %v728_v8 }
  0xba   : > { %v1150_v18 = vpack.c.bf16 %v1086_v11, %v1086_v11  ;;  %v1055_v19 = vmax.f32 %v897_v12, 0.0 }
  0xbb   : > { %v807_v22 = vpop.f32.mrf.mxu2 }
  0xbc   : > { %1215 = vst.msk [vmem:[%s2397_s12 + $0x80] sm:$0xf] %vm1182_vm0, %v1150_v18  ;;  %v1119_v23 = vpack.c.bf16 %v1055_v19, %v1055_v19  ;;  %v808_v24 = vadd.f32 %v2384_v48, %v807_v22  ;;  %v976_v25 = vpop.f32.mrf.mxu3  ;;  %v1685_v19 = vld [vmem:[%s2306_s4 + $0xb0] sm:$0xf]  ;;  %v1956_v22 = vld [vmem:[%s2306_s4 + $0xb4] sm:$0xf0] }
  0xbd   : > { %v730_v28 = vpop.f32.mrf.mxu0 }
  0xbe   : > { %1184 = vst.msk [vmem:[%s2397_s12 + $0x4] sm:$0xf] %vm1182_vm0, %v1119_v23  ;;  %v977_v31 = vadd.f32 %v976_v25, %v808_v24  ;;  %v731_v32 = vadd.f32 %v2384_v48, %v730_v28  ;;  %v899_v33 = vpop.f32.mrf.mxu1  ;;  %v1813_v23 = vld [vmem:[%s2306_s4 + $0x1b0] sm:$0xf]  ;;  %v1988_v24 = vld [vmem:[%s2306_s4 + $0x1b4] sm:$0xf0] }
  0xbf   : > { %v1955_v25 = vld [vmem:[%s2306_s4 + $0xb4] sm:$0xf] }
  0xc0   : > { %v1087_v34 = vmax.f32 %v977_v31, 0.0  ;;  %v900_v35 = vadd.f32 %v899_v33, %v731_v32  ;;  %769 = vmatmul.bf16.gmra.mxu0 %v1670_v26  ;;  %849 = vmatmul.bf16.gmra.mxu2 %v1798_v27  ;;  %v1687_v26 = vld [vmem:[%s2306_s4 + $0xb8] sm:$0xf0] }
  0xc1   : > { %938 = vmatmul.bf16.gmra.mxu1 %v1674_v29  ;;  %1018 = vmatmul.bf16.gmra.mxu3 %v1802_v30  ;;  %v1987_v29 = vld [vmem:[%s2306_s4 + $0x1b4] sm:$0xf]  ;;  %v1815_v30 = vld [vmem:[%s2306_s4 + $0x1b8] sm:$0xf0] }
  0xc2   : > { %v1151_v36 = vpack.c.bf16 %v1087_v34, %v1087_v34  ;;  %v1056_v37 = vmax.f32 %v900_v35, 0.0  ;;  %v1686_v35 = vor.u32 %v1956_v22, %v1685_v19 }
  0xc3   : > { %v810_v38 = vpop.f32.mrf.mxu2 }
  0xc4   : > { %1216 = vst.msk [vmem:[%s2397_s12 + $0x84] sm:$0xf] %vm1182_vm0, %v1151_v36  ;;  %v1120_v39 = vpack.c.bf16 %v1056_v37, %v1056_v37  ;;  %v811_v40 = vadd.f32 %v2384_v48, %v810_v38  ;;  %v979_v41 = vpop.f32.mrf.mxu3  ;;  %v1814_v36 = vor.u32 %v1988_v24, %v1813_v23  ;;  %v1690_v38 = vor.u32 %v1955_v25, %v1687_v26 }
  0xc5   : > { %v732_v42 = vpop.f32.mrf.mxu0 }
  0xc6   : > { %1185 = vst.msk [vmem:[%s2397_s12 + $0x8] sm:$0xf] %vm1182_vm0, %v1120_v39  ;;  %v980_v43 = vadd.f32 %v979_v41, %v811_v40  ;;  %v733_v44 = vadd.f32 %v2384_v48, %v732_v42  ;;  %v901_v45 = vpop.f32.mrf.mxu1  ;;  %v1818_v39 = vor.u32 %v1987_v29, %v1815_v30 }
  0xc8   : > { %v1088_v47 = vmax.f32 %v980_v43, 0.0  ;;  %v902_v49 = vadd.f32 %v901_v45, %v733_v44 }
  0xca   : > { %v1152_v55 = vpack.c.bf16 %v1088_v47, %v1088_v47  ;;  %v1057_v56 = vmax.f32 %v902_v49, 0.0 }
  0xcb   : > { %v812_v59 = vpop.f32.mrf.mxu2 }
  0xcc   : > { %1217 = vst.msk [vmem:[%s2397_s12 + $0x88] sm:$0xf] %vm1182_vm0, %v1152_v55  ;;  %v1121_v60 = vpack.c.bf16 %v1057_v56, %v1057_v56  ;;  %v813_v61 = vadd.f32 %v2384_v48, %v812_v59  ;;  %v981_v62 = vpop.f32.mrf.mxu3  ;;  %v1693_v56 = vld [vmem:[%s2306_s4 + $0xc0] sm:$0xf]  ;;  %v1958_v59 = vld [vmem:[%s2306_s4 + $0xc4] sm:$0xf0] }
  0xcd   : > { %v735_v1 = vpop.f32.mrf.mxu0 }
  0xce   : > { %1186 = vst.msk [vmem:[%s2397_s12 + $0xc] sm:$0xf] %vm1182_vm0, %v1121_v60  ;;  %v982_v4 = vadd.f32 %v981_v62, %v813_v61  ;;  %v736_v5 = vadd.f32 %v2384_v48, %v735_v1  ;;  %v904_v6 = vpop.f32.mrf.mxu1  ;;  %v1821_v60 = vld [vmem:[%s2306_s4 + $0x1c0] sm:$0xf]  ;;  %v1990_v61 = vld [vmem:[%s2306_s4 + $0x1c4] sm:$0xf0] }
  0xcf   : > { %v1957_v62 = vld [vmem:[%s2306_s4 + $0xc4] sm:$0xf] }
  0xd0   : > { %v1089_v7 = vmax.f32 %v982_v4, 0.0  ;;  %v905_v8 = vadd.f32 %v904_v6, %v736_v5  ;;  %774 = vmatmul.bf16.gmra.mxu0 %v1678_v63  ;;  %854 = vmatmul.bf16.gmra.mxu2 %v1806_v0  ;;  %v1695_v63 = vld [vmem:[%s2306_s4 + $0xc8] sm:$0xf0] }
  0xd1   : > { %943 = vmatmul.bf16.gmra.mxu1 %v1682_v2  ;;  %1023 = vmatmul.bf16.gmra.mxu3 %v1810_v3  ;;  %v1989_v2 = vld [vmem:[%s2306_s4 + $0x1c4] sm:$0xf]  ;;  %v1823_v3 = vld [vmem:[%s2306_s4 + $0x1c8] sm:$0xf0] }
  0xd2   : > { %v1153_v9 = vpack.c.bf16 %v1089_v7, %v1089_v7  ;;  %v1058_v10 = vmax.f32 %v905_v8, 0.0  ;;  %v1694_v8 = vor.u32 %v1958_v59, %v1693_v56 }
  0xd3   : > { %v815_v11 = vpop.f32.mrf.mxu2 }
  0xd4   : > { %1218 = vst.msk [vmem:[%s2397_s12 + $0x8c] sm:$0xf] %vm1182_vm0, %v1153_v9  ;;  %v1122_v12 = vpack.c.bf16 %v1058_v10, %v1058_v10  ;;  %v816_v13 = vadd.f32 %v2384_v48, %v815_v11  ;;  %v984_v14 = vpop.f32.mrf.mxu3  ;;  %v1822_v9 = vor.u32 %v1990_v61, %v1821_v60  ;;  %v1698_v11 = vor.u32 %v1957_v62, %v1695_v63 }
  0xd5   : > { %v737_v15 = vpop.f32.mrf.mxu0 }
  0xd6   : > { %1187 = vst.msk [vmem:[%s2397_s12 + $0x10] sm:$0xf] %vm1182_vm0, %v1122_v12  ;;  %v985_v16 = vadd.f32 %v984_v14, %v816_v13  ;;  %v738_v17 = vadd.f32 %v2384_v48, %v737_v15  ;;  %v906_v18 = vpop.f32.mrf.mxu1  ;;  %v1826_v12 = vor.u32 %v1989_v2, %v1823_v3 }
  0xd8   : > { %v1090_v20 = vmax.f32 %v985_v16, 0.0  ;;  %v907_v21 = vadd.f32 %v906_v18, %v738_v17 }
  0xda   : > { %v1154_v27 = vpack.c.bf16 %v1090_v20, %v1090_v20  ;;  %v1059_v28 = vmax.f32 %v907_v21, 0.0 }
  0xdb   : > { %v817_v31 = vpop.f32.mrf.mxu2 }
  0xdc   : > { %1219 = vst.msk [vmem:[%s2397_s12 + $0x90] sm:$0xf] %vm1182_vm0, %v1154_v27  ;;  %v1123_v32 = vpack.c.bf16 %v1059_v28, %v1059_v28  ;;  %v818_v33 = vadd.f32 %v2384_v48, %v817_v31  ;;  %v986_v34 = vpop.f32.mrf.mxu3  ;;  %v1701_v28 = vld [vmem:[%s2306_s4 + $0xd0] sm:$0xf]  ;;  %v1960_v31 = vld [vmem:[%s2306_s4 + $0xd4] sm:$0xf0] }
  0xdd   : > { %v740_v37 = vpop.f32.mrf.mxu0 }
  0xde   : > { %1188 = vst.msk [vmem:[%s2397_s12 + $0x14] sm:$0xf] %vm1182_vm0, %v1123_v32  ;;  %v987_v40 = vadd.f32 %v986_v34, %v818_v33  ;;  %v741_v41 = vadd.f32 %v2384_v48, %v740_v37  ;;  %v909_v42 = vpop.f32.mrf.mxu1  ;;  %v1829_v32 = vld [vmem:[%s2306_s4 + $0x1d0] sm:$0xf]  ;;  %v1992_v33 = vld [vmem:[%s2306_s4 + $0x1d4] sm:$0xf0] }
  0xdf   : > { %v1959_v34 = vld [vmem:[%s2306_s4 + $0xd4] sm:$0xf] }
  0xe0   : > { %v1091_v43 = vmax.f32 %v987_v40, 0.0  ;;  %v910_v44 = vadd.f32 %v909_v42, %v741_v41  ;;  %779 = vmatmul.bf16.gmra.mxu0 %v1686_v35  ;;  %859 = vmatmul.bf16.gmra.mxu2 %v1814_v36  ;;  %v1703_v35 = vld [vmem:[%s2306_s4 + $0xd8] sm:$0xf0] }
  0xe1   : > { %948 = vmatmul.bf16.gmra.mxu1 %v1690_v38  ;;  %1028 = vmatmul.bf16.gmra.mxu3 %v1818_v39  ;;  %v1991_v38 = vld [vmem:[%s2306_s4 + $0x1d4] sm:$0xf]  ;;  %v1831_v39 = vld [vmem:[%s2306_s4 + $0x1d8] sm:$0xf0] }
  0xe2   : > { %v1155_v45 = vpack.c.bf16 %v1091_v43, %v1091_v43  ;;  %v1060_v46 = vmax.f32 %v910_v44, 0.0  ;;  %v1702_v44 = vor.u32 %v1960_v31, %v1701_v28 }
  0xe3   : > { %v820_v47 = vpop.f32.mrf.mxu2 }
  0xe4   : > { %1220 = vst.msk [vmem:[%s2397_s12 + $0x94] sm:$0xf] %vm1182_vm0, %v1155_v45  ;;  %v1124_v49 = vpack.c.bf16 %v1060_v46, %v1060_v46  ;;  %v821_v50 = vadd.f32 %v2384_v48, %v820_v47  ;;  %v989_v51 = vpop.f32.mrf.mxu3  ;;  %v1830_v45 = vor.u32 %v1992_v33, %v1829_v32  ;;  %v1706_v47 = vor.u32 %v1959_v34, %v1703_v35 }
  0xe5   : > { %v742_v52 = vpop.f32.mrf.mxu0 }
  0xe6   : > { %1189 = vst.msk [vmem:[%s2397_s12 + $0x18] sm:$0xf] %vm1182_vm0, %v1124_v49  ;;  %v990_v53 = vadd.f32 %v989_v51, %v821_v50  ;;  %v743_v54 = vadd.f32 %v2384_v48, %v742_v52  ;;  %v911_v55 = vpop.f32.mrf.mxu1  ;;  %v1834_v49 = vor.u32 %v1991_v38, %v1831_v39 }
  0xe8   : > { %v1092_v57 = vmax.f32 %v990_v53, 0.0  ;;  %v912_v58 = vadd.f32 %v911_v55, %v743_v54 }
  0xea   : > { %v1156_v0 = vpack.c.bf16 %v1092_v57, %v1092_v57  ;;  %v1061_v1 = vmax.f32 %v912_v58, 0.0 }
  0xeb   : > { %v822_v4 = vpop.f32.mrf.mxu2 }
  0xec   : > { %1221 = vst.msk [vmem:[%s2397_s12 + $0x98] sm:$0xf] %vm1182_vm0, %v1156_v0  ;;  %v1125_v5 = vpack.c.bf16 %v1061_v1, %v1061_v1  ;;  %v823_v6 = vadd.f32 %v2384_v48, %v822_v4  ;;  %v991_v7 = vpop.f32.mrf.mxu3  ;;  %v1709_v1 = vld [vmem:[%s2306_s4 + $0xe0] sm:$0xf]  ;;  %v1962_v4 = vld [vmem:[%s2306_s4 + $0xe4] sm:$0xf0] }
  0xed   : > { %v745_v10 = vpop.f32.mrf.mxu0 }
  0xee   : > { %1190 = vst.msk [vmem:[%s2397_s12 + $0x1c] sm:$0xf] %vm1182_vm0, %v1125_v5  ;;  %v992_v13 = vadd.f32 %v991_v7, %v823_v6  ;;  %v746_v14 = vadd.f32 %v2384_v48, %v745_v10  ;;  %v914_v15 = vpop.f32.mrf.mxu1  ;;  %v1837_v5 = vld [vmem:[%s2306_s4 + $0x1e0] sm:$0xf]  ;;  %v1994_v6 = vld [vmem:[%s2306_s4 + $0x1e4] sm:$0xf0] }
  0xef   : > { %v1961_v7 = vld [vmem:[%s2306_s4 + $0xe4] sm:$0xf] }
  0xf0   : > { %v1093_v16 = vmax.f32 %v992_v13, 0.0  ;;  %v915_v17 = vadd.f32 %v914_v15, %v746_v14  ;;  %784 = vmatmul.bf16.gmra.mxu0 %v1694_v8  ;;  %864 = vmatmul.bf16.gmra.mxu2 %v1822_v9  ;;  %v1711_v8 = vld [vmem:[%s2306_s4 + $0xe8] sm:$0xf0] }
  0xf1   : > { %953 = vmatmul.bf16.gmra.mxu1 %v1698_v11  ;;  %1033 = vmatmul.bf16.gmra.mxu3 %v1826_v12  ;;  %v1993_v11 = vld [vmem:[%s2306_s4 + $0x1e4] sm:$0xf]  ;;  %v1839_v12 = vld [vmem:[%s2306_s4 + $0x1e8] sm:$0xf0] }
  0xf2   : > { %v1157_v18 = vpack.c.bf16 %v1093_v16, %v1093_v16  ;;  %v1062_v19 = vmax.f32 %v915_v17, 0.0  ;;  %v1710_v17 = vor.u32 %v1962_v4, %v1709_v1 }
  0xf3   : > { %v825_v20 = vpop.f32.mrf.mxu2 }
  0xf4   : > { %1222 = vst.msk [vmem:[%s2397_s12 + $0x9c] sm:$0xf] %vm1182_vm0, %v1157_v18  ;;  %v1126_v21 = vpack.c.bf16 %v1062_v19, %v1062_v19  ;;  %v826_v22 = vadd.f32 %v2384_v48, %v825_v20  ;;  %v994_v23 = vpop.f32.mrf.mxu3  ;;  %v1838_v18 = vor.u32 %v1994_v6, %v1837_v5  ;;  %v1714_v20 = vor.u32 %v1961_v7, %v1711_v8 }
  0xf5   : > { %v747_v24 = vpop.f32.mrf.mxu0 }
  0xf6   : > { %1191 = vst.msk [vmem:[%s2397_s12 + $0x20] sm:$0xf] %vm1182_vm0, %v1126_v21  ;;  %v995_v25 = vadd.f32 %v994_v23, %v826_v22  ;;  %v748_v26 = vadd.f32 %v2384_v48, %v747_v24  ;;  %v916_v27 = vpop.f32.mrf.mxu1  ;;  %v1842_v21 = vor.u32 %v1993_v11, %v1839_v12 }
  0xf8   : > { %v1094_v29 = vmax.f32 %v995_v25, 0.0  ;;  %v917_v30 = vadd.f32 %v916_v27, %v748_v26 }
  0xfa   : > { %v1158_v36 = vpack.c.bf16 %v1094_v29, %v1094_v29  ;;  %v1063_v37 = vmax.f32 %v917_v30, 0.0 }
  0xfb   : > { %v827_v40 = vpop.f32.mrf.mxu2 }
  0xfc   : > { %1223 = vst.msk [vmem:[%s2397_s12 + $0xa0] sm:$0xf] %vm1182_vm0, %v1158_v36  ;;  %v1127_v41 = vpack.c.bf16 %v1063_v37, %v1063_v37  ;;  %v828_v42 = vadd.f32 %v2384_v48, %v827_v40  ;;  %v996_v43 = vpop.f32.mrf.mxu3  ;;  %v1717_v37 = vld [vmem:[%s2306_s4 + $0xf0] sm:$0xf]  ;;  %v1964_v40 = vld [vmem:[%s2306_s4 + $0xf4] sm:$0xf0] }
  0xfd   : > { %v750_v46 = vpop.f32.mrf.mxu0 }
  0xfe   : > { %1192 = vst.msk [vmem:[%s2397_s12 + $0x24] sm:$0xf] %vm1182_vm0, %v1127_v41  ;;  %v997_v50 = vadd.f32 %v996_v43, %v828_v42  ;;  %v751_v51 = vadd.f32 %v2384_v48, %v750_v46  ;;  %v919_v52 = vpop.f32.mrf.mxu1  ;;  %v1845_v41 = vld [vmem:[%s2306_s4 + $0x1f0] sm:$0xf]  ;;  %v1996_v42 = vld [vmem:[%s2306_s4 + $0x1f4] sm:$0xf0] }
  0xff   : > { %v1963_v43 = vld [vmem:[%s2306_s4 + $0xf4] sm:$0xf] }
 0x100   : > { %v1095_v53 = vmax.f32 %v997_v50, 0.0  ;;  %v920_v54 = vadd.f32 %v919_v52, %v751_v51  ;;  %789 = vmatmul.bf16.gmra.mxu0 %v1702_v44  ;;  %869 = vmatmul.bf16.gmra.mxu2 %v1830_v45  ;;  %v1719_v44 = vld [vmem:[%s2306_s4 + $0xf8] sm:$0xf0] }
 0x101   : > { %958 = vmatmul.bf16.gmra.mxu1 %v1706_v47  ;;  %1038 = vmatmul.bf16.gmra.mxu3 %v1834_v49  ;;  %v1995_v47 = vld [vmem:[%s2306_s4 + $0x1f4] sm:$0xf]  ;;  %v1847_v49 = vld [vmem:[%s2306_s4 + $0x1f8] sm:$0xf0] }
 0x102   : > { %v1159_v55 = vpack.c.bf16 %v1095_v53, %v1095_v53  ;;  %v1064_v56 = vmax.f32 %v920_v54, 0.0  ;;  %v1718_v54 = vor.u32 %v1964_v40, %v1717_v37 }
 0x103   : > { %v830_v57 = vpop.f32.mrf.mxu2 }
 0x104   : > { %1224 = vst.msk [vmem:[%s2397_s12 + $0xa4] sm:$0xf] %vm1182_vm0, %v1159_v55  ;;  %v1128_v58 = vpack.c.bf16 %v1064_v56, %v1064_v56  ;;  %v831_v59 = vadd.f32 %v2384_v48, %v830_v57  ;;  %v999_v60 = vpop.f32.mrf.mxu3  ;;  %v1846_v55 = vor.u32 %v1996_v42, %v1845_v41  ;;  %v1722_v57 = vor.u32 %v1963_v43, %v1719_v44 }
 0x105   : > { %v752_v61 = vpop.f32.mrf.mxu0 }
 0x106   : > { %1193 = vst.msk [vmem:[%s2397_s12 + $0x28] sm:$0xf] %vm1182_vm0, %v1128_v58  ;;  %v1000_v62 = vadd.f32 %v999_v60, %v831_v59  ;;  %v753_v63 = vadd.f32 %v2384_v48, %v752_v61  ;;  %v921_v0 = vpop.f32.mrf.mxu1  ;;  %v1850_v58 = vor.u32 %v1995_v47, %v1847_v49 }
 0x108   : > { %v1096_v2 = vmax.f32 %v1000_v62, 0.0  ;;  %v922_v3 = vadd.f32 %v921_v0, %v753_v63 }
 0x10a   : > { %v1160_v9 = vpack.c.bf16 %v1096_v2, %v1096_v2  ;;  %v1065_v10 = vmax.f32 %v922_v3, 0.0 }
 0x10b   : > { %v832_v13 = vpop.f32.mrf.mxu2 }
 0x10c   : > { %1225 = vst.msk [vmem:[%s2397_s12 + $0xa8] sm:$0xf] %vm1182_vm0, %v1160_v9  ;;  %v1129_v14 = vpack.c.bf16 %v1065_v10, %v1065_v10  ;;  %v833_v15 = vadd.f32 %v2384_v48, %v832_v13  ;;  %v1001_v16 = vpop.f32.mrf.mxu3 }
 0x10d   : > { %v755_v19 = vpop.f32.mrf.mxu0 }
 0x10e   : > { %1194 = vst.msk [vmem:[%s2397_s12 + $0x2c] sm:$0xf] %vm1182_vm0, %v1129_v14  ;;  %v1002_v22 = vadd.f32 %v1001_v16, %v833_v15  ;;  %v756_v23 = vadd.f32 %v2384_v48, %v755_v19  ;;  %v924_v24 = vpop.f32.mrf.mxu1 }
 0x110   : > { %v1097_v25 = vmax.f32 %v1002_v22, 0.0  ;;  %v925_v26 = vadd.f32 %v924_v24, %v756_v23  ;;  %794 = vmatmul.bf16.gmra.mxu0 %v1710_v17  ;;  %874 = vmatmul.bf16.gmra.mxu2 %v1838_v18 }
 0x111   : > { %963 = vmatmul.bf16.gmra.mxu1 %v1714_v20  ;;  %1043 = vmatmul.bf16.gmra.mxu3 %v1842_v21 }
 0x112   : > { %v1161_v27 = vpack.c.bf16 %v1097_v25, %v1097_v25  ;;  %v1066_v28 = vmax.f32 %v925_v26, 0.0 }
 0x113   : > { %v835_v29 = vpop.f32.mrf.mxu2 }
 0x114   : > { %1226 = vst.msk [vmem:[%s2397_s12 + $0xac] sm:$0xf] %vm1182_vm0, %v1161_v27  ;;  %v1130_v30 = vpack.c.bf16 %v1066_v28, %v1066_v28  ;;  %v836_v31 = vadd.f32 %v2384_v48, %v835_v29  ;;  %v1004_v32 = vpop.f32.mrf.mxu3 }
 0x115   : > { %v757_v33 = vpop.f32.mrf.mxu0 }
 0x116   : > { %1195 = vst.msk [vmem:[%s2397_s12 + $0x30] sm:$0xf] %vm1182_vm0, %v1130_v30  ;;  %v1005_v34 = vadd.f32 %v1004_v32, %v836_v31  ;;  %v758_v35 = vadd.f32 %v2384_v48, %v757_v33  ;;  %v926_v36 = vpop.f32.mrf.mxu1 }
 0x118   : > { %v1098_v38 = vmax.f32 %v1005_v34, 0.0  ;;  %v927_v39 = vadd.f32 %v926_v36, %v758_v35 }
 0x11a   : > { %v1162_v45 = vpack.c.bf16 %v1098_v38, %v1098_v38  ;;  %v1067_v46 = vmax.f32 %v927_v39, 0.0 }
 0x11b   : > { %v837_v50 = vpop.f32.mrf.mxu2 }
 0x11c   : > { %1227 = vst.msk [vmem:[%s2397_s12 + $0xb0] sm:$0xf] %vm1182_vm0, %v1162_v45  ;;  %v1131_v51 = vpack.c.bf16 %v1067_v46, %v1067_v46  ;;  %v838_v52 = vadd.f32 %v2384_v48, %v837_v50  ;;  %v1006_v53 = vpop.f32.mrf.mxu3 }
 0x11d   : > { %v760_v56 = vpop.f32.mrf.mxu0 }
 0x11e   : > { %1196 = vst.msk [vmem:[%s2397_s12 + $0x34] sm:$0xf] %vm1182_vm0, %v1131_v51  ;;  %v1007_v59 = vadd.f32 %v1006_v53, %v838_v52  ;;  %v761_v60 = vadd.f32 %v2384_v48, %v760_v56  ;;  %v929_v61 = vpop.f32.mrf.mxu1 }
 0x120   : > { %v1099_v62 = vmax.f32 %v1007_v59, 0.0  ;;  %v930_v63 = vadd.f32 %v929_v61, %v761_v60  ;;  %799 = vmatmul.bf16.gmra.mxu0 %v1718_v54  ;;  %879 = vmatmul.bf16.gmra.mxu2 %v1846_v55 }
 0x121   : > { %968 = vmatmul.bf16.gmra.mxu1 %v1722_v57  ;;  %1048 = vmatmul.bf16.gmra.mxu3 %v1850_v58 }
 0x122   : > { %v1163_v0 = vpack.c.bf16 %v1099_v62, %v1099_v62  ;;  %v1068_v1 = vmax.f32 %v930_v63, 0.0 }
 0x123   : > { %v840_v2 = vpop.f32.mrf.mxu2 }
 0x124   : > { %1228 = vst.msk [vmem:[%s2397_s12 + $0xb4] sm:$0xf] %vm1182_vm0, %v1163_v0  ;;  %v1132_v3 = vpack.c.bf16 %v1068_v1, %v1068_v1  ;;  %v841_v4 = vadd.f32 %v2384_v48, %v840_v2  ;;  %v1009_v5 = vpop.f32.mrf.mxu3 }
 0x125   : > { %v762_v6 = vpop.f32.mrf.mxu0 }
 0x126   : > { %1197 = vst.msk [vmem:[%s2397_s12 + $0x38] sm:$0xf] %vm1182_vm0, %v1132_v3  ;;  %v1010_v7 = vadd.f32 %v1009_v5, %v841_v4  ;;  %v763_v8 = vadd.f32 %v2384_v48, %v762_v6  ;;  %v931_v9 = vpop.f32.mrf.mxu1 }
 0x128   : > { %v1100_v10 = vmax.f32 %v1010_v7, 0.0  ;;  %v932_v11 = vadd.f32 %v931_v9, %v763_v8 }
 0x12a   : > { %v1164_v12 = vpack.c.bf16 %v1100_v10, %v1100_v10  ;;  %v1069_v13 = vmax.f32 %v932_v11, 0.0 }
 0x12b   : > { %v842_v14 = vpop.f32.mrf.mxu2 }
 0x12c   : > { %1229 = vst.msk [vmem:[%s2397_s12 + $0xb8] sm:$0xf] %vm1182_vm0, %v1164_v12  ;;  %v1133_v15 = vpack.c.bf16 %v1069_v13, %v1069_v13  ;;  %v843_v16 = vadd.f32 %v2384_v48, %v842_v14  ;;  %v1011_v17 = vpop.f32.mrf.mxu3 }
 0x12d   : > { %v765_v18 = vpop.f32.mrf.mxu0 }
 0x12e   : > { %1198 = vst.msk [vmem:[%s2397_s12 + $0x3c] sm:$0xf] %vm1182_vm0, %v1133_v15  ;;  %v1012_v19 = vadd.f32 %v1011_v17, %v843_v16  ;;  %v766_v20 = vadd.f32 %v2384_v48, %v765_v18  ;;  %v934_v21 = vpop.f32.mrf.mxu1 }
 0x130   : > { %v1101_v22 = vmax.f32 %v1012_v19, 0.0  ;;  %v935_v23 = vadd.f32 %v934_v21, %v766_v20 }
 0x132   : > { %v1165_v24 = vpack.c.bf16 %v1101_v22, %v1101_v22  ;;  %v1070_v25 = vmax.f32 %v935_v23, 0.0 }
 0x133   : > { %v845_v26 = vpop.f32.mrf.mxu2 }
 0x134   : > { %1230 = vst.msk [vmem:[%s2397_s12 + $0xbc] sm:$0xf] %vm1182_vm0, %v1165_v24  ;;  %v1134_v27 = vpack.c.bf16 %v1070_v25, %v1070_v25  ;;  %v846_v28 = vadd.f32 %v2384_v48, %v845_v26  ;;  %v1014_v29 = vpop.f32.mrf.mxu3 }
 0x135   : > { %v767_v30 = vpop.f32.mrf.mxu0 }
 0x136   : > { %1199 = vst.msk [vmem:[%s2397_s12 + $0x40] sm:$0xf] %vm1182_vm0, %v1134_v27  ;;  %v1015_v31 = vadd.f32 %v1014_v29, %v846_v28  ;;  %v768_v32 = vadd.f32 %v2384_v48, %v767_v30  ;;  %v936_v33 = vpop.f32.mrf.mxu1 }
 0x138   : > { %v1102_v34 = vmax.f32 %v1015_v31, 0.0  ;;  %v937_v35 = vadd.f32 %v936_v33, %v768_v32 }
 0x13a   : > { %v1166_v36 = vpack.c.bf16 %v1102_v34, %v1102_v34  ;;  %v1071_v37 = vmax.f32 %v937_v35, 0.0 }
 0x13b   : > { %v847_v38 = vpop.f32.mrf.mxu2 }
 0x13c   : > { %1231 = vst.msk [vmem:[%s2397_s12 + $0xc0] sm:$0xf] %vm1182_vm0, %v1166_v36  ;;  %v1135_v39 = vpack.c.bf16 %v1071_v37, %v1071_v37  ;;  %v848_v40 = vadd.f32 %v2384_v48, %v847_v38  ;;  %v1016_v41 = vpop.f32.mrf.mxu3 }
 0x13d   : > { %v770_v42 = vpop.f32.mrf.mxu0 }
 0x13e   : > { %1200 = vst.msk [vmem:[%s2397_s12 + $0x44] sm:$0xf] %vm1182_vm0, %v1135_v39  ;;  %v1017_v43 = vadd.f32 %v1016_v41, %v848_v40  ;;  %v771_v44 = vadd.f32 %v2384_v48, %v770_v42  ;;  %v939_v45 = vpop.f32.mrf.mxu1 }
 0x140   : > { %v1103_v46 = vmax.f32 %v1017_v43, 0.0  ;;  %v940_v47 = vadd.f32 %v939_v45, %v771_v44 }
 0x142   : > { %v1167_v49 = vpack.c.bf16 %v1103_v46, %v1103_v46  ;;  %v1072_v50 = vmax.f32 %v940_v47, 0.0 }
 0x143   : > { %v850_v51 = vpop.f32.mrf.mxu2 }
 0x144   : > { %1232 = vst.msk [vmem:[%s2397_s12 + $0xc4] sm:$0xf] %vm1182_vm0, %v1167_v49  ;;  %v1136_v52 = vpack.c.bf16 %v1072_v50, %v1072_v50  ;;  %v851_v53 = vadd.f32 %v2384_v48, %v850_v51  ;;  %v1019_v54 = vpop.f32.mrf.mxu3 }
 0x145   : > { %v772_v55 = vpop.f32.mrf.mxu0 }
 0x146   : > { %1201 = vst.msk [vmem:[%s2397_s12 + $0x48] sm:$0xf] %vm1182_vm0, %v1136_v52  ;;  %v1020_v56 = vadd.f32 %v1019_v54, %v851_v53  ;;  %v773_v57 = vadd.f32 %v2384_v48, %v772_v55  ;;  %v941_v58 = vpop.f32.mrf.mxu1 }
 0x148   : > { %v1104_v59 = vmax.f32 %v1020_v56, 0.0  ;;  %v942_v60 = vadd.f32 %v941_v58, %v773_v57 }
 0x14a   : > { %v1168_v61 = vpack.c.bf16 %v1104_v59, %v1104_v59  ;;  %v1073_v62 = vmax.f32 %v942_v60, 0.0 }
 0x14b   : > { %v852_v63 = vpop.f32.mrf.mxu2 }
 0x14c   : > { %1233 = vst.msk [vmem:[%s2397_s12 + $0xc8] sm:$0xf] %vm1182_vm0, %v1168_v61  ;;  %v1137_v0 = vpack.c.bf16 %v1073_v62, %v1073_v62  ;;  %v853_v1 = vadd.f32 %v2384_v48, %v852_v63  ;;  %v1021_v2 = vpop.f32.mrf.mxu3 }
 0x14d   : > { %v775_v3 = vpop.f32.mrf.mxu0 }
 0x14e   : > { %1202 = vst.msk [vmem:[%s2397_s12 + $0x4c] sm:$0xf] %vm1182_vm0, %v1137_v0  ;;  %v1022_v4 = vadd.f32 %v1021_v2, %v853_v1  ;;  %v776_v5 = vadd.f32 %v2384_v48, %v775_v3  ;;  %v944_v6 = vpop.f32.mrf.mxu1 }
 0x150   : > { %v1105_v7 = vmax.f32 %v1022_v4, 0.0  ;;  %v945_v8 = vadd.f32 %v944_v6, %v776_v5 }
 0x152   : > { %v1169_v9 = vpack.c.bf16 %v1105_v7, %v1105_v7  ;;  %v1074_v10 = vmax.f32 %v945_v8, 0.0 }
 0x153   : > { %v855_v11 = vpop.f32.mrf.mxu2 }
 0x154   : > { %1234 = vst.msk [vmem:[%s2397_s12 + $0xcc] sm:$0xf] %vm1182_vm0, %v1169_v9  ;;  %v1138_v12 = vpack.c.bf16 %v1074_v10, %v1074_v10  ;;  %v856_v13 = vadd.f32 %v2384_v48, %v855_v11  ;;  %v1024_v14 = vpop.f32.mrf.mxu3 }
 0x155   : > { %v777_v15 = vpop.f32.mrf.mxu0 }
 0x156   : > { %1203 = vst.msk [vmem:[%s2397_s12 + $0x50] sm:$0xf] %vm1182_vm0, %v1138_v12  ;;  %v1025_v16 = vadd.f32 %v1024_v14, %v856_v13  ;;  %v778_v17 = vadd.f32 %v2384_v48, %v777_v15  ;;  %v946_v18 = vpop.f32.mrf.mxu1 }
 0x158   : > { %v1106_v19 = vmax.f32 %v1025_v16, 0.0  ;;  %v947_v20 = vadd.f32 %v946_v18, %v778_v17 }
 0x15a   : > { %v1170_v21 = vpack.c.bf16 %v1106_v19, %v1106_v19  ;;  %v1075_v22 = vmax.f32 %v947_v20, 0.0 }
 0x15b   : > { %v857_v23 = vpop.f32.mrf.mxu2 }
 0x15c   : > { %1235 = vst.msk [vmem:[%s2397_s12 + $0xd0] sm:$0xf] %vm1182_vm0, %v1170_v21  ;;  %v1139_v24 = vpack.c.bf16 %v1075_v22, %v1075_v22  ;;  %v858_v25 = vadd.f32 %v2384_v48, %v857_v23  ;;  %v1026_v26 = vpop.f32.mrf.mxu3 }
 0x15d   : > { %v780_v27 = vpop.f32.mrf.mxu0 }
 0x15e   : > { %1204 = vst.msk [vmem:[%s2397_s12 + $0x54] sm:$0xf] %vm1182_vm0, %v1139_v24  ;;  %v1027_v28 = vadd.f32 %v1026_v26, %v858_v25  ;;  %v781_v29 = vadd.f32 %v2384_v48, %v780_v27  ;;  %v949_v30 = vpop.f32.mrf.mxu1 }
 0x160   : > { %v1107_v31 = vmax.f32 %v1027_v28, 0.0  ;;  %v950_v32 = vadd.f32 %v949_v30, %v781_v29 }
 0x162   : > { %v1171_v33 = vpack.c.bf16 %v1107_v31, %v1107_v31  ;;  %v1076_v34 = vmax.f32 %v950_v32, 0.0 }
 0x163   : > { %v860_v35 = vpop.f32.mrf.mxu2 }
 0x164   : > { %1236 = vst.msk [vmem:[%s2397_s12 + $0xd4] sm:$0xf] %vm1182_vm0, %v1171_v33  ;;  %v1140_v36 = vpack.c.bf16 %v1076_v34, %v1076_v34  ;;  %v861_v37 = vadd.f32 %v2384_v48, %v860_v35  ;;  %v1029_v38 = vpop.f32.mrf.mxu3  ;;  %v2121_v34 = vld [vmem:[%s2783_s2] ss:$0 sm:$0xff] }
 0x165   : > { %v782_v39 = vpop.f32.mrf.mxu0 }
 0x166   : > { %1205 = vst.msk [vmem:[%s2397_s12 + $0x58] sm:$0xf] %vm1182_vm0, %v1140_v36  ;;  %v1030_v40 = vadd.f32 %v1029_v38, %v861_v37  ;;  %v783_v41 = vadd.f32 %v2384_v48, %v782_v39  ;;  %v951_v42 = vpop.f32.mrf.mxu1 }
 0x168   : > { %v1108_v43 = vmax.f32 %v1030_v40, 0.0  ;;  %v952_v44 = vadd.f32 %v951_v42, %v783_v41 }
 0x16a   : > { %v1172_v45 = vpack.c.bf16 %v1108_v43, %v1108_v43  ;;  %v1077_v46 = vmax.f32 %v952_v44, 0.0 }
 0x16b   : > { %v862_v47 = vpop.f32.mrf.mxu2 }
 0x16c   : > { %1237 = vst.msk [vmem:[%s2397_s12 + $0xd8] sm:$0xf] %vm1182_vm0, %v1172_v45  ;;  %v1141_v49 = vpack.c.bf16 %v1077_v46, %v1077_v46  ;;  %v863_v50 = vadd.f32 %v2384_v48, %v862_v47  ;;  %v1031_v51 = vpop.f32.mrf.mxu3 }
 0x16d   : > { %v785_v52 = vpop.f32.mrf.mxu0 }
 0x16e   : > { %1206 = vst.msk [vmem:[%s2397_s12 + $0x5c] sm:$0xf] %vm1182_vm0, %v1141_v49  ;;  %v1032_v53 = vadd.f32 %v1031_v51, %v863_v50  ;;  %v786_v54 = vadd.f32 %v2384_v48, %v785_v52  ;;  %v954_v55 = vpop.f32.mrf.mxu1 }
 0x170   : > { %v1109_v56 = vmax.f32 %v1032_v53, 0.0  ;;  %v955_v57 = vadd.f32 %v954_v55, %v786_v54 }
 0x172   : > { %v1173_v58 = vpack.c.bf16 %v1109_v56, %v1109_v56  ;;  %v1078_v59 = vmax.f32 %v955_v57, 0.0 }
 0x173   : > { %v865_v60 = vpop.f32.mrf.mxu2 }
 0x174   : > { %1238 = vst.msk [vmem:[%s2397_s12 + $0xdc] sm:$0xf] %vm1182_vm0, %v1173_v58  ;;  %v1142_v61 = vpack.c.bf16 %v1078_v59, %v1078_v59  ;;  %v866_v62 = vadd.f32 %v2384_v48, %v865_v60  ;;  %v1034_v63 = vpop.f32.mrf.mxu3 }
 0x175   : > { %v787_v0 = vpop.f32.mrf.mxu0 }
 0x176   : > { %1207 = vst.msk [vmem:[%s2397_s12 + $0x60] sm:$0xf] %vm1182_vm0, %v1142_v61  ;;  %v1035_v1 = vadd.f32 %v1034_v63, %v866_v62  ;;  %v788_v2 = vadd.f32 %v2384_v48, %v787_v0  ;;  %v956_v3 = vpop.f32.mrf.mxu1 }
 0x178   : > { %v1110_v4 = vmax.f32 %v1035_v1, 0.0  ;;  %v957_v5 = vadd.f32 %v956_v3, %v788_v2 }
 0x17a   : > { %v1174_v6 = vpack.c.bf16 %v1110_v4, %v1110_v4  ;;  %v1079_v7 = vmax.f32 %v957_v5, 0.0 }
 0x17b   : > { %v867_v8 = vpop.f32.mrf.mxu2 }
 0x17c   : > { %1239 = vst.msk [vmem:[%s2397_s12 + $0xe0] sm:$0xf] %vm1182_vm0, %v1174_v6  ;;  %v1143_v9 = vpack.c.bf16 %v1079_v7, %v1079_v7  ;;  %v868_v10 = vadd.f32 %v2384_v48, %v867_v8  ;;  %v1036_v11 = vpop.f32.mrf.mxu3 }
 0x17d   : > { %v790_v12 = vpop.f32.mrf.mxu0 }
 0x17e   : > { %1208 = vst.msk [vmem:[%s2397_s12 + $0x64] sm:$0xf] %vm1182_vm0, %v1143_v9  ;;  %v1037_v13 = vadd.f32 %v1036_v11, %v868_v10  ;;  %v791_v14 = vadd.f32 %v2384_v48, %v790_v12  ;;  %v959_v15 = vpop.f32.mrf.mxu1 }
 0x180   : > { %v1111_v16 = vmax.f32 %v1037_v13, 0.0  ;;  %v960_v17 = vadd.f32 %v959_v15, %v791_v14 }
 0x182   : > { %v1175_v18 = vpack.c.bf16 %v1111_v16, %v1111_v16  ;;  %v1080_v19 = vmax.f32 %v960_v17, 0.0 }
 0x183   : > { %v870_v20 = vpop.f32.mrf.mxu2 }
 0x184   : > { %1240 = vst.msk [vmem:[%s2397_s12 + $0xe4] sm:$0xf] %vm1182_vm0, %v1175_v18  ;;  %v1144_v21 = vpack.c.bf16 %v1080_v19, %v1080_v19  ;;  %v871_v22 = vadd.f32 %v2384_v48, %v870_v20  ;;  %v1039_v23 = vpop.f32.mrf.mxu3 }
 0x185   : > { %v792_v24 = vpop.f32.mrf.mxu0 }
 0x186   : > { %1209 = vst.msk [vmem:[%s2397_s12 + $0x68] sm:$0xf] %vm1182_vm0, %v1144_v21  ;;  %v1040_v25 = vadd.f32 %v1039_v23, %v871_v22  ;;  %v793_v26 = vadd.f32 %v2384_v48, %v792_v24  ;;  %v961_v27 = vpop.f32.mrf.mxu1 }
 0x188   : > { %v1112_v28 = vmax.f32 %v1040_v25, 0.0  ;;  %v962_v29 = vadd.f32 %v961_v27, %v793_v26 }
 0x18a   : > { %v1176_v30 = vpack.c.bf16 %v1112_v28, %v1112_v28  ;;  %v1081_v31 = vmax.f32 %v962_v29, 0.0 }
 0x18b   : > { %v872_v32 = vpop.f32.mrf.mxu2 }
 0x18c   : > { %1241 = vst.msk [vmem:[%s2397_s12 + $0xe8] sm:$0xf] %vm1182_vm0, %v1176_v30  ;;  %v1145_v33 = vpack.c.bf16 %v1081_v31, %v1081_v31  ;;  %v873_v35 = vadd.f32 %v2121_v34, %v872_v32  ;;  %v1041_v36 = vpop.f32.mrf.mxu3 }
 0x18d   : > { %v795_v37 = vpop.f32.mrf.mxu0 }
 0x18e   : > { %1210 = vst.msk [vmem:[%s2397_s12 + $0x6c] sm:$0xf] %vm1182_vm0, %v1145_v33  ;;  %v1042_v48 = vadd.f32 %v1041_v36, %v873_v35  ;;  %v796_v38 = vadd.f32 %v2121_v34, %v795_v37  ;;  %v964_v39 = vpop.f32.mrf.mxu1 }
 0x190   : > { %v1113_v40 = vmax.f32 %v1042_v48, 0.0  ;;  %v965_v41 = vadd.f32 %v964_v39, %v796_v38 }
 0x192   : > { %v1177_v42 = vpack.c.bf16 %v1113_v40, %v1113_v40  ;;  %v1082_v43 = vmax.f32 %v965_v41, 0.0 }
 0x193   : > { %v875_v44 = vpop.f32.mrf.mxu2 }
 0x194   : > { %1242 = vst.msk [vmem:[%s2397_s12 + $0xec] sm:$0xf] %vm1182_vm0, %v1177_v42  ;;  %v1146_v45 = vpack.c.bf16 %v1082_v43, %v1082_v43  ;;  %v876_v46 = vadd.f32 %v2121_v34, %v875_v44  ;;  %v1044_v47 = vpop.f32.mrf.mxu3 }
 0x195   : > { %v797_v49 = vpop.f32.mrf.mxu0 }
 0x196   : > { %1211 = vst.msk [vmem:[%s2397_s12 + $0x70] sm:$0xf] %vm1182_vm0, %v1146_v45  ;;  %v1045_v50 = vadd.f32 %v1044_v47, %v876_v46  ;;  %v798_v51 = vadd.f32 %v2121_v34, %v797_v49  ;;  %v966_v52 = vpop.f32.mrf.mxu1 }
 0x198   : > { %v1114_v53 = vmax.f32 %v1045_v50, 0.0  ;;  %v967_v54 = vadd.f32 %v966_v52, %v798_v51 }
 0x19a   : > { %v1178_v55 = vpack.c.bf16 %v1114_v53, %v1114_v53  ;;  %v1083_v56 = vmax.f32 %v967_v54, 0.0 }
 0x19b   : > { %v877_v57 = vpop.f32.mrf.mxu2 }
 0x19c   : > { %1243 = vst.msk [vmem:[%s2397_s12 + $0xf0] sm:$0xf] %vm1182_vm0, %v1178_v55  ;;  %v1147_v58 = vpack.c.bf16 %v1083_v56, %v1083_v56  ;;  %v878_v59 = vadd.f32 %v2121_v34, %v877_v57  ;;  %v1046_v60 = vpop.f32.mrf.mxu3 }
 0x19d   : > { %v800_v61 = vpop.f32.mrf.mxu0 }
 0x19e   : > { %1212 = vst.msk [vmem:[%s2397_s12 + $0x74] sm:$0xf] %vm1182_vm0, %v1147_v58  ;;  %v1047_v62 = vadd.f32 %v1046_v60, %v878_v59  ;;  %v801_v63 = vadd.f32 %v2121_v34, %v800_v61  ;;  %v969_v0 = vpop.f32.mrf.mxu1 }
 0x1a0   : > { %v1115_v1 = vmax.f32 %v1047_v62, 0.0  ;;  %v970_v2 = vadd.f32 %v969_v0, %v801_v63 }
 0x1a2   : > { %v1179_v3 = vpack.c.bf16 %v1115_v1, %v1115_v1  ;;  %v1084_v4 = vmax.f32 %v970_v2, 0.0 }
 0x1a3   : > { %v880_v5 = vpop.f32.mrf.mxu2 }
 0x1a4   : > { %1244 = vst.msk [vmem:[%s2397_s12 + $0xf4] sm:$0xf] %vm1182_vm0, %v1179_v3  ;;  %v1148_v6 = vpack.c.bf16 %v1084_v4, %v1084_v4  ;;  %v881_v7 = vadd.f32 %v2121_v34, %v880_v5  ;;  %v1049_v8 = vpop.f32.mrf.mxu3 }
 0x1a5   : > { %v802_v9 = vpop.f32.mrf.mxu0 }
 0x1a6   : > { %1213 = vst.msk [vmem:[%s2397_s12 + $0x78] sm:$0xf] %vm1182_vm0, %v1148_v6  ;;  %v1050_v10 = vadd.f32 %v1049_v8, %v881_v7  ;;  %v803_v11 = vadd.f32 %v2121_v34, %v802_v9  ;;  %v971_v12 = vpop.f32.mrf.mxu1 }
 0x1a8   : > { %v1116_v13 = vmax.f32 %v1050_v10, 0.0  ;;  %v972_v14 = vadd.f32 %v971_v12, %v803_v11 }
 0x1aa   : > { %v1180_v15 = vpack.c.bf16 %v1116_v13, %v1116_v13  ;;  %v1085_v16 = vmax.f32 %v972_v14, 0.0 }
 0x1ab   : > { %v882_v17 = vpop.f32.mrf.mxu2 }
 0x1ac   : > { %1245 = vst.msk [vmem:[%s2397_s12 + $0xf8] sm:$0xf] %vm1182_vm0, %v1180_v15  ;;  %v1149_v18 = vpack.c.bf16 %v1085_v16, %v1085_v16  ;;  %v883_v19 = vadd.f32 %v2121_v34, %v882_v17  ;;  %v1051_v20 = vpop.f32.mrf.mxu3 }
 0x1ae   : > { %1214 = vst.msk [vmem:[%s2397_s12 + $0x7c] sm:$0xf] %vm1182_vm0, %v1149_v18  ;;  %v1052_v21 = vadd.f32 %v1051_v20, %v883_v19 }
 0x1b0   : > { %v1117_v22 = vmax.f32 %v1052_v21, 0.0  ;;  %1253 = sbr.rel (!%p2255_p4) target bundleno = 501 (0x1f5), region = 36 }
 0x1b2   : > { %v1181_v23 = vpack.c.bf16 %v1117_v22, %v1117_v22 }
 0x1b4   : > { %1246 = vst.msk [vmem:[%s2397_s12 + $0xfc] sm:$0xf] %vm1182_vm0, %v1181_v23 }
 0x1b5   : > { %s2795_s24 = smov (!%p1256_p8, %s1255_s24), 64 }
 0x1b6   : > { %s1917_s29 = sshll.u32 %s2795_s24, 2 }
 0x1b7   : > { %p1920_p9 = scmp.eq.s32.totalorder %s1917_s29, 0 }
 0x1b8   : > { %s2652_s30 = sshrl.u32 (!%p1920_p9), %s2795_s24, 5 }
 0x1b9   : > { %1264 = sbr.rel (%p1920_p9) target bundleno = 501 (0x1f5), region = 40  ;;  %p1921_p10 = scmp.le.s32.totalorder (!%p1920_p9), %s2652_s30, 0 }
 0x1be   : > { %1543 = sbr.rel (%p1921_p10) target bundleno = 484 (0x1e4), region = 112  ;;  %s2786_s15 = smov (!%p1921_p10), %s2646_s28 }
 0x1bf   : > { %s2787_s20 = smov (!%p1921_p10), %s2397_s12  ;;  %s2661_s6 = smov (!%p1921_p10), 0  }
 0x1c0   : > { %s2663_s4 = smov (!%p1921_p10), 0  }
 0x1c3 LB: >> { %v1281_v24 = vld [vmem:[%s2184_s20] sm:$0xf]  ;;  %v1283_v25 = vld [vmem:[%s2184_s20 + $0x4] sm:$0xf]  ;;  %v1285_v26 = vld [vmem:[%s2184_s20 + $0x8] sm:$0xf]  ;;  %s2192_s4 = sphi %s2663_s4, %s1275_s4   ;;  %s2188_s6 = sphi %s2661_s6, %s2790_s6   ;;  %s2184_s20 = sphi %s2787_s20, %s2789_s20   ;;  %s2180_s15 = sphi %s2786_s15, %s2788_s15  }
 0x1c4   : >> { %1282 = vst [vmem:[%s2180_s15] sm:$0xf] %v1281_v24  ;;  %v1287_v27 = vld [vmem:[%s2184_s20 + $0xc] sm:$0xf]  ;;  %v1289_v28 = vld [vmem:[%s2184_s20 + $0x10] sm:$0xf]  ;;  %s1345_s5 = sadd.s32 1, %s2188_s6 }
 0x1c5   : >> { %1284 = vst [vmem:[%s2180_s15 + $0x4] sm:$0xf] %v1283_v25  ;;  %v1291_v29 = vld [vmem:[%s2184_s20 + $0x14] sm:$0xf]  ;;  %v1293_v30 = vld [vmem:[%s2184_s20 + $0x18] sm:$0xf]  ;;  %p1346_p11 = scmp.ge.s32.totalorder %s1345_s5, %s2652_s30 }
 0x1c6   : >> { %1286 = vst [vmem:[%s2180_s15 + $0x8] sm:$0xf] %v1285_v26  ;;  %v1295_v31 = vld [vmem:[%s2184_s20 + $0x1c] sm:$0xf]  ;;  %v1297_v32 = vld [vmem:[%s2184_s20 + $0x20] sm:$0xf] }
 0x1c7   : >> { %1288 = vst [vmem:[%s2180_s15 + $0xc] sm:$0xf] %v1287_v27  ;;  %v1299_v33 = vld [vmem:[%s2184_s20 + $0x24] sm:$0xf]  ;;  %v1301_v34 = vld [vmem:[%s2184_s20 + $0x28] sm:$0xf] }
 0x1c8   : >> { %1290 = vst [vmem:[%s2180_s15 + $0x10] sm:$0xf] %v1289_v28  ;;  %v1303_v35 = vld [vmem:[%s2184_s20 + $0x2c] sm:$0xf]  ;;  %v1305_v36 = vld [vmem:[%s2184_s20 + $0x30] sm:$0xf] }
 0x1c9   : >> { %1292 = vst [vmem:[%s2180_s15 + $0x14] sm:$0xf] %v1291_v29  ;;  %v1307_v37 = vld [vmem:[%s2184_s20 + $0x34] sm:$0xf]  ;;  %v1309_v48 = vld [vmem:[%s2184_s20 + $0x38] sm:$0xf] }
 0x1ca   : >> { %1294 = vst [vmem:[%s2180_s15 + $0x18] sm:$0xf] %v1293_v30  ;;  %v1311_v38 = vld [vmem:[%s2184_s20 + $0x3c] sm:$0xf]  ;;  %v1313_v39 = vld [vmem:[%s2184_s20 + $0x40] sm:$0xf] }
 0x1cb   : >> { %1296 = vst [vmem:[%s2180_s15 + $0x1c] sm:$0xf] %v1295_v31  ;;  %v1315_v40 = vld [vmem:[%s2184_s20 + $0x44] sm:$0xf]  ;;  %s2797_s5 = smov (%p1346_p11, %s1345_s5), 0  ;;  %s1275_s4 = sadd.s32 1, %s2192_s4  }
 0x1cc   : >> { %1298 = vst [vmem:[%s2180_s15 + $0x20] sm:$0xf] %v1297_v32  ;;  %v1317_v41 = vld [vmem:[%s2184_s20 + $0x48] sm:$0xf]  ;;  %v1319_v42 = vld [vmem:[%s2184_s20 + $0x4c] sm:$0xf]  ;;  %p1274_p12 = scmp.ge.s32.totalorder %s1275_s4, %s2652_s30  ;;  %s2790_s6 = smov %s2797_s5 }
 0x1cd   : >> { %1300 = vst [vmem:[%s2180_s15 + $0x24] sm:$0xf] %v1299_v33  ;;  %s1922_s7 = sshll.u32 %s2797_s5, 7  ;;  %v1321_v43 = vld [vmem:[%s2184_s20 + $0x50] sm:$0xf] }
 0x1ce   : >> { %1302 = vst [vmem:[%s2180_s15 + $0x28] sm:$0xf] %v1301_v34  ;;  %s2722_s8 = scalar_lea.vmem %s2397_s12, %s1922_s7 [#allocation2]   ;;  %s1351_s9 = scalar_lea.vmem %s2646_s28, %s1922_s7   ;;  %v1323_v44 = vld [vmem:[%s2184_s20 + $0x54] sm:$0xf]  ;;  %v1325_v45 = vld [vmem:[%s2184_s20 + $0x58] sm:$0xf] }
 0x1cf   : >> { %1304 = vst [vmem:[%s2180_s15 + $0x2c] sm:$0xf] %v1303_v35  ;;  %v1327_v46 = vld [vmem:[%s2184_s20 + $0x5c] sm:$0xf]  ;;  %v1329_v47 = vld [vmem:[%s2184_s20 + $0x60] sm:$0xf] }
 0x1d0   : >> { %1306 = vst [vmem:[%s2180_s15 + $0x30] sm:$0xf] %v1305_v36  ;;  %v1331_v49 = vld [vmem:[%s2184_s20 + $0x64] sm:$0xf]  ;;  %v1333_v50 = vld [vmem:[%s2184_s20 + $0x68] sm:$0xf] }
 0x1d1   : >> { %1308 = vst [vmem:[%s2180_s15 + $0x34] sm:$0xf] %v1307_v37  ;;  %v1335_v51 = vld [vmem:[%s2184_s20 + $0x6c] sm:$0xf]  ;;  %v1337_v52 = vld [vmem:[%s2184_s20 + $0x70] sm:$0xf] }
 0x1d2   : >> { %1310 = vst [vmem:[%s2180_s15 + $0x38] sm:$0xf] %v1309_v48  ;;  %v1339_v53 = vld [vmem:[%s2184_s20 + $0x74] sm:$0xf]  ;;  %v1341_v54 = vld [vmem:[%s2184_s20 + $0x78] sm:$0xf] }
 0x1d3   : >> { %1312 = vst [vmem:[%s2180_s15 + $0x3c] sm:$0xf] %v1311_v38  ;;  %v1343_v55 = vld [vmem:[%s2184_s20 + $0x7c] sm:$0xf]  ;;  %s2789_s20 = smov %s2722_s8 }
 0x1d4   : >> { %1314 = vst [vmem:[%s2180_s15 + $0x40] sm:$0xf] %v1313_v39 }
 0x1d5   : >> { %1316 = vst [vmem:[%s2180_s15 + $0x44] sm:$0xf] %v1315_v40 }
 0x1d6   : >> { %1318 = vst [vmem:[%s2180_s15 + $0x48] sm:$0xf] %v1317_v41 }
 0x1d7   : >> { %1320 = vst [vmem:[%s2180_s15 + $0x4c] sm:$0xf] %v1319_v42 }
 0x1d8   : >> { %1322 = vst [vmem:[%s2180_s15 + $0x50] sm:$0xf] %v1321_v43 }
 0x1d9   : >> { %1324 = vst [vmem:[%s2180_s15 + $0x54] sm:$0xf] %v1323_v44 }
 0x1da   : >> { %1326 = vst [vmem:[%s2180_s15 + $0x58] sm:$0xf] %v1325_v45 }
 0x1db   : >> { %1328 = vst [vmem:[%s2180_s15 + $0x5c] sm:$0xf] %v1327_v46 }
 0x1dc   : >> { %1330 = vst [vmem:[%s2180_s15 + $0x60] sm:$0xf] %v1329_v47 }
 0x1dd   : >> { %1332 = vst [vmem:[%s2180_s15 + $0x64] sm:$0xf] %v1331_v49 }
 0x1de   : >> { %1334 = vst [vmem:[%s2180_s15 + $0x68] sm:$0xf] %v1333_v50 }
 0x1df   : >> { %1336 = vst [vmem:[%s2180_s15 + $0x6c] sm:$0xf] %v1335_v51  ;;  %1277 = sbr.rel (!%p1274_p12) target bundleno = 451 (0x1c3), region = 118 }
 0x1e0   : >> { %1338 = vst [vmem:[%s2180_s15 + $0x70] sm:$0xf] %v1337_v52 }
 0x1e1   : >> { %1340 = vst [vmem:[%s2180_s15 + $0x74] sm:$0xf] %v1339_v53 }
 0x1e2   : >> { %1342 = vst [vmem:[%s2180_s15 + $0x78] sm:$0xf] %v1341_v54 }
 0x1e3   : >> { %1344 = vst [vmem:[%s2180_s15 + $0x7c] sm:$0xf] %v1343_v55  ;;  %s2788_s15 = smov %s1351_s9 }
 0x1e4 PF: > { %s2763_s10 = sand.u32 31, %s2795_s24   ;;  %s2014_s11 = sshll.u32 %s2652_s30, 7 }
 0x1e5   : > { %s1356_s14 = scalar_lea.vmem %s2397_s12, %s2014_s11 [#allocation2]   ;;  %s1358_s17 = scalar_lea.vmem %s2646_s28, %s2014_s11  }
 0x1e6   : > { %p1927_p13 = scmp.le.s32.totalorder %s2763_s10, 0 }
 0x1e7   : > { %s2194_s18 = smov (!%p1927_p13), %s1358_s17   ;;  %s2198_s21 = smov (!%p1927_p13), %s1356_s14  }
 0x1e8   : > { %1557 = sbr.rel (%p1927_p13) target bundleno = 501 (0x1f5), region = 123  ;;  %s2202_s22 = smov (!%p1927_p13), 0  }
 0x1e9   : > { %s2206_s23 = smov (!%p1927_p13), 0  }
 0x1ed LB: >> { %v1368_v56 = vld [vmem:[%s2200_s21] sm:$0xf]  ;;  %s1370_s24 = sadd.s32 1, %s2204_s22  ;;  %s1362_s23 = sadd.s32 1, %s2208_s23   ;;  %s2208_s23 = sphi %s2206_s23, %s1362_s23   ;;  %s2204_s22 = sphi %s2202_s22, %s2203_s22   ;;  %s2200_s21 = sphi %s2198_s21, %s1375_s21   ;;  %s2196_s18 = sphi %s2194_s18, %s1376_s18  }
 0x1ee   : >> { %1369 = vst [vmem:[%s2196_s18] sm:$0xf] %v1368_v56  ;;  %p1371_p0 = scmp.ge.s32.totalorder %s1370_s24, %s2763_s10  ;;  %p1361_p1 = scmp.ge.s32.totalorder %s1362_s23, %s2763_s10 }
 0x1f0   : >> { %s2799_s24 = smov (%p1371_p0, %s1370_s24), 0  ;;  %1364 = sbr.rel (!%p1361_p1) target bundleno = 493 (0x1ed), region = 129 }
 0x1f1   : >> { %s1928_s12 = sshll.u32 %s2799_s24, 2  ;;  %s2203_s22 = smov %s2799_s24  }
 0x1f2   : >> { %s1375_s21 = scalar_lea.vmem %s1356_s14, %s1928_s12 [#allocation2]   ;;  %s1376_s18 = scalar_lea.vmem %s1358_s17, %s1928_s12  }
 0x1f5 PF: > { %p10_p2 = scmp.ge.s32.totalorder %s2245_s16, 4   ;;  %s2791_s12 = smov %s2172_s13 }
 0x1f6   : > { %s2792_s13 = smov %s2253_s19  ;;  %s2793_s14 = smov %s2245_s16 }
 0x1f7   :  { %12 = sbr.rel (!%p10_p2) target bundleno = 2 (0x2), region = 140 }

// kernel: qnetwork_forward.5
= control target key start
LH: loop header
LB: loop body
LE: loop exit
PB: predicated region body
PF: predicated region fallthrough
CT: control target
= control target key end

     0   :  { %vm838_vm0 = vcmask 519168   ;;  %s1861_s0 = inlined_call_operand.vmem [shape: bf16[162,512], index: 0, kind: input, shape index: {}]   ;;  %s1862_s1 = inlined_call_operand.vmem [shape: bf16[512,64], index: 1, kind: input, shape index: {}]   ;;  %s1863_s2 = inlined_call_operand.vmem [shape: f32[1,64], index: 2, kind: input, shape index: {}]   ;;  %s1864_s3 = inlined_call_operand.vmem [shape: bf16[162,64], index: 3, kind: output, shape index: {}]  }
   0x1   :  { %v1345_v0 = vld [vmem:[%s1862_s1 + $0x38] sm:$0xff]  ;;  %v1344_v4 = vld [vmem:[%s1862_s1 + $0x30] sm:$0xff]  ;;  %v1343_v8 = vld [vmem:[%s1862_s1 + $0x28] sm:$0xff] }
   0x2   :  { %v1353_v1 = vld [vmem:[%s1862_s1 + $0x78] sm:$0xff]  ;;  %538 = vmatpush.bf16.msra.mxu0 %v1345_v0  ;;  %v1352_v5 = vld [vmem:[%s1862_s1 + $0x70] sm:$0xff]  ;;  %v1351_v9 = vld [vmem:[%s1862_s1 + $0x68] sm:$0xff] }
   0x3   :  { %v1361_v2 = vld [vmem:[%s1862_s1 + $0xb8] sm:$0xff]  ;;  %602 = vmatpush.bf16.msra.mxu1 %v1353_v1  ;;  %v1360_v6 = vld [vmem:[%s1862_s1 + $0xb0] sm:$0xff]  ;;  %v1359_v10 = vld [vmem:[%s1862_s1 + $0xa8] sm:$0xff] }
   0x4   :  { %v1369_v3 = vld [vmem:[%s1862_s1 + $0xf8] sm:$0xff]  ;;  %666 = vmatpush.bf16.msra.mxu2 %v1361_v2  ;;  %v1368_v7 = vld [vmem:[%s1862_s1 + $0xf0] sm:$0xff]  ;;  %v1367_v11 = vld [vmem:[%s1862_s1 + $0xe8] sm:$0xff] }
   0x5   :  { %730 = vmatpush.bf16.msra.mxu3 %v1369_v3  ;;  %v1342_v12 = vld [vmem:[%s1862_s1 + $0x20] sm:$0xff]  ;;  %v1341_v16 = vld [vmem:[%s1862_s1 + $0x18] sm:$0xff]  ;;  %v1340_v20 = vld [vmem:[%s1862_s1 + $0x10] sm:$0xff] }
   0x6   :  { %539 = vmatpush.bf16.msra.mxu0 %v1344_v4  ;;  %v1350_v13 = vld [vmem:[%s1862_s1 + $0x60] sm:$0xff]  ;;  %v1349_v17 = vld [vmem:[%s1862_s1 + $0x58] sm:$0xff]  ;;  %v1348_v21 = vld [vmem:[%s1862_s1 + $0x50] sm:$0xff] }
   0x7   :  { %603 = vmatpush.bf16.msra.mxu1 %v1352_v5  ;;  %v1358_v14 = vld [vmem:[%s1862_s1 + $0xa0] sm:$0xff]  ;;  %v1357_v18 = vld [vmem:[%s1862_s1 + $0x98] sm:$0xff]  ;;  %v1356_v22 = vld [vmem:[%s1862_s1 + $0x90] sm:$0xff] }
   0x8   :  { %667 = vmatpush.bf16.msra.mxu2 %v1360_v6  ;;  %v1366_v15 = vld [vmem:[%s1862_s1 + $0xe0] sm:$0xff]  ;;  %v1365_v19 = vld [vmem:[%s1862_s1 + $0xd8] sm:$0xff]  ;;  %v1364_v23 = vld [vmem:[%s1862_s1 + $0xd0] sm:$0xff] }
   0x9   :  { %731 = vmatpush.bf16.msra.mxu3 %v1368_v7  ;;  %v1339_v24 = vld [vmem:[%s1862_s1 + $0x8] sm:$0xff]  ;;  %v1338_v28 = vld [vmem:[%s1862_s1] sm:$0xff]  ;;  %v1296_v33 = vld [vmem:[%s1861_s0 + $0xc] sm:$0xf0] }
   0xa   :  { %540 = vmatpush.bf16.msra.mxu0 %v1343_v8  ;;  %v1347_v25 = vld [vmem:[%s1862_s1 + $0x48] sm:$0xff]  ;;  %v1346_v29 = vld [vmem:[%s1862_s1 + $0x40] sm:$0xff]  ;;  %v994_v35 = vld [vmem:[%s1861_s0 + $0x10] sm:$0xf0] }
   0xb   :  { %604 = vmatpush.bf16.msra.mxu1 %v1351_v9  ;;  %v1355_v26 = vld [vmem:[%s1862_s1 + $0x88] sm:$0xff]  ;;  %v1354_v30 = vld [vmem:[%s1862_s1 + $0x80] sm:$0xff]  ;;  %v1297_v37 = vld [vmem:[%s1861_s0 + $0x14] sm:$0xf0] }
   0xc   :  { %668 = vmatpush.bf16.msra.mxu2 %v1359_v10  ;;  %v1363_v27 = vld [vmem:[%s1862_s1 + $0xc8] sm:$0xff]  ;;  %v1362_v31 = vld [vmem:[%s1862_s1 + $0xc0] sm:$0xff]  ;;  %v1002_v39 = vld [vmem:[%s1861_s0 + $0x18] sm:$0xf0] }
   0xd   :  { %732 = vmatpush.bf16.msra.mxu3 %v1367_v11  ;;  %v992_v32 = vld [vmem:[%s1861_s0] sm:$0xf]  ;;  %v1294_v34 = vld [vmem:[%s1861_s0 + $0x4] sm:$0xf]  ;;  %v1000_v36 = vld [vmem:[%s1861_s0 + $0x8] sm:$0xf] }
   0xe   :  { %541 = vmatpush.bf16.msra.mxu0 %v1342_v12  ;;  %v1295_v38 = vld [vmem:[%s1861_s0 + $0xc] sm:$0xf]  ;;  %v993_v40 = vor.u32 %v1296_v33, %v992_v32  ;;  %v997_v41 = vor.u32 %v1294_v34, %v994_v35  ;;  %v1001_v42 = vor.u32 %v1297_v37, %v1000_v36  ;;  %v1008_v44 = vld [vmem:[%s1861_s0 + $0x20] sm:$0xf]  ;;  %v1300_v45 = vld [vmem:[%s1861_s0 + $0x2c] sm:$0xf0] }
   0xf   :  { %605 = vmatpush.bf16.msra.mxu1 %v1350_v13  ;;  %v1005_v43 = vor.u32 %v1295_v38, %v1002_v39  ;;  %v1298_v46 = vld [vmem:[%s1861_s0 + $0x24] sm:$0xf]  ;;  %v1010_v47 = vld [vmem:[%s1861_s0 + $0x30] sm:$0xf0]  ;;  %v1016_v48 = vld [vmem:[%s1861_s0 + $0x28] sm:$0xf]  ;;  %v1009_v52 = vor.u32 %v1300_v45, %v1008_v44 }
  0x10   :  { %669 = vmatpush.bf16.msra.mxu2 %v1358_v14  ;;  %v1301_v49 = vld [vmem:[%s1861_s0 + $0x34] sm:$0xf0]  ;;  %v1299_v50 = vld [vmem:[%s1861_s0 + $0x2c] sm:$0xf]  ;;  %v1018_v51 = vld [vmem:[%s1861_s0 + $0x38] sm:$0xf0]  ;;  %v1013_v53 = vor.u32 %v1298_v46, %v1010_v47 }
  0x11   :  { %733 = vmatpush.bf16.msra.mxu3 %v1366_v15  ;;  %v1017_v54 = vor.u32 %v1301_v49, %v1016_v48  ;;  %v1021_v55 = vor.u32 %v1299_v50, %v1018_v51  ;;  %v1024_v56 = vld [vmem:[%s1861_s0 + $0x40] sm:$0xf]  ;;  %v1304_v57 = vld [vmem:[%s1861_s0 + $0x4c] sm:$0xf0]  ;;  %v1302_v58 = vld [vmem:[%s1861_s0 + $0x44] sm:$0xf] }
  0x12   :  { %542 = vmatpush.bf16.msra.mxu0 %v1341_v16  ;;  %v1026_v59 = vld [vmem:[%s1861_s0 + $0x50] sm:$0xf0]  ;;  %v1032_v60 = vld [vmem:[%s1861_s0 + $0x48] sm:$0xf]  ;;  %v1305_v61 = vld [vmem:[%s1861_s0 + $0x54] sm:$0xf0]  ;;  %v1025_v0 = vor.u32 %v1304_v57, %v1024_v56 }
  0x13   :  { %606 = vmatpush.bf16.msra.mxu1 %v1349_v17  ;;  %v1303_v62 = vld [vmem:[%s1861_s0 + $0x4c] sm:$0xf]  ;;  %v1034_v63 = vld [vmem:[%s1861_s0 + $0x58] sm:$0xf0]  ;;  %v1029_v1 = vor.u32 %v1302_v58, %v1026_v59  ;;  %v1033_v2 = vor.u32 %v1305_v61, %v1032_v60  ;;  %v1040_v4 = vld [vmem:[%s1861_s0 + $0x60] sm:$0xf] }
  0x14   :  { %670 = vmatpush.bf16.msra.mxu2 %v1357_v18  ;;  %v1037_v3 = vor.u32 %v1303_v62, %v1034_v63  ;;  %v1308_v5 = vld [vmem:[%s1861_s0 + $0x6c] sm:$0xf0]  ;;  %v1306_v6 = vld [vmem:[%s1861_s0 + $0x64] sm:$0xf]  ;;  %v1042_v7 = vld [vmem:[%s1861_s0 + $0x70] sm:$0xf0] }
  0x15   :  { %734 = vmatpush.bf16.msra.mxu3 %v1365_v19  ;;  %v1048_v8 = vld [vmem:[%s1861_s0 + $0x68] sm:$0xf]  ;;  %v1309_v9 = vld [vmem:[%s1861_s0 + $0x74] sm:$0xf0]  ;;  %v1307_v10 = vld [vmem:[%s1861_s0 + $0x6c] sm:$0xf]  ;;  %v1041_v12 = vor.u32 %v1308_v5, %v1040_v4  ;;  %v1045_v13 = vor.u32 %v1306_v6, %v1042_v7 }
  0x16   :  { %543 = vmatpush.bf16.msra.mxu0 %v1340_v20  ;;  %v1050_v11 = vld [vmem:[%s1861_s0 + $0x78] sm:$0xf0]  ;;  %v1049_v14 = vor.u32 %v1309_v9, %v1048_v8  ;;  %v1056_v16 = vld [vmem:[%s1861_s0 + $0x80] sm:$0xf]  ;;  %v1312_v17 = vld [vmem:[%s1861_s0 + $0x8c] sm:$0xf0] }
  0x17   :  { %607 = vmatpush.bf16.msra.mxu1 %v1348_v21  ;;  %v1053_v15 = vor.u32 %v1307_v10, %v1050_v11  ;;  %v1310_v18 = vld [vmem:[%s1861_s0 + $0x84] sm:$0xf]  ;;  %v1058_v19 = vld [vmem:[%s1861_s0 + $0x90] sm:$0xf0]  ;;  %v1064_v20 = vld [vmem:[%s1861_s0 + $0x88] sm:$0xf] }
  0x18   :  { %671 = vmatpush.bf16.msra.mxu2 %v1356_v22  ;;  %v1313_v21 = vld [vmem:[%s1861_s0 + $0x94] sm:$0xf0]  ;;  %v1311_v22 = vld [vmem:[%s1861_s0 + $0x8c] sm:$0xf]  ;;  %v1080_v32 = vld [vmem:[%s1861_s0 + $0xa8] sm:$0xf] }
  0x19   :  { %735 = vmatpush.bf16.msra.mxu3 %v1364_v23  ;;  %v1066_v23 = vld [vmem:[%s1861_s0 + $0x98] sm:$0xf0]  ;;  %v1317_v33 = vld [vmem:[%s1861_s0 + $0xb4] sm:$0xf0]  ;;  %v1315_v34 = vld [vmem:[%s1861_s0 + $0xac] sm:$0xf] }
  0x1a   :  { %544 = vmatpush.bf16.msra.mxu0 %v1339_v24  ;;  %v1057_v24 = vor.u32 %v1312_v17, %v1056_v16  ;;  %v1082_v35 = vld [vmem:[%s1861_s0 + $0xb8] sm:$0xf0]  ;;  %v1081_v38 = vor.u32 %v1317_v33, %v1080_v32  ;;  %v1096_v44 = vld [vmem:[%s1861_s0 + $0xc8] sm:$0xf]  ;;  %v1321_v45 = vld [vmem:[%s1861_s0 + $0xd4] sm:$0xf0] }
  0x1b   :  { %608 = vmatpush.bf16.msra.mxu1 %v1347_v25  ;;  %v1061_v25 = vor.u32 %v1310_v18, %v1058_v19  ;;  %v1085_v39 = vor.u32 %v1315_v34, %v1082_v35  ;;  %v1319_v46 = vld [vmem:[%s1861_s0 + $0xcc] sm:$0xf]  ;;  %v1098_v47 = vld [vmem:[%s1861_s0 + $0xd8] sm:$0xf0]  ;;  %v1097_v50 = vor.u32 %v1321_v45, %v1096_v44  ;;  %v1112_v56 = vld [vmem:[%s1861_s0 + $0xe8] sm:$0xf] }
  0x1c   :  { %672 = vmatpush.bf16.msra.mxu2 %v1355_v26  ;;  %v1065_v26 = vor.u32 %v1313_v21, %v1064_v20  ;;  %v1101_v51 = vor.u32 %v1319_v46, %v1098_v47  ;;  %v1325_v57 = vld [vmem:[%s1861_s0 + $0xf4] sm:$0xf0]  ;;  %v1323_v58 = vld [vmem:[%s1861_s0 + $0xec] sm:$0xf]  ;;  %v1114_v59 = vld [vmem:[%s1861_s0 + $0xf8] sm:$0xf0] }
  0x1d   :  { %736 = vmatpush.bf16.msra.mxu3 %v1363_v27  ;;  %v1069_v27 = vor.u32 %v1311_v22, %v1066_v23  ;;  %v1113_v62 = vor.u32 %v1325_v57, %v1112_v56  ;;  %v1117_v63 = vor.u32 %v1323_v58, %v1114_v59  ;;  %v1122_v4 = vld [vmem:[%s1861_s0 + $0x110] sm:$0xf0]  ;;  %v1128_v5 = vld [vmem:[%s1861_s0 + $0x108] sm:$0xf]  ;;  %v1329_v6 = vld [vmem:[%s1861_s0 + $0x114] sm:$0xf0] }
  0x1e   :  { %545 = vmatpush.bf16.msra.mxu0 %v1338_v28  ;;  %v1072_v28 = vld [vmem:[%s1861_s0 + $0xa0] sm:$0xf]  ;;  %v1327_v7 = vld [vmem:[%s1861_s0 + $0x10c] sm:$0xf]  ;;  %v1130_v8 = vld [vmem:[%s1861_s0 + $0x118] sm:$0xf0] }
  0x1f   :  { %609 = vmatpush.bf16.msra.mxu1 %v1346_v29  ;;  %v1316_v29 = vld [vmem:[%s1861_s0 + $0xac] sm:$0xf0]  ;;  %v1146_v32 = vld [vmem:[%s1861_s0 + $0x138] sm:$0xf0]  ;;  %v1152_v57 = vld [vmem:[%s1861_s0 + $0x140] sm:$0xf] }
  0x20   :  { %673 = vmatpush.bf16.msra.mxu2 %v1354_v30  ;;  %v1314_v30 = vld [vmem:[%s1861_s0 + $0xa4] sm:$0xf]  ;;  %v1073_v36 = vor.u32 %v1316_v29, %v1072_v28  ;;  %v1138_v28 = vld [vmem:[%s1861_s0 + $0x130] sm:$0xf0]  ;;  %v1144_v29 = vld [vmem:[%s1861_s0 + $0x128] sm:$0xf] }
  0x21   :  { %737 = vmatpush.bf16.msra.mxu3 %v1362_v31  ;;  %546 = vmatmul.bf16.vlgmr.msra.gmra.mxu0 %v993_v40  ;;  %v1074_v31 = vld [vmem:[%s1861_s0 + $0xb0] sm:$0xf0]  ;;  %v1088_v40 = vld [vmem:[%s1861_s0 + $0xc0] sm:$0xf]  ;;  %v1336_v58 = vld [vmem:[%s1861_s0 + $0x14c] sm:$0xf0] }
  0x22   :  { %610 = vmatmul.bf16.vlgmr.msra.gmra.mxu1 %v997_v41  ;;  %v1077_v37 = vor.u32 %v1314_v30, %v1074_v31  ;;  %v1320_v41 = vld [vmem:[%s1861_s0 + $0xcc] sm:$0xf0]  ;;  %v1333_v30 = vld [vmem:[%s1861_s0 + $0x134] sm:$0xf0]  ;;  %v1331_v31 = vld [vmem:[%s1861_s0 + $0x12c] sm:$0xf] }
  0x23   :  { %674 = vmatmul.bf16.vlgmr.msra.gmra.mxu2 %v1001_v42  ;;  %v1318_v42 = vld [vmem:[%s1861_s0 + $0xc4] sm:$0xf]  ;;  %v1089_v48 = vor.u32 %v1320_v41, %v1088_v40 }
  0x24   :  { %738 = vmatmul.bf16.vlgmr.msra.gmra.mxu3 %v1005_v43  ;;  %v1090_v43 = vld [vmem:[%s1861_s0 + $0xd0] sm:$0xf0]  ;;  %v1334_v59 = vld [vmem:[%s1861_s0 + $0x144] sm:$0xf] }
  0x25   :  { %v1093_v49 = vor.u32 %v1318_v42, %v1090_v43  ;;  %v1145_v42 = vor.u32 %v1333_v30, %v1144_v29  ;;  %v1149_v43 = vor.u32 %v1331_v31, %v1146_v32 }
  0x31   :  { %551 = vmatmul.bf16.gmra.mxu0 %v1009_v52  ;;  %v1104_v52 = vld [vmem:[%s1861_s0 + $0xe0] sm:$0xf] }
  0x32   :  { %615 = vmatmul.bf16.gmra.mxu1 %v1013_v53  ;;  %v1324_v53 = vld [vmem:[%s1861_s0 + $0xec] sm:$0xf0] }
  0x33   :  { %679 = vmatmul.bf16.gmra.mxu2 %v1017_v54  ;;  %v1322_v54 = vld [vmem:[%s1861_s0 + $0xe4] sm:$0xf]  ;;  %v1105_v60 = vor.u32 %v1324_v53, %v1104_v52 }
  0x34   :  { %743 = vmatmul.bf16.gmra.mxu3 %v1021_v55  ;;  %v1106_v55 = vld [vmem:[%s1861_s0 + $0xf0] sm:$0xf0] }
  0x35   :  { %v1109_v61 = vor.u32 %v1322_v54, %v1106_v55 }
  0x41   :  { %556 = vmatmul.bf16.gmra.mxu0 %v1025_v0  ;;  %v1682_v0 = vld [vmem:[%s1863_s2] ss:$0 sm:$0xff] }
  0x42   :  { %620 = vmatmul.bf16.gmra.mxu1 %v1029_v1  ;;  %v1120_v1 = vld [vmem:[%s1861_s0 + $0x100] sm:$0xf] }
  0x43   :  { %684 = vmatmul.bf16.gmra.mxu2 %v1033_v2  ;;  %v1328_v2 = vld [vmem:[%s1861_s0 + $0x10c] sm:$0xf0] }
  0x44   :  { %748 = vmatmul.bf16.gmra.mxu3 %v1037_v3  ;;  %v1326_v3 = vld [vmem:[%s1861_s0 + $0x104] sm:$0xf]  ;;  %v1121_v9 = vor.u32 %v1328_v2, %v1120_v1  ;;  %v1335_v1 = vld [vmem:[%s1861_s0 + $0x14c] sm:$0xf]  ;;  %v1162_v2 = vld [vmem:[%s1861_s0 + $0x158] sm:$0xf0] }
  0x45   :  { %v1125_v10 = vor.u32 %v1326_v3, %v1122_v4 }
  0x51   :  { %561 = vmatmul.bf16.gmra.mxu0 %v1041_v12 }
  0x52   :  { %625 = vmatmul.bf16.gmra.mxu1 %v1045_v13  ;;  %v1129_v13 = vor.u32 %v1329_v6, %v1128_v5 }
  0x53   :  { %689 = vmatmul.bf16.gmra.mxu2 %v1049_v14  ;;  %v1133_v14 = vor.u32 %v1327_v7, %v1130_v8  ;;  %v1153_v7 = vor.u32 %v1336_v58, %v1152_v57 }
  0x54   :  { %753 = vmatmul.bf16.gmra.mxu3 %v1053_v15 }
  0x61   :  { %566 = vmatmul.bf16.gmra.mxu0 %v1057_v24  ;;  %v1136_v24 = vld [vmem:[%s1861_s0 + $0x120] sm:$0xf] }
  0x62   :  { %630 = vmatmul.bf16.gmra.mxu1 %v1061_v25  ;;  %v1332_v25 = vld [vmem:[%s1861_s0 + $0x12c] sm:$0xf0] }
  0x63   :  { %694 = vmatmul.bf16.gmra.mxu2 %v1065_v26  ;;  %v1330_v26 = vld [vmem:[%s1861_s0 + $0x124] sm:$0xf] }
  0x64   :  { %758 = vmatmul.bf16.gmra.mxu3 %v1069_v27 }
  0x71   :  { %571 = vmatmul.bf16.gmra.mxu0 %v1073_v36 }
  0x72   :  { %635 = vmatmul.bf16.gmra.mxu1 %v1077_v37  ;;  %v1137_v37 = vor.u32 %v1332_v25, %v1136_v24 }
  0x73   :  { %699 = vmatmul.bf16.gmra.mxu2 %v1081_v38  ;;  %v1141_v38 = vor.u32 %v1330_v26, %v1138_v28 }
  0x74   :  { %763 = vmatmul.bf16.gmra.mxu3 %v1085_v39 }
  0x81   :  { %576 = vmatmul.bf16.gmra.mxu0 %v1089_v48 }
  0x82   :  { %640 = vmatmul.bf16.gmra.mxu1 %v1093_v49 }
  0x83   :  { %704 = vmatmul.bf16.gmra.mxu2 %v1097_v50 }
  0x84   :  { %768 = vmatmul.bf16.gmra.mxu3 %v1101_v51 }
  0x91   :  { %581 = vmatmul.bf16.gmra.mxu0 %v1105_v60 }
  0x92   :  { %645 = vmatmul.bf16.gmra.mxu1 %v1109_v61  ;;  %v1154_v61 = vld [vmem:[%s1861_s0 + $0x150] sm:$0xf0] }
  0x93   :  { %709 = vmatmul.bf16.gmra.mxu2 %v1113_v62  ;;  %v1160_v62 = vld [vmem:[%s1861_s0 + $0x148] sm:$0xf]  ;;  %v1157_v8 = vor.u32 %v1334_v59, %v1154_v61 }
  0x94   :  { %773 = vmatmul.bf16.gmra.mxu3 %v1117_v63  ;;  %v1337_v63 = vld [vmem:[%s1861_s0 + $0x154] sm:$0xf0] }
  0x9e   :  { %v547_v11 = vpop.f32.mrf.mxu0 }
  0x9f   :  { %v611_v12 = vpop.f32.mrf.mxu1  ;;  %v548_v15 = vadd.f32 %v1682_v0, %v547_v11 }
  0xa1   :  { %586 = vmatmul.bf16.gmra.mxu0 %v1121_v9  ;;  %v612_v16 = vadd.f32 %v611_v12, %v548_v15 }
  0xa2   :  { %650 = vmatmul.bf16.gmra.mxu1 %v1125_v10 }
  0xa3   :  { %714 = vmatmul.bf16.gmra.mxu2 %v1129_v13  ;;  %v1161_v13 = vor.u32 %v1337_v63, %v1160_v62 }
  0xa4   :  { %778 = vmatmul.bf16.gmra.mxu3 %v1133_v14  ;;  %v1165_v14 = vor.u32 %v1335_v1, %v1162_v2 }
  0xa6   :  { %v675_v17 = vpop.f32.mrf.mxu2  ;;  %v549_v20 = vpop.f32.mrf.mxu0 }
  0xa7   :  { %v739_v18 = vpop.f32.mrf.mxu3  ;;  %v676_v19 = vadd.f32 %v675_v17, %v612_v16  ;;  %v613_v21 = vpop.f32.mrf.mxu1  ;;  %v550_v23 = vadd.f32 %v1682_v0, %v549_v20 }
  0xa9   :  { %v740_v22 = vadd.f32 %v739_v18, %v676_v19  ;;  %v614_v34 = vadd.f32 %v613_v21, %v550_v23 }
  0xab   :  { %v794_v27 = vmax.f32 %v740_v22, 0.0 }
  0xad   :  { %v816_v33 = vpack.c.bf16 %v794_v27, %v794_v27 }
  0xae   :  { %v677_v35 = vpop.f32.mrf.mxu2  ;;  %v552_v40 = vpop.f32.mrf.mxu0 }
  0xaf   :  { %v741_v36 = vpop.f32.mrf.mxu3  ;;  %839 = vst.msk [vmem:[#allocation2] sm:$0xf] %vm838_vm0, %v816_v33  ;;  %v678_v39 = vadd.f32 %v677_v35, %v614_v34  ;;  %v616_v41 = vpop.f32.mrf.mxu1  ;;  %v553_v44 = vadd.f32 %v1682_v0, %v552_v40 }
  0xb1   :  { %v742_v45 = vadd.f32 %v741_v36, %v678_v39  ;;  %591 = vmatmul.bf16.gmra.mxu0 %v1137_v37  ;;  %v617_v47 = vadd.f32 %v616_v41, %v553_v44 }
  0xb2   :  { %655 = vmatmul.bf16.gmra.mxu1 %v1141_v38 }
  0xb3   :  { %v795_v46 = vmax.f32 %v742_v45, 0.0  ;;  %719 = vmatmul.bf16.gmra.mxu2 %v1145_v42 }
  0xb4   :  { %783 = vmatmul.bf16.gmra.mxu3 %v1149_v43 }
  0xb5   :  { %v817_v48 = vpack.c.bf16 %v795_v46, %v795_v46 }
  0xb6   :  { %v879_v49 = vld [vmem:[#allocation2] sm:$0xf]  ;;  %v680_v50 = vpop.f32.mrf.mxu2  ;;  %v554_v53 = vpop.f32.mrf.mxu0 }
  0xb7   :  { %v744_v51 = vpop.f32.mrf.mxu3  ;;  %880 = vst [vmem:[%s1864_s3] sm:$0xf] %v879_v49  ;;  %v681_v52 = vadd.f32 %v680_v50, %v617_v47  ;;  %v618_v54 = vpop.f32.mrf.mxu1  ;;  %v555_v56 = vadd.f32 %v1682_v0, %v554_v53 }
  0xb8   :  { %840 = vst.msk [vmem:[#allocation2 + $0x4] sm:$0xf] %vm838_vm0, %v817_v48 }
  0xb9   :  { %v745_v55 = vadd.f32 %v744_v51, %v681_v52  ;;  %v619_v4 = vadd.f32 %v618_v54, %v555_v56 }
  0xbb   :  { %v796_v60 = vmax.f32 %v745_v55, 0.0 }
  0xbd   :  { %v818_v3 = vpack.c.bf16 %v796_v60, %v796_v60 }
  0xbe   :  { %v682_v5 = vpop.f32.mrf.mxu2  ;;  %v557_v11 = vpop.f32.mrf.mxu0 }
  0xbf   :  { %v746_v6 = vpop.f32.mrf.mxu3  ;;  %v881_v9 = vld [vmem:[#allocation2 + $0x4] sm:$0xf]  ;;  %841 = vst.msk [vmem:[#allocation2 + $0x8] sm:$0xf] %vm838_vm0, %v818_v3  ;;  %v683_v10 = vadd.f32 %v682_v5, %v619_v4  ;;  %v621_v12 = vpop.f32.mrf.mxu1  ;;  %v558_v15 = vadd.f32 %v1682_v0, %v557_v11 }
  0xc0   :  { %882 = vst [vmem:[%s1864_s3 + $0x4] sm:$0xf] %v881_v9 }
  0xc1   :  { %v747_v16 = vadd.f32 %v746_v6, %v683_v10  ;;  %596 = vmatmul.bf16.gmra.mxu0 %v1153_v7  ;;  %v622_v18 = vadd.f32 %v621_v12, %v558_v15 }
  0xc2   :  { %660 = vmatmul.bf16.gmra.mxu1 %v1157_v8 }
  0xc3   :  { %v797_v17 = vmax.f32 %v747_v16, 0.0  ;;  %724 = vmatmul.bf16.gmra.mxu2 %v1161_v13 }
  0xc4   :  { %788 = vmatmul.bf16.gmra.mxu3 %v1165_v14 }
  0xc5   :  { %v819_v19 = vpack.c.bf16 %v797_v17, %v797_v17 }
  0xc6   :  { %v883_v20 = vld [vmem:[#allocation2 + $0x8] sm:$0xf]  ;;  %v685_v21 = vpop.f32.mrf.mxu2  ;;  %v559_v24 = vpop.f32.mrf.mxu0 }
  0xc7   :  { %v749_v22 = vpop.f32.mrf.mxu3  ;;  %884 = vst [vmem:[%s1864_s3 + $0x8] sm:$0xf] %v883_v20  ;;  %v686_v23 = vadd.f32 %v685_v21, %v622_v18  ;;  %v623_v25 = vpop.f32.mrf.mxu1  ;;  %v560_v27 = vadd.f32 %v1682_v0, %v559_v24 }
  0xc8   :  { %842 = vst.msk [vmem:[#allocation2 + $0xc] sm:$0xf] %vm838_vm0, %v819_v19 }
  0xc9   :  { %v750_v26 = vadd.f32 %v749_v22, %v686_v23  ;;  %v624_v30 = vadd.f32 %v623_v25, %v560_v27 }
  0xcb   :  { %v798_v28 = vmax.f32 %v750_v26, 0.0 }
  0xcd   :  { %v820_v29 = vpack.c.bf16 %v798_v28, %v798_v28 }
  0xce   :  { %v687_v31 = vpop.f32.mrf.mxu2  ;;  %v562_v35 = vpop.f32.mrf.mxu0 }
  0xcf   :  { %v751_v32 = vpop.f32.mrf.mxu3  ;;  %v885_v33 = vld [vmem:[#allocation2 + $0xc] sm:$0xf]  ;;  %843 = vst.msk [vmem:[#allocation2 + $0x10] sm:$0xf] %vm838_vm0, %v820_v29  ;;  %v688_v34 = vadd.f32 %v687_v31, %v624_v30  ;;  %v626_v36 = vpop.f32.mrf.mxu1  ;;  %v563_v37 = vadd.f32 %v1682_v0, %v562_v35 }
  0xd0   :  { %886 = vst [vmem:[%s1864_s3 + $0xc] sm:$0xf] %v885_v33 }
  0xd1   :  { %v752_v38 = vadd.f32 %v751_v32, %v688_v34  ;;  %v627_v40 = vadd.f32 %v626_v36, %v563_v37 }
  0xd3   :  { %v799_v39 = vmax.f32 %v752_v38, 0.0 }
  0xd5   :  { %v821_v41 = vpack.c.bf16 %v799_v39, %v799_v39 }
  0xd6   :  { %v887_v42 = vld [vmem:[#allocation2 + $0x10] sm:$0xf]  ;;  %v690_v43 = vpop.f32.mrf.mxu2  ;;  %v564_v46 = vpop.f32.mrf.mxu0 }
  0xd7   :  { %v754_v44 = vpop.f32.mrf.mxu3  ;;  %888 = vst [vmem:[%s1864_s3 + $0x10] sm:$0xf] %v887_v42  ;;  %v691_v45 = vadd.f32 %v690_v43, %v627_v40  ;;  %v628_v47 = vpop.f32.mrf.mxu1  ;;  %v565_v49 = vadd.f32 %v1682_v0, %v564_v46 }
  0xd8   :  { %844 = vst.msk [vmem:[#allocation2 + $0x14] sm:$0xf] %vm838_vm0, %v821_v41 }
  0xd9   :  { %v755_v48 = vadd.f32 %v754_v44, %v691_v45  ;;  %v629_v52 = vadd.f32 %v628_v47, %v565_v49 }
  0xdb   :  { %v800_v50 = vmax.f32 %v755_v48, 0.0 }
  0xdd   :  { %v822_v51 = vpack.c.bf16 %v800_v50, %v800_v50 }
  0xde   :  { %v692_v53 = vpop.f32.mrf.mxu2  ;;  %v567_v57 = vpop.f32.mrf.mxu0 }
  0xdf   :  { %v756_v54 = vpop.f32.mrf.mxu3  ;;  %v889_v55 = vld [vmem:[#allocation2 + $0x14] sm:$0xf]  ;;  %845 = vst.msk [vmem:[#allocation2 + $0x18] sm:$0xf] %vm838_vm0, %v822_v51  ;;  %v693_v56 = vadd.f32 %v692_v53, %v629_v52  ;;  %v631_v58 = vpop.f32.mrf.mxu1  ;;  %v568_v59 = vadd.f32 %v1682_v0, %v567_v57 }
  0xe0   :  { %890 = vst [vmem:[%s1864_s3 + $0x14] sm:$0xf] %v889_v55 }
  0xe1   :  { %v757_v60 = vadd.f32 %v756_v54, %v693_v56  ;;  %v632_v62 = vadd.f32 %v631_v58, %v568_v59 }
  0xe3   :  { %v801_v61 = vmax.f32 %v757_v60, 0.0 }
  0xe5   :  { %v823_v63 = vpack.c.bf16 %v801_v61, %v801_v61 }
  0xe6   :  { %v891_v1 = vld [vmem:[#allocation2 + $0x18] sm:$0xf]  ;;  %v695_v2 = vpop.f32.mrf.mxu2  ;;  %v569_v5 = vpop.f32.mrf.mxu0 }
  0xe7   :  { %v759_v3 = vpop.f32.mrf.mxu3  ;;  %892 = vst [vmem:[%s1864_s3 + $0x18] sm:$0xf] %v891_v1  ;;  %v696_v4 = vadd.f32 %v695_v2, %v632_v62  ;;  %v633_v6 = vpop.f32.mrf.mxu1  ;;  %v570_v8 = vadd.f32 %v1682_v0, %v569_v5 }
  0xe8   :  { %846 = vst.msk [vmem:[#allocation2 + $0x1c] sm:$0xf] %vm838_vm0, %v823_v63 }
  0xe9   :  { %v760_v7 = vadd.f32 %v759_v3, %v696_v4  ;;  %v634_v11 = vadd.f32 %v633_v6, %v570_v8 }
  0xeb   :  { %v802_v9 = vmax.f32 %v760_v7, 0.0 }
  0xed   :  { %v824_v10 = vpack.c.bf16 %v802_v9, %v802_v9 }
  0xee   :  { %v697_v12 = vpop.f32.mrf.mxu2  ;;  %v572_v16 = vpop.f32.mrf.mxu0 }
  0xef   :  { %v761_v13 = vpop.f32.mrf.mxu3  ;;  %v893_v14 = vld [vmem:[#allocation2 + $0x1c] sm:$0xf]  ;;  %847 = vst.msk [vmem:[#allocation2 + $0x20] sm:$0xf] %vm838_vm0, %v824_v10  ;;  %v698_v15 = vadd.f32 %v697_v12, %v634_v11  ;;  %v636_v17 = vpop.f32.mrf.mxu1  ;;  %v573_v18 = vadd.f32 %v1682_v0, %v572_v16 }
  0xf0   :  { %894 = vst [vmem:[%s1864_s3 + $0x1c] sm:$0xf] %v893_v14 }
  0xf1   :  { %v762_v19 = vadd.f32 %v761_v13, %v698_v15  ;;  %v637_v21 = vadd.f32 %v636_v17, %v573_v18 }
  0xf3   :  { %v803_v20 = vmax.f32 %v762_v19, 0.0 }
  0xf5   :  { %v825_v22 = vpack.c.bf16 %v803_v20, %v803_v20 }
  0xf6   :  { %v895_v23 = vld [vmem:[#allocation2 + $0x20] sm:$0xf]  ;;  %v700_v24 = vpop.f32.mrf.mxu2  ;;  %v574_v27 = vpop.f32.mrf.mxu0 }
  0xf7   :  { %v764_v25 = vpop.f32.mrf.mxu3  ;;  %896 = vst [vmem:[%s1864_s3 + $0x20] sm:$0xf] %v895_v23  ;;  %v701_v26 = vadd.f32 %v700_v24, %v637_v21  ;;  %v638_v28 = vpop.f32.mrf.mxu1  ;;  %v575_v30 = vadd.f32 %v1682_v0, %v574_v27 }
  0xf8   :  { %848 = vst.msk [vmem:[#allocation2 + $0x24] sm:$0xf] %vm838_vm0, %v825_v22 }
  0xf9   :  { %v765_v29 = vadd.f32 %v764_v25, %v701_v26  ;;  %v639_v33 = vadd.f32 %v638_v28, %v575_v30 }
  0xfb   :  { %v804_v31 = vmax.f32 %v765_v29, 0.0 }
  0xfd   :  { %v826_v32 = vpack.c.bf16 %v804_v31, %v804_v31 }
  0xfe   :  { %v702_v34 = vpop.f32.mrf.mxu2  ;;  %v577_v38 = vpop.f32.mrf.mxu0 }
  0xff   :  { %v766_v35 = vpop.f32.mrf.mxu3  ;;  %v897_v36 = vld [vmem:[#allocation2 + $0x24] sm:$0xf]  ;;  %849 = vst.msk [vmem:[#allocation2 + $0x28] sm:$0xf] %vm838_vm0, %v826_v32  ;;  %v703_v37 = vadd.f32 %v702_v34, %v639_v33  ;;  %v641_v39 = vpop.f32.mrf.mxu1  ;;  %v578_v40 = vadd.f32 %v1682_v0, %v577_v38 }
 0x100   :  { %898 = vst [vmem:[%s1864_s3 + $0x24] sm:$0xf] %v897_v36 }
 0x101   :  { %v767_v41 = vadd.f32 %v766_v35, %v703_v37  ;;  %v642_v43 = vadd.f32 %v641_v39, %v578_v40 }
 0x103   :  { %v805_v42 = vmax.f32 %v767_v41, 0.0 }
 0x105   :  { %v827_v44 = vpack.c.bf16 %v805_v42, %v805_v42 }
 0x106   :  { %v899_v45 = vld [vmem:[#allocation2 + $0x28] sm:$0xf]  ;;  %v705_v46 = vpop.f32.mrf.mxu2  ;;  %v579_v49 = vpop.f32.mrf.mxu0 }
 0x107   :  { %v769_v47 = vpop.f32.mrf.mxu3  ;;  %900 = vst [vmem:[%s1864_s3 + $0x28] sm:$0xf] %v899_v45  ;;  %v706_v48 = vadd.f32 %v705_v46, %v642_v43  ;;  %v643_v50 = vpop.f32.mrf.mxu1  ;;  %v580_v52 = vadd.f32 %v1682_v0, %v579_v49 }
 0x108   :  { %850 = vst.msk [vmem:[#allocation2 + $0x2c] sm:$0xf] %vm838_vm0, %v827_v44 }
 0x109   :  { %v770_v51 = vadd.f32 %v769_v47, %v706_v48  ;;  %v644_v55 = vadd.f32 %v643_v50, %v580_v52 }
 0x10b   :  { %v806_v53 = vmax.f32 %v770_v51, 0.0 }
 0x10d   :  { %v828_v54 = vpack.c.bf16 %v806_v53, %v806_v53 }
 0x10e   :  { %v707_v56 = vpop.f32.mrf.mxu2  ;;  %v582_v60 = vpop.f32.mrf.mxu0 }
 0x10f   :  { %v771_v57 = vpop.f32.mrf.mxu3  ;;  %v901_v58 = vld [vmem:[#allocation2 + $0x2c] sm:$0xf]  ;;  %851 = vst.msk [vmem:[#allocation2 + $0x30] sm:$0xf] %vm838_vm0, %v828_v54  ;;  %v708_v59 = vadd.f32 %v707_v56, %v644_v55  ;;  %v646_v61 = vpop.f32.mrf.mxu1  ;;  %v583_v62 = vadd.f32 %v1682_v0, %v582_v60 }
 0x110   :  { %902 = vst [vmem:[%s1864_s3 + $0x2c] sm:$0xf] %v901_v58 }
 0x111   :  { %v772_v63 = vadd.f32 %v771_v57, %v708_v59  ;;  %v647_v2 = vadd.f32 %v646_v61, %v583_v62 }
 0x113   :  { %v807_v1 = vmax.f32 %v772_v63, 0.0 }
 0x115   :  { %v829_v3 = vpack.c.bf16 %v807_v1, %v807_v1 }
 0x116   :  { %v903_v4 = vld [vmem:[#allocation2 + $0x30] sm:$0xf]  ;;  %v710_v5 = vpop.f32.mrf.mxu2  ;;  %v584_v8 = vpop.f32.mrf.mxu0 }
 0x117   :  { %v774_v6 = vpop.f32.mrf.mxu3  ;;  %904 = vst [vmem:[%s1864_s3 + $0x30] sm:$0xf] %v903_v4  ;;  %v711_v7 = vadd.f32 %v710_v5, %v647_v2  ;;  %v648_v9 = vpop.f32.mrf.mxu1  ;;  %v585_v11 = vadd.f32 %v1682_v0, %v584_v8 }
 0x118   :  { %852 = vst.msk [vmem:[#allocation2 + $0x34] sm:$0xf] %vm838_vm0, %v829_v3 }
 0x119   :  { %v775_v10 = vadd.f32 %v774_v6, %v711_v7  ;;  %v649_v14 = vadd.f32 %v648_v9, %v585_v11 }
 0x11b   :  { %v808_v12 = vmax.f32 %v775_v10, 0.0 }
 0x11d   :  { %v830_v13 = vpack.c.bf16 %v808_v12, %v808_v12 }
 0x11e   :  { %v712_v15 = vpop.f32.mrf.mxu2  ;;  %v587_v19 = vpop.f32.mrf.mxu0 }
 0x11f   :  { %v776_v16 = vpop.f32.mrf.mxu3  ;;  %v905_v17 = vld [vmem:[#allocation2 + $0x34] sm:$0xf]  ;;  %853 = vst.msk [vmem:[#allocation2 + $0x38] sm:$0xf] %vm838_vm0, %v830_v13  ;;  %v713_v18 = vadd.f32 %v712_v15, %v649_v14  ;;  %v651_v20 = vpop.f32.mrf.mxu1  ;;  %v588_v21 = vadd.f32 %v1682_v0, %v587_v19 }
 0x120   :  { %906 = vst [vmem:[%s1864_s3 + $0x34] sm:$0xf] %v905_v17 }
 0x121   :  { %v777_v22 = vadd.f32 %v776_v16, %v713_v18  ;;  %v652_v24 = vadd.f32 %v651_v20, %v588_v21 }
 0x123   :  { %v809_v23 = vmax.f32 %v777_v22, 0.0 }
 0x125   :  { %v831_v25 = vpack.c.bf16 %v809_v23, %v809_v23 }
 0x126   :  { %v907_v26 = vld [vmem:[#allocation2 + $0x38] sm:$0xf]  ;;  %v715_v27 = vpop.f32.mrf.mxu2  ;;  %v589_v30 = vpop.f32.mrf.mxu0 }
 0x127   :  { %v779_v28 = vpop.f32.mrf.mxu3  ;;  %908 = vst [vmem:[%s1864_s3 + $0x38] sm:$0xf] %v907_v26  ;;  %v716_v29 = vadd.f32 %v715_v27, %v652_v24  ;;  %v653_v31 = vpop.f32.mrf.mxu1  ;;  %v590_v33 = vadd.f32 %v1682_v0, %v589_v30 }
 0x128   :  { %854 = vst.msk [vmem:[#allocation2 + $0x3c] sm:$0xf] %vm838_vm0, %v831_v25 }
 0x129   :  { %v780_v32 = vadd.f32 %v779_v28, %v716_v29  ;;  %v654_v36 = vadd.f32 %v653_v31, %v590_v33 }
 0x12b   :  { %v810_v34 = vmax.f32 %v780_v32, 0.0 }
 0x12d   :  { %v832_v35 = vpack.c.bf16 %v810_v34, %v810_v34 }
 0x12e   :  { %v717_v37 = vpop.f32.mrf.mxu2  ;;  %v592_v41 = vpop.f32.mrf.mxu0 }
 0x12f   :  { %v781_v38 = vpop.f32.mrf.mxu3  ;;  %v909_v39 = vld [vmem:[#allocation2 + $0x3c] sm:$0xf]  ;;  %855 = vst.msk [vmem:[#allocation2 + $0x40] sm:$0xf] %vm838_vm0, %v832_v35  ;;  %v718_v40 = vadd.f32 %v717_v37, %v654_v36  ;;  %v656_v42 = vpop.f32.mrf.mxu1  ;;  %v593_v43 = vadd.f32 %v1682_v0, %v592_v41 }
 0x130   :  { %910 = vst [vmem:[%s1864_s3 + $0x3c] sm:$0xf] %v909_v39 }
 0x131   :  { %v782_v44 = vadd.f32 %v781_v38, %v718_v40  ;;  %v657_v46 = vadd.f32 %v656_v42, %v593_v43 }
 0x133   :  { %v811_v45 = vmax.f32 %v782_v44, 0.0 }
 0x135   :  { %v833_v47 = vpack.c.bf16 %v811_v45, %v811_v45 }
 0x136   :  { %v911_v48 = vld [vmem:[#allocation2 + $0x40] sm:$0xf]  ;;  %v720_v49 = vpop.f32.mrf.mxu2  ;;  %v594_v52 = vpop.f32.mrf.mxu0 }
 0x137   :  { %v784_v50 = vpop.f32.mrf.mxu3  ;;  %912 = vst [vmem:[%s1864_s3 + $0x40] sm:$0xf] %v911_v48  ;;  %v721_v51 = vadd.f32 %v720_v49, %v657_v46  ;;  %v658_v53 = vpop.f32.mrf.mxu1  ;;  %v595_v55 = vadd.f32 %v1682_v0, %v594_v52 }
 0x138   :  { %856 = vst.msk [vmem:[#allocation2 + $0x44] sm:$0xf] %vm838_vm0, %v833_v47 }
 0x139   :  { %v785_v54 = vadd.f32 %v784_v50, %v721_v51  ;;  %v659_v58 = vadd.f32 %v658_v53, %v595_v55 }
 0x13b   :  { %v812_v56 = vmax.f32 %v785_v54, 0.0 }
 0x13d   :  { %v834_v57 = vpack.c.bf16 %v812_v56, %v812_v56 }
 0x13e   :  { %v722_v59 = vpop.f32.mrf.mxu2  ;;  %v597_v63 = vpop.f32.mrf.mxu0 }
 0x13f   :  { %v786_v60 = vpop.f32.mrf.mxu3  ;;  %v913_v61 = vld [vmem:[#allocation2 + $0x44] sm:$0xf]  ;;  %857 = vst.msk [vmem:[#allocation2 + $0x48] sm:$0xf] %vm838_vm0, %v834_v57  ;;  %v723_v62 = vadd.f32 %v722_v59, %v659_v58  ;;  %v598_v1 = vadd.f32 %v1682_v0, %v597_v63  ;;  %v661_v3 = vpop.f32.mrf.mxu1 }
 0x140   :  { %914 = vst [vmem:[%s1864_s3 + $0x44] sm:$0xf] %v913_v61 }
 0x141   :  { %v787_v2 = vadd.f32 %v786_v60, %v723_v62  ;;  %v662_v5 = vadd.f32 %v661_v3, %v598_v1 }
 0x143   :  { %v813_v4 = vmax.f32 %v787_v2, 0.0 }
 0x145   :  { %v835_v6 = vpack.c.bf16 %v813_v4, %v813_v4 }
 0x146   :  { %v915_v7 = vld [vmem:[#allocation2 + $0x48] sm:$0xf]  ;;  %v725_v8 = vpop.f32.mrf.mxu2  ;;  %v599_v11 = vpop.f32.mrf.mxu0 }
 0x147   :  { %v789_v9 = vpop.f32.mrf.mxu3  ;;  %916 = vst [vmem:[%s1864_s3 + $0x48] sm:$0xf] %v915_v7  ;;  %v726_v10 = vadd.f32 %v725_v8, %v662_v5  ;;  %v663_v14 = vpop.f32.mrf.mxu1 }
 0x148   :  { %858 = vst.msk [vmem:[#allocation2 + $0x4c] sm:$0xf] %vm838_vm0, %v835_v6 }
 0x149   :  { %v790_v12 = vadd.f32 %v789_v9, %v726_v10 }
 0x14b   :  { %v814_v13 = vmax.f32 %v790_v12, 0.0 }
 0x14d   :  { %v836_v0 = vpack.c.bf16 %v814_v13, %v814_v13 }
 0x14e   :  { %v727_v15 = vpop.f32.mrf.mxu2 }
 0x14f   :  { %v917_v16 = vld [vmem:[#allocation2 + $0x4c] sm:$0xf]  ;;  %859 = vst.msk [vmem:[#allocation2 + $0x50] sm:$0xf] %vm838_vm0, %v836_v0  ;;  %v791_v17 = vpop.f32.mrf.mxu3 }
 0x150   :  { %918 = vst [vmem:[%s1864_s3 + $0x4c] sm:$0xf] %v917_v16 }
 0x156   :  { %v919_v18 = vld [vmem:[#allocation2 + $0x50] sm:$0xf] }
 0x157   :  { %920 = vst [vmem:[%s1864_s3 + $0x50] sm:$0xf] %v919_v18 }

// kernel: qnetwork_forward.6
= control target key start
LH: loop header
LB: loop body
LE: loop exit
PB: predicated region body
PF: predicated region fallthrough
CT: control target
= control target key end

     0   :  { %vm524_vm0 = vcmask 523264   ;;  %vm794_vm1 = vcmask 519168   ;;  %s1735_s0 = inlined_call_operand.vmem [shape: bf16[98,576], index: 0, kind: input, shape index: {}]   ;;  %s1736_s1 = inlined_call_operand.vmem [shape: bf16[576,64], index: 1, kind: input, shape index: {}]   ;;  %s1737_s2 = inlined_call_operand.vmem [shape: f32[1,64], index: 2, kind: input, shape index: {}]   ;;  %s1738_s3 = inlined_call_operand.vmem [shape: bf16[98,64], index: 3, kind: output, shape index: {}]  }
   0x1   :  { %v1239_v0 = vld [vmem:[%s1736_s1 + $0x38] sm:$0xff]  ;;  %v1238_v1 = vld [vmem:[%s1736_s1 + $0x30] sm:$0xff]  ;;  %v1237_v2 = vld [vmem:[%s1736_s1 + $0x28] sm:$0xff] }
   0x2   :  { %1268 = vmatpush.bf16.msra.mxu1 %v1239_v0  ;;  %1269 = vmatpush.bf16.msra.mxu2 %v1239_v0  ;;  %v1236_v3 = vld [vmem:[%s1736_s1 + $0x20] sm:$0xff]  ;;  %v1235_v4 = vld [vmem:[%s1736_s1 + $0x18] sm:$0xff]  ;;  %v1234_v5 = vld [vmem:[%s1736_s1 + $0x10] sm:$0xff] }
   0x3   :  { %1270 = vmatpush.bf16.msra.mxu3 %v1239_v0  ;;  %546 = vmatpush.bf16.msra.mxu0 %v1239_v0  ;;  %v1233_v6 = vld [vmem:[%s1736_s1 + $0x8] sm:$0xff]  ;;  %v1232_v7 = vld [vmem:[%s1736_s1] sm:$0xff]  ;;  %v948_v8 = vld [vmem:[%s1735_s0 + $0x50] sm:$0xf] }
   0x4   :  { %v1209_v9 = vld [vmem:[%s1735_s0 + $0x60] sm:$0xf0]  ;;  %v988_v10 = vld [vmem:[%s1735_s0 + $0xa0] sm:$0xf]  ;;  %v1219_v11 = vld [vmem:[%s1735_s0 + $0xb0] sm:$0xf0] }
   0x5   :  { %v1263_v12 = vld [vmem:[%s1736_s1 + $0xf8] sm:$0xff]  ;;  %v908_v13 = vld [vmem:[%s1735_s0] sm:$0xf]  ;;  %v1199_v14 = vld [vmem:[%s1735_s0 + $0x10] sm:$0xf0]  ;;  %v949_v18 = vor.u32 %v1209_v9, %v948_v8  ;;  %v989_v19 = vor.u32 %v1219_v11, %v988_v10 }
   0x6   :  { %1271 = vmatpush.bf16.msra.mxu1 %v1238_v1  ;;  %1272 = vmatpush.bf16.msra.mxu2 %v1238_v1  ;;  %v1255_v15 = vld [vmem:[%s1736_s1 + $0xb8] sm:$0xff]  ;;  %v1028_v16 = vld [vmem:[%s1735_s0 + $0xf0] sm:$0xf]  ;;  %v1229_v17 = vld [vmem:[%s1735_s0 + $0x100] sm:$0xf0]  ;;  %v909_v21 = vor.u32 %v1199_v14, %v908_v13 }
   0x7   :  { %1273 = vmatpush.bf16.msra.mxu3 %v1238_v1  ;;  %547 = vmatpush.bf16.msra.mxu0 %v1238_v1  ;;  %v1247_v20 = vld [vmem:[%s1736_s1 + $0x78] sm:$0xff]  ;;  %v1029_v22 = vor.u32 %v1229_v17, %v1028_v16  ;;  %v1262_v24 = vld [vmem:[%s1736_s1 + $0xf0] sm:$0xff]  ;;  %v1261_v28 = vld [vmem:[%s1736_s1 + $0xe8] sm:$0xff] }
   0x8   :  { %v1267_v23 = vld [vmem:[%s1736_s1 + $0x118] sm:$0xff]  ;;  %v1254_v25 = vld [vmem:[%s1736_s1 + $0xb0] sm:$0xff]  ;;  %v1253_v29 = vld [vmem:[%s1736_s1 + $0xa8] sm:$0xff] }
   0x9   :  { %v1246_v26 = vld [vmem:[%s1736_s1 + $0x70] sm:$0xff]  ;;  %v1245_v30 = vld [vmem:[%s1736_s1 + $0x68] sm:$0xff]  ;;  %v1260_v32 = vld [vmem:[%s1736_s1 + $0xe0] sm:$0xff] }
   0xa   :  { %1274 = vmatpush.bf16.msra.mxu1 %v1237_v2  ;;  %1275 = vmatpush.bf16.msra.mxu2 %v1237_v2  ;;  %v1266_v27 = vld [vmem:[%s1736_s1 + $0x110] sm:$0xff]  ;;  %v1265_v31 = vld [vmem:[%s1736_s1 + $0x108] sm:$0xff]  ;;  %v1252_v33 = vld [vmem:[%s1736_s1 + $0xa0] sm:$0xff] }
   0xb   :  { %1276 = vmatpush.bf16.msra.mxu3 %v1237_v2  ;;  %548 = vmatpush.bf16.msra.mxu0 %v1237_v2  ;;  %v1244_v34 = vld [vmem:[%s1736_s1 + $0x60] sm:$0xff]  ;;  %v968_v35 = vld [vmem:[%s1735_s0 + $0x78] sm:$0xf]  ;;  %v1214_v36 = vld [vmem:[%s1735_s0 + $0x88] sm:$0xf0] }
   0xc   :  { %v1008_v37 = vld [vmem:[%s1735_s0 + $0xc8] sm:$0xf]  ;;  %v1224_v38 = vld [vmem:[%s1735_s0 + $0xd8] sm:$0xf0]  ;;  %v1264_v41 = vld [vmem:[%s1736_s1 + $0x100] sm:$0xff]  ;;  %v969_v44 = vor.u32 %v1214_v36, %v968_v35 }
   0xd   :  { %v928_v39 = vld [vmem:[%s1735_s0 + $0x28] sm:$0xf]  ;;  %v1204_v40 = vld [vmem:[%s1735_s0 + $0x38] sm:$0xf0]  ;;  %v1009_v45 = vor.u32 %v1224_v38, %v1008_v37  ;;  %v1258_v48 = vld [vmem:[%s1736_s1 + $0xd0] sm:$0xff] }
   0xe   :  { %1277 = vmatpush.bf16.msra.mxu1 %v1236_v3  ;;  %1278 = vmatpush.bf16.msra.mxu2 %v1236_v3  ;;  %v1259_v42 = vld [vmem:[%s1736_s1 + $0xd8] sm:$0xff]  ;;  %v929_v47 = vor.u32 %v1204_v40, %v928_v39  ;;  %v1250_v49 = vld [vmem:[%s1736_s1 + $0x90] sm:$0xff]  ;;  %v1257_v51 = vld [vmem:[%s1736_s1 + $0xc8] sm:$0xff] }
   0xf   :  { %1279 = vmatpush.bf16.msra.mxu3 %v1236_v3  ;;  %549 = vmatpush.bf16.msra.mxu0 %v1236_v3  ;;  %v1251_v43 = vld [vmem:[%s1736_s1 + $0x98] sm:$0xff]  ;;  %v1242_v50 = vld [vmem:[%s1736_s1 + $0x50] sm:$0xff]  ;;  %v1249_v52 = vld [vmem:[%s1736_s1 + $0x88] sm:$0xff] }
  0x10   :  { %v1243_v46 = vld [vmem:[%s1736_s1 + $0x58] sm:$0xff]  ;;  %v1241_v53 = vld [vmem:[%s1736_s1 + $0x48] sm:$0xff]  ;;  %v1256_v54 = vld [vmem:[%s1736_s1 + $0xc0] sm:$0xff] }
  0x11   :  { %v1248_v55 = vld [vmem:[%s1736_s1 + $0x80] sm:$0xff]  ;;  %v1198_v56 = vld [vmem:[%s1735_s0 + $0xc] sm:$0xf]  ;;  %v910_v60 = vld [vmem:[%s1735_s0 + $0x14] sm:$0xf0] }
  0x12   :  { %1280 = vmatpush.bf16.msra.mxu1 %v1235_v4  ;;  %1281 = vmatpush.bf16.msra.mxu2 %v1235_v4  ;;  %v918_v57 = vld [vmem:[%s1735_s0 + $0x1c] sm:$0xf0]  ;;  %v1197_v59 = vld [vmem:[%s1735_s0 + $0x4] sm:$0xf]  ;;  %v916_v61 = vld [vmem:[%s1735_s0 + $0x8] sm:$0xf] }
  0x13   :  { %1282 = vmatpush.bf16.msra.mxu3 %v1235_v4  ;;  %550 = vmatpush.bf16.msra.mxu0 %v1235_v4  ;;  %v1240_v58 = vld [vmem:[%s1736_s1 + $0x40] sm:$0xff]  ;;  %v1200_v62 = vld [vmem:[%s1735_s0 + $0x18] sm:$0xf0]  ;;  %v921_v63 = vor.u32 %v1198_v56, %v918_v57  ;;  %v924_v0 = vld [vmem:[%s1735_s0 + $0x10] sm:$0xf]  ;;  %v913_v2 = vor.u32 %v1197_v59, %v910_v60 }
  0x14   :  { %v1201_v1 = vld [vmem:[%s1735_s0 + $0x20] sm:$0xf0]  ;;  %v917_v3 = vor.u32 %v1200_v62, %v916_v61  ;;  %v930_v8 = vld [vmem:[%s1735_s0 + $0x3c] sm:$0xf0]  ;;  %v936_v9 = vld [vmem:[%s1735_s0 + $0x30] sm:$0xf] }
  0x15   :  { %v925_v4 = vor.u32 %v1201_v1, %v924_v0  ;;  %v1205_v10 = vld [vmem:[%s1735_s0 + $0x40] sm:$0xf0]  ;;  %v1206_v13 = vld [vmem:[%s1735_s0 + $0x48] sm:$0xf0]  ;;  %v1208_v17 = vld [vmem:[%s1735_s0 + $0x5c] sm:$0xf] }
  0x16   :  { %1283 = vmatpush.bf16.msra.mxu1 %v1234_v5  ;;  %1284 = vmatpush.bf16.msra.mxu2 %v1234_v5  ;;  %v984_v36 = vld [vmem:[%s1735_s0 + $0x88] sm:$0xf]  ;;  %v1216_v37 = vld [vmem:[%s1735_s0 + $0x98] sm:$0xf0]  ;;  %v1010_v56 = vld [vmem:[%s1735_s0 + $0xdc] sm:$0xf0] }
  0x17   :  { %1285 = vmatpush.bf16.msra.mxu3 %v1234_v5  ;;  %551 = vmatpush.bf16.msra.mxu0 %v1234_v5  ;;  %v1203_v5 = vld [vmem:[%s1735_s0 + $0x34] sm:$0xf]  ;;  %v985_v40 = vor.u32 %v1216_v37, %v984_v36  ;;  %v1016_v57 = vld [vmem:[%s1735_s0 + $0xd0] sm:$0xf]  ;;  %v1024_v60 = vld [vmem:[%s1735_s0 + $0xd8] sm:$0xf] }
  0x18   :  { %v1226_v61 = vld [vmem:[%s1735_s0 + $0xe8] sm:$0xf0]  ;;  %v1228_v1 = vld [vmem:[%s1735_s0 + $0xfc] sm:$0xf] }
  0x19   :  { %v1025_v0 = vor.u32 %v1226_v61, %v1024_v60 }
  0x1a   :  { %1286 = vmatpush.bf16.msra.mxu1 %v1233_v6  ;;  %1287 = vmatpush.bf16.msra.mxu2 %v1233_v6 }
  0x1b   :  { %1288 = vmatpush.bf16.msra.mxu3 %v1233_v6  ;;  %552 = vmatpush.bf16.msra.mxu0 %v1233_v6  ;;  %v938_v6 = vld [vmem:[%s1735_s0 + $0x44] sm:$0xf0] }
  0x1c   :  { %v941_v11 = vor.u32 %v1203_v5, %v938_v6  ;;  %v1036_v5 = vld [vmem:[%s1735_s0 + $0xf8] sm:$0xf]  ;;  %v1230_v6 = vld [vmem:[%s1735_s0 + $0x108] sm:$0xf0] }
  0x1e   :  { %1289 = vmatpush.bf16.msra.mxu1 %v1232_v7  ;;  %1290 = vmatpush.bf16.msra.mxu2 %v1232_v7 }
  0x1f   :  { %1291 = vmatpush.bf16.msra.mxu3 %v1232_v7  ;;  %553 = vmatpush.bf16.msra.mxu0 %v1232_v7  ;;  %v1202_v7 = vld [vmem:[%s1735_s0 + $0x2c] sm:$0xf] }
  0x20   :  { %v933_v14 = vor.u32 %v1202_v7, %v930_v8  ;;  %v1044_v8 = vld [vmem:[%s1735_s0 + $0x100] sm:$0xf] }
  0x21   :  { %564 = vmatmul.bf16.vlgmr.msra.gmra.mxu1 %v949_v18  ;;  %574 = vmatmul.bf16.vlgmr.msra.gmra.mxu2 %v989_v19  ;;  %v958_v18 = vld [vmem:[%s1735_s0 + $0x6c] sm:$0xf0]  ;;  %v1207_v19 = vld [vmem:[%s1735_s0 + $0x54] sm:$0xf] }
  0x22   :  { %634 = vmatpush.bf16.msrb.mxu2 %v1255_v15  ;;  %590 = vmatpush.bf16.msrb.mxu1 %v1247_v20  ;;  %v937_v15 = vor.u32 %v1205_v10, %v936_v9  ;;  %v950_v20 = vld [vmem:[%s1735_s0 + $0x64] sm:$0xf0]  ;;  %v1231_v9 = vld [vmem:[%s1735_s0 + $0x110] sm:$0xf0] }
  0x23   :  { %678 = vmatpush.bf16.msrb.mxu3 %v1263_v12  ;;  %554 = vmatmul.bf16.vlgmr.msra.gmra.mxu0 %v909_v21  ;;  %v944_v12 = vld [vmem:[%s1735_s0 + $0x38] sm:$0xf] }
  0x24   :  { %584 = vmatmul.bf16.vlgmr.msra.gmra.mxu3 %v1029_v22  ;;  %726 = vmatpush.bf16.msrb.mxu0 %v1267_v23  ;;  %v945_v16 = vor.u32 %v1206_v13, %v944_v12  ;;  %v956_v21 = vld [vmem:[%s1735_s0 + $0x58] sm:$0xf]  ;;  %v1210_v22 = vld [vmem:[%s1735_s0 + $0x68] sm:$0xf0]  ;;  %v961_v23 = vor.u32 %v1208_v17, %v958_v18  ;;  %v1045_v13 = vor.u32 %v1231_v9, %v1044_v8 }
  0x26   :  { %635 = vmatpush.bf16.msrb.mxu2 %v1254_v25  ;;  %591 = vmatpush.bf16.msrb.mxu1 %v1246_v26  ;;  %v1211_v25 = vld [vmem:[%s1735_s0 + $0x70] sm:$0xf0]  ;;  %v953_v26 = vor.u32 %v1207_v19, %v950_v20 }
  0x27   :  { %679 = vmatpush.bf16.msrb.mxu3 %v1262_v24  ;;  %v964_v24 = vld [vmem:[%s1735_s0 + $0x60] sm:$0xf] }
  0x28   :  { %727 = vmatpush.bf16.msrb.mxu0 %v1266_v27  ;;  %v957_v27 = vor.u32 %v1210_v22, %v956_v21 }
  0x2a   :  { %636 = vmatpush.bf16.msrb.mxu2 %v1253_v29  ;;  %592 = vmatpush.bf16.msrb.mxu1 %v1245_v30  ;;  %v1213_v29 = vld [vmem:[%s1735_s0 + $0x84] sm:$0xf]  ;;  %v978_v30 = vld [vmem:[%s1735_s0 + $0x94] sm:$0xf0] }
  0x2b   :  { %680 = vmatpush.bf16.msrb.mxu3 %v1261_v28  ;;  %v965_v28 = vor.u32 %v1211_v25, %v964_v24  ;;  %v981_v35 = vor.u32 %v1213_v29, %v978_v30 }
  0x2c   :  { %728 = vmatpush.bf16.msrb.mxu0 %v1265_v31  ;;  %v1212_v31 = vld [vmem:[%s1735_s0 + $0x7c] sm:$0xf] }
  0x2e   :  { %637 = vmatpush.bf16.msrb.mxu2 %v1252_v33  ;;  %593 = vmatpush.bf16.msrb.mxu1 %v1244_v34  ;;  %v976_v33 = vld [vmem:[%s1735_s0 + $0x80] sm:$0xf]  ;;  %v1215_v34 = vld [vmem:[%s1735_s0 + $0x90] sm:$0xf0] }
  0x2f   :  { %681 = vmatpush.bf16.msrb.mxu3 %v1260_v32  ;;  %v970_v32 = vld [vmem:[%s1735_s0 + $0x8c] sm:$0xf0]  ;;  %v977_v39 = vor.u32 %v1215_v34, %v976_v33 }
  0x30   :  { %729 = vmatpush.bf16.msrb.mxu0 %v1264_v41  ;;  %v973_v38 = vor.u32 %v1212_v31, %v970_v32  ;;  %v1218_v41 = vld [vmem:[%s1735_s0 + $0xac] sm:$0xf] }
  0x31   :  { %569 = vmatmul.bf16.gmra.mxu1 %v969_v44  ;;  %579 = vmatmul.bf16.gmra.mxu2 %v1009_v45  ;;  %v990_v44 = vld [vmem:[%s1735_s0 + $0xb4] sm:$0xf0]  ;;  %v996_v45 = vld [vmem:[%s1735_s0 + $0xa8] sm:$0xf] }
  0x32   :  { %638 = vmatpush.bf16.msrb.mxu2 %v1251_v43  ;;  %594 = vmatpush.bf16.msrb.mxu1 %v1243_v46  ;;  %v1217_v43 = vld [vmem:[%s1735_s0 + $0xa4] sm:$0xf]  ;;  %v1220_v46 = vld [vmem:[%s1735_s0 + $0xb8] sm:$0xf0] }
  0x33   :  { %682 = vmatpush.bf16.msrb.mxu3 %v1259_v42  ;;  %559 = vmatmul.bf16.gmra.mxu0 %v929_v47  ;;  %v998_v42 = vld [vmem:[%s1735_s0 + $0xbc] sm:$0xf0] }
  0x34   :  { %v1001_v47 = vor.u32 %v1218_v41, %v998_v42 }
  0x36   :  { %639 = vmatpush.bf16.msrb.mxu2 %v1250_v49  ;;  %595 = vmatpush.bf16.msrb.mxu1 %v1242_v50  ;;  %v1221_v49 = vld [vmem:[%s1735_s0 + $0xc0] sm:$0xf0]  ;;  %v993_v50 = vor.u32 %v1217_v43, %v990_v44 }
  0x37   :  { %683 = vmatpush.bf16.msrb.mxu3 %v1258_v48  ;;  %v1004_v48 = vld [vmem:[%s1735_s0 + $0xb0] sm:$0xf] }
  0x3a   :  { %640 = vmatpush.bf16.msrb.mxu2 %v1249_v52  ;;  %596 = vmatpush.bf16.msrb.mxu1 %v1241_v53  ;;  %v1005_v52 = vor.u32 %v1221_v49, %v1004_v48  ;;  %v1223_v53 = vld [vmem:[%s1735_s0 + $0xd4] sm:$0xf] }
  0x3b   :  { %684 = vmatpush.bf16.msrb.mxu3 %v1257_v51  ;;  %v997_v51 = vor.u32 %v1220_v46, %v996_v45 }
  0x3e   :  { %641 = vmatpush.bf16.msrb.mxu2 %v1248_v55  ;;  %597 = vmatpush.bf16.msrb.mxu1 %v1240_v58  ;;  %v1222_v55 = vld [vmem:[%s1735_s0 + $0xcc] sm:$0xf]  ;;  %v1225_v58 = vld [vmem:[%s1735_s0 + $0xe0] sm:$0xf0] }
  0x3f   :  { %685 = vmatpush.bf16.msrb.mxu3 %v1256_v54  ;;  %v1018_v54 = vld [vmem:[%s1735_s0 + $0xe4] sm:$0xf0]  ;;  %v1013_v62 = vor.u32 %v1222_v55, %v1010_v56 }
  0x40   :  { %v1021_v59 = vor.u32 %v1223_v53, %v1018_v54 }
  0x41   :  { %598 = vmatmul.bf16.vlgmr.msrb.gmra.mxu1 %v913_v2  ;;  %642 = vmatmul.bf16.vlgmr.msrb.gmra.mxu2 %v917_v3  ;;  %v1038_v2 = vld [vmem:[%s1735_s0 + $0x10c] sm:$0xf0]  ;;  %v1227_v3 = vld [vmem:[%s1735_s0 + $0xf4] sm:$0xf] }
  0x42   :  { %686 = vmatmul.bf16.vlgmr.msrb.gmra.mxu3 %v921_v63  ;;  %v1017_v63 = vor.u32 %v1225_v58, %v1016_v57  ;;  %v1041_v7 = vor.u32 %v1228_v1, %v1038_v2 }
  0x43   :  { %1190 = vmatmul.msk.bf16.vlgmr.msrb.gmra.mxu0 %vm524_vm0, %v925_v4  ;;  %v1030_v4 = vld [vmem:[%s1735_s0 + $0x104] sm:$0xf0] }
  0x44   :  { %v1033_v10 = vor.u32 %v1227_v3, %v1030_v4 }
  0x51   :  { %603 = vmatmul.bf16.gmra.mxu1 %v933_v14  ;;  %647 = vmatmul.bf16.gmra.mxu2 %v937_v15  ;;  %v1643_v15 = vld [vmem:[%s1737_s2] ss:$0 sm:$0xff] }
  0x52   :  { %691 = vmatmul.bf16.gmra.mxu3 %v941_v11  ;;  %v1037_v11 = vor.u32 %v1230_v6, %v1036_v5 }
  0x53   :  { %1191 = vmatmul.msk.bf16.gmra.mxu0 %vm524_vm0, %v945_v16 }
  0x61   :  { %608 = vmatmul.bf16.gmra.mxu1 %v953_v26  ;;  %652 = vmatmul.bf16.gmra.mxu2 %v957_v27 }
  0x62   :  { %696 = vmatmul.bf16.gmra.mxu3 %v961_v23 }
  0x63   :  { %1192 = vmatmul.msk.bf16.gmra.mxu0 %vm524_vm0, %v965_v28 }
  0x71   :  { %613 = vmatmul.bf16.gmra.mxu1 %v973_v38  ;;  %657 = vmatmul.bf16.gmra.mxu2 %v977_v39 }
  0x72   :  { %701 = vmatmul.bf16.gmra.mxu3 %v981_v35 }
  0x73   :  { %1193 = vmatmul.msk.bf16.gmra.mxu0 %vm524_vm0, %v985_v40 }
  0x81   :  { %618 = vmatmul.bf16.gmra.mxu1 %v993_v50  ;;  %662 = vmatmul.bf16.gmra.mxu2 %v997_v51 }
  0x82   :  { %706 = vmatmul.bf16.gmra.mxu3 %v1001_v47 }
  0x83   :  { %1194 = vmatmul.msk.bf16.gmra.mxu0 %vm524_vm0, %v1005_v52 }
  0x91   :  { %623 = vmatmul.bf16.gmra.mxu1 %v1013_v62  ;;  %667 = vmatmul.bf16.gmra.mxu2 %v1017_v63 }
  0x92   :  { %711 = vmatmul.bf16.gmra.mxu3 %v1021_v59 }
  0x93   :  { %1195 = vmatmul.msk.bf16.gmra.mxu0 %vm524_vm0, %v1025_v0 }
  0x9e   :  { %v1637_v12 = vpop.f32.mrf.mxu1 }
  0xa0   :  { %v555_v14 = vpop.f32.mrf.mxu0 }
  0xa1   :  { %628 = vmatmul.bf16.gmra.mxu1 %v1033_v10  ;;  %672 = vmatmul.bf16.gmra.mxu2 %v1037_v11  ;;  %v556_v35 = vadd.f32 %v1643_v15, %v555_v14 }
  0xa2   :  { %716 = vmatmul.bf16.gmra.mxu3 %v1041_v7 }
  0xa3   :  { %1196 = vmatmul.msk.bf16.gmra.mxu0 %vm524_vm0, %v1045_v13 }
  0xa4   :  { %v575_v16 = vpop.f32.mrf.mxu2 }
  0xa5   :  { %v1646_v17 = vadd.f32 %v1643_v15, %v575_v16  ;;  %v566_v16 = vadd.f32 %v1643_v15, %v1637_v12 }
  0xa6   :  { %v1648_v18 = vpop.f32.mrf.mxu1 }
  0xa7   :  { %v585_v19 = vpop.f32.mrf.mxu3  ;;  %v568_v12 = vadd.f32 %v1643_v15, %v1648_v18 }
  0xa8   :  { %v557_v20 = vpop.f32.mrf.mxu0  ;;  %v1651_v21 = vadd.f32 %v1643_v15, %v585_v19 }
  0xa9   :  { %v558_v43 = vadd.f32 %v1643_v15, %v557_v20 }
  0xac   :  { %v577_v22 = vpop.f32.mrf.mxu2 }
  0xad   :  { %v1654_v23 = vadd.f32 %v1643_v15, %v577_v22 }
  0xae   :  { %v1656_v24 = vpop.f32.mrf.mxu1 }
  0xaf   :  { %v587_v25 = vpop.f32.mrf.mxu3  ;;  %v571_v18 = vadd.f32 %v1643_v15, %v1656_v24 }
  0xb0   :  { %v560_v26 = vpop.f32.mrf.mxu0 }
  0xb1   :  { %v561_v54 = vadd.f32 %v1643_v15, %v560_v26 }
  0xb4   :  { %v580_v27 = vpop.f32.mrf.mxu2 }
  0xb5   :  { %v1659_v28 = vadd.f32 %v1643_v15, %v580_v27 }
  0xb6   :  { %v1661_v29 = vpop.f32.mrf.mxu1 }
  0xb7   :  { %v573_v24 = vadd.f32 %v1643_v15, %v1661_v29 }
  0xb8   :  { %v562_v30 = vpop.f32.mrf.mxu0 }
  0xb9   :  { %v563_v2 = vadd.f32 %v1643_v15, %v562_v30 }
  0xbc   :  { %v582_v31 = vpop.f32.mrf.mxu2 }
  0xbd   :  { %v1664_v32 = vadd.f32 %v1643_v15, %v582_v31 }
  0xbe   :  { %v599_v33 = vpop.f32.mrf.mxu1 }
  0xbf   :  { %v600_v37 = vadd.f32 %v599_v33, %v556_v35 }
  0xc0   :  { %v731_v34 = vpop.f32.mrf.mxu0 }
  0xc4   :  { %v643_v38 = vpop.f32.mrf.mxu2 }
  0xc5   :  { %v687_v36 = vpop.f32.mrf.mxu3  ;;  %v644_v39 = vadd.f32 %v643_v38, %v600_v37 }
  0xc6   :  { %v601_v40 = vpop.f32.mrf.mxu1 }
  0xc7   :  { %v688_v41 = vadd.f32 %v687_v36, %v644_v39  ;;  %v602_v47 = vadd.f32 %v601_v40, %v558_v43 }
  0xc8   :  { %v733_v42 = vpop.f32.mrf.mxu0 }
  0xc9   :  { %v732_v44 = vadd.f32 %v731_v34, %v688_v41 }
  0xcb   :  { %v766_v46 = vmax.f32 %v732_v44, 0.0 }
  0xcc   :  { %v645_v48 = vpop.f32.mrf.mxu2 }
  0xcd   :  { %v689_v45 = vpop.f32.mrf.mxu3  ;;  %v780_v49 = vpack.c.bf16 %v766_v46, %v766_v46  ;;  %v646_v50 = vadd.f32 %v645_v48, %v602_v47 }
  0xce   :  { %v604_v51 = vpop.f32.mrf.mxu1 }
  0xcf   :  { %795 = vst.msk [vmem:[#allocation2] sm:$0xf] %vm794_vm1, %v780_v49  ;;  %v690_v52 = vadd.f32 %v689_v45, %v646_v50  ;;  %v605_v58 = vadd.f32 %v604_v51, %v561_v54 }
  0xd0   :  { %v736_v53 = vpop.f32.mrf.mxu0 }
  0xd1   :  { %v734_v55 = vadd.f32 %v733_v42, %v690_v52 }
  0xd3   :  { %v767_v57 = vmax.f32 %v734_v55, 0.0 }
  0xd4   :  { %v648_v59 = vpop.f32.mrf.mxu2 }
  0xd5   :  { %v692_v56 = vpop.f32.mrf.mxu3  ;;  %v781_v60 = vpack.c.bf16 %v767_v57, %v767_v57  ;;  %v649_v61 = vadd.f32 %v648_v59, %v605_v58 }
  0xd6   :  { %v827_v62 = vld [vmem:[#allocation2] sm:$0xf]  ;;  %v606_v63 = vpop.f32.mrf.mxu1 }
  0xd7   :  { %828 = vst [vmem:[%s1738_s3] sm:$0xf] %v827_v62  ;;  %v693_v0 = vadd.f32 %v692_v56, %v649_v61  ;;  %v607_v6 = vadd.f32 %v606_v63, %v563_v2 }
  0xd8   :  { %v738_v1 = vpop.f32.mrf.mxu0  ;;  %796 = vst.msk [vmem:[#allocation2 + $0x4] sm:$0xf] %vm794_vm1, %v781_v60 }
  0xd9   :  { %v737_v3 = vadd.f32 %v736_v53, %v693_v0 }
  0xdb   :  { %v768_v5 = vmax.f32 %v737_v3, 0.0 }
  0xdc   :  { %v650_v7 = vpop.f32.mrf.mxu2 }
  0xdd   :  { %v694_v4 = vpop.f32.mrf.mxu3  ;;  %v782_v8 = vpack.c.bf16 %v768_v5, %v768_v5  ;;  %v651_v9 = vadd.f32 %v650_v7, %v607_v6 }
  0xde   :  { %v609_v10 = vpop.f32.mrf.mxu1 }
  0xdf   :  { %v829_v11 = vld [vmem:[#allocation2 + $0x4] sm:$0xf]  ;;  %797 = vst.msk [vmem:[#allocation2 + $0x8] sm:$0xf] %vm794_vm1, %v782_v8  ;;  %v695_v13 = vadd.f32 %v694_v4, %v651_v9  ;;  %v610_v25 = vadd.f32 %v609_v10, %v566_v16 }
  0xe0   :  { %v741_v14 = vpop.f32.mrf.mxu0  ;;  %830 = vst [vmem:[%s1738_s3 + $0x4] sm:$0xf] %v829_v11 }
  0xe1   :  { %v739_v19 = vadd.f32 %v738_v1, %v695_v13 }
  0xe3   :  { %v769_v22 = vmax.f32 %v739_v19, 0.0 }
  0xe4   :  { %v653_v26 = vpop.f32.mrf.mxu2 }
  0xe5   :  { %v697_v20 = vpop.f32.mrf.mxu3  ;;  %v783_v27 = vpack.c.bf16 %v769_v22, %v769_v22  ;;  %v654_v30 = vadd.f32 %v653_v26, %v610_v25 }
  0xe6   :  { %v831_v31 = vld [vmem:[#allocation2 + $0x8] sm:$0xf]  ;;  %v611_v33 = vpop.f32.mrf.mxu1 }
  0xe7   :  { %832 = vst [vmem:[%s1738_s3 + $0x8] sm:$0xf] %v831_v31  ;;  %v698_v34 = vadd.f32 %v697_v20, %v654_v30  ;;  %v612_v39 = vadd.f32 %v611_v33, %v568_v12 }
  0xe8   :  { %v743_v35 = vpop.f32.mrf.mxu0  ;;  %798 = vst.msk [vmem:[#allocation2 + $0xc] sm:$0xf] %vm794_vm1, %v783_v27 }
  0xe9   :  { %v742_v36 = vadd.f32 %v741_v14, %v698_v34 }
  0xeb   :  { %v770_v38 = vmax.f32 %v742_v36, 0.0 }
  0xec   :  { %v655_v40 = vpop.f32.mrf.mxu2 }
  0xed   :  { %v699_v37 = vpop.f32.mrf.mxu3  ;;  %v784_v41 = vpack.c.bf16 %v770_v38, %v770_v38  ;;  %v656_v42 = vadd.f32 %v655_v40, %v612_v39 }
  0xee   :  { %v614_v43 = vpop.f32.mrf.mxu1 }
  0xef   :  { %v833_v44 = vld [vmem:[#allocation2 + $0xc] sm:$0xf]  ;;  %799 = vst.msk [vmem:[#allocation2 + $0x10] sm:$0xf] %vm794_vm1, %v784_v41  ;;  %v700_v45 = vadd.f32 %v699_v37, %v656_v42  ;;  %v615_v50 = vadd.f32 %v614_v43, %v571_v18 }
  0xf0   :  { %v746_v46 = vpop.f32.mrf.mxu0  ;;  %834 = vst [vmem:[%s1738_s3 + $0xc] sm:$0xf] %v833_v44 }
  0xf1   :  { %v744_v47 = vadd.f32 %v743_v35, %v700_v45 }
  0xf3   :  { %v771_v49 = vmax.f32 %v744_v47, 0.0 }
  0xf4   :  { %v658_v51 = vpop.f32.mrf.mxu2 }
  0xf5   :  { %v702_v48 = vpop.f32.mrf.mxu3  ;;  %v785_v52 = vpack.c.bf16 %v771_v49, %v771_v49  ;;  %v659_v53 = vadd.f32 %v658_v51, %v615_v50 }
  0xf6   :  { %v835_v54 = vld [vmem:[#allocation2 + $0x10] sm:$0xf]  ;;  %v616_v55 = vpop.f32.mrf.mxu1 }
  0xf7   :  { %836 = vst [vmem:[%s1738_s3 + $0x10] sm:$0xf] %v835_v54  ;;  %v703_v56 = vadd.f32 %v702_v48, %v659_v53  ;;  %v617_v61 = vadd.f32 %v616_v55, %v573_v24 }
  0xf8   :  { %v748_v57 = vpop.f32.mrf.mxu0  ;;  %800 = vst.msk [vmem:[#allocation2 + $0x14] sm:$0xf] %vm794_vm1, %v785_v52 }
  0xf9   :  { %v747_v58 = vadd.f32 %v746_v46, %v703_v56 }
  0xfb   :  { %v772_v60 = vmax.f32 %v747_v58, 0.0 }
  0xfc   :  { %v660_v62 = vpop.f32.mrf.mxu2 }
  0xfd   :  { %v704_v59 = vpop.f32.mrf.mxu3  ;;  %v786_v63 = vpack.c.bf16 %v772_v60, %v772_v60  ;;  %v661_v0 = vadd.f32 %v660_v62, %v617_v61 }
  0xfe   :  { %v619_v1 = vpop.f32.mrf.mxu1 }
  0xff   :  { %v837_v2 = vld [vmem:[#allocation2 + $0x14] sm:$0xf]  ;;  %801 = vst.msk [vmem:[#allocation2 + $0x18] sm:$0xf] %vm794_vm1, %v786_v63  ;;  %v705_v3 = vadd.f32 %v704_v59, %v661_v0  ;;  %v620_v29 = vadd.f32 %v619_v1, %v1646_v17 }
 0x100   :  { %v751_v4 = vpop.f32.mrf.mxu0  ;;  %838 = vst [vmem:[%s1738_s3 + $0x14] sm:$0xf] %v837_v2 }
 0x101   :  { %v749_v5 = vadd.f32 %v748_v57, %v705_v3 }
 0x103   :  { %v773_v15 = vmax.f32 %v749_v5, 0.0 }
 0x104   :  { %v663_v7 = vpop.f32.mrf.mxu2 }
 0x105   :  { %v707_v6 = vpop.f32.mrf.mxu3  ;;  %v787_v8 = vpack.c.bf16 %v773_v15, %v773_v15  ;;  %v664_v9 = vadd.f32 %v663_v7, %v620_v29 }
 0x106   :  { %v839_v10 = vld [vmem:[#allocation2 + $0x18] sm:$0xf]  ;;  %v621_v11 = vpop.f32.mrf.mxu1 }
 0x107   :  { %840 = vst [vmem:[%s1738_s3 + $0x18] sm:$0xf] %v839_v10  ;;  %v708_v13 = vadd.f32 %v707_v6, %v664_v9  ;;  %v622_v22 = vadd.f32 %v621_v11, %v1654_v23 }
 0x108   :  { %802 = vst.msk [vmem:[#allocation2 + $0x1c] sm:$0xf] %vm794_vm1, %v787_v8  ;;  %v753_v14 = vpop.f32.mrf.mxu0 }
 0x109   :  { %v752_v16 = vadd.f32 %v751_v4, %v708_v13 }
 0x10b   :  { %v774_v20 = vmax.f32 %v752_v16, 0.0 }
 0x10c   :  { %v665_v25 = vpop.f32.mrf.mxu2 }
 0x10d   :  { %v709_v19 = vpop.f32.mrf.mxu3  ;;  %v788_v17 = vpack.c.bf16 %v774_v20, %v774_v20  ;;  %v666_v26 = vadd.f32 %v665_v25, %v622_v22 }
 0x10e   :  { %v624_v27 = vpop.f32.mrf.mxu1 }
 0x10f   :  { %v841_v30 = vld [vmem:[#allocation2 + $0x1c] sm:$0xf]  ;;  %803 = vst.msk [vmem:[#allocation2 + $0x20] sm:$0xf] %vm794_vm1, %v788_v17  ;;  %v710_v31 = vadd.f32 %v709_v19, %v666_v26  ;;  %v625_v36 = vadd.f32 %v624_v27, %v1659_v28 }
 0x110   :  { %842 = vst [vmem:[%s1738_s3 + $0x1c] sm:$0xf] %v841_v30  ;;  %v756_v34 = vpop.f32.mrf.mxu0 }
 0x111   :  { %v754_v33 = vadd.f32 %v753_v14, %v710_v31 }
 0x113   :  { %v775_v12 = vmax.f32 %v754_v33, 0.0 }
 0x114   :  { %v668_v37 = vpop.f32.mrf.mxu2 }
 0x115   :  { %v712_v35 = vpop.f32.mrf.mxu3  ;;  %v789_v23 = vpack.c.bf16 %v775_v12, %v775_v12  ;;  %v669_v38 = vadd.f32 %v668_v37, %v625_v36 }
 0x116   :  { %v843_v39 = vld [vmem:[#allocation2 + $0x20] sm:$0xf]  ;;  %v626_v40 = vpop.f32.mrf.mxu1 }
 0x117   :  { %844 = vst [vmem:[%s1738_s3 + $0x20] sm:$0xf] %v843_v39  ;;  %v713_v41 = vadd.f32 %v712_v35, %v669_v38  ;;  %v627_v45 = vadd.f32 %v626_v40, %v1664_v32 }
 0x118   :  { %804 = vst.msk [vmem:[#allocation2 + $0x24] sm:$0xf] %vm794_vm1, %v789_v23  ;;  %v758_v46 = vpop.f32.mrf.mxu0 }
 0x119   :  { %v757_v42 = vadd.f32 %v756_v34, %v713_v41 }
 0x11b   :  { %v776_v44 = vmax.f32 %v757_v42, 0.0 }
 0x11c   :  { %v670_v18 = vpop.f32.mrf.mxu2 }
 0x11d   :  { %v714_v43 = vpop.f32.mrf.mxu3  ;;  %v790_v28 = vpack.c.bf16 %v776_v44, %v776_v44  ;;  %v671_v47 = vadd.f32 %v670_v18, %v627_v45 }
 0x11e   :  { %v629_v48 = vpop.f32.mrf.mxu1 }
 0x11f   :  { %v845_v49 = vld [vmem:[#allocation2 + $0x24] sm:$0xf]  ;;  %805 = vst.msk [vmem:[#allocation2 + $0x28] sm:$0xf] %vm794_vm1, %v790_v28  ;;  %v715_v50 = vadd.f32 %v714_v43, %v671_v47  ;;  %v630_v53 = vadd.f32 %v629_v48, %v1651_v21 }
 0x120   :  { %846 = vst [vmem:[%s1738_s3 + $0x24] sm:$0xf] %v845_v49  ;;  %v761_v24 = vpop.f32.mrf.mxu0 }
 0x121   :  { %v759_v51 = vadd.f32 %v758_v46, %v715_v50 }
 0x123   :  { %v777_v52 = vmax.f32 %v759_v51, 0.0 }
 0x124   :  { %v673_v55 = vpop.f32.mrf.mxu2 }
 0x125   :  { %v717_v54 = vpop.f32.mrf.mxu3  ;;  %v791_v32 = vpack.c.bf16 %v777_v52, %v777_v52  ;;  %v674_v56 = vadd.f32 %v673_v55, %v630_v53 }
 0x126   :  { %v847_v57 = vld [vmem:[#allocation2 + $0x28] sm:$0xf]  ;;  %v631_v59 = vpop.f32.mrf.mxu1 }
 0x127   :  { %848 = vst [vmem:[%s1738_s3 + $0x28] sm:$0xf] %v847_v57  ;;  %v718_v58 = vadd.f32 %v717_v54, %v674_v56 }
 0x128   :  { %806 = vst.msk [vmem:[#allocation2 + $0x2c] sm:$0xf] %vm794_vm1, %v791_v32  ;;  %v763_v1 = vpop.f32.mrf.mxu0 }
 0x129   :  { %v762_v60 = vadd.f32 %v761_v24, %v718_v58 }
 0x12b   :  { %v778_v61 = vmax.f32 %v762_v60, 0.0 }
 0x12c   :  { %v675_v62 = vpop.f32.mrf.mxu2 }
 0x12d   :  { %v792_v63 = vpack.c.bf16 %v778_v61, %v778_v61  ;;  %v719_v0 = vpop.f32.mrf.mxu3 }
 0x12f   :  { %v849_v21 = vld [vmem:[#allocation2 + $0x2c] sm:$0xf]  ;;  %807 = vst.msk [vmem:[#allocation2 + $0x30] sm:$0xf] %vm794_vm1, %v792_v63 }
 0x130   :  { %850 = vst [vmem:[%s1738_s3 + $0x2c] sm:$0xf] %v849_v21 }
 0x136   :  { %v851_v2 = vld [vmem:[#allocation2 + $0x30] sm:$0xf] }
 0x137   :  { %852 = vst [vmem:[%s1738_s3 + $0x30] sm:$0xf] %v851_v2 }

// kernel: qnetwork_forward.7
= control target key start
LH: loop header
LB: loop body
LE: loop exit
PB: predicated region body
PF: predicated region fallthrough
CT: control target
= control target key end

     0   :  { %vm4887_vm0 = vcmask 523264   ;;  %s16155_s0 = inlined_call_operand.vmem [shape: bf16[2,3136], index: 0, kind: input, shape index: {}]   ;;  %s16156_s1 = inlined_call_operand.vmem [shape: bf16[3136,512], index: 1, kind: input, shape index: {}]   ;;  %s16157_s2 = inlined_call_operand.vmem [shape: f32[1,512], index: 2, kind: input, shape index: {}]   ;;  %s16158_s3 = inlined_call_operand.vmem [shape: bf16[512,128], index: 3, kind: input, shape index: {}]   ;;  %s16159_s4 = inlined_call_operand.vmem [shape: f32[1,128], index: 4, kind: input, shape index: {}]   ;;  %s16160_s5 = inlined_call_operand.vmem [shape: f32[2,128], index: 5, kind: output, shape index: {}]  }
   0x1   :  { %v6775_v0 = vld [vmem:[%s16156_s1 + $0xe0] sm:$0xf]  ;;  %v9959_v1 = vld [vmem:[%s16156_s1 + $0xec] sm:$0xf0] }
   0x2   :  { %v6903_v2 = vld [vmem:[%s16156_s1 + $0x1e0] sm:$0xf]  ;;  %v6776_v3 = vor.u32 %v9959_v1, %v6775_v0  ;;  %v9991_v4 = vld [vmem:[%s16156_s1 + $0x1ec] sm:$0xf0] }
   0x3   :  { %v7031_v5 = vld [vmem:[%s16156_s1 + $0x2e0] sm:$0xf]  ;;  %v10023_v6 = vld [vmem:[%s16156_s1 + $0x2ec] sm:$0xf0]  ;;  %v6904_v7 = vor.u32 %v9991_v4, %v6903_v2 }
   0x4   :  { %v7032_v8 = vor.u32 %v10023_v6, %v7031_v5  ;;  %v7159_v9 = vld [vmem:[%s16156_s1 + $0x3e0] sm:$0xf]  ;;  %v10055_v10 = vld [vmem:[%s16156_s1 + $0x3ec] sm:$0xf0]  ;;  %4890 = vmatpush.bf16.msra.mxu0 %v6776_v3 }
   0x5   :  { %v6759_v11 = vld [vmem:[%s16156_s1 + $0xc0] sm:$0xf]  ;;  %v7160_v12 = vor.u32 %v10055_v10, %v7159_v9  ;;  %v9955_v13 = vld [vmem:[%s16156_s1 + $0xcc] sm:$0xf0]  ;;  %4904 = vmatpush.bf16.msra.mxu1 %v6904_v7 }
   0x6   :  { %v6887_v14 = vld [vmem:[%s16156_s1 + $0x1c0] sm:$0xf]  ;;  %v9987_v15 = vld [vmem:[%s16156_s1 + $0x1cc] sm:$0xf0]  ;;  %4918 = vmatpush.bf16.msra.mxu2 %v7032_v8  ;;  %v6760_v16 = vor.u32 %v9955_v13, %v6759_v11 }
   0x7   :  { %v6888_v17 = vor.u32 %v9987_v15, %v6887_v14  ;;  %v7015_v18 = vld [vmem:[%s16156_s1 + $0x2c0] sm:$0xf]  ;;  %v10019_v19 = vld [vmem:[%s16156_s1 + $0x2cc] sm:$0xf0]  ;;  %4932 = vmatpush.bf16.msra.mxu3 %v7160_v12 }
   0x8   :  { %v7143_v20 = vld [vmem:[%s16156_s1 + $0x3c0] sm:$0xf]  ;;  %v7016_v21 = vor.u32 %v10019_v19, %v7015_v18  ;;  %v10051_v22 = vld [vmem:[%s16156_s1 + $0x3cc] sm:$0xf0]  ;;  %4891 = vmatpush.bf16.msra.mxu0 %v6760_v16 }
   0x9   :  { %v6743_v23 = vld [vmem:[%s16156_s1 + $0xa0] sm:$0xf]  ;;  %v9951_v24 = vld [vmem:[%s16156_s1 + $0xac] sm:$0xf0]  ;;  %v7144_v25 = vor.u32 %v10051_v22, %v7143_v20  ;;  %4905 = vmatpush.bf16.msra.mxu1 %v6888_v17 }
   0xa   :  { %v6871_v26 = vld [vmem:[%s16156_s1 + $0x1a0] sm:$0xf]  ;;  %v9983_v27 = vld [vmem:[%s16156_s1 + $0x1ac] sm:$0xf0]  ;;  %v6744_v29 = vor.u32 %v9951_v24, %v6743_v23  ;;  %4919 = vmatpush.bf16.msra.mxu2 %v7016_v21 }
   0xb   :  { %v6999_v28 = vld [vmem:[%s16156_s1 + $0x2a0] sm:$0xf]  ;;  %v10015_v30 = vld [vmem:[%s16156_s1 + $0x2ac] sm:$0xf0]  ;;  %v6872_v33 = vor.u32 %v9983_v27, %v6871_v26  ;;  %4933 = vmatpush.bf16.msra.mxu3 %v7144_v25 }
   0xc   :  { %v7127_v31 = vld [vmem:[%s16156_s1 + $0x3a0] sm:$0xf]  ;;  %v10047_v32 = vld [vmem:[%s16156_s1 + $0x3ac] sm:$0xf0]  ;;  %v7000_v34 = vor.u32 %v10015_v30, %v6999_v28  ;;  %4892 = vmatpush.bf16.msra.mxu0 %v6744_v29 }
   0xd   :  { %v6727_v35 = vld [vmem:[%s16156_s1 + $0x80] sm:$0xf]  ;;  %v9947_v36 = vld [vmem:[%s16156_s1 + $0x8c] sm:$0xf0]  ;;  %v7128_v38 = vor.u32 %v10047_v32, %v7127_v31  ;;  %4906 = vmatpush.bf16.msra.mxu1 %v6872_v33 }
   0xe   :  { %v6855_v37 = vld [vmem:[%s16156_s1 + $0x180] sm:$0xf]  ;;  %v9979_v39 = vld [vmem:[%s16156_s1 + $0x18c] sm:$0xf0]  ;;  %v6728_v44 = vor.u32 %v9947_v36, %v6727_v35  ;;  %4920 = vmatpush.bf16.msra.mxu2 %v7000_v34 }
   0xf   :  { %v6983_v40 = vld [vmem:[%s16156_s1 + $0x280] sm:$0xf]  ;;  %v10011_v41 = vld [vmem:[%s16156_s1 + $0x28c] sm:$0xf0]  ;;  %v6856_v45 = vor.u32 %v9979_v39, %v6855_v37  ;;  %4934 = vmatpush.bf16.msra.mxu3 %v7128_v38 }
  0x10   :  { %v7111_v42 = vld [vmem:[%s16156_s1 + $0x380] sm:$0xf]  ;;  %v10043_v43 = vld [vmem:[%s16156_s1 + $0x38c] sm:$0xf0]  ;;  %v6984_v46 = vor.u32 %v10011_v41, %v6983_v40  ;;  %4893 = vmatpush.bf16.msra.mxu0 %v6728_v44 }
  0x11   :  { %v6711_v47 = vld [vmem:[%s16156_s1 + $0x60] sm:$0xf]  ;;  %v9943_v48 = vld [vmem:[%s16156_s1 + $0x6c] sm:$0xf0]  ;;  %v7112_v50 = vor.u32 %v10043_v43, %v7111_v42  ;;  %4907 = vmatpush.bf16.msra.mxu1 %v6856_v45 }
  0x12   :  { %v6839_v49 = vld [vmem:[%s16156_s1 + $0x160] sm:$0xf]  ;;  %v9975_v51 = vld [vmem:[%s16156_s1 + $0x16c] sm:$0xf0]  ;;  %v6712_v56 = vor.u32 %v9943_v48, %v6711_v47  ;;  %4921 = vmatpush.bf16.msra.mxu2 %v6984_v46 }
  0x13   :  { %v6967_v52 = vld [vmem:[%s16156_s1 + $0x260] sm:$0xf]  ;;  %v10007_v53 = vld [vmem:[%s16156_s1 + $0x26c] sm:$0xf0]  ;;  %v6840_v57 = vor.u32 %v9975_v51, %v6839_v49  ;;  %4935 = vmatpush.bf16.msra.mxu3 %v7112_v50 }
  0x14   :  { %v7095_v54 = vld [vmem:[%s16156_s1 + $0x360] sm:$0xf]  ;;  %v10039_v55 = vld [vmem:[%s16156_s1 + $0x36c] sm:$0xf0]  ;;  %v6968_v58 = vor.u32 %v10007_v53, %v6967_v52  ;;  %4894 = vmatpush.bf16.msra.mxu0 %v6712_v56 }
  0x15   :  { %v6695_v59 = vld [vmem:[%s16156_s1 + $0x40] sm:$0xf]  ;;  %v9939_v60 = vld [vmem:[%s16156_s1 + $0x4c] sm:$0xf0]  ;;  %v7096_v62 = vor.u32 %v10039_v55, %v7095_v54  ;;  %4908 = vmatpush.bf16.msra.mxu1 %v6840_v57 }
  0x16   :  { %v6823_v61 = vld [vmem:[%s16156_s1 + $0x140] sm:$0xf]  ;;  %v9971_v63 = vld [vmem:[%s16156_s1 + $0x14c] sm:$0xf0]  ;;  %v6696_v4 = vor.u32 %v9939_v60, %v6695_v59  ;;  %4922 = vmatpush.bf16.msra.mxu2 %v6968_v58 }
  0x17   :  { %v6951_v0 = vld [vmem:[%s16156_s1 + $0x240] sm:$0xf]  ;;  %v10003_v1 = vld [vmem:[%s16156_s1 + $0x24c] sm:$0xf0]  ;;  %v6824_v5 = vor.u32 %v9971_v63, %v6823_v61  ;;  %4936 = vmatpush.bf16.msra.mxu3 %v7096_v62 }
  0x18   :  { %v7079_v2 = vld [vmem:[%s16156_s1 + $0x340] sm:$0xf]  ;;  %v10035_v3 = vld [vmem:[%s16156_s1 + $0x34c] sm:$0xf0]  ;;  %v6952_v6 = vor.u32 %v10003_v1, %v6951_v0  ;;  %4895 = vmatpush.bf16.msra.mxu0 %v6696_v4 }
  0x19   :  { %v6679_v7 = vld [vmem:[%s16156_s1 + $0x20] sm:$0xf]  ;;  %v9935_v8 = vld [vmem:[%s16156_s1 + $0x2c] sm:$0xf0]  ;;  %v7080_v10 = vor.u32 %v10035_v3, %v7079_v2  ;;  %4909 = vmatpush.bf16.msra.mxu1 %v6824_v5  ;;  %v37_v2 = vld [vmem:[%s16155_s0 + $0x64] sm:$0xff] }
  0x1a   :  { %v6807_v9 = vld [vmem:[%s16156_s1 + $0x120] sm:$0xf]  ;;  %v9967_v11 = vld [vmem:[%s16156_s1 + $0x12c] sm:$0xf0]  ;;  %v6680_v16 = vor.u32 %v9935_v8, %v6679_v7  ;;  %4923 = vmatpush.bf16.msra.mxu2 %v6952_v6  ;;  %v45_v7 = vld [vmem:[%s16155_s0 + $0x96] sm:$0xff] }
  0x1b   :  { %v6935_v12 = vld [vmem:[%s16156_s1 + $0x220] sm:$0xf]  ;;  %v9999_v13 = vld [vmem:[%s16156_s1 + $0x22c] sm:$0xf0]  ;;  %v6808_v19 = vor.u32 %v9967_v11, %v6807_v9  ;;  %4937 = vmatpush.bf16.msra.mxu3 %v7080_v10  ;;  %860 = vst [vmem:[#allocation1 + $0x4] ss:$9 sm:$0xff] %v37_v2 }
  0x1c   :  { %v7063_v14 = vld [vmem:[%s16156_s1 + $0x320] sm:$0xf]  ;;  %v10031_v15 = vld [vmem:[%s16156_s1 + $0x32c] sm:$0xf0]  ;;  %v6936_v20 = vor.u32 %v9999_v13, %v6935_v12  ;;  %4896 = vmatpush.bf16.msra.mxu0 %v6680_v16  ;;  %866 = vst [vmem:[#allocation1 + $0x6] ss:$9 sm:$0xff] %v45_v7 }
  0x1d   :  { %v6663_v17 = vld [vmem:[%s16156_s1] sm:$0xf]  ;;  %v9931_v18 = vld [vmem:[%s16156_s1 + $0xc] sm:$0xf0]  ;;  %v7064_v24 = vor.u32 %v10031_v15, %v7063_v14  ;;  %4910 = vmatpush.bf16.msra.mxu1 %v6808_v19 }
  0x1e   :  { %v6791_v21 = vld [vmem:[%s16156_s1 + $0x100] sm:$0xf]  ;;  %v9963_v22 = vld [vmem:[%s16156_s1 + $0x10c] sm:$0xf0]  ;;  %v6664_v31 = vor.u32 %v9931_v18, %v6663_v17  ;;  %4924 = vmatpush.bf16.msra.mxu2 %v6936_v20 }
  0x1f   :  { %v6919_v23 = vld [vmem:[%s16156_s1 + $0x200] sm:$0xf]  ;;  %v9995_v25 = vld [vmem:[%s16156_s1 + $0x20c] sm:$0xf0]  ;;  %v6792_v35 = vor.u32 %v9963_v22, %v6791_v21  ;;  %4938 = vmatpush.bf16.msra.mxu3 %v7064_v24 }
  0x20   :  { %v7047_v26 = vld [vmem:[%s16156_s1 + $0x300] sm:$0xf]  ;;  %v10027_v27 = vld [vmem:[%s16156_s1 + $0x30c] sm:$0xf0]  ;;  %v6920_v36 = vor.u32 %v9995_v25, %v6919_v23  ;;  %4897 = vmatpush.bf16.msra.mxu0 %v6664_v31 }
  0x21   :  { %v7287_v28 = vld [vmem:[%s16156_s1 + $0x4e0] sm:$0xf]  ;;  %v10087_v29 = vld [vmem:[%s16156_s1 + $0x4ec] sm:$0xf0]  ;;  %v7048_v39 = vor.u32 %v10027_v27, %v7047_v26  ;;  %4911 = vmatpush.bf16.msra.mxu1 %v6792_v35 }
  0x22   :  { %v7415_v30 = vld [vmem:[%s16156_s1 + $0x5e0] sm:$0xf]  ;;  %v10119_v32 = vld [vmem:[%s16156_s1 + $0x5ec] sm:$0xf0]  ;;  %v7288_v40 = vor.u32 %v10087_v29, %v7287_v28  ;;  %4925 = vmatpush.bf16.msra.mxu2 %v6920_v36 }
  0x23   :  { %v7543_v33 = vld [vmem:[%s16156_s1 + $0x6e0] sm:$0xf]  ;;  %v10151_v34 = vld [vmem:[%s16156_s1 + $0x6ec] sm:$0xf0]  ;;  %v7416_v43 = vor.u32 %v10119_v32, %v7415_v30  ;;  %4939 = vmatpush.bf16.msra.mxu3 %v7048_v39 }
  0x24   :  { %v7671_v37 = vld [vmem:[%s16156_s1 + $0x7e0] sm:$0xf]  ;;  %v10183_v38 = vld [vmem:[%s16156_s1 + $0x7ec] sm:$0xf0]  ;;  %v7544_v44 = vor.u32 %v10151_v34, %v7543_v33  ;;  %4946 = vmatpush.bf16.msrb.mxu0 %v7288_v40 }
  0x25   :  { %v7271_v41 = vld [vmem:[%s16156_s1 + $0x4c0] sm:$0xf]  ;;  %v10083_v42 = vld [vmem:[%s16156_s1 + $0x4cc] sm:$0xf0]  ;;  %v7672_v48 = vor.u32 %v10183_v38, %v7671_v37  ;;  %4960 = vmatpush.bf16.msrb.mxu1 %v7416_v43 }
  0x26   :  { %v7399_v45 = vld [vmem:[%s16156_s1 + $0x5c0] sm:$0xf]  ;;  %v10115_v46 = vld [vmem:[%s16156_s1 + $0x5cc] sm:$0xf0]  ;;  %v7272_v57 = vor.u32 %v10083_v42, %v7271_v41  ;;  %4974 = vmatpush.bf16.msrb.mxu2 %v7544_v44 }
  0x27   :  { %v7527_v47 = vld [vmem:[%s16156_s1 + $0x6c0] sm:$0xf]  ;;  %v10147_v49 = vld [vmem:[%s16156_s1 + $0x6cc] sm:$0xf0]  ;;  %v7400_v63 = vor.u32 %v10115_v46, %v7399_v45  ;;  %4988 = vmatpush.bf16.msrb.mxu3 %v7672_v48 }
  0x28   :  { %v7655_v50 = vld [vmem:[%s16156_s1 + $0x7c0] sm:$0xf]  ;;  %v10179_v51 = vld [vmem:[%s16156_s1 + $0x7cc] sm:$0xf0]  ;;  %v7528_v0 = vor.u32 %v10147_v49, %v7527_v47  ;;  %4947 = vmatpush.bf16.msrb.mxu0 %v7272_v57 }
  0x29   :  { %v7255_v52 = vld [vmem:[%s16156_s1 + $0x4a0] sm:$0xf]  ;;  %v10079_v53 = vld [vmem:[%s16156_s1 + $0x4ac] sm:$0xf0]  ;;  %v7656_v3 = vor.u32 %v10179_v51, %v7655_v50  ;;  %4961 = vmatpush.bf16.msrb.mxu1 %v7400_v63 }
  0x2a   :  { %v21_v54 = vld [vmem:[%s16155_s0] sm:$0xff]  ;;  %v29_v56 = vld [vmem:[%s16155_s0 + $0x32] sm:$0xff]  ;;  %v7256_v8 = vor.u32 %v10079_v53, %v7255_v52  ;;  %4975 = vmatpush.bf16.msrb.mxu2 %v7528_v0 }
  0x2b   :  { %v25_v55 = vld [vmem:[%s16155_s0 + $0x19] sm:$0xff]  ;;  %v10111_v59 = vld [vmem:[%s16156_s1 + $0x5ac] sm:$0xf0]  ;;  %848 = vst [vmem:[#allocation1] ss:$9 sm:$0xff] %v21_v54  ;;  %4989 = vmatpush.bf16.msrb.mxu3 %v7656_v3 }
  0x2c   :  { %v7383_v58 = vld [vmem:[%s16156_s1 + $0x5a0] sm:$0xf]  ;;  %v10143_v61 = vld [vmem:[%s16156_s1 + $0x6ac] sm:$0xf0]  ;;  %851 = vst [vmem:[#allocation1 + $0x1] ss:$9 sm:$0xff] %v25_v55  ;;  %4948 = vmatpush.bf16.msrb.mxu0 %v7256_v8 }
  0x2d   :  { %v7511_v60 = vld [vmem:[%s16156_s1 + $0x6a0] sm:$0xf]  ;;  %v33_v62 = vld [vmem:[%s16155_s0 + $0x4b] sm:$0xff]  ;;  %854 = vst [vmem:[#allocation1 + $0x2] ss:$9 sm:$0xff] %v29_v56  ;;  %v7384_v11 = vor.u32 %v10111_v59, %v7383_v58 }
  0x2e   :  { %v7639_v1 = vld [vmem:[%s16156_s1 + $0x7a0] sm:$0xf]  ;;  %v10175_v4 = vld [vmem:[%s16156_s1 + $0x7ac] sm:$0xf0]  ;;  %857 = vst [vmem:[#allocation1 + $0x3] ss:$9 sm:$0xff] %v33_v62  ;;  %v7512_v12 = vor.u32 %v10143_v61, %v7511_v60 }
  0x2f   :  { %v41_v5 = vld [vmem:[%s16155_s0 + $0x7d] sm:$0xff]  ;;  %v10075_v9 = vld [vmem:[%s16156_s1 + $0x48c] sm:$0xf0]  ;;  %v7640_v15 = vor.u32 %v10175_v4, %v7639_v1  ;;  %4962 = vmatpush.bf16.msrb.mxu1 %v7384_v11 }
  0x30   :  { %v7239_v6 = vld [vmem:[%s16156_s1 + $0x480] sm:$0xf]  ;;  %v49_v10 = vld [vmem:[%s16155_s0 + $0xaf] sm:$0xff]  ;;  %863 = vst [vmem:[#allocation1 + $0x5] ss:$9 sm:$0xff] %v41_v5  ;;  %4976 = vmatpush.bf16.msrb.mxu2 %v7512_v12 }
  0x31   :  { %v7367_v13 = vld [vmem:[%s16156_s1 + $0x580] sm:$0xf]  ;;  %v10107_v14 = vld [vmem:[%s16156_s1 + $0x58c] sm:$0xf0]  ;;  %869 = vst [vmem:[#allocation1 + $0x7] ss:$9 sm:$0xff] %v49_v10  ;;  %v7240_v20 = vor.u32 %v10075_v9, %v7239_v6  ;;  %4990 = vmatpush.bf16.msrb.mxu3 %v7640_v15 }
  0x32   :  { %v7495_v16 = vld [vmem:[%s16156_s1 + $0x680] sm:$0xf]  ;;  %v10139_v17 = vld [vmem:[%s16156_s1 + $0x68c] sm:$0xf0]  ;;  %v7368_v21 = vor.u32 %v10107_v14, %v7367_v13 }
  0x33   :  { %v7623_v18 = vld [vmem:[%s16156_s1 + $0x780] sm:$0xf]  ;;  %v10171_v19 = vld [vmem:[%s16156_s1 + $0x78c] sm:$0xf0]  ;;  %v7496_v22 = vor.u32 %v10139_v17, %v7495_v16  ;;  %4949 = vmatpush.bf16.msrb.mxu0 %v7240_v20 }
  0x34   :  { %v7223_v23 = vld [vmem:[%s16156_s1 + $0x460] sm:$0xf]  ;;  %v10071_v24 = vld [vmem:[%s16156_s1 + $0x46c] sm:$0xf0]  ;;  %v7624_v26 = vor.u32 %v10171_v19, %v7623_v18  ;;  %4963 = vmatpush.bf16.msrb.mxu1 %v7368_v21 }
  0x35   :  { %v7351_v25 = vld [vmem:[%s16156_s1 + $0x560] sm:$0xf]  ;;  %v10103_v27 = vld [vmem:[%s16156_s1 + $0x56c] sm:$0xf0]  ;;  %v7224_v32 = vor.u32 %v10071_v24, %v7223_v23  ;;  %4977 = vmatpush.bf16.msrb.mxu2 %v7496_v22 }
  0x36   :  { %v7479_v28 = vld [vmem:[%s16156_s1 + $0x660] sm:$0xf]  ;;  %v10135_v29 = vld [vmem:[%s16156_s1 + $0x66c] sm:$0xf0]  ;;  %v7352_v36 = vor.u32 %v10103_v27, %v7351_v25  ;;  %4991 = vmatpush.bf16.msrb.mxu3 %v7624_v26 }
  0x37   :  { %v7607_v30 = vld [vmem:[%s16156_s1 + $0x760] sm:$0xf]  ;;  %v10167_v31 = vld [vmem:[%s16156_s1 + $0x76c] sm:$0xf0]  ;;  %v7480_v37 = vor.u32 %v10135_v29, %v7479_v28  ;;  %4950 = vmatpush.bf16.msrb.mxu0 %v7224_v32 }
  0x38   :  { %v7207_v33 = vld [vmem:[%s16156_s1 + $0x440] sm:$0xf]  ;;  %v10067_v34 = vld [vmem:[%s16156_s1 + $0x44c] sm:$0xf0]  ;;  %v7608_v43 = vor.u32 %v10167_v31, %v7607_v30  ;;  %4964 = vmatpush.bf16.msrb.mxu1 %v7352_v36  ;;  %v11225_v23 = vld [vmem:[#allocation1 + $0x24] sm:$0xff] }
  0x39   :  { %v7335_v35 = vld [vmem:[%s16156_s1 + $0x540] sm:$0xf]  ;;  %v10099_v38 = vld [vmem:[%s16156_s1 + $0x54c] sm:$0xf0]  ;;  %v7208_v48 = vor.u32 %v10067_v34, %v7207_v33  ;;  %4978 = vmatpush.bf16.msrb.mxu2 %v7480_v37  ;;  %v11251_v33 = vld [vmem:[#allocation1 + $0x36] sm:$0xff] }
  0x3a   :  { %v7463_v39 = vld [vmem:[%s16156_s1 + $0x640] sm:$0xf]  ;;  %v10131_v40 = vld [vmem:[%s16156_s1 + $0x64c] sm:$0xf0]  ;;  %v7336_v49 = vor.u32 %v10099_v38, %v7335_v35  ;;  %4992 = vmatpush.bf16.msrb.mxu3 %v7608_v43 }
  0x3b   :  { %v11135_v41 = vld [vmem:[#allocation1] sm:$0xff]  ;;  %v11137_v42 = vld [vmem:[#allocation1 + $0x12] sm:$0xff]  ;;  %v11139_v44 = vld [vmem:[#allocation1 + $0x9] sm:$0xff]  ;;  %v7464_v50 = vor.u32 %v10131_v40, %v7463_v39  ;;  %4951 = vmatpush.bf16.msrb.mxu0 %v7208_v48 }
  0x3c   :  { %4898 = vmatmul.bf16.vlgmr.msra.gmra.mxu0 %v11135_v41  ;;  %4926 = vmatmul.bf16.vlgmr.msra.gmra.mxu2 %v11137_v42  ;;  %v7591_v45 = vld [vmem:[%s16156_s1 + $0x740] sm:$0xf]  ;;  %v10163_v46 = vld [vmem:[%s16156_s1 + $0x74c] sm:$0xf0] }
  0x3d   :  { %4912 = vmatmul.bf16.vlgmr.msra.gmra.mxu1 %v11139_v44  ;;  %v11150_v47 = vld [vmem:[#allocation1 + $0x1b] sm:$0xff]  ;;  %v10063_v52 = vld [vmem:[%s16156_s1 + $0x42c] sm:$0xf0]  ;;  %v7592_v54 = vor.u32 %v10163_v46, %v7591_v45  ;;  %4979 = vmatpush.bf16.msrb.mxu2 %v7464_v50 }
  0x3e   :  { %v7191_v51 = vld [vmem:[%s16156_s1 + $0x420] sm:$0xf]  ;;  %v10095_v55 = vld [vmem:[%s16156_s1 + $0x52c] sm:$0xf0]  ;;  %4940 = vmatmul.bf16.vlgmr.msra.gmra.mxu3 %v11150_v47  ;;  %4965 = vmatpush.bf16.msrb.mxu1 %v7336_v49 }
  0x3f   :  { %v7319_v53 = vld [vmem:[%s16156_s1 + $0x520] sm:$0xf]  ;;  %v10127_v57 = vld [vmem:[%s16156_s1 + $0x62c] sm:$0xf0]  ;;  %v7192_v60 = vor.u32 %v10063_v52, %v7191_v51  ;;  %4993 = vmatpush.bf16.msrb.mxu3 %v7592_v54 }
  0x40   :  { %v7447_v56 = vld [vmem:[%s16156_s1 + $0x620] sm:$0xf]  ;;  %v10159_v59 = vld [vmem:[%s16156_s1 + $0x72c] sm:$0xf0]  ;;  %v7320_v63 = vor.u32 %v10095_v55, %v7319_v53 }
  0x41   :  { %v7575_v58 = vld [vmem:[%s16156_s1 + $0x720] sm:$0xf]  ;;  %v10059_v62 = vld [vmem:[%s16156_s1 + $0x40c] sm:$0xf0]  ;;  %v7448_v0 = vor.u32 %v10127_v57, %v7447_v56  ;;  %4952 = vmatpush.bf16.msrb.mxu0 %v7192_v60 }
  0x42   :  { %v7175_v61 = vld [vmem:[%s16156_s1 + $0x400] sm:$0xf]  ;;  %v10091_v2 = vld [vmem:[%s16156_s1 + $0x50c] sm:$0xf0]  ;;  %v7576_v4 = vor.u32 %v10159_v59, %v7575_v58  ;;  %4966 = vmatpush.bf16.msrb.mxu1 %v7320_v63 }
  0x43   :  { %v7303_v1 = vld [vmem:[%s16156_s1 + $0x500] sm:$0xf]  ;;  %v10123_v5 = vld [vmem:[%s16156_s1 + $0x60c] sm:$0xf0]  ;;  %v7176_v11 = vor.u32 %v10059_v62, %v7175_v61  ;;  %4980 = vmatpush.bf16.msrb.mxu2 %v7448_v0 }
  0x44   :  { %v7431_v3 = vld [vmem:[%s16156_s1 + $0x600] sm:$0xf]  ;;  %v10155_v7 = vld [vmem:[%s16156_s1 + $0x70c] sm:$0xf0]  ;;  %v7304_v15 = vor.u32 %v10091_v2, %v7303_v1  ;;  %4994 = vmatpush.bf16.msrb.mxu3 %v7576_v4 }
  0x45   :  { %v7559_v6 = vld [vmem:[%s16156_s1 + $0x700] sm:$0xf]  ;;  %v10215_v9 = vld [vmem:[%s16156_s1 + $0x8ec] sm:$0xf0]  ;;  %v7432_v16 = vor.u32 %v10123_v5, %v7431_v3  ;;  %4953 = vmatpush.bf16.msrb.mxu0 %v7176_v11 }
  0x46   :  { %v7799_v8 = vld [vmem:[%s16156_s1 + $0x8e0] sm:$0xf]  ;;  %v10247_v12 = vld [vmem:[%s16156_s1 + $0x9ec] sm:$0xf0]  ;;  %v7560_v19 = vor.u32 %v10155_v7, %v7559_v6  ;;  %4967 = vmatpush.bf16.msrb.mxu1 %v7304_v15 }
  0x47   :  { %v7927_v10 = vld [vmem:[%s16156_s1 + $0x9e0] sm:$0xf]  ;;  %v10279_v14 = vld [vmem:[%s16156_s1 + $0xaec] sm:$0xf0]  ;;  %v7800_v20 = vor.u32 %v10215_v9, %v7799_v8  ;;  %4981 = vmatpush.bf16.msrb.mxu2 %v7432_v16 }
  0x48   :  { %v8055_v13 = vld [vmem:[%s16156_s1 + $0xae0] sm:$0xf]  ;;  %v10311_v18 = vld [vmem:[%s16156_s1 + $0xbec] sm:$0xf0]  ;;  %v7928_v21 = vor.u32 %v10247_v12, %v7927_v10  ;;  %4995 = vmatpush.bf16.msrb.mxu3 %v7560_v19 }
  0x49   :  { %v8183_v17 = vld [vmem:[%s16156_s1 + $0xbe0] sm:$0xf]  ;;  %v8056_v22 = vor.u32 %v10279_v14, %v8055_v13  ;;  %v10211_v25 = vld [vmem:[%s16156_s1 + $0x8cc] sm:$0xf0]  ;;  %5002 = vmatpush.bf16.msra.mxu0 %v7800_v20  ;;  %v22_v14 = vld [vmem:[%s16155_s0 + $0x8] sm:$0xff] }
  0x4a   :  { %v7783_v24 = vld [vmem:[%s16156_s1 + $0x8c0] sm:$0xf]  ;;  %v8184_v26 = vor.u32 %v10311_v18, %v8183_v17  ;;  %v10243_v28 = vld [vmem:[%s16156_s1 + $0x9cc] sm:$0xf0]  ;;  %5016 = vmatpush.bf16.msra.mxu1 %v7928_v21 }
  0x4b   :  { %v7911_v27 = vld [vmem:[%s16156_s1 + $0x9c0] sm:$0xf]  ;;  %v10275_v30 = vld [vmem:[%s16156_s1 + $0xacc] sm:$0xf0]  ;;  %v7784_v35 = vor.u32 %v10211_v25, %v7783_v24  ;;  %5030 = vmatpush.bf16.msra.mxu2 %v8056_v22 }
  0x4c   :  { %v8039_v29 = vld [vmem:[%s16156_s1 + $0xac0] sm:$0xf]  ;;  %v10307_v32 = vld [vmem:[%s16156_s1 + $0xbcc] sm:$0xf0]  ;;  %v7912_v37 = vor.u32 %v10243_v28, %v7911_v27  ;;  %5044 = vmatpush.bf16.msra.mxu3 %v8184_v26  ;;  %4954 = vmatmul.bf16.vlgmr.msrb.gmra.mxu0 %v11225_v23 }
  0x4d   :  { %v8167_v31 = vld [vmem:[%s16156_s1 + $0xbc0] sm:$0xf]  ;;  %v11253_v34 = vld [vmem:[#allocation1 + $0x2d] sm:$0xff]  ;;  %v8040_v40 = vor.u32 %v10275_v30, %v8039_v29  ;;  %4982 = vmatmul.bf16.vlgmr.msrb.gmra.mxu2 %v11251_v33  ;;  %5003 = vmatpush.bf16.msra.mxu0 %v7784_v35  ;;  %v42_v30 = vld [vmem:[%s16155_s0 + $0x85] sm:$0xff] }
  0x4e   :  { %v11255_v36 = vld [vmem:[#allocation1 + $0x3f] sm:$0xff]  ;;  %v10207_v39 = vld [vmem:[%s16156_s1 + $0x8ac] sm:$0xf0]  ;;  %v8168_v43 = vor.u32 %v10307_v32, %v8167_v31  ;;  %4968 = vmatmul.bf16.vlgmr.msrb.gmra.mxu1 %v11253_v34 }
  0x4f   :  { %v7767_v38 = vld [vmem:[%s16156_s1 + $0x8a0] sm:$0xf]  ;;  %v10239_v46 = vld [vmem:[%s16156_s1 + $0x9ac] sm:$0xf0]  ;;  %4996 = vmatmul.bf16.vlgmr.msrb.gmra.mxu3 %v11255_v36  ;;  %5017 = vmatpush.bf16.msra.mxu1 %v7912_v37  ;;  %879 = vst [vmem:[#allocation1] ss:$9 sm:$0xff] %v22_v14 }
  0x50   :  { %v7895_v45 = vld [vmem:[%s16156_s1 + $0x9a0] sm:$0xf]  ;;  %v10271_v49 = vld [vmem:[%s16156_s1 + $0xaac] sm:$0xf0]  ;;  %v7768_v52 = vor.u32 %v10207_v39, %v7767_v38  ;;  %5031 = vmatpush.bf16.msra.mxu2 %v8040_v40  ;;  %5045 = vmatpush.bf16.msra.mxu3 %v8168_v43  ;;  %v50_v38 = vld [vmem:[%s16155_s0 + $0xb7] sm:$0xff] }
  0x51   :  { %v8023_v48 = vld [vmem:[%s16156_s1 + $0xaa0] sm:$0xf]  ;;  %v10303_v51 = vld [vmem:[%s16156_s1 + $0xbac] sm:$0xf0]  ;;  %v7896_v53 = vor.u32 %v10239_v46, %v7895_v45  ;;  %889 = vst [vmem:[#allocation1 + $0x5] ss:$9 sm:$0xff] %v42_v30 }
  0x52   :  { %v8151_v50 = vld [vmem:[%s16156_s1 + $0xba0] sm:$0xf]  ;;  %v10203_v55 = vld [vmem:[%s16156_s1 + $0x88c] sm:$0xf0]  ;;  %v8024_v56 = vor.u32 %v10271_v49, %v8023_v48  ;;  %5004 = vmatpush.bf16.msra.mxu0 %v7768_v52  ;;  %893 = vst [vmem:[#allocation1 + $0x7] ss:$9 sm:$0xff] %v50_v38 }
  0x53   :  { %v7751_v54 = vld [vmem:[%s16156_s1 + $0x880] sm:$0xf]  ;;  %v8152_v57 = vor.u32 %v10303_v51, %v8151_v50  ;;  %v10235_v59 = vld [vmem:[%s16156_s1 + $0x98c] sm:$0xf0]  ;;  %5018 = vmatpush.bf16.msra.mxu1 %v7896_v53 }
  0x54   :  { %v7879_v58 = vld [vmem:[%s16156_s1 + $0x980] sm:$0xf]  ;;  %v10267_v61 = vld [vmem:[%s16156_s1 + $0xa8c] sm:$0xf0]  ;;  %v7752_v0 = vor.u32 %v10203_v55, %v7751_v54  ;;  %5032 = vmatpush.bf16.msra.mxu2 %v8024_v56 }
  0x55   :  { %v8007_v60 = vld [vmem:[%s16156_s1 + $0xa80] sm:$0xf]  ;;  %v10299_v63 = vld [vmem:[%s16156_s1 + $0xb8c] sm:$0xf0]  ;;  %v7880_v3 = vor.u32 %v10235_v59, %v7879_v58  ;;  %5046 = vmatpush.bf16.msra.mxu3 %v8152_v57 }
  0x56   :  { %v8135_v62 = vld [vmem:[%s16156_s1 + $0xb80] sm:$0xf]  ;;  %v10199_v2 = vld [vmem:[%s16156_s1 + $0x86c] sm:$0xf0]  ;;  %v8008_v7 = vor.u32 %v10267_v61, %v8007_v60  ;;  %5005 = vmatpush.bf16.msra.mxu0 %v7752_v0 }
  0x57   :  { %v7735_v1 = vld [vmem:[%s16156_s1 + $0x860] sm:$0xf]  ;;  %v10231_v5 = vld [vmem:[%s16156_s1 + $0x96c] sm:$0xf0]  ;;  %v8136_v8 = vor.u32 %v10299_v63, %v8135_v62  ;;  %5019 = vmatpush.bf16.msra.mxu1 %v7880_v3 }
  0x58   :  { %v7863_v4 = vld [vmem:[%s16156_s1 + $0x960] sm:$0xf]  ;;  %v10263_v9 = vld [vmem:[%s16156_s1 + $0xa6c] sm:$0xf0]  ;;  %v7736_v17 = vor.u32 %v10199_v2, %v7735_v1  ;;  %5033 = vmatpush.bf16.msra.mxu2 %v8008_v7 }
  0x59   :  { %v7991_v6 = vld [vmem:[%s16156_s1 + $0xa60] sm:$0xf]  ;;  %v10295_v11 = vld [vmem:[%s16156_s1 + $0xb6c] sm:$0xf0]  ;;  %v7864_v21 = vor.u32 %v10231_v5, %v7863_v4  ;;  %5047 = vmatpush.bf16.msra.mxu3 %v8136_v8 }
  0x5a   :  { %v8119_v10 = vld [vmem:[%s16156_s1 + $0xb60] sm:$0xf]  ;;  %v10195_v13 = vld [vmem:[%s16156_s1 + $0x84c] sm:$0xf0]  ;;  %v7992_v27 = vor.u32 %v10263_v9, %v7991_v6  ;;  %5006 = vmatpush.bf16.msra.mxu0 %v7736_v17 }
  0x5b   :  { %v7719_v12 = vld [vmem:[%s16156_s1 + $0x840] sm:$0xf]  ;;  %v10227_v19 = vld [vmem:[%s16156_s1 + $0x94c] sm:$0xf0]  ;;  %v8120_v28 = vor.u32 %v10295_v11, %v8119_v10  ;;  %5020 = vmatpush.bf16.msra.mxu1 %v7864_v21 }
  0x5c   :  { %v26_v15 = vld [vmem:[%s16155_s0 + $0x21] sm:$0xff]  ;;  %v34_v20 = vld [vmem:[%s16155_s0 + $0x53] sm:$0xff]  ;;  %v7720_v35 = vor.u32 %v10195_v13, %v7719_v12  ;;  %5034 = vmatpush.bf16.msra.mxu2 %v7992_v27 }
  0x5d   :  { %v30_v16 = vld [vmem:[%s16155_s0 + $0x3a] sm:$0xff]  ;;  %v10259_v24 = vld [vmem:[%s16156_s1 + $0xa4c] sm:$0xf0]  ;;  %881 = vst [vmem:[#allocation1 + $0x1] ss:$9 sm:$0xff] %v26_v15  ;;  %5048 = vmatpush.bf16.msra.mxu3 %v8120_v28 }
  0x5e   :  { %v7847_v18 = vld [vmem:[%s16156_s1 + $0x940] sm:$0xf]  ;;  %v38_v26 = vld [vmem:[%s16155_s0 + $0x6c] sm:$0xff]  ;;  %883 = vst [vmem:[#allocation1 + $0x2] ss:$9 sm:$0xff] %v30_v16  ;;  %5007 = vmatpush.bf16.msra.mxu0 %v7720_v35 }
  0x5f   :  { %v7975_v22 = vld [vmem:[%s16156_s1 + $0xa40] sm:$0xf]  ;;  %v10291_v29 = vld [vmem:[%s16156_s1 + $0xb4c] sm:$0xf0]  ;;  %885 = vst [vmem:[#allocation1 + $0x3] ss:$9 sm:$0xff] %v34_v20  ;;  %v7848_v39 = vor.u32 %v10227_v19, %v7847_v18 }
  0x60   :  { %v8103_v25 = vld [vmem:[%s16156_s1 + $0xb40] sm:$0xf]  ;;  %v10191_v37 = vld [vmem:[%s16156_s1 + $0x82c] sm:$0xf0]  ;;  %887 = vst [vmem:[#allocation1 + $0x4] ss:$9 sm:$0xff] %v38_v26  ;;  %v7976_v45 = vor.u32 %v10259_v24, %v7975_v22 }
  0x61   :  { %v7703_v31 = vld [vmem:[%s16156_s1 + $0x820] sm:$0xf]  ;;  %v10223_v43 = vld [vmem:[%s16156_s1 + $0x92c] sm:$0xf0]  ;;  %v8104_v46 = vor.u32 %v10291_v29, %v8103_v25  ;;  %5021 = vmatpush.bf16.msra.mxu1 %v7848_v39 }
  0x62   :  { %v46_v32 = vld [vmem:[%s16155_s0 + $0x9e] sm:$0xff]  ;;  %v10255_v49 = vld [vmem:[%s16156_s1 + $0xa2c] sm:$0xf0]  ;;  %v7704_v52 = vor.u32 %v10191_v37, %v7703_v31  ;;  %5035 = vmatpush.bf16.msra.mxu2 %v7976_v45 }
  0x63   :  { %v7831_v40 = vld [vmem:[%s16156_s1 + $0x920] sm:$0xf]  ;;  %891 = vst [vmem:[#allocation1 + $0x6] ss:$9 sm:$0xff] %v46_v32  ;;  %v10287_v51 = vld [vmem:[%s16156_s1 + $0xb2c] sm:$0xf0]  ;;  %5049 = vmatpush.bf16.msra.mxu3 %v8104_v46 }
  0x64   :  { %v7959_v48 = vld [vmem:[%s16156_s1 + $0xa20] sm:$0xf]  ;;  %v10187_v54 = vld [vmem:[%s16156_s1 + $0x80c] sm:$0xf0]  ;;  %v7832_v55 = vor.u32 %v10223_v43, %v7831_v40  ;;  %5008 = vmatpush.bf16.msra.mxu0 %v7704_v52 }
  0x65   :  { %v8087_v50 = vld [vmem:[%s16156_s1 + $0xb20] sm:$0xf]  ;;  %v10219_v57 = vld [vmem:[%s16156_s1 + $0x90c] sm:$0xf0]  ;;  %v7960_v59 = vor.u32 %v10255_v49, %v7959_v48 }
  0x66   :  { %v7687_v53 = vld [vmem:[%s16156_s1 + $0x800] sm:$0xf]  ;;  %v8088_v60 = vor.u32 %v10287_v51, %v8087_v50  ;;  %v10251_v61 = vld [vmem:[%s16156_s1 + $0xa0c] sm:$0xf0]  ;;  %5022 = vmatpush.bf16.msra.mxu1 %v7832_v55 }
  0x67   :  { %v7815_v56 = vld [vmem:[%s16156_s1 + $0x900] sm:$0xf]  ;;  %v10343_v63 = vld [vmem:[%s16156_s1 + $0xcec] sm:$0xf0]  ;;  %v7688_v3 = vor.u32 %v10187_v54, %v7687_v53  ;;  %5036 = vmatpush.bf16.msra.mxu2 %v7960_v59 }
  0x68   :  { %v7943_v58 = vld [vmem:[%s16156_s1 + $0xa00] sm:$0xf]  ;;  %v10283_v1 = vld [vmem:[%s16156_s1 + $0xb0c] sm:$0xf0]  ;;  %v7816_v7 = vor.u32 %v10219_v57, %v7815_v56  ;;  %5050 = vmatpush.bf16.msra.mxu3 %v8088_v60 }
  0x69   :  { %v8311_v62 = vld [vmem:[%s16156_s1 + $0xce0] sm:$0xf]  ;;  %v10375_v4 = vld [vmem:[%s16156_s1 + $0xdec] sm:$0xf0]  ;;  %v7944_v11 = vor.u32 %v10251_v61, %v7943_v58  ;;  %5009 = vmatpush.bf16.msra.mxu0 %v7688_v3 }
  0x6a   :  { %v8071_v0 = vld [vmem:[%s16156_s1 + $0xb00] sm:$0xf]  ;;  %v10407_v6 = vld [vmem:[%s16156_s1 + $0xeec] sm:$0xf0]  ;;  %v8312_v8 = vor.u32 %v10343_v63, %v8311_v62  ;;  %5023 = vmatpush.bf16.msra.mxu1 %v7816_v7 }
  0x6b   :  { %v8439_v2 = vld [vmem:[%s16156_s1 + $0xde0] sm:$0xf]  ;;  %v10439_v10 = vld [vmem:[%s16156_s1 + $0xfec] sm:$0xf0]  ;;  %v8072_v12 = vor.u32 %v10283_v1, %v8071_v0  ;;  %5037 = vmatpush.bf16.msra.mxu2 %v7944_v11 }
  0x6c   :  { %v8567_v5 = vld [vmem:[%s16156_s1 + $0xee0] sm:$0xf]  ;;  %v8440_v13 = vor.u32 %v10375_v4, %v8439_v2  ;;  %v10339_v16 = vld [vmem:[%s16156_s1 + $0xccc] sm:$0xf0] }
  0x6d   :  { %v8695_v9 = vld [vmem:[%s16156_s1 + $0xfe0] sm:$0xf]  ;;  %v8568_v14 = vor.u32 %v10407_v6, %v8567_v5  ;;  %v10371_v19 = vld [vmem:[%s16156_s1 + $0xdcc] sm:$0xf0]  ;;  %5058 = vmatpush.bf16.msrb.mxu0 %v8312_v8  ;;  %5051 = vmatpush.bf16.msra.mxu3 %v8072_v12 }
  0x6e   :  { %v8295_v15 = vld [vmem:[%s16156_s1 + $0xcc0] sm:$0xf]  ;;  %v8696_v18 = vor.u32 %v10439_v10, %v8695_v9  ;;  %v10403_v21 = vld [vmem:[%s16156_s1 + $0xecc] sm:$0xf0]  ;;  %5072 = vmatpush.bf16.msrb.mxu1 %v8440_v13 }
  0x6f   :  { %v8423_v17 = vld [vmem:[%s16156_s1 + $0xdc0] sm:$0xf]  ;;  %v10435_v25 = vld [vmem:[%s16156_s1 + $0xfcc] sm:$0xf0]  ;;  %v8296_v28 = vor.u32 %v10339_v16, %v8295_v15  ;;  %5086 = vmatpush.bf16.msrb.mxu2 %v8568_v14 }
  0x70   :  { %v8551_v20 = vld [vmem:[%s16156_s1 + $0xec0] sm:$0xf]  ;;  %v11479_v26 = vld [vmem:[#allocation1 + $0x12] sm:$0xff]  ;;  %v11481_v27 = vld [vmem:[#allocation1 + $0x9] sm:$0xff]  ;;  %v8424_v31 = vor.u32 %v10371_v19, %v8423_v17 }
  0x71   :  { %v11471_v22 = vld [vmem:[#allocation1] sm:$0xff]  ;;  %v8552_v32 = vor.u32 %v10403_v21, %v8551_v20  ;;  %v10335_v35 = vld [vmem:[%s16156_s1 + $0xcac] sm:$0xf0]  ;;  %5100 = vmatpush.bf16.msrb.mxu3 %v8696_v18  ;;  %5038 = vmatmul.bf16.vlgmr.msra.gmra.mxu2 %v11479_v26 }
  0x72   :  { %v8679_v24 = vld [vmem:[%s16156_s1 + $0xfc0] sm:$0xf]  ;;  %5010 = vmatmul.bf16.vlgmr.msra.gmra.mxu0 %v11471_v22  ;;  %v10367_v39 = vld [vmem:[%s16156_s1 + $0xdac] sm:$0xf0]  ;;  %5024 = vmatmul.bf16.vlgmr.msra.gmra.mxu1 %v11481_v27 }
  0x73   :  { %v8279_v29 = vld [vmem:[%s16156_s1 + $0xca0] sm:$0xf]  ;;  %v8680_v38 = vor.u32 %v10435_v25, %v8679_v24  ;;  %v10399_v43 = vld [vmem:[%s16156_s1 + $0xeac] sm:$0xf0]  ;;  %5059 = vmatpush.bf16.msrb.mxu0 %v8296_v28  ;;  %5073 = vmatpush.bf16.msrb.mxu1 %v8424_v31 }
  0x74   :  { %v11486_v30 = vld [vmem:[#allocation1 + $0x1b] sm:$0xff]  ;;  %v10431_v46 = vld [vmem:[%s16156_s1 + $0xfac] sm:$0xf0]  ;;  %v8280_v48 = vor.u32 %v10335_v35, %v8279_v29  ;;  %5087 = vmatpush.bf16.msrb.mxu2 %v8552_v32 }
  0x75   :  { %v8407_v37 = vld [vmem:[%s16156_s1 + $0xda0] sm:$0xf]  ;;  %5052 = vmatmul.bf16.vlgmr.msra.gmra.mxu3 %v11486_v30  ;;  %v10331_v52 = vld [vmem:[%s16156_s1 + $0xc8c] sm:$0xf0] }
  0x76   :  { %v8535_v40 = vld [vmem:[%s16156_s1 + $0xea0] sm:$0xf]  ;;  %v8408_v49 = vor.u32 %v10367_v39, %v8407_v37  ;;  %5101 = vmatpush.bf16.msrb.mxu3 %v8680_v38  ;;  %v10363_v55 = vld [vmem:[%s16156_s1 + $0xd8c] sm:$0xf0] }
  0x77   :  { %v8663_v45 = vld [vmem:[%s16156_s1 + $0xfa0] sm:$0xf]  ;;  %v8536_v50 = vor.u32 %v10399_v43, %v8535_v40  ;;  %v10395_v57 = vld [vmem:[%s16156_s1 + $0xe8c] sm:$0xf0]  ;;  %5060 = vmatpush.bf16.msrb.mxu0 %v8280_v48 }
  0x78   :  { %v8263_v51 = vld [vmem:[%s16156_s1 + $0xc80] sm:$0xf]  ;;  %v8664_v54 = vor.u32 %v10431_v46, %v8663_v45  ;;  %v10427_v59 = vld [vmem:[%s16156_s1 + $0xf8c] sm:$0xf0]  ;;  %5074 = vmatpush.bf16.msrb.mxu1 %v8408_v49 }
  0x79   :  { %v8391_v53 = vld [vmem:[%s16156_s1 + $0xd80] sm:$0xf]  ;;  %v8264_v60 = vor.u32 %v10331_v52, %v8263_v51  ;;  %5088 = vmatpush.bf16.msrb.mxu2 %v8536_v50  ;;  %v10327_v0 = vld [vmem:[%s16156_s1 + $0xc6c] sm:$0xf0] }
  0x7a   :  { %v8519_v56 = vld [vmem:[%s16156_s1 + $0xe80] sm:$0xf]  ;;  %v8392_v61 = vor.u32 %v10363_v55, %v8391_v53  ;;  %5102 = vmatpush.bf16.msrb.mxu3 %v8664_v54  ;;  %v10359_v3 = vld [vmem:[%s16156_s1 + $0xd6c] sm:$0xf0] }
  0x7b   :  { %v8647_v58 = vld [vmem:[%s16156_s1 + $0xf80] sm:$0xf]  ;;  %v8520_v62 = vor.u32 %v10395_v57, %v8519_v56  ;;  %v10391_v5 = vld [vmem:[%s16156_s1 + $0xe6c] sm:$0xf0]  ;;  %5061 = vmatpush.bf16.msrb.mxu0 %v8264_v60 }
  0x7c   :  { %v8247_v63 = vld [vmem:[%s16156_s1 + $0xc60] sm:$0xf]  ;;  %v8648_v2 = vor.u32 %v10427_v59, %v8647_v58  ;;  %v10423_v7 = vld [vmem:[%s16156_s1 + $0xf6c] sm:$0xf0]  ;;  %5075 = vmatpush.bf16.msrb.mxu1 %v8392_v61 }
  0x7d   :  { %v8375_v1 = vld [vmem:[%s16156_s1 + $0xd60] sm:$0xf]  ;;  %v8248_v8 = vor.u32 %v10327_v0, %v8247_v63  ;;  %5089 = vmatpush.bf16.msrb.mxu2 %v8520_v62  ;;  %v10323_v12 = vld [vmem:[%s16156_s1 + $0xc4c] sm:$0xf0] }
  0x7e   :  { %v8503_v4 = vld [vmem:[%s16156_s1 + $0xe60] sm:$0xf]  ;;  %v8376_v9 = vor.u32 %v10359_v3, %v8375_v1  ;;  %5103 = vmatpush.bf16.msrb.mxu3 %v8648_v2  ;;  %v10355_v15 = vld [vmem:[%s16156_s1 + $0xd4c] sm:$0xf0] }
  0x7f   :  { %v8631_v6 = vld [vmem:[%s16156_s1 + $0xf60] sm:$0xf]  ;;  %v8504_v10 = vor.u32 %v10391_v5, %v8503_v4  ;;  %v10387_v17 = vld [vmem:[%s16156_s1 + $0xe4c] sm:$0xf0]  ;;  %5062 = vmatpush.bf16.msrb.mxu0 %v8248_v8  ;;  %v11660_v8 = vld [vmem:[#allocation1 + $0x24] sm:$0xff] }
  0x80   :  { %v8231_v11 = vld [vmem:[%s16156_s1 + $0xc40] sm:$0xf]  ;;  %v8632_v14 = vor.u32 %v10423_v7, %v8631_v6  ;;  %v10419_v19 = vld [vmem:[%s16156_s1 + $0xf4c] sm:$0xf0]  ;;  %5076 = vmatpush.bf16.msrb.mxu1 %v8376_v9 }
  0x81   :  { %v8359_v13 = vld [vmem:[%s16156_s1 + $0xd40] sm:$0xf]  ;;  %v8232_v20 = vor.u32 %v10323_v12, %v8231_v11  ;;  %5090 = vmatpush.bf16.msrb.mxu2 %v8504_v10  ;;  %v10319_v28 = vld [vmem:[%s16156_s1 + $0xc2c] sm:$0xf0] }
  0x82   :  { %v8487_v16 = vld [vmem:[%s16156_s1 + $0xe40] sm:$0xf]  ;;  %v8360_v21 = vor.u32 %v10355_v15, %v8359_v13  ;;  %5104 = vmatpush.bf16.msrb.mxu3 %v8632_v14  ;;  %v10351_v32 = vld [vmem:[%s16156_s1 + $0xd2c] sm:$0xf0]  ;;  %v11671_v13 = vld [vmem:[#allocation1 + $0x36] sm:$0xff] }
  0x83   :  { %v8615_v18 = vld [vmem:[%s16156_s1 + $0xf40] sm:$0xf]  ;;  %v8488_v24 = vor.u32 %v10387_v17, %v8487_v16  ;;  %v10383_v37 = vld [vmem:[%s16156_s1 + $0xe2c] sm:$0xf0]  ;;  %5063 = vmatpush.bf16.msrb.mxu0 %v8232_v20 }
  0x84   :  { %v8215_v25 = vld [vmem:[%s16156_s1 + $0xc20] sm:$0xf]  ;;  %v8616_v31 = vor.u32 %v10419_v19, %v8615_v18  ;;  %v10415_v39 = vld [vmem:[%s16156_s1 + $0xf2c] sm:$0xf0]  ;;  %5077 = vmatpush.bf16.msrb.mxu1 %v8360_v21 }
  0x85   :  { %v8343_v29 = vld [vmem:[%s16156_s1 + $0xd20] sm:$0xf]  ;;  %v8216_v40 = vor.u32 %v10319_v28, %v8215_v25  ;;  %v10315_v45 = vld [vmem:[%s16156_s1 + $0xc0c] sm:$0xf0]  ;;  %5091 = vmatpush.bf16.msrb.mxu2 %v8488_v24 }
  0x86   :  { %v8471_v35 = vld [vmem:[%s16156_s1 + $0xe20] sm:$0xf]  ;;  %v8344_v46 = vor.u32 %v10351_v32, %v8343_v29  ;;  %v10347_v50 = vld [vmem:[%s16156_s1 + $0xd0c] sm:$0xf0]  ;;  %5105 = vmatpush.bf16.msrb.mxu3 %v8616_v31 }
  0x87   :  { %v8599_v38 = vld [vmem:[%s16156_s1 + $0xf20] sm:$0xf]  ;;  %v8472_v48 = vor.u32 %v10383_v37, %v8471_v35  ;;  %v10379_v53 = vld [vmem:[%s16156_s1 + $0xe0c] sm:$0xf0]  ;;  %5064 = vmatpush.bf16.msrb.mxu0 %v8216_v40 }
  0x88   :  { %v8199_v43 = vld [vmem:[%s16156_s1 + $0xc00] sm:$0xf]  ;;  %v8600_v52 = vor.u32 %v10415_v39, %v8599_v38  ;;  %v10411_v55 = vld [vmem:[%s16156_s1 + $0xf0c] sm:$0xf0]  ;;  %5078 = vmatpush.bf16.msrb.mxu1 %v8344_v46 }
  0x89   :  { %v8327_v49 = vld [vmem:[%s16156_s1 + $0xd00] sm:$0xf]  ;;  %v10471_v57 = vld [vmem:[%s16156_s1 + $0x10ec] sm:$0xf0]  ;;  %v8200_v59 = vor.u32 %v10315_v45, %v8199_v43  ;;  %5092 = vmatpush.bf16.msrb.mxu2 %v8472_v48 }
  0x8a   :  { %v8455_v51 = vld [vmem:[%s16156_s1 + $0xe00] sm:$0xf]  ;;  %v10503_v60 = vld [vmem:[%s16156_s1 + $0x11ec] sm:$0xf0]  ;;  %v8328_v63 = vor.u32 %v10347_v50, %v8327_v49  ;;  %5106 = vmatpush.bf16.msrb.mxu3 %v8600_v52  ;;  %v39_v50 = vld [vmem:[%s16155_s0 + $0x74] sm:$0xff] }
  0x8b   :  { %v8583_v54 = vld [vmem:[%s16156_s1 + $0xf00] sm:$0xf]  ;;  %v10535_v62 = vld [vmem:[%s16156_s1 + $0x12ec] sm:$0xf0]  ;;  %v8456_v0 = vor.u32 %v10379_v53, %v8455_v51  ;;  %5065 = vmatpush.bf16.msrb.mxu0 %v8200_v59 }
  0x8c   :  { %v8823_v56 = vld [vmem:[%s16156_s1 + $0x10e0] sm:$0xf]  ;;  %v10567_v2 = vld [vmem:[%s16156_s1 + $0x13ec] sm:$0xf0]  ;;  %v8584_v3 = vor.u32 %v10411_v55, %v8583_v54  ;;  %5079 = vmatpush.bf16.msrb.mxu1 %v8328_v63 }
  0x8d   :  { %v8951_v58 = vld [vmem:[%s16156_s1 + $0x11e0] sm:$0xf]  ;;  %v8824_v4 = vor.u32 %v10471_v57, %v8823_v56  ;;  %v10467_v9 = vld [vmem:[%s16156_s1 + $0x10cc] sm:$0xf0]  ;;  %5093 = vmatpush.bf16.msrb.mxu2 %v8456_v0 }
  0x8e   :  { %v9079_v61 = vld [vmem:[%s16156_s1 + $0x12e0] sm:$0xf]  ;;  %v8952_v6 = vor.u32 %v10503_v60, %v8951_v58  ;;  %v10499_v11 = vld [vmem:[%s16156_s1 + $0x11cc] sm:$0xf0]  ;;  %5107 = vmatpush.bf16.msrb.mxu3 %v8584_v3  ;;  %5066 = vmatmul.bf16.vlgmr.msrb.gmra.mxu0 %v11660_v8  ;;  %v47_v58 = vld [vmem:[%s16155_s0 + $0xa6] sm:$0xff] }
  0x8f   :  { %v9207_v1 = vld [vmem:[%s16156_s1 + $0x13e0] sm:$0xf]  ;;  %v9080_v7 = vor.u32 %v10535_v62, %v9079_v61  ;;  %v11673_v14 = vld [vmem:[#allocation1 + $0x2d] sm:$0xff]  ;;  %5114 = vmatpush.bf16.msra.mxu0 %v8824_v4 }
  0x90   :  { %v8807_v5 = vld [vmem:[%s16156_s1 + $0x10c0] sm:$0xf]  ;;  %v9208_v12 = vor.u32 %v10567_v2, %v9207_v1  ;;  %v10531_v16 = vld [vmem:[%s16156_s1 + $0x12cc] sm:$0xf0]  ;;  %5128 = vmatpush.bf16.msra.mxu1 %v8952_v6  ;;  %5094 = vmatmul.bf16.vlgmr.msrb.gmra.mxu2 %v11671_v13 }
  0x91   :  { %v8935_v10 = vld [vmem:[%s16156_s1 + $0x11c0] sm:$0xf]  ;;  %v10563_v19 = vld [vmem:[%s16156_s1 + $0x13cc] sm:$0xf0]  ;;  %v8808_v24 = vor.u32 %v10467_v9, %v8807_v5  ;;  %5142 = vmatpush.bf16.msra.mxu2 %v9080_v7  ;;  %5080 = vmatmul.bf16.vlgmr.msrb.gmra.mxu1 %v11673_v14 }
  0x92   :  { %v9063_v15 = vld [vmem:[%s16156_s1 + $0x12c0] sm:$0xf]  ;;  %v10463_v21 = vld [vmem:[%s16156_s1 + $0x10ac] sm:$0xf0]  ;;  %v8936_v32 = vor.u32 %v10499_v11, %v8935_v10  ;;  %5156 = vmatpush.bf16.msra.mxu3 %v9208_v12 }
  0x93   :  { %v9191_v17 = vld [vmem:[%s16156_s1 + $0x13c0] sm:$0xf]  ;;  %v10495_v28 = vld [vmem:[%s16156_s1 + $0x11ac] sm:$0xf0]  ;;  %v9064_v35 = vor.u32 %v10531_v16, %v9063_v15  ;;  %5115 = vmatpush.bf16.msra.mxu0 %v8808_v24 }
  0x94   :  { %v11684_v18 = vld [vmem:[#allocation1 + $0x3f] sm:$0xff]  ;;  %v10527_v31 = vld [vmem:[%s16156_s1 + $0x12ac] sm:$0xf0]  ;;  %v9192_v43 = vor.u32 %v10563_v19, %v9191_v17  ;;  %5129 = vmatpush.bf16.msra.mxu1 %v8936_v32 }
  0x95   :  { %v8791_v20 = vld [vmem:[%s16156_s1 + $0x10a0] sm:$0xf]  ;;  %v23_v38 = vld [vmem:[%s16155_s0 + $0x10] sm:$0xff]  ;;  %5108 = vmatmul.bf16.vlgmr.msrb.gmra.mxu3 %v11684_v18  ;;  %5143 = vmatpush.bf16.msra.mxu2 %v9064_v35  ;;  %911 = vst [vmem:[#allocation1 + $0x4] ss:$9 sm:$0xff] %v39_v50 }
  0x96   :  { %v8919_v25 = vld [vmem:[%s16156_s1 + $0x11a0] sm:$0xf]  ;;  %v27_v39 = vld [vmem:[%s16155_s0 + $0x29] sm:$0xff]  ;;  %903 = vst [vmem:[#allocation1] ss:$9 sm:$0xff] %v23_v38  ;;  %v8792_v51 = vor.u32 %v10463_v21, %v8791_v20  ;;  %5157 = vmatpush.bf16.msra.mxu3 %v9192_v43 }
  0x97   :  { %v9047_v29 = vld [vmem:[%s16156_s1 + $0x12a0] sm:$0xf]  ;;  %v10559_v45 = vld [vmem:[%s16156_s1 + $0x13ac] sm:$0xf0]  ;;  %905 = vst [vmem:[#allocation1 + $0x1] ss:$9 sm:$0xff] %v27_v39  ;;  %v8920_v55 = vor.u32 %v10495_v28, %v8919_v25 }
  0x98   :  { %v9175_v37 = vld [vmem:[%s16156_s1 + $0x13a0] sm:$0xf]  ;;  %v10459_v49 = vld [vmem:[%s16156_s1 + $0x108c] sm:$0xf0]  ;;  %v9048_v56 = vor.u32 %v10527_v31, %v9047_v29  ;;  %5116 = vmatpush.bf16.msra.mxu0 %v8792_v51  ;;  %915 = vst [vmem:[#allocation1 + $0x6] ss:$9 sm:$0xff] %v47_v58 }
  0x99   :  { %v31_v40 = vld [vmem:[%s16155_s0 + $0x42] sm:$0xff]  ;;  %v10491_v53 = vld [vmem:[%s16156_s1 + $0x118c] sm:$0xf0]  ;;  %v9176_v59 = vor.u32 %v10559_v45, %v9175_v37  ;;  %5130 = vmatpush.bf16.msra.mxu1 %v8920_v55 }
  0x9a   :  { %v35_v46 = vld [vmem:[%s16155_s0 + $0x5b] sm:$0xff]  ;;  %v43_v54 = vld [vmem:[%s16155_s0 + $0x8d] sm:$0xff]  ;;  %907 = vst [vmem:[#allocation1 + $0x2] ss:$9 sm:$0xff] %v31_v40  ;;  %5144 = vmatpush.bf16.msra.mxu2 %v9048_v56 }
  0x9b   :  { %v8775_v48 = vld [vmem:[%s16156_s1 + $0x1080] sm:$0xf]  ;;  %909 = vst [vmem:[#allocation1 + $0x3] ss:$9 sm:$0xff] %v35_v46  ;;  %v10523_v60 = vld [vmem:[%s16156_s1 + $0x128c] sm:$0xf0]  ;;  %5158 = vmatpush.bf16.msra.mxu3 %v9176_v59 }
  0x9c   :  { %v8903_v52 = vld [vmem:[%s16156_s1 + $0x1180] sm:$0xf]  ;;  %v10555_v63 = vld [vmem:[%s16156_s1 + $0x138c] sm:$0xf0]  ;;  %913 = vst [vmem:[#allocation1 + $0x5] ss:$9 sm:$0xff] %v43_v54  ;;  %v8776_v0 = vor.u32 %v10459_v49, %v8775_v48 }
  0x9d   :  { %v9031_v57 = vld [vmem:[%s16156_s1 + $0x1280] sm:$0xf]  ;;  %v8904_v2 = vor.u32 %v10491_v53, %v8903_v52  ;;  %v10455_v4 = vld [vmem:[%s16156_s1 + $0x106c] sm:$0xf0] }
  0x9e   :  { %v51_v61 = vld [vmem:[%s16155_s0 + $0xbf] sm:$0xff]  ;;  %v9032_v3 = vor.u32 %v10523_v60, %v9031_v57  ;;  %v10487_v7 = vld [vmem:[%s16156_s1 + $0x116c] sm:$0xf0]  ;;  %5117 = vmatpush.bf16.msra.mxu0 %v8776_v0 }
  0x9f   :  { %v9159_v62 = vld [vmem:[%s16156_s1 + $0x1380] sm:$0xf]  ;;  %917 = vst [vmem:[#allocation1 + $0x7] ss:$9 sm:$0xff] %v51_v61  ;;  %v10519_v10 = vld [vmem:[%s16156_s1 + $0x126c] sm:$0xf0]  ;;  %5131 = vmatpush.bf16.msra.mxu1 %v8904_v2 }
  0xa0   :  { %v8759_v1 = vld [vmem:[%s16156_s1 + $0x1060] sm:$0xf]  ;;  %v9160_v6 = vor.u32 %v10555_v63, %v9159_v62  ;;  %v10551_v12 = vld [vmem:[%s16156_s1 + $0x136c] sm:$0xf0]  ;;  %5145 = vmatpush.bf16.msra.mxu2 %v9032_v3 }
  0xa1   :  { %v8887_v5 = vld [vmem:[%s16156_s1 + $0x1160] sm:$0xf]  ;;  %v8760_v15 = vor.u32 %v10455_v4, %v8759_v1  ;;  %v10451_v20 = vld [vmem:[%s16156_s1 + $0x104c] sm:$0xf0] }
  0xa2   :  { %v9015_v9 = vld [vmem:[%s16156_s1 + $0x1260] sm:$0xf]  ;;  %v8888_v16 = vor.u32 %v10487_v7, %v8887_v5  ;;  %5159 = vmatpush.bf16.msra.mxu3 %v9160_v6  ;;  %v10483_v25 = vld [vmem:[%s16156_s1 + $0x114c] sm:$0xf0] }
  0xa3   :  { %v9143_v11 = vld [vmem:[%s16156_s1 + $0x1360] sm:$0xf]  ;;  %v9016_v17 = vor.u32 %v10519_v10, %v9015_v9  ;;  %v10515_v29 = vld [vmem:[%s16156_s1 + $0x124c] sm:$0xf0]  ;;  %5118 = vmatpush.bf16.msra.mxu0 %v8760_v15 }
  0xa4   :  { %v8743_v19 = vld [vmem:[%s16156_s1 + $0x1040] sm:$0xf]  ;;  %v9144_v24 = vor.u32 %v10551_v12, %v9143_v11  ;;  %v10547_v32 = vld [vmem:[%s16156_s1 + $0x134c] sm:$0xf0]  ;;  %5132 = vmatpush.bf16.msra.mxu1 %v8888_v16 }
  0xa5   :  { %v8871_v21 = vld [vmem:[%s16156_s1 + $0x1140] sm:$0xf]  ;;  %v8744_v35 = vor.u32 %v10451_v20, %v8743_v19  ;;  %5146 = vmatpush.bf16.msra.mxu2 %v9016_v17  ;;  %v10447_v40 = vld [vmem:[%s16156_s1 + $0x102c] sm:$0xf0] }
  0xa6   :  { %v8999_v28 = vld [vmem:[%s16156_s1 + $0x1240] sm:$0xf]  ;;  %v8872_v37 = vor.u32 %v10483_v25, %v8871_v21  ;;  %5160 = vmatpush.bf16.msra.mxu3 %v9144_v24  ;;  %v10479_v46 = vld [vmem:[%s16156_s1 + $0x112c] sm:$0xf0] }
  0xa7   :  { %v9127_v31 = vld [vmem:[%s16156_s1 + $0x1340] sm:$0xf]  ;;  %v9000_v38 = vor.u32 %v10515_v29, %v8999_v28  ;;  %v10511_v49 = vld [vmem:[%s16156_s1 + $0x122c] sm:$0xf0]  ;;  %5119 = vmatpush.bf16.msra.mxu0 %v8744_v35 }
  0xa8   :  { %v8727_v39 = vld [vmem:[%s16156_s1 + $0x1020] sm:$0xf]  ;;  %v9128_v45 = vor.u32 %v10547_v32, %v9127_v31  ;;  %v10543_v51 = vld [vmem:[%s16156_s1 + $0x132c] sm:$0xf0]  ;;  %5133 = vmatpush.bf16.msra.mxu1 %v8872_v37 }
  0xa9   :  { %v8855_v43 = vld [vmem:[%s16156_s1 + $0x1120] sm:$0xf]  ;;  %v8728_v52 = vor.u32 %v10447_v40, %v8727_v39  ;;  %v10443_v54 = vld [vmem:[%s16156_s1 + $0x100c] sm:$0xf0]  ;;  %5147 = vmatpush.bf16.msra.mxu2 %v9000_v38 }
  0xaa   :  { %v8983_v48 = vld [vmem:[%s16156_s1 + $0x1220] sm:$0xf]  ;;  %v8856_v56 = vor.u32 %v10479_v46, %v8855_v43  ;;  %v10475_v58 = vld [vmem:[%s16156_s1 + $0x110c] sm:$0xf0]  ;;  %5161 = vmatpush.bf16.msra.mxu3 %v9128_v45 }
  0xab   :  { %v9111_v50 = vld [vmem:[%s16156_s1 + $0x1320] sm:$0xf]  ;;  %v8984_v57 = vor.u32 %v10511_v49, %v8983_v48  ;;  %v10507_v60 = vld [vmem:[%s16156_s1 + $0x120c] sm:$0xf0]  ;;  %5120 = vmatpush.bf16.msra.mxu0 %v8728_v52 }
  0xac   :  { %v8711_v53 = vld [vmem:[%s16156_s1 + $0x1000] sm:$0xf]  ;;  %v9112_v61 = vor.u32 %v10543_v51, %v9111_v50  ;;  %v10539_v63 = vld [vmem:[%s16156_s1 + $0x130c] sm:$0xf0]  ;;  %5134 = vmatpush.bf16.msra.mxu1 %v8856_v56 }
  0xad   :  { %v8839_v55 = vld [vmem:[%s16156_s1 + $0x1100] sm:$0xf]  ;;  %v10599_v1 = vld [vmem:[%s16156_s1 + $0x14ec] sm:$0xf0]  ;;  %v8712_v3 = vor.u32 %v10443_v54, %v8711_v53  ;;  %5148 = vmatpush.bf16.msra.mxu2 %v8984_v57 }
  0xae   :  { %v8967_v59 = vld [vmem:[%s16156_s1 + $0x1200] sm:$0xf]  ;;  %v10631_v4 = vld [vmem:[%s16156_s1 + $0x15ec] sm:$0xf0]  ;;  %v8840_v7 = vor.u32 %v10475_v58, %v8839_v55  ;;  %5162 = vmatpush.bf16.msra.mxu3 %v9112_v61 }
  0xaf   :  { %v9095_v62 = vld [vmem:[%s16156_s1 + $0x1300] sm:$0xf]  ;;  %v10663_v6 = vld [vmem:[%s16156_s1 + $0x16ec] sm:$0xf0]  ;;  %v8968_v9 = vor.u32 %v10507_v60, %v8967_v59  ;;  %5121 = vmatpush.bf16.msra.mxu0 %v8712_v3 }
  0xb0   :  { %v9335_v0 = vld [vmem:[%s16156_s1 + $0x14e0] sm:$0xf]  ;;  %v10695_v11 = vld [vmem:[%s16156_s1 + $0x17ec] sm:$0xf0]  ;;  %v9096_v12 = vor.u32 %v10539_v63, %v9095_v62  ;;  %5135 = vmatpush.bf16.msra.mxu1 %v8840_v7 }
  0xb1   :  { %v9463_v2 = vld [vmem:[%s16156_s1 + $0x15e0] sm:$0xf]  ;;  %v9336_v15 = vor.u32 %v10599_v1, %v9335_v0  ;;  %v10595_v20 = vld [vmem:[%s16156_s1 + $0x14cc] sm:$0xf0]  ;;  %5149 = vmatpush.bf16.msra.mxu2 %v8968_v9 }
  0xb2   :  { %v9591_v5 = vld [vmem:[%s16156_s1 + $0x16e0] sm:$0xf]  ;;  %v9464_v16 = vor.u32 %v10631_v4, %v9463_v2  ;;  %v10627_v25 = vld [vmem:[%s16156_s1 + $0x15cc] sm:$0xf0]  ;;  %5163 = vmatpush.bf16.msra.mxu3 %v9096_v12 }
  0xb3   :  { %v9719_v10 = vld [vmem:[%s16156_s1 + $0x17e0] sm:$0xf]  ;;  %v9592_v17 = vor.u32 %v10663_v6, %v9591_v5  ;;  %v10659_v29 = vld [vmem:[%s16156_s1 + $0x16cc] sm:$0xf0]  ;;  %5170 = vmatpush.bf16.msrb.mxu0 %v9336_v15 }
  0xb4   :  { %v9319_v19 = vld [vmem:[%s16156_s1 + $0x14c0] sm:$0xf]  ;;  %v9720_v24 = vor.u32 %v10695_v11, %v9719_v10  ;;  %v10691_v35 = vld [vmem:[%s16156_s1 + $0x17cc] sm:$0xf0]  ;;  %5184 = vmatpush.bf16.msrb.mxu1 %v9464_v16 }
  0xb5   :  { %v9447_v21 = vld [vmem:[%s16156_s1 + $0x15c0] sm:$0xf]  ;;  %v11911_v37 = vld [vmem:[#allocation1 + $0x12] sm:$0xff]  ;;  %v11913_v38 = vld [vmem:[#allocation1 + $0x9] sm:$0xff]  ;;  %v9320_v39 = vor.u32 %v10595_v20, %v9319_v19  ;;  %5198 = vmatpush.bf16.msrb.mxu2 %v9592_v17 }
  0xb6   :  { %v9575_v28 = vld [vmem:[%s16156_s1 + $0x16c0] sm:$0xf]  ;;  %v9448_v45 = vor.u32 %v10627_v25, %v9447_v21  ;;  %v10591_v48 = vld [vmem:[%s16156_s1 + $0x14ac] sm:$0xf0]  ;;  %5212 = vmatpush.bf16.msrb.mxu3 %v9720_v24  ;;  %5150 = vmatmul.bf16.vlgmr.msra.gmra.mxu2 %v11911_v37 }
  0xb7   :  { %v11903_v31 = vld [vmem:[#allocation1] sm:$0xff]  ;;  %v9576_v46 = vor.u32 %v10659_v29, %v9575_v28  ;;  %v10623_v51 = vld [vmem:[%s16156_s1 + $0x15ac] sm:$0xf0]  ;;  %5136 = vmatmul.bf16.vlgmr.msra.gmra.mxu1 %v11913_v38  ;;  %5171 = vmatpush.bf16.msrb.mxu0 %v9320_v39 }
  0xb8   :  { %v9703_v32 = vld [vmem:[%s16156_s1 + $0x17c0] sm:$0xf]  ;;  %5122 = vmatmul.bf16.vlgmr.msra.gmra.mxu0 %v11903_v31  ;;  %v10655_v53 = vld [vmem:[%s16156_s1 + $0x16ac] sm:$0xf0]  ;;  %5185 = vmatpush.bf16.msrb.mxu1 %v9448_v45 }
  0xb9   :  { %v9303_v40 = vld [vmem:[%s16156_s1 + $0x14a0] sm:$0xf]  ;;  %v9704_v50 = vor.u32 %v10691_v35, %v9703_v32  ;;  %v10687_v55 = vld [vmem:[%s16156_s1 + $0x17ac] sm:$0xf0]  ;;  %5199 = vmatpush.bf16.msrb.mxu2 %v9576_v46 }
  0xba   :  { %v11918_v43 = vld [vmem:[#allocation1 + $0x1b] sm:$0xff]  ;;  %v9304_v56 = vor.u32 %v10591_v48, %v9303_v40  ;;  %v10587_v60 = vld [vmem:[%s16156_s1 + $0x148c] sm:$0xf0] }
  0xbb   :  { %v9431_v49 = vld [vmem:[%s16156_s1 + $0x15a0] sm:$0xf]  ;;  %5164 = vmatmul.bf16.vlgmr.msra.gmra.mxu3 %v11918_v43  ;;  %v10619_v63 = vld [vmem:[%s16156_s1 + $0x158c] sm:$0xf0] }
  0xbc   :  { %v9559_v52 = vld [vmem:[%s16156_s1 + $0x16a0] sm:$0xf]  ;;  %v9432_v57 = vor.u32 %v10623_v51, %v9431_v49  ;;  %5213 = vmatpush.bf16.msrb.mxu3 %v9704_v50  ;;  %v10651_v1 = vld [vmem:[%s16156_s1 + $0x168c] sm:$0xf0]  ;;  %5172 = vmatpush.bf16.msrb.mxu0 %v9304_v56  ;;  %v24_v49 = vld [vmem:[%s16155_s0 + $0x18] sm:$0x1] }
  0xbd   :  { %v9687_v54 = vld [vmem:[%s16156_s1 + $0x17a0] sm:$0xf]  ;;  %v9560_v58 = vor.u32 %v10655_v53, %v9559_v52  ;;  %v10683_v3 = vld [vmem:[%s16156_s1 + $0x178c] sm:$0xf0]  ;;  %v12031_v52 = vld [vmem:[#allocation1 + $0x24] sm:$0xff] }
  0xbe   :  { %v9287_v59 = vld [vmem:[%s16156_s1 + $0x1480] sm:$0xf]  ;;  %v9688_v62 = vor.u32 %v10687_v55, %v9687_v54  ;;  %5186 = vmatpush.bf16.msrb.mxu1 %v9432_v57  ;;  %v10583_v9 = vld [vmem:[%s16156_s1 + $0x146c] sm:$0xf0]  ;;  %v12033_v53 = vld [vmem:[#allocation1 + $0x36] sm:$0xff] }
  0xbf   :  { %v9415_v61 = vld [vmem:[%s16156_s1 + $0x1580] sm:$0xf]  ;;  %v9288_v4 = vor.u32 %v10587_v60, %v9287_v59  ;;  %5200 = vmatpush.bf16.msrb.mxu2 %v9560_v58  ;;  %v10615_v12 = vld [vmem:[%s16156_s1 + $0x156c] sm:$0xf0] }
  0xc0   :  { %v9543_v0 = vld [vmem:[%s16156_s1 + $0x1680] sm:$0xf]  ;;  %v9416_v5 = vor.u32 %v10619_v63, %v9415_v61  ;;  %5214 = vmatpush.bf16.msrb.mxu3 %v9688_v62  ;;  %v10647_v16 = vld [vmem:[%s16156_s1 + $0x166c] sm:$0xf0]  ;;  %v32_v63 = vld [vmem:[%s16155_s0 + $0x4a] sm:$0x1] }
  0xc1   :  { %v9671_v2 = vld [vmem:[%s16156_s1 + $0x1780] sm:$0xf]  ;;  %v9544_v6 = vor.u32 %v10651_v1, %v9543_v0  ;;  %v10679_v19 = vld [vmem:[%s16156_s1 + $0x176c] sm:$0xf0]  ;;  %5173 = vmatpush.bf16.msrb.mxu0 %v9288_v4 }
  0xc2   :  { %v9271_v7 = vld [vmem:[%s16156_s1 + $0x1460] sm:$0xf]  ;;  %v9672_v11 = vor.u32 %v10683_v3, %v9671_v2  ;;  %v10579_v24 = vld [vmem:[%s16156_s1 + $0x144c] sm:$0xf0]  ;;  %5187 = vmatpush.bf16.msrb.mxu1 %v9416_v5 }
  0xc3   :  { %v9399_v10 = vld [vmem:[%s16156_s1 + $0x1560] sm:$0xf]  ;;  %v9272_v21 = vor.u32 %v10583_v9, %v9271_v7  ;;  %v10611_v28 = vld [vmem:[%s16156_s1 + $0x154c] sm:$0xf0]  ;;  %5201 = vmatpush.bf16.msrb.mxu2 %v9544_v6  ;;  %v40_v6 = vld [vmem:[%s16155_s0 + $0x7c] sm:$0x1] }
  0xc4   :  { %v9527_v15 = vld [vmem:[%s16156_s1 + $0x1660] sm:$0xf]  ;;  %v9400_v29 = vor.u32 %v10615_v12, %v9399_v10  ;;  %v10643_v39 = vld [vmem:[%s16156_s1 + $0x164c] sm:$0xf0]  ;;  %5215 = vmatpush.bf16.msrb.mxu3 %v9672_v11  ;;  %v44_v10 = vld [vmem:[%s16155_s0 + $0x95] sm:$0x1]  ;;  %v4899_v11 = vpop.f32.mrf.mxu0 }
  0xc5   :  { %v9655_v17 = vld [vmem:[%s16156_s1 + $0x1760] sm:$0xf]  ;;  %v9528_v32 = vor.u32 %v10647_v16, %v9527_v15  ;;  %v10675_v48 = vld [vmem:[%s16156_s1 + $0x174c] sm:$0xf0]  ;;  %5174 = vmatpush.bf16.msrb.mxu0 %v9272_v21 }
  0xc6   :  { %v9255_v20 = vld [vmem:[%s16156_s1 + $0x1440] sm:$0xf]  ;;  %v9656_v45 = vor.u32 %v10679_v19, %v9655_v17  ;;  %v10575_v51 = vld [vmem:[%s16156_s1 + $0x142c] sm:$0xf0]  ;;  %5188 = vmatpush.bf16.msrb.mxu1 %v9400_v29 }
  0xc7   :  { %v9383_v25 = vld [vmem:[%s16156_s1 + $0x1540] sm:$0xf]  ;;  %v28_v54 = vld [vmem:[%s16155_s0 + $0x31] sm:$0x1]  ;;  %v9256_v55 = vor.u32 %v10579_v24, %v9255_v20  ;;  %5202 = vmatpush.bf16.msrb.mxu2 %v9528_v32  ;;  %v48_v20 = vld [vmem:[%s16155_s0 + $0xae] sm:$0x1] }
  0xc8   :  { %v9511_v35 = vld [vmem:[%s16156_s1 + $0x1640] sm:$0xf]  ;;  %v10607_v58 = vld [vmem:[%s16156_s1 + $0x152c] sm:$0xf0]  ;;  %v9384_v0 = vor.u32 %v10611_v28, %v9383_v25  ;;  %5216 = vmatpush.bf16.msrb.mxu3 %v9656_v45  ;;  %v4913_v28 = vpop.f32.mrf.mxu1 }
  0xc9   :  { %v12014_v40 = vld [vmem:[%s16157_s2] sm:$0xf]  ;;  %v10639_v60 = vld [vmem:[%s16156_s1 + $0x162c] sm:$0xf0]  ;;  %v9512_v1 = vor.u32 %v10643_v39, %v9511_v35  ;;  %5175 = vmatpush.bf16.msrb.mxu0 %v9256_v55  ;;  %v52_v35 = vld [vmem:[%s16155_s0 + $0xc7] sm:$0x1] }
  0xca   :  { %v9639_v46 = vld [vmem:[%s16156_s1 + $0x1740] sm:$0xf]  ;;  %v16161_v56 = vperm.slane %v12014_v40, 0  ;;  %v12051_v61 = vld [vmem:[#allocation1 + $0x2d] sm:$0xff]  ;;  %5189 = vmatpush.bf16.msrb.mxu1 %v9384_v0 }
  0xcb   :  { %v9239_v50 = vld [vmem:[%s16156_s1 + $0x1420] sm:$0xf]  ;;  %v9640_v4 = vor.u32 %v10675_v48, %v9639_v46  ;;  %v10671_v5 = vld [vmem:[%s16156_s1 + $0x172c] sm:$0xf0]  ;;  %5203 = vmatpush.bf16.msrb.mxu2 %v9512_v1  ;;  %v6905_v55 = vld [vmem:[%s16156_s1 + $0x1f0] sm:$0xf0]  ;;  %v4927_v1 = vpop.f32.mrf.mxu2 }
  0xcc   :  { %v9367_v57 = vld [vmem:[%s16156_s1 + $0x1520] sm:$0xf]  ;;  %v10571_v9 = vld [vmem:[%s16156_s1 + $0x140c] sm:$0xf0]  ;;  %v9240_v12 = vor.u32 %v10575_v51, %v9239_v50  ;;  %v4900_v21 = vadd.f32 %v4899_v11, %v16161_v56  ;;  %v6777_v50 = vld [vmem:[%s16156_s1 + $0xf0] sm:$0xf0] }
  0xcd   :  { %v9495_v59 = vld [vmem:[%s16156_s1 + $0x1620] sm:$0xf]  ;;  %v10603_v16 = vld [vmem:[%s16156_s1 + $0x150c] sm:$0xf0]  ;;  %v9368_v24 = vor.u32 %v10607_v58, %v9367_v57  ;;  %5217 = vmatpush.bf16.msrb.mxu3 %v9640_v4  ;;  %v6761_v11 = vld [vmem:[%s16156_s1 + $0xd0] sm:$0xf0] }
  0xce   :  { %v12053_v62 = vld [vmem:[#allocation1 + $0x3f] sm:$0xff]  ;;  %v10635_v19 = vld [vmem:[%s16156_s1 + $0x160c] sm:$0xf0]  ;;  %v9496_v25 = vor.u32 %v10639_v60, %v9495_v59  ;;  %v4914_v48 = vadd.f32 %v4913_v28, %v4900_v21  ;;  %5176 = vmatpush.bf16.msrb.mxu0 %v9240_v12  ;;  %v7033_v60 = vld [vmem:[%s16156_s1 + $0x2f0] sm:$0xf0] }
  0xcf   :  { %16164 = vst [vmem:[#allocation3_spill] sm:$0xff] %v12053_v62  ;;  %v9623_v2 = vld [vmem:[%s16156_s1 + $0x1720] sm:$0xf]  ;;  %v10667_v32 = vld [vmem:[%s16156_s1 + $0x170c] sm:$0xf0]  ;;  %5190 = vmatpush.bf16.msrb.mxu1 %v9368_v24 }
  0xd0   :  { %v36_v3 = vld [vmem:[%s16155_s0 + $0x63] sm:$0x1]  ;;  %927 = vst [vmem:[#allocation1] ss:$9 sm:$0xff] %v24_v49  ;;  %v9624_v39 = vor.u32 %v10671_v5, %v9623_v2  ;;  %v10711_v46 = vld [vmem:[%s16156_s1 + $0x186c] sm:$0xf0]  ;;  %5204 = vmatpush.bf16.msrb.mxu2 %v9496_v25  ;;  %v4928_v4 = vadd.f32 %v4927_v1, %v4914_v48 }
  0xd1   :  { %929 = vst [vmem:[#allocation1 + $0x1] ss:$9 sm:$0xff] %v28_v54  ;;  %v9223_v7 = vld [vmem:[%s16156_s1 + $0x1400] sm:$0xf]  ;;  %v9957_v49 = vld [vmem:[%s16156_s1 + $0xe4] sm:$0xf] }
  0xd2   :  { %931 = vst [vmem:[#allocation1 + $0x2] ss:$9 sm:$0xff] %v32_v63  ;;  %v9351_v15 = vld [vmem:[%s16156_s1 + $0x1500] sm:$0xf]  ;;  %v9224_v51 = vor.u32 %v10571_v9, %v9223_v7  ;;  %v9989_v54 = vld [vmem:[%s16156_s1 + $0x1e4] sm:$0xf]  ;;  %5218 = vmatpush.bf16.msrb.mxu3 %v9624_v39  ;;  %v6780_v2 = vor.u32 %v9957_v49, %v6777_v50 }
  0xd3   :  { %v9479_v17 = vld [vmem:[%s16156_s1 + $0x1600] sm:$0xf]  ;;  %933 = vst [vmem:[#allocation1 + $0x3] ss:$9 sm:$0xff] %v36_v3  ;;  %v9352_v57 = vor.u32 %v10603_v16, %v9351_v15  ;;  %v10021_v59 = vld [vmem:[%s16156_s1 + $0x2e4] sm:$0xf]  ;;  %v6908_v3 = vor.u32 %v9989_v54, %v6905_v55  ;;  %v12185_v54 = vpop.f32.mrf.mxu2 }
  0xd4   :  { %v9607_v29 = vld [vmem:[%s16156_s1 + $0x1700] sm:$0xf]  ;;  %935 = vst [vmem:[#allocation1 + $0x4] ss:$9 sm:$0xff] %v40_v6  ;;  %v9480_v58 = vor.u32 %v10635_v19, %v9479_v17  ;;  %v10707_v6 = vld [vmem:[%s16156_s1 + $0x184c] sm:$0xf0]  ;;  %5177 = vmatpush.bf16.msrb.mxu0 %v9224_v51  ;;  %v7036_v9 = vor.u32 %v10021_v59, %v7033_v60  ;;  %v12155_v19 = vpop.f32.mrf.mxu1 }
  0xd5   :  { %v9783_v45 = vld [vmem:[%s16156_s1 + $0x1860] sm:$0xf]  ;;  %937 = vst [vmem:[#allocation1 + $0x5] ss:$9 sm:$0xff] %v44_v10  ;;  %v9608_v63 = vor.u32 %v10667_v32, %v9607_v29  ;;  %v9953_v7 = vld [vmem:[%s16156_s1 + $0xc4] sm:$0xf]  ;;  %v12138_v10 = vpop.f32.mrf.mxu0  ;;  %5191 = vmatpush.bf16.msrb.mxu1 %v9352_v57 }
  0xd6   :  { %939 = vst [vmem:[#allocation1 + $0x6] ss:$9 sm:$0xff] %v48_v20  ;;  %v9784_v0 = vor.u32 %v10711_v46, %v9783_v45  ;;  %v9767_v5 = vld [vmem:[%s16156_s1 + $0x1840] sm:$0xf]  ;;  %v9985_v12 = vld [vmem:[%s16156_s1 + $0x1c4] sm:$0xf]  ;;  %5205 = vmatpush.bf16.msrb.mxu2 %v9480_v58  ;;  %v4941_v20 = vpop.f32.mrf.mxu3  ;;  %v6764_v25 = vor.u32 %v9953_v7, %v6761_v11 }
  0xd7   :  { %941 = vst [vmem:[#allocation1 + $0x7] ss:$9 sm:$0xff] %v52_v35  ;;  %v6889_v15 = vld [vmem:[%s16156_s1 + $0x1d0] sm:$0xf0]  ;;  %v10017_v16 = vld [vmem:[%s16156_s1 + $0x2c4] sm:$0xf]  ;;  %5219 = vmatpush.bf16.msrb.mxu3 %v9608_v63  ;;  %v9768_v21 = vor.u32 %v10707_v6, %v9767_v5  ;;  %v4942_v24 = vadd.f32 %v4941_v20, %v4928_v4  ;;  %5178 = vmatmul.bf16.vlgmr.msrb.gmra.mxu0 %v12031_v52 }
  0xd8   :  { %v7017_v17 = vld [vmem:[%s16156_s1 + $0x2d0] sm:$0xf0]  ;;  %5230 = vmatpush.bf16.msra.mxu0 %v9784_v0  ;;  %v6892_v28 = vor.u32 %v9985_v12, %v6889_v15  ;;  %v9751_v29 = vld [vmem:[%s16156_s1 + $0x1820] sm:$0xf]  ;;  %v10703_v32 = vld [vmem:[%s16156_s1 + $0x182c] sm:$0xf0]  ;;  %5192 = vmatmul.bf16.vlgmr.msrb.gmra.mxu1 %v12051_v61 }
  0xd9   :  { %5240 = vmatpush.bf16.msra.mxu1 %v6780_v2  ;;  %v9949_v35 = vld [vmem:[%s16156_s1 + $0xa4] sm:$0xf]  ;;  %v7020_v39 = vor.u32 %v10017_v16, %v7017_v17  ;;  %v6745_v45 = vld [vmem:[%s16156_s1 + $0xb0] sm:$0xf0]  ;;  %5206 = vmatmul.bf16.vlgmr.msrb.gmra.mxu2 %v12033_v53  ;;  %v9752_v51 = vor.u32 %v10703_v32, %v9751_v29  ;;  %v9735_v55 = vld [vmem:[%s16156_s1 + $0x1800] sm:$0xf] }
  0xda   :  { %5254 = vmatpush.bf16.msra.mxu2 %v6908_v3  ;;  %v9981_v46 = vld [vmem:[%s16156_s1 + $0x1a4] sm:$0xf]  ;;  %v6873_v48 = vld [vmem:[%s16156_s1 + $0x1b0] sm:$0xf0]  ;;  %5220 = vmatmul.bf16.vlgmr.msrb.gmra.mxu3 %v12053_v62  ;;  %v6748_v57 = vor.u32 %v9949_v35, %v6745_v45  ;;  %v10699_v59 = vld [vmem:[%s16156_s1 + $0x180c] sm:$0xf0] }
  0xdb   :  { %5268 = vmatpush.bf16.msra.mxu3 %v7036_v9  ;;  %v10013_v49 = vld [vmem:[%s16156_s1 + $0x2a4] sm:$0xf]  ;;  %v7001_v50 = vld [vmem:[%s16156_s1 + $0x2b0] sm:$0xf0]  ;;  %v6876_v58 = vor.u32 %v9981_v46, %v6873_v48  ;;  %v9736_v12 = vor.u32 %v10699_v59, %v9735_v55 }
  0xdc   :  { %5231 = vmatpush.bf16.msra.mxu0 %v9768_v21  ;;  %v9945_v60 = vld [vmem:[%s16156_s1 + $0x84] sm:$0xf]  ;;  %v6729_v63 = vld [vmem:[%s16156_s1 + $0x90] sm:$0xf0]  ;;  %v7004_v0 = vor.u32 %v10013_v49, %v7001_v50  ;;  %v4969_v17 = vpop.f32.mrf.mxu1 }
  0xdd   :  { %5241 = vmatpush.bf16.msra.mxu1 %v6764_v25  ;;  %v9977_v1 = vld [vmem:[%s16156_s1 + $0x184] sm:$0xf]  ;;  %v6857_v2 = vld [vmem:[%s16156_s1 + $0x190] sm:$0xf0]  ;;  %v4955_v4 = vpop.f32.mrf.mxu0  ;;  %v6732_v15 = vor.u32 %v9945_v60, %v6729_v63 }
  0xde   :  { %5255 = vmatpush.bf16.msra.mxu2 %v6892_v28  ;;  %v10009_v3 = vld [vmem:[%s16156_s1 + $0x284] sm:$0xf]  ;;  %v6985_v5 = vld [vmem:[%s16156_s1 + $0x290] sm:$0xf0]  ;;  %v12217_v9 = vpop.f32.mrf.mxu3  ;;  %v4956_v11 = vadd.f32 %v4955_v4, %v4942_v24  ;;  %v6860_v16 = vor.u32 %v9977_v1, %v6857_v2 }
  0xdf   :  { %5269 = vmatpush.bf16.msra.mxu3 %v7020_v39  ;;  %v10053_v6 = vld [vmem:[%s16156_s1 + $0x3e4] sm:$0xf]  ;;  %v7161_v7 = vld [vmem:[%s16156_s1 + $0x3f0] sm:$0xf0]  ;;  %v6988_v25 = vor.u32 %v10009_v3, %v6985_v5 }
  0xe0   :  { %5232 = vmatpush.bf16.msra.mxu0 %v9752_v51  ;;  %v9941_v20 = vld [vmem:[%s16156_s1 + $0x64] sm:$0xf]  ;;  %v6713_v21 = vld [vmem:[%s16156_s1 + $0x70] sm:$0xf0]  ;;  %v4970_v28 = vadd.f32 %v4969_v17, %v4956_v11  ;;  %v7164_v29 = vor.u32 %v10053_v6, %v7161_v7 }
  0xe1   :  { %5242 = vmatpush.bf16.msra.mxu1 %v6748_v57  ;;  %v9973_v24 = vld [vmem:[%s16156_s1 + $0x164] sm:$0xf]  ;;  %v6841_v32 = vld [vmem:[%s16156_s1 + $0x170] sm:$0xf0]  ;;  %v6716_v48 = vor.u32 %v9941_v20, %v6713_v21  ;;  %v4983_v57 = vpop.f32.mrf.mxu2 }
  0xe2   :  { %5256 = vmatpush.bf16.msra.mxu2 %v6876_v58  ;;  %v10005_v35 = vld [vmem:[%s16156_s1 + $0x264] sm:$0xf]  ;;  %v6969_v39 = vld [vmem:[%s16156_s1 + $0x270] sm:$0xf0]  ;;  %v6844_v49 = vor.u32 %v9973_v24, %v6841_v32 }
  0xe3   :  { %5270 = vmatpush.bf16.msra.mxu3 %v7004_v0  ;;  %v10049_v45 = vld [vmem:[%s16156_s1 + $0x3c4] sm:$0xf]  ;;  %v7145_v46 = vld [vmem:[%s16156_s1 + $0x3d0] sm:$0xf0]  ;;  %v6972_v55 = vor.u32 %v10005_v35, %v6969_v39  ;;  %v4984_v0 = vadd.f32 %v4983_v57, %v4970_v28 }
  0xe4   :  { %5233 = vmatpush.bf16.msra.mxu0 %v9736_v12  ;;  %v9937_v50 = vld [vmem:[%s16156_s1 + $0x44] sm:$0xf]  ;;  %v6697_v51 = vld [vmem:[%s16156_s1 + $0x50] sm:$0xf0]  ;;  %v7148_v58 = vor.u32 %v10049_v45, %v7145_v46 }
  0xe5   :  { %5243 = vmatpush.bf16.msra.mxu1 %v6732_v15  ;;  %v9969_v59 = vld [vmem:[%s16156_s1 + $0x144] sm:$0xf]  ;;  %v6825_v60 = vld [vmem:[%s16156_s1 + $0x150] sm:$0xf0]  ;;  %v6700_v7 = vor.u32 %v9937_v50, %v6697_v51 }
  0xe6   :  { %5257 = vmatpush.bf16.msra.mxu2 %v6860_v16  ;;  %v10001_v63 = vld [vmem:[%s16156_s1 + $0x244] sm:$0xf]  ;;  %v6953_v1 = vld [vmem:[%s16156_s1 + $0x250] sm:$0xf0]  ;;  %v4997_v5 = vpop.f32.mrf.mxu3  ;;  %v6828_v11 = vor.u32 %v9969_v59, %v6825_v60 }
  0xe7   :  { %5271 = vmatpush.bf16.msra.mxu3 %v6988_v25  ;;  %v10045_v2 = vld [vmem:[%s16156_s1 + $0x3a4] sm:$0xf]  ;;  %v7129_v3 = vld [vmem:[%s16156_s1 + $0x3b0] sm:$0xf0]  ;;  %v12267_v6 = vadd.f32 %v4997_v5, %v4984_v0  ;;  %v6956_v16 = vor.u32 %v10001_v63, %v6953_v1 }
  0xe8   :  { %5282 = vmatpush.bf16.msrb.mxu0 %v7164_v29  ;;  %v942_v4 = vld [vmem:[#allocation1] sm:$0xff]  ;;  %v6681_v15 = vld [vmem:[%s16156_s1 + $0x30] sm:$0xf0]  ;;  %v7132_v17 = vor.u32 %v10045_v2, %v7129_v3 }
  0xe9   :  { %5244 = vmatpush.bf16.msra.mxu1 %v6716_v48  ;;  %v9933_v12 = vld [vmem:[%s16156_s1 + $0x24] sm:$0xf]  ;;  %v6809_v21 = vld [vmem:[%s16156_s1 + $0x130] sm:$0xf0]  ;;  %9797 = vmatmul.msk.bf16.vlgmr.msra.gmra.mxu0 %vm4887_vm0, %v942_v4 }
  0xea   :  { %5258 = vmatpush.bf16.msra.mxu2 %v6844_v49  ;;  %v9965_v20 = vld [vmem:[%s16156_s1 + $0x124] sm:$0xf]  ;;  %v6937_v28 = vld [vmem:[%s16156_s1 + $0x230] sm:$0xf0]  ;;  %v6684_v32 = vor.u32 %v9933_v12, %v6681_v15 }
  0xeb   :  { %5272 = vmatpush.bf16.msra.mxu3 %v6972_v55  ;;  %v9997_v25 = vld [vmem:[%s16156_s1 + $0x224] sm:$0xf]  ;;  %v7113_v24 = vld [vmem:[%s16156_s1 + $0x390] sm:$0xf0]  ;;  %v6812_v35 = vor.u32 %v9965_v20, %v6809_v21 }
  0xec   :  { %5283 = vmatpush.bf16.msrb.mxu0 %v7148_v58  ;;  %v10041_v29 = vld [vmem:[%s16156_s1 + $0x384] sm:$0xf]  ;;  %v6665_v45 = vld [vmem:[%s16156_s1 + $0x10] sm:$0xf0]  ;;  %v6940_v48 = vor.u32 %v9997_v25, %v6937_v28 }
  0xed   :  { %5245 = vmatpush.bf16.msra.mxu1 %v6700_v7  ;;  %v9929_v39 = vld [vmem:[%s16156_s1 + $0x4] sm:$0xf]  ;;  %v7116_v49 = vor.u32 %v10041_v29, %v7113_v24  ;;  %v6793_v50 = vld [vmem:[%s16156_s1 + $0x110] sm:$0xf0]  ;;  %v12354_v29 = vpop.f32.mrf.mxu0 }
  0xee   :  { %5259 = vmatpush.bf16.msra.mxu2 %v6828_v11  ;;  %v9961_v46 = vld [vmem:[%s16156_s1 + $0x104] sm:$0xf]  ;;  %v6921_v55 = vld [vmem:[%s16156_s1 + $0x210] sm:$0xf0]  ;;  %v6668_v1 = vor.u32 %v9929_v39, %v6665_v45 }
  0xef   :  { %5273 = vmatpush.bf16.msra.mxu3 %v6956_v16  ;;  %v9993_v51 = vld [vmem:[%s16156_s1 + $0x204] sm:$0xf]  ;;  %v7097_v58 = vld [vmem:[%s16156_s1 + $0x370] sm:$0xf0]  ;;  %v6796_v2 = vor.u32 %v9961_v46, %v6793_v50 }
  0xf0   :  { %5284 = vmatpush.bf16.msrb.mxu0 %v7132_v17  ;;  %v10037_v57 = vld [vmem:[%s16156_s1 + $0x364] sm:$0xf]  ;;  %v7289_v60 = vld [vmem:[%s16156_s1 + $0x4f0] sm:$0xf0]  ;;  %v6924_v5 = vor.u32 %v9993_v51, %v6921_v55 }
  0xf1   :  { %v10085_v59 = vld [vmem:[%s16156_s1 + $0x4e4] sm:$0xf]  ;;  %v7417_v0 = vld [vmem:[%s16156_s1 + $0x5f0] sm:$0xf0]  ;;  %5246 = vmatpush.bf16.msra.mxu1 %v6684_v32  ;;  %v7100_v7 = vor.u32 %v10037_v57, %v7097_v58 }
  0xf2   :  { %v10117_v63 = vld [vmem:[%s16156_s1 + $0x5e4] sm:$0xf]  ;;  %5260 = vmatpush.bf16.msra.mxu2 %v6812_v35  ;;  %v7545_v4 = vld [vmem:[%s16156_s1 + $0x6f0] sm:$0xf0]  ;;  %v7292_v11 = vor.u32 %v10085_v59, %v7289_v60  ;;  %v12362_v35 = vpop.f32.mrf.mxu1 }
  0xf3   :  { %v10149_v3 = vld [vmem:[%s16156_s1 + $0x6e4] sm:$0xf]  ;;  %5274 = vmatpush.bf16.msra.mxu3 %v6940_v48  ;;  %v7420_v12 = vor.u32 %v10117_v63, %v7417_v0  ;;  %v7081_v16 = vld [vmem:[%s16156_s1 + $0x350] sm:$0xf0] }
  0xf4   :  { %5285 = vmatpush.bf16.msrb.mxu0 %v7116_v49  ;;  %v10033_v15 = vld [vmem:[%s16156_s1 + $0x344] sm:$0xf]  ;;  %v7548_v20 = vor.u32 %v10149_v3, %v7545_v4  ;;  %v7273_v21 = vld [vmem:[%s16156_s1 + $0x4d0] sm:$0xf0] }
  0xf5   :  { %v10081_v17 = vld [vmem:[%s16156_s1 + $0x4c4] sm:$0xf]  ;;  %v7401_v28 = vld [vmem:[%s16156_s1 + $0x5d0] sm:$0xf0]  ;;  %5247 = vmatpush.bf16.msra.mxu1 %v6668_v1  ;;  %v7084_v39 = vor.u32 %v10033_v15, %v7081_v16 }
  0xf6   :  { %v10113_v25 = vld [vmem:[%s16156_s1 + $0x5c4] sm:$0xf]  ;;  %5261 = vmatpush.bf16.msra.mxu2 %v6796_v2  ;;  %v7529_v32 = vld [vmem:[%s16156_s1 + $0x6d0] sm:$0xf0]  ;;  %v7276_v45 = vor.u32 %v10081_v17, %v7273_v21  ;;  %v12414_v17 = vpop.f32.mrf.mxu3 }
  0xf7   :  { %v10145_v24 = vld [vmem:[%s16156_s1 + $0x6c4] sm:$0xf]  ;;  %5275 = vmatpush.bf16.msra.mxu3 %v6924_v5  ;;  %v7404_v46 = vor.u32 %v10113_v25, %v7401_v28  ;;  %v7065_v49 = vld [vmem:[%s16156_s1 + $0x330] sm:$0xf0] }
  0xf8   :  { %5286 = vmatpush.bf16.msrb.mxu0 %v7100_v7  ;;  %v10029_v48 = vld [vmem:[%s16156_s1 + $0x324] sm:$0xf]  ;;  %v7532_v51 = vor.u32 %v10145_v24, %v7529_v32  ;;  %v7257_v55 = vld [vmem:[%s16156_s1 + $0x4b0] sm:$0xf0]  ;;  %5248 = vmatmul.bf16.vlgmr.msra.gmra.mxu1 %v11135_v41  ;;  %v12403_v7 = vpop.f32.mrf.mxu2 }
  0xf9   :  { %5296 = vmatpush.bf16.msrb.mxu1 %v7292_v11  ;;  %v10077_v50 = vld [vmem:[%s16156_s1 + $0x4a4] sm:$0xf]  ;;  %v7385_v58 = vld [vmem:[%s16156_s1 + $0x5b0] sm:$0xf0]  ;;  %5262 = vmatmul.bf16.vlgmr.msra.gmra.mxu2 %v11139_v44  ;;  %v7068_v63 = vor.u32 %v10029_v48, %v7065_v49 }
  0xfa   :  { %5310 = vmatpush.bf16.msrb.mxu2 %v7420_v12  ;;  %v10109_v57 = vld [vmem:[%s16156_s1 + $0x5a4] sm:$0xf]  ;;  %v7513_v60 = vld [vmem:[%s16156_s1 + $0x6b0] sm:$0xf0]  ;;  %5276 = vmatmul.bf16.vlgmr.msra.gmra.mxu3 %v11137_v42  ;;  %v7260_v1 = vor.u32 %v10077_v50, %v7257_v55 }
  0xfb   :  { %5324 = vmatpush.bf16.msrb.mxu3 %v7548_v20  ;;  %v10141_v59 = vld [vmem:[%s16156_s1 + $0x6a4] sm:$0xf]  ;;  %v7388_v2 = vor.u32 %v10109_v57, %v7385_v58  ;;  %v7049_v3 = vld [vmem:[%s16156_s1 + $0x310] sm:$0xf0]  ;;  %v5011_v20 = vpop.f32.mrf.mxu0 }
  0xfc   :  { %5287 = vmatpush.bf16.msrb.mxu0 %v7084_v39  ;;  %v10025_v0 = vld [vmem:[%s16156_s1 + $0x304] sm:$0xf]  ;;  %v7241_v5 = vld [vmem:[%s16156_s1 + $0x490] sm:$0xf0]  ;;  %v7516_v11 = vor.u32 %v10141_v59, %v7513_v60  ;;  %v5012_v24 = vadd.f32 %v5011_v20, %v12267_v6  ;;  %v5025_v39 = vpop.f32.mrf.mxu1 }
  0xfd   :  { %5297 = vmatpush.bf16.msrb.mxu1 %v7276_v45  ;;  %v10073_v4 = vld [vmem:[%s16156_s1 + $0x484] sm:$0xf]  ;;  %v7369_v15 = vld [vmem:[%s16156_s1 + $0x590] sm:$0xf0]  ;;  %v7052_v32 = vor.u32 %v10025_v0, %v7049_v3 }
  0xfe   :  { %5311 = vmatpush.bf16.msrb.mxu2 %v7404_v46  ;;  %v10105_v12 = vld [vmem:[%s16156_s1 + $0x584] sm:$0xf]  ;;  %v7497_v21 = vld [vmem:[%s16156_s1 + $0x690] sm:$0xf0]  ;;  %v7244_v45 = vor.u32 %v10073_v4, %v7241_v5 }
  0xff   :  { %5325 = vmatpush.bf16.msrb.mxu3 %v7532_v51  ;;  %v10137_v16 = vld [vmem:[%s16156_s1 + $0x684] sm:$0xf]  ;;  %v7673_v28 = vld [vmem:[%s16156_s1 + $0x7f0] sm:$0xf0]  ;;  %v7372_v46 = vor.u32 %v10105_v12, %v7369_v15  ;;  %v5026_v51 = vadd.f32 %v5025_v39, %v5012_v24 }
 0x100   :  { %v10181_v25 = vld [vmem:[%s16156_s1 + $0x7e4] sm:$0xf]  ;;  %5288 = vmatpush.bf16.msrb.mxu0 %v7068_v63  ;;  %v7225_v49 = vld [vmem:[%s16156_s1 + $0x470] sm:$0xf0]  ;;  %v7500_v50 = vor.u32 %v10137_v16, %v7497_v21  ;;  %v5039_v5 = vpop.f32.mrf.mxu2  ;;  %v5053_v21 = vpop.f32.mrf.mxu3 }
 0x101   :  { %5298 = vmatpush.bf16.msrb.mxu1 %v7260_v1  ;;  %v10069_v48 = vld [vmem:[%s16156_s1 + $0x464] sm:$0xf]  ;;  %v7676_v55 = vor.u32 %v10181_v25, %v7673_v28  ;;  %v7353_v57 = vld [vmem:[%s16156_s1 + $0x570] sm:$0xf0]  ;;  %v5040_v20 = vadd.f32 %v5039_v5, %v5026_v51 }
 0x102   :  { %5312 = vmatpush.bf16.msrb.mxu2 %v7388_v2  ;;  %v10101_v6 = vld [vmem:[%s16156_s1 + $0x564] sm:$0xf]  ;;  %v7481_v59 = vld [vmem:[%s16156_s1 + $0x670] sm:$0xf0]  ;;  %v7228_v0 = vor.u32 %v10069_v48, %v7225_v49 }
 0x103   :  { %5326 = vmatpush.bf16.msrb.mxu3 %v7516_v11  ;;  %v10133_v58 = vld [vmem:[%s16156_s1 + $0x664] sm:$0xf]  ;;  %v7657_v63 = vld [vmem:[%s16156_s1 + $0x7d0] sm:$0xf0]  ;;  %v7356_v1 = vor.u32 %v10101_v6, %v7353_v57 }
 0x104   :  { %v10177_v60 = vld [vmem:[%s16156_s1 + $0x7c4] sm:$0xf]  ;;  %5289 = vmatpush.bf16.msrb.mxu0 %v7052_v32  ;;  %v7209_v3 = vld [vmem:[%s16156_s1 + $0x450] sm:$0xf0]  ;;  %v7484_v4 = vor.u32 %v10133_v58, %v7481_v59  ;;  %v12475_v32 = vadd.f32 %v5053_v21, %v5040_v20 }
 0x105   :  { %5299 = vmatpush.bf16.msrb.mxu1 %v7244_v45  ;;  %v10065_v2 = vld [vmem:[%s16156_s1 + $0x444] sm:$0xf]  ;;  %v7660_v11 = vor.u32 %v10177_v60, %v7657_v63  ;;  %v7337_v15 = vld [vmem:[%s16156_s1 + $0x550] sm:$0xf0] }
 0x106   :  { %5313 = vmatpush.bf16.msrb.mxu2 %v7372_v46  ;;  %v10097_v12 = vld [vmem:[%s16156_s1 + $0x544] sm:$0xf]  ;;  %v7465_v25 = vld [vmem:[%s16156_s1 + $0x650] sm:$0xf0]  ;;  %v7212_v39 = vor.u32 %v10065_v2, %v7209_v3 }
 0x107   :  { %5327 = vmatpush.bf16.msrb.mxu3 %v7500_v50  ;;  %v10129_v16 = vld [vmem:[%s16156_s1 + $0x644] sm:$0xf]  ;;  %v7641_v24 = vld [vmem:[%s16156_s1 + $0x7b0] sm:$0xf0]  ;;  %5290 = vmatmul.bf16.vlgmr.msrb.gmra.mxu0 %v11150_v47  ;;  %v7340_v45 = vor.u32 %v10097_v12, %v7337_v15 }
 0x108   :  { %5338 = vmatpush.bf16.msra.mxu0 %v7676_v55  ;;  %v10173_v28 = vld [vmem:[%s16156_s1 + $0x7a4] sm:$0xf]  ;;  %v7193_v48 = vld [vmem:[%s16156_s1 + $0x430] sm:$0xf0]  ;;  %v7468_v49 = vor.u32 %v10129_v16, %v7465_v25 }
 0x109   :  { %5300 = vmatpush.bf16.msrb.mxu1 %v7228_v0  ;;  %v10061_v46 = vld [vmem:[%s16156_s1 + $0x424] sm:$0xf]  ;;  %v7644_v50 = vor.u32 %v10173_v28, %v7641_v24  ;;  %v7321_v55 = vld [vmem:[%s16156_s1 + $0x530] sm:$0xf0] }
 0x10a   :  { %5314 = vmatpush.bf16.msrb.mxu2 %v7356_v1  ;;  %v10093_v51 = vld [vmem:[%s16156_s1 + $0x524] sm:$0xf]  ;;  %v7449_v57 = vld [vmem:[%s16156_s1 + $0x630] sm:$0xf0]  ;;  %v7196_v60 = vor.u32 %v10061_v46, %v7193_v48 }
 0x10b   :  { %5328 = vmatpush.bf16.msrb.mxu3 %v7484_v4  ;;  %v10125_v6 = vld [vmem:[%s16156_s1 + $0x624] sm:$0xf]  ;;  %v7625_v59 = vld [vmem:[%s16156_s1 + $0x790] sm:$0xf0]  ;;  %v7324_v63 = vor.u32 %v10093_v51, %v7321_v55 }
 0x10c   :  { %5339 = vmatpush.bf16.msra.mxu0 %v7660_v11  ;;  %v10169_v58 = vld [vmem:[%s16156_s1 + $0x784] sm:$0xf]  ;;  %v7177_v1 = vld [vmem:[%s16156_s1 + $0x410] sm:$0xf0]  ;;  %v7452_v3 = vor.u32 %v10125_v6, %v7449_v57 }
 0x10d   :  { %5301 = vmatpush.bf16.msrb.mxu1 %v7212_v39  ;;  %v10057_v0 = vld [vmem:[%s16156_s1 + $0x404] sm:$0xf]  ;;  %v7628_v4 = vor.u32 %v10169_v58, %v7625_v59  ;;  %v7305_v5 = vld [vmem:[%s16156_s1 + $0x510] sm:$0xf0] }
 0x10e   :  { %5315 = vmatpush.bf16.msrb.mxu2 %v7340_v45  ;;  %v10089_v2 = vld [vmem:[%s16156_s1 + $0x504] sm:$0xf]  ;;  %v7433_v12 = vld [vmem:[%s16156_s1 + $0x610] sm:$0xf0]  ;;  %v7180_v24 = vor.u32 %v10057_v0, %v7177_v1  ;;  %v12561_v0 = vpop.f32.mrf.mxu0 }
 0x10f   :  { %5329 = vmatpush.bf16.msrb.mxu3 %v7468_v49  ;;  %v10121_v11 = vld [vmem:[%s16156_s1 + $0x604] sm:$0xf]  ;;  %v7609_v16 = vld [vmem:[%s16156_s1 + $0x770] sm:$0xf0]  ;;  %v7308_v39 = vor.u32 %v10089_v2, %v7305_v5 }
 0x110   :  { %5340 = vmatpush.bf16.msra.mxu0 %v7644_v50  ;;  %v10165_v15 = vld [vmem:[%s16156_s1 + $0x764] sm:$0xf]  ;;  %v7801_v21 = vld [vmem:[%s16156_s1 + $0x8f0] sm:$0xf0]  ;;  %v7436_v48 = vor.u32 %v10121_v11, %v7433_v12 }
 0x111   :  { %v10213_v20 = vld [vmem:[%s16156_s1 + $0x8e4] sm:$0xf]  ;;  %v7929_v28 = vld [vmem:[%s16156_s1 + $0x9f0] sm:$0xf0]  ;;  %5302 = vmatpush.bf16.msrb.mxu1 %v7196_v60  ;;  %v7612_v49 = vor.u32 %v10165_v15, %v7609_v16 }
 0x112   :  { %v10245_v25 = vld [vmem:[%s16156_s1 + $0x9e4] sm:$0xf]  ;;  %5316 = vmatpush.bf16.msrb.mxu2 %v7324_v63  ;;  %v8057_v46 = vld [vmem:[%s16156_s1 + $0xaf0] sm:$0xf0]  ;;  %v7804_v50 = vor.u32 %v10213_v20, %v7801_v21 }
 0x113   :  { %v10277_v45 = vld [vmem:[%s16156_s1 + $0xae4] sm:$0xf]  ;;  %5330 = vmatpush.bf16.msrb.mxu3 %v7452_v3  ;;  %v7932_v51 = vor.u32 %v10245_v25, %v7929_v28  ;;  %v7593_v6 = vld [vmem:[%s16156_s1 + $0x750] sm:$0xf0]  ;;  %v12569_v3 = vpop.f32.mrf.mxu1 }
 0x114   :  { %5341 = vmatpush.bf16.msra.mxu0 %v7628_v4  ;;  %v10161_v55 = vld [vmem:[%s16156_s1 + $0x744] sm:$0xf]  ;;  %v8060_v58 = vor.u32 %v10277_v45, %v8057_v46  ;;  %v7785_v59 = vld [vmem:[%s16156_s1 + $0x8d0] sm:$0xf0]  ;;  %16165 = vst [vmem:[#allocation4_spill] sm:$0xff] %v12569_v3 }
 0x115   :  { %v10209_v57 = vld [vmem:[%s16156_s1 + $0x8c4] sm:$0xf]  ;;  %v7913_v63 = vld [vmem:[%s16156_s1 + $0x9d0] sm:$0xf0]  ;;  %5303 = vmatpush.bf16.msrb.mxu1 %v7180_v24  ;;  %v7596_v4 = vor.u32 %v10161_v55, %v7593_v6  ;;  %v12610_v6 = vpop.f32.mrf.mxu2 }
 0x116   :  { %v10241_v60 = vld [vmem:[%s16156_s1 + $0x9c4] sm:$0xf]  ;;  %5317 = vmatpush.bf16.msrb.mxu2 %v7308_v39  ;;  %v8041_v2 = vld [vmem:[%s16156_s1 + $0xad0] sm:$0xf0]  ;;  %v7788_v5 = vor.u32 %v10209_v57, %v7785_v59  ;;  %16166 = vst [vmem:[#allocation5_spill] sm:$0xff] %v12610_v6 }
 0x117   :  { %v10273_v1 = vld [vmem:[%s16156_s1 + $0xac4] sm:$0xf]  ;;  %5331 = vmatpush.bf16.msrb.mxu3 %v7436_v48  ;;  %v7916_v11 = vor.u32 %v10241_v60, %v7913_v63  ;;  %v7577_v15 = vld [vmem:[%s16156_s1 + $0x730] sm:$0xf0]  ;;  %v12621_v63 = vpop.f32.mrf.mxu3 }
 0x118   :  { %5342 = vmatpush.bf16.msra.mxu0 %v7612_v49  ;;  %v10157_v12 = vld [vmem:[%s16156_s1 + $0x724] sm:$0xf]  ;;  %5304 = vmatmul.bf16.vlgmr.msrb.gmra.mxu1 %v11225_v23  ;;  %v8044_v20 = vor.u32 %v10273_v1, %v8041_v2  ;;  %v7769_v21 = vld [vmem:[%s16156_s1 + $0x8b0] sm:$0xf0]  ;;  %16167 = vst [vmem:[#allocation6_spill] sm:$0xff] %v12621_v63  ;;  %v5067_v1 = vpop.f32.mrf.mxu0 }
 0x119   :  { %5352 = vmatpush.bf16.msra.mxu1 %v7804_v50  ;;  %v10205_v16 = vld [vmem:[%s16156_s1 + $0x8a4] sm:$0xf]  ;;  %v7897_v28 = vld [vmem:[%s16156_s1 + $0x9b0] sm:$0xf0]  ;;  %5318 = vmatmul.bf16.vlgmr.msrb.gmra.mxu2 %v11253_v34  ;;  %v7580_v45 = vor.u32 %v10157_v12, %v7577_v15 }
 0x11a   :  { %5366 = vmatpush.bf16.msra.mxu2 %v7932_v51  ;;  %v10237_v25 = vld [vmem:[%s16156_s1 + $0x9a4] sm:$0xf]  ;;  %5332 = vmatmul.bf16.vlgmr.msrb.gmra.mxu3 %v11251_v33  ;;  %v8025_v39 = vld [vmem:[%s16156_s1 + $0xab0] sm:$0xf0]  ;;  %v7772_v48 = vor.u32 %v10205_v16, %v7769_v21 }
 0x11b   :  { %5380 = vmatpush.bf16.msra.mxu3 %v8060_v58  ;;  %v10269_v24 = vld [vmem:[%s16156_s1 + $0xaa4] sm:$0xf]  ;;  %v7900_v49 = vor.u32 %v10237_v25, %v7897_v28  ;;  %v7561_v50 = vld [vmem:[%s16156_s1 + $0x710] sm:$0xf0]  ;;  %v5081_v15 = vpop.f32.mrf.mxu1 }
 0x11c   :  { %5343 = vmatpush.bf16.msra.mxu0 %v7596_v4  ;;  %v10153_v46 = vld [vmem:[%s16156_s1 + $0x704] sm:$0xf]  ;;  %v7753_v55 = vld [vmem:[%s16156_s1 + $0x890] sm:$0xf0]  ;;  %v8028_v57 = vor.u32 %v10269_v24, %v8025_v39 }
 0x11d   :  { %5353 = vmatpush.bf16.msra.mxu1 %v7788_v5  ;;  %v10201_v51 = vld [vmem:[%s16156_s1 + $0x884] sm:$0xf]  ;;  %v7881_v59 = vld [vmem:[%s16156_s1 + $0x990] sm:$0xf0]  ;;  %v7564_v12 = vor.u32 %v10153_v46, %v7561_v50 }
 0x11e   :  { %5367 = vmatpush.bf16.msra.mxu2 %v7916_v11  ;;  %v10233_v58 = vld [vmem:[%s16156_s1 + $0x984] sm:$0xf]  ;;  %v8009_v2 = vld [vmem:[%s16156_s1 + $0xa90] sm:$0xf0]  ;;  %v5068_v11 = vadd.f32 %v5067_v1, %v12475_v32  ;;  %v7756_v16 = vor.u32 %v10201_v51, %v7753_v55 }
 0x11f   :  { %5381 = vmatpush.bf16.msra.mxu3 %v8044_v20  ;;  %v10265_v60 = vld [vmem:[%s16156_s1 + $0xa84] sm:$0xf]  ;;  %v8185_v5 = vld [vmem:[%s16156_s1 + $0xbf0] sm:$0xf0]  ;;  %v7884_v20 = vor.u32 %v10233_v58, %v7881_v59 }
 0x120   :  { %v10309_v4 = vld [vmem:[%s16156_s1 + $0xbe4] sm:$0xf]  ;;  %5344 = vmatpush.bf16.msra.mxu0 %v7580_v45  ;;  %v7737_v25 = vld [vmem:[%s16156_s1 + $0x870] sm:$0xf0]  ;;  %v8012_v28 = vor.u32 %v10265_v60, %v8009_v2  ;;  %v5082_v24 = vadd.f32 %v5081_v15, %v5068_v11  ;;  %v5095_v60 = vpop.f32.mrf.mxu2 }
 0x121   :  { %5354 = vmatpush.bf16.msra.mxu1 %v7772_v48  ;;  %v10197_v21 = vld [vmem:[%s16156_s1 + $0x864] sm:$0xf]  ;;  %v8188_v39 = vor.u32 %v10309_v4, %v8185_v5  ;;  %v7865_v45 = vld [vmem:[%s16156_s1 + $0x970] sm:$0xf0] }
 0x122   :  { %5368 = vmatpush.bf16.msra.mxu2 %v7900_v49  ;;  %v10229_v32 = vld [vmem:[%s16156_s1 + $0x964] sm:$0xf]  ;;  %v7993_v48 = vld [vmem:[%s16156_s1 + $0xa70] sm:$0xf0]  ;;  %v7740_v51 = vor.u32 %v10197_v21, %v7737_v25  ;;  %v5096_v11 = vadd.f32 %v5095_v60, %v5082_v24 }
 0x123   :  { %5382 = vmatpush.bf16.msra.mxu3 %v8028_v57  ;;  %v10261_v46 = vld [vmem:[%s16156_s1 + $0xa64] sm:$0xf]  ;;  %v8169_v50 = vld [vmem:[%s16156_s1 + $0xbd0] sm:$0xf0]  ;;  %v7868_v55 = vor.u32 %v10229_v32, %v7865_v45 }
 0x124   :  { %v10305_v49 = vld [vmem:[%s16156_s1 + $0xbc4] sm:$0xf]  ;;  %5345 = vmatpush.bf16.msra.mxu0 %v7564_v12  ;;  %v7721_v58 = vld [vmem:[%s16156_s1 + $0x850] sm:$0xf0]  ;;  %v7996_v59 = vor.u32 %v10261_v46, %v7993_v48  ;;  %v5109_v12 = vpop.f32.mrf.mxu3 }
 0x125   :  { %5355 = vmatpush.bf16.msra.mxu1 %v7756_v16  ;;  %v10193_v57 = vld [vmem:[%s16156_s1 + $0x844] sm:$0xf]  ;;  %v8172_v1 = vor.u32 %v10305_v49, %v8169_v50  ;;  %v7849_v4 = vld [vmem:[%s16156_s1 + $0x950] sm:$0xf0]  ;;  %v12682_v21 = vadd.f32 %v5109_v12, %v5096_v11 }
 0x126   :  { %5369 = vmatpush.bf16.msra.mxu2 %v7884_v20  ;;  %v10225_v2 = vld [vmem:[%s16156_s1 + $0x944] sm:$0xf]  ;;  %v7977_v15 = vld [vmem:[%s16156_s1 + $0xa50] sm:$0xf0]  ;;  %v7724_v25 = vor.u32 %v10193_v57, %v7721_v58 }
 0x127   :  { %5383 = vmatpush.bf16.msra.mxu3 %v8012_v28  ;;  %v10257_v5 = vld [vmem:[%s16156_s1 + $0xa44] sm:$0xf]  ;;  %5346 = vmatmul.bf16.vlgmr.msra.gmra.mxu0 %v11255_v36  ;;  %v8153_v20 = vld [vmem:[%s16156_s1 + $0xbb0] sm:$0xf0]  ;;  %v7852_v28 = vor.u32 %v10225_v2, %v7849_v4 }
 0x128   :  { %5394 = vmatpush.bf16.msrb.mxu0 %v8188_v39  ;;  %v10301_v16 = vld [vmem:[%s16156_s1 + $0xba4] sm:$0xf]  ;;  %v7705_v39 = vld [vmem:[%s16156_s1 + $0x830] sm:$0xf0]  ;;  %v7980_v32 = vor.u32 %v10257_v5, %v7977_v15 }
 0x129   :  { %5356 = vmatpush.bf16.msra.mxu1 %v7740_v51  ;;  %v10189_v24 = vld [vmem:[%s16156_s1 + $0x824] sm:$0xf]  ;;  %v8156_v45 = vor.u32 %v10301_v16, %v8153_v20  ;;  %v7833_v48 = vld [vmem:[%s16156_s1 + $0x930] sm:$0xf0] }
 0x12a   :  { %5370 = vmatpush.bf16.msra.mxu2 %v7868_v55  ;;  %v10221_v46 = vld [vmem:[%s16156_s1 + $0x924] sm:$0xf]  ;;  %v7961_v50 = vld [vmem:[%s16156_s1 + $0xa30] sm:$0xf0]  ;;  %v7708_v57 = vor.u32 %v10189_v24, %v7705_v39 }
 0x12b   :  { %5384 = vmatpush.bf16.msra.mxu3 %v7996_v59  ;;  %v10253_v49 = vld [vmem:[%s16156_s1 + $0xa24] sm:$0xf]  ;;  %v8137_v55 = vld [vmem:[%s16156_s1 + $0xb90] sm:$0xf0]  ;;  %v7836_v58 = vor.u32 %v10221_v46, %v7833_v48 }
 0x12c   :  { %5395 = vmatpush.bf16.msrb.mxu0 %v8172_v1  ;;  %v10297_v51 = vld [vmem:[%s16156_s1 + $0xb84] sm:$0xf]  ;;  %v7689_v60 = vld [vmem:[%s16156_s1 + $0x810] sm:$0xf0]  ;;  %v7964_v2 = vor.u32 %v10253_v49, %v7961_v50 }
 0x12d   :  { %5357 = vmatpush.bf16.msra.mxu1 %v7724_v25  ;;  %v10185_v59 = vld [vmem:[%s16156_s1 + $0x804] sm:$0xf]  ;;  %v8140_v4 = vor.u32 %v10297_v51, %v8137_v55  ;;  %v7817_v5 = vld [vmem:[%s16156_s1 + $0x910] sm:$0xf0] }
 0x12e   :  { %5371 = vmatpush.bf16.msra.mxu2 %v7852_v28  ;;  %v10217_v1 = vld [vmem:[%s16156_s1 + $0x904] sm:$0xf]  ;;  %v7945_v12 = vld [vmem:[%s16156_s1 + $0xa10] sm:$0xf0]  ;;  %v7692_v39 = vor.u32 %v10185_v59, %v7689_v60 }
 0x12f   :  { %5385 = vmatpush.bf16.msra.mxu3 %v7980_v32  ;;  %v10249_v11 = vld [vmem:[%s16156_s1 + $0xa04] sm:$0xf]  ;;  %v8121_v16 = vld [vmem:[%s16156_s1 + $0xb70] sm:$0xf0]  ;;  %v7820_v32 = vor.u32 %v10217_v1, %v7817_v5 }
 0x130   :  { %5396 = vmatpush.bf16.msrb.mxu0 %v8156_v45  ;;  %v10293_v15 = vld [vmem:[%s16156_s1 + $0xb64] sm:$0xf]  ;;  %v8313_v25 = vld [vmem:[%s16156_s1 + $0xcf0] sm:$0xf0]  ;;  %v7948_v48 = vor.u32 %v10249_v11, %v7945_v12  ;;  %v12776_v12 = vpop.f32.mrf.mxu1 }
 0x131   :  { %v10341_v20 = vld [vmem:[%s16156_s1 + $0xce4] sm:$0xf]  ;;  %v8441_v24 = vld [vmem:[%s16156_s1 + $0xdf0] sm:$0xf0]  ;;  %5358 = vmatpush.bf16.msra.mxu1 %v7708_v57  ;;  %v8124_v49 = vor.u32 %v10293_v15, %v8121_v16  ;;  %16169 = vst [vmem:[#allocation8_spill] sm:$0xff] %v12776_v12 }
 0x132   :  { %v10373_v28 = vld [vmem:[%s16156_s1 + $0xde4] sm:$0xf]  ;;  %5372 = vmatpush.bf16.msra.mxu2 %v7836_v58  ;;  %v8569_v46 = vld [vmem:[%s16156_s1 + $0xef0] sm:$0xf0]  ;;  %v8316_v50 = vor.u32 %v10341_v20, %v8313_v25 }
 0x133   :  { %v10405_v45 = vld [vmem:[%s16156_s1 + $0xee4] sm:$0xf]  ;;  %5386 = vmatpush.bf16.msra.mxu3 %v7964_v2  ;;  %v8444_v51 = vor.u32 %v10373_v28, %v8441_v24  ;;  %v8105_v57 = vld [vmem:[%s16156_s1 + $0xb50] sm:$0xf0] }
 0x134   :  { %5397 = vmatpush.bf16.msrb.mxu0 %v8140_v4  ;;  %v10289_v55 = vld [vmem:[%s16156_s1 + $0xb44] sm:$0xf]  ;;  %v8572_v59 = vor.u32 %v10405_v45, %v8569_v46  ;;  %v8297_v60 = vld [vmem:[%s16156_s1 + $0xcd0] sm:$0xf0]  ;;  %v12768_v4 = vpop.f32.mrf.mxu0 }
 0x135   :  { %v10337_v58 = vld [vmem:[%s16156_s1 + $0xcc4] sm:$0xf]  ;;  %v8425_v2 = vld [vmem:[%s16156_s1 + $0xdd0] sm:$0xf0]  ;;  %16168 = vst [vmem:[#allocation7_spill] sm:$0xff] %v12768_v4  ;;  %5359 = vmatpush.bf16.msra.mxu1 %v7692_v39  ;;  %v8108_v15 = vor.u32 %v10289_v55, %v8105_v57 }
 0x136   :  { %v10369_v1 = vld [vmem:[%s16156_s1 + $0xdc4] sm:$0xf]  ;;  %5373 = vmatpush.bf16.msra.mxu2 %v7820_v32  ;;  %v8553_v11 = vld [vmem:[%s16156_s1 + $0xed0] sm:$0xf0]  ;;  %v8300_v16 = vor.u32 %v10337_v58, %v8297_v60 }
 0x137   :  { %v10401_v5 = vld [vmem:[%s16156_s1 + $0xec4] sm:$0xf]  ;;  %5387 = vmatpush.bf16.msra.mxu3 %v7948_v48  ;;  %v8428_v20 = vor.u32 %v10369_v1, %v8425_v2  ;;  %v8089_v28 = vld [vmem:[%s16156_s1 + $0xb30] sm:$0xf0]  ;;  %v12817_v1 = vpop.f32.mrf.mxu2 }
 0x138   :  { %5398 = vmatpush.bf16.msrb.mxu0 %v8124_v49  ;;  %v10285_v25 = vld [vmem:[%s16156_s1 + $0xb24] sm:$0xf]  ;;  %5360 = vmatmul.bf16.vlgmr.msra.gmra.mxu1 %v11471_v22  ;;  %v8556_v39 = vor.u32 %v10401_v5, %v8553_v11  ;;  %v8281_v32 = vld [vmem:[%s16156_s1 + $0xcb0] sm:$0xf0]  ;;  %16170 = vst [vmem:[#allocation9_spill] sm:$0xff] %v12817_v1 }
 0x139   :  { %5408 = vmatpush.bf16.msrb.mxu1 %v8316_v50  ;;  %v10333_v24 = vld [vmem:[%s16156_s1 + $0xca4] sm:$0xf]  ;;  %v8409_v46 = vld [vmem:[%s16156_s1 + $0xdb0] sm:$0xf0]  ;;  %5374 = vmatmul.bf16.vlgmr.msra.gmra.mxu2 %v11481_v27  ;;  %v8092_v50 = vor.u32 %v10285_v25, %v8089_v28 }
 0x13a   :  { %5422 = vmatpush.bf16.msrb.mxu2 %v8444_v51  ;;  %v10365_v45 = vld [vmem:[%s16156_s1 + $0xda4] sm:$0xf]  ;;  %5388 = vmatmul.bf16.vlgmr.msra.gmra.mxu3 %v11479_v26  ;;  %v8537_v49 = vld [vmem:[%s16156_s1 + $0xeb0] sm:$0xf0]  ;;  %v8284_v55 = vor.u32 %v10333_v24, %v8281_v32 }
 0x13b   :  { %5436 = vmatpush.bf16.msrb.mxu3 %v8572_v59  ;;  %v10397_v48 = vld [vmem:[%s16156_s1 + $0xea4] sm:$0xf]  ;;  %v8412_v57 = vor.u32 %v10365_v45, %v8409_v46  ;;  %v8073_v58 = vld [vmem:[%s16156_s1 + $0xb10] sm:$0xf0]  ;;  %v5137_v45 = vpop.f32.mrf.mxu1 }
 0x13c   :  { %5399 = vmatpush.bf16.msrb.mxu0 %v8108_v15  ;;  %v10281_v51 = vld [vmem:[%s16156_s1 + $0xb04] sm:$0xf]  ;;  %v8265_v60 = vld [vmem:[%s16156_s1 + $0xc90] sm:$0xf0]  ;;  %v8540_v2 = vor.u32 %v10397_v48, %v8537_v49 }
 0x13d   :  { %5409 = vmatpush.bf16.msrb.mxu1 %v8300_v16  ;;  %v10329_v59 = vld [vmem:[%s16156_s1 + $0xc84] sm:$0xf]  ;;  %v8393_v11 = vld [vmem:[%s16156_s1 + $0xd90] sm:$0xf0]  ;;  %v12828_v16 = vpop.f32.mrf.mxu3  ;;  %v8076_v32 = vor.u32 %v10281_v51, %v8073_v58 }
 0x13e   :  { %5423 = vmatpush.bf16.msrb.mxu2 %v8428_v20  ;;  %v10361_v5 = vld [vmem:[%s16156_s1 + $0xd84] sm:$0xf]  ;;  %16171 = vst [vmem:[#allocation10_spill] sm:$0xff] %v12828_v16  ;;  %v5123_v20 = vpop.f32.mrf.mxu0  ;;  %v8521_v25 = vld [vmem:[%s16156_s1 + $0xe90] sm:$0xf0]  ;;  %v8268_v46 = vor.u32 %v10329_v59, %v8265_v60 }
 0x13f   :  { %5437 = vmatpush.bf16.msrb.mxu3 %v8556_v39  ;;  %v10393_v15 = vld [vmem:[%s16156_s1 + $0xe84] sm:$0xf]  ;;  %v8697_v24 = vld [vmem:[%s16156_s1 + $0xff0] sm:$0xf0]  ;;  %v5124_v39 = vadd.f32 %v5123_v20, %v12682_v21  ;;  %v8396_v48 = vor.u32 %v10361_v5, %v8393_v11  ;;  %v5151_v20 = vpop.f32.mrf.mxu2 }
 0x140   :  { %v10437_v28 = vld [vmem:[%s16156_s1 + $0xfe4] sm:$0xf]  ;;  %5400 = vmatpush.bf16.msrb.mxu0 %v8092_v50  ;;  %v8249_v56 = vld [vmem:[%s16156_s1 + $0xc70] sm:$0xf0]  ;;  %v8524_v16 = vor.u32 %v10393_v15, %v8521_v25 }
 0x141   :  { %5410 = vmatpush.bf16.msrb.mxu1 %v8284_v55  ;;  %v10325_v49 = vld [vmem:[%s16156_s1 + $0xc64] sm:$0xf]  ;;  %v5138_v1 = vadd.f32 %v5137_v45, %v5124_v39  ;;  %v8700_v50 = vor.u32 %v10437_v28, %v8697_v24  ;;  %v8377_v51 = vld [vmem:[%s16156_s1 + $0xd70] sm:$0xf0] }
 0x142   :  { %5424 = vmatpush.bf16.msrb.mxu2 %v8412_v57  ;;  %v10357_v21 = vld [vmem:[%s16156_s1 + $0xd64] sm:$0xf]  ;;  %v8505_v57 = vld [vmem:[%s16156_s1 + $0xe70] sm:$0xf0]  ;;  %v8252_v60 = vor.u32 %v10325_v49, %v8249_v56 }
 0x143   :  { %5438 = vmatpush.bf16.msrb.mxu3 %v8540_v2  ;;  %v10389_v55 = vld [vmem:[%s16156_s1 + $0xe64] sm:$0xf]  ;;  %v8681_v59 = vld [vmem:[%s16156_s1 + $0xfd0] sm:$0xf0]  ;;  %v8380_v2 = vor.u32 %v10357_v21, %v8377_v51  ;;  %v5152_v39 = vadd.f32 %v5151_v20, %v5138_v1 }
 0x144   :  { %v10433_v58 = vld [vmem:[%s16156_s1 + $0xfc4] sm:$0xf]  ;;  %5401 = vmatpush.bf16.msrb.mxu0 %v8076_v32  ;;  %v8233_v11 = vld [vmem:[%s16156_s1 + $0xc50] sm:$0xf0]  ;;  %v8508_v15 = vor.u32 %v10389_v55, %v8505_v57 }
 0x145   :  { %5411 = vmatpush.bf16.msrb.mxu1 %v8268_v46  ;;  %v10321_v5 = vld [vmem:[%s16156_s1 + $0xc44] sm:$0xf]  ;;  %v8684_v25 = vor.u32 %v10433_v58, %v8681_v59  ;;  %v8361_v56 = vld [vmem:[%s16156_s1 + $0xd50] sm:$0xf0] }
 0x146   :  { %5425 = vmatpush.bf16.msrb.mxu2 %v8396_v48  ;;  %v10353_v28 = vld [vmem:[%s16156_s1 + $0xd44] sm:$0xf]  ;;  %v8489_v32 = vld [vmem:[%s16156_s1 + $0xe50] sm:$0xf0]  ;;  %v8236_v49 = vor.u32 %v10321_v5, %v8233_v11 }
 0x147   :  { %5439 = vmatpush.bf16.msrb.mxu3 %v8524_v16  ;;  %v10385_v24 = vld [vmem:[%s16156_s1 + $0xe44] sm:$0xf]  ;;  %5402 = vmatmul.bf16.vlgmr.msrb.gmra.mxu0 %v11486_v30  ;;  %v5165_v16 = vpop.f32.mrf.mxu3  ;;  %v8665_v46 = vld [vmem:[%s16156_s1 + $0xfb0] sm:$0xf0] }
 0x148   :  { %5450 = vmatpush.bf16.msra.mxu0 %v8700_v50  ;;  %v10429_v45 = vld [vmem:[%s16156_s1 + $0xfa4] sm:$0xf]  ;;  %v12889_v48 = vadd.f32 %v5165_v16, %v5152_v39  ;;  %v8364_v50 = vor.u32 %v10353_v28, %v8361_v56  ;;  %v8217_v21 = vld [vmem:[%s16156_s1 + $0xc30] sm:$0xf0]  ;;  %v8492_v51 = vor.u32 %v10385_v24, %v8489_v32 }
 0x149   :  { %5412 = vmatpush.bf16.msrb.mxu1 %v8252_v60  ;;  %v10317_v1 = vld [vmem:[%s16156_s1 + $0xc24] sm:$0xf]  ;;  %v8668_v55 = vor.u32 %v10429_v45, %v8665_v46  ;;  %v8345_v58 = vld [vmem:[%s16156_s1 + $0xd30] sm:$0xf0] }
 0x14a   :  { %5426 = vmatpush.bf16.msrb.mxu2 %v8380_v2  ;;  %v10349_v57 = vld [vmem:[%s16156_s1 + $0xd24] sm:$0xf]  ;;  %v8473_v60 = vld [vmem:[%s16156_s1 + $0xe30] sm:$0xf0]  ;;  %v8220_v11 = vor.u32 %v10317_v1, %v8217_v21 }
 0x14b   :  { %5440 = vmatpush.bf16.msrb.mxu3 %v8508_v15  ;;  %v10381_v59 = vld [vmem:[%s16156_s1 + $0xe24] sm:$0xf]  ;;  %v8649_v5 = vld [vmem:[%s16156_s1 + $0xf90] sm:$0xf0]  ;;  %v8348_v15 = vor.u32 %v10349_v57, %v8345_v58 }
 0x14c   :  { %5451 = vmatpush.bf16.msra.mxu0 %v8684_v25  ;;  %v10425_v2 = vld [vmem:[%s16156_s1 + $0xf84] sm:$0xf]  ;;  %v8201_v25 = vld [vmem:[%s16156_s1 + $0xc10] sm:$0xf0]  ;;  %v8476_v56 = vor.u32 %v10381_v59, %v8473_v60 }
 0x14d   :  { %5413 = vmatpush.bf16.msrb.mxu1 %v8236_v49  ;;  %v10313_v20 = vld [vmem:[%s16156_s1 + $0xc04] sm:$0xf]  ;;  %v8652_v24 = vor.u32 %v10425_v2, %v8649_v5  ;;  %v8329_v39 = vld [vmem:[%s16156_s1 + $0xd10] sm:$0xf0] }
 0x14e   :  { %5427 = vmatpush.bf16.msrb.mxu2 %v8364_v50  ;;  %v10345_v28 = vld [vmem:[%s16156_s1 + $0xd04] sm:$0xf]  ;;  %v8457_v32 = vld [vmem:[%s16156_s1 + $0xe10] sm:$0xf0] }
 0x14f   :  { %5441 = vmatpush.bf16.msrb.mxu3 %v8492_v51  ;;  %v10377_v16 = vld [vmem:[%s16156_s1 + $0xe04] sm:$0xf]  ;;  %v8633_v46 = vld [vmem:[%s16156_s1 + $0xf70] sm:$0xf0]  ;;  %v8204_v51 = vor.u32 %v10313_v20, %v8201_v25 }
 0x150   :  { %5452 = vmatpush.bf16.msra.mxu0 %v8668_v55  ;;  %v10421_v45 = vld [vmem:[%s16156_s1 + $0xf64] sm:$0xf]  ;;  %v8825_v50 = vld [vmem:[%s16156_s1 + $0x10f0] sm:$0xf0]  ;;  %v8332_v55 = vor.u32 %v10345_v28, %v8329_v39  ;;  %v8460_v59 = vor.u32 %v10377_v16, %v8457_v32  ;;  %v12975_v39 = vpop.f32.mrf.mxu0 }
 0x151   :  { %v10469_v49 = vld [vmem:[%s16156_s1 + $0x10e4] sm:$0xf]  ;;  %v8953_v21 = vld [vmem:[%s16156_s1 + $0x11f0] sm:$0xf0]  ;;  %5414 = vmatpush.bf16.msrb.mxu1 %v8220_v11  ;;  %v8636_v60 = vor.u32 %v10421_v45, %v8633_v46  ;;  %16172 = vst [vmem:[#allocation11_spill] sm:$0xff] %v12975_v39  ;;  %v12983_v45 = vpop.f32.mrf.mxu1 }
 0x152   :  { %v10501_v1 = vld [vmem:[%s16156_s1 + $0x11e4] sm:$0xf]  ;;  %5428 = vmatpush.bf16.msrb.mxu2 %v8348_v15  ;;  %v9081_v58 = vld [vmem:[%s16156_s1 + $0x12f0] sm:$0xf0]  ;;  %v8828_v2 = vor.u32 %v10469_v49, %v8825_v50  ;;  %16173 = vst [vmem:[#allocation12_spill] sm:$0xff] %v12983_v45 }
 0x153   :  { %v10533_v57 = vld [vmem:[%s16156_s1 + $0x12e4] sm:$0xf]  ;;  %5442 = vmatpush.bf16.msrb.mxu3 %v8476_v56  ;;  %v8956_v5 = vor.u32 %v10501_v1, %v8953_v21  ;;  %v8617_v15 = vld [vmem:[%s16156_s1 + $0xf50] sm:$0xf0] }
 0x154   :  { %5453 = vmatpush.bf16.msra.mxu0 %v8652_v24  ;;  %v10417_v11 = vld [vmem:[%s16156_s1 + $0xf44] sm:$0xf]  ;;  %v9084_v25 = vor.u32 %v10533_v57, %v9081_v58  ;;  %v8809_v28 = vld [vmem:[%s16156_s1 + $0x10d0] sm:$0xf0] }
 0x155   :  { %v10465_v20 = vld [vmem:[%s16156_s1 + $0x10c4] sm:$0xf]  ;;  %v8937_v24 = vld [vmem:[%s16156_s1 + $0x11d0] sm:$0xf0]  ;;  %5415 = vmatpush.bf16.msrb.mxu1 %v8204_v51  ;;  %v8620_v46 = vor.u32 %v10417_v11, %v8617_v15 }
 0x156   :  { %v10497_v56 = vld [vmem:[%s16156_s1 + $0x11c4] sm:$0xf]  ;;  %5429 = vmatpush.bf16.msrb.mxu2 %v8332_v55  ;;  %v9065_v32 = vld [vmem:[%s16156_s1 + $0x12d0] sm:$0xf0]  ;;  %v8812_v49 = vor.u32 %v10465_v20, %v8809_v28 }
 0x157   :  { %v10529_v16 = vld [vmem:[%s16156_s1 + $0x12c4] sm:$0xf]  ;;  %5443 = vmatpush.bf16.msrb.mxu3 %v8460_v59  ;;  %v8940_v50 = vor.u32 %v10497_v56, %v8937_v24  ;;  %v8601_v21 = vld [vmem:[%s16156_s1 + $0xf30] sm:$0xf0]  ;;  %v13024_v24 = vpop.f32.mrf.mxu2 }
 0x158   :  { %5454 = vmatpush.bf16.msra.mxu0 %v8636_v60  ;;  %v10413_v1 = vld [vmem:[%s16156_s1 + $0xf24] sm:$0xf]  ;;  %5416 = vmatmul.bf16.vlgmr.msrb.gmra.mxu1 %v11660_v8  ;;  %v9068_v55 = vor.u32 %v10529_v16, %v9065_v32  ;;  %v8793_v57 = vld [vmem:[%s16156_s1 + $0x10b0] sm:$0xf0]  ;;  %16174 = vst [vmem:[#allocation13_spill] sm:$0xff] %v13024_v24 }
 0x159   :  { %5464 = vmatpush.bf16.msra.mxu1 %v8828_v2  ;;  %v10461_v51 = vld [vmem:[%s16156_s1 + $0x10a4] sm:$0xf]  ;;  %v8921_v59 = vld [vmem:[%s16156_s1 + $0x11b0] sm:$0xf0]  ;;  %5430 = vmatmul.bf16.vlgmr.msrb.gmra.mxu2 %v11673_v14 }
 0x15a   :  { %5478 = vmatpush.bf16.msra.mxu2 %v8956_v5  ;;  %v10493_v58 = vld [vmem:[%s16156_s1 + $0x11a4] sm:$0xf]  ;;  %5444 = vmatmul.bf16.vlgmr.msrb.gmra.mxu3 %v11671_v13  ;;  %v9049_v2 = vld [vmem:[%s16156_s1 + $0x12b0] sm:$0xf0]  ;;  %v8604_v5 = vor.u32 %v10413_v1, %v8601_v21  ;;  %v8796_v15 = vor.u32 %v10461_v51, %v8793_v57  ;;  %v5179_v1 = vpop.f32.mrf.mxu0 }
 0x15b   :  { %5492 = vmatpush.bf16.msra.mxu3 %v9084_v25  ;;  %v10525_v60 = vld [vmem:[%s16156_s1 + $0x12a4] sm:$0xf]  ;;  %v8924_v20 = vor.u32 %v10493_v58, %v8921_v59  ;;  %v8585_v25 = vld [vmem:[%s16156_s1 + $0xf10] sm:$0xf0]  ;;  %v5180_v57 = vadd.f32 %v5179_v1, %v12889_v48  ;;  %v5193_v59 = vpop.f32.mrf.mxu1 }
 0x15c   :  { %5455 = vmatpush.bf16.msra.mxu0 %v8620_v46  ;;  %v10409_v11 = vld [vmem:[%s16156_s1 + $0xf04] sm:$0xf]  ;;  %v8777_v56 = vld [vmem:[%s16156_s1 + $0x1090] sm:$0xf0]  ;;  %v9052_v16 = vor.u32 %v10525_v60, %v9049_v2 }
 0x15d   :  { %5465 = vmatpush.bf16.msra.mxu1 %v8812_v49  ;;  %v10457_v28 = vld [vmem:[%s16156_s1 + $0x1084] sm:$0xf]  ;;  %v8905_v46 = vld [vmem:[%s16156_s1 + $0x1190] sm:$0xf0]  ;;  %v8588_v58 = vor.u32 %v10409_v11, %v8585_v25  ;;  %v5194_v39 = vadd.f32 %v5193_v59, %v5180_v57 }
 0x15e   :  { %5479 = vmatpush.bf16.msra.mxu2 %v8940_v50  ;;  %v10489_v32 = vld [vmem:[%s16156_s1 + $0x1184] sm:$0xf]  ;;  %v13035_v50 = vpop.f32.mrf.mxu3  ;;  %v9033_v21 = vld [vmem:[%s16156_s1 + $0x1290] sm:$0xf0]  ;;  %v8780_v60 = vor.u32 %v10457_v28, %v8777_v56 }
 0x15f   :  { %5493 = vmatpush.bf16.msra.mxu3 %v9068_v55  ;;  %v10521_v49 = vld [vmem:[%s16156_s1 + $0x1284] sm:$0xf]  ;;  %16175 = vst [vmem:[#allocation14_spill] sm:$0xff] %v13035_v50  ;;  %v9209_v55 = vld [vmem:[%s16156_s1 + $0x13f0] sm:$0xf0]  ;;  %v8908_v2 = vor.u32 %v10489_v32, %v8905_v46  ;;  %v5207_v1 = vpop.f32.mrf.mxu2 }
 0x160   :  { %v10565_v51 = vld [vmem:[%s16156_s1 + $0x13e4] sm:$0xf]  ;;  %5456 = vmatpush.bf16.msra.mxu0 %v8604_v5  ;;  %v8761_v24 = vld [vmem:[%s16156_s1 + $0x1070] sm:$0xf0]  ;;  %v9036_v45 = vor.u32 %v10521_v49, %v9033_v21 }
 0x161   :  { %5466 = vmatpush.bf16.msra.mxu1 %v8796_v15  ;;  %v10453_v50 = vld [vmem:[%s16156_s1 + $0x1064] sm:$0xf]  ;;  %v9212_v5 = vor.u32 %v10565_v51, %v9209_v55  ;;  %v8889_v11 = vld [vmem:[%s16156_s1 + $0x1170] sm:$0xf0]  ;;  %v5208_v55 = vadd.f32 %v5207_v1, %v5194_v39 }
 0x162   :  { %5480 = vmatpush.bf16.msra.mxu2 %v8924_v20  ;;  %v10485_v48 = vld [vmem:[%s16156_s1 + $0x1164] sm:$0xf]  ;;  %v9017_v20 = vld [vmem:[%s16156_s1 + $0x1270] sm:$0xf0]  ;;  %v8764_v56 = vor.u32 %v10453_v50, %v8761_v24 }
 0x163   :  { %5494 = vmatpush.bf16.msra.mxu3 %v9052_v16  ;;  %v10517_v15 = vld [vmem:[%s16156_s1 + $0x1264] sm:$0xf]  ;;  %v9193_v28 = vld [vmem:[%s16156_s1 + $0x13d0] sm:$0xf0]  ;;  %v8892_v16 = vor.u32 %v10485_v48, %v8889_v11 }
 0x164   :  { %v10561_v25 = vld [vmem:[%s16156_s1 + $0x13c4] sm:$0xf]  ;;  %5457 = vmatpush.bf16.msra.mxu0 %v8588_v58  ;;  %v8745_v46 = vld [vmem:[%s16156_s1 + $0x1050] sm:$0xf0]  ;;  %v9020_v49 = vor.u32 %v10517_v15, %v9017_v20 }
 0x165   :  { %5467 = vmatpush.bf16.msra.mxu1 %v8780_v60  ;;  %v10449_v32 = vld [vmem:[%s16156_s1 + $0x1044] sm:$0xf]  ;;  %v9196_v21 = vor.u32 %v10561_v25, %v9193_v28  ;;  %v8873_v24 = vld [vmem:[%s16156_s1 + $0x1150] sm:$0xf0] }
 0x166   :  { %5481 = vmatpush.bf16.msra.mxu2 %v8908_v2  ;;  %v10481_v51 = vld [vmem:[%s16156_s1 + $0x1144] sm:$0xf]  ;;  %v5221_v57 = vpop.f32.mrf.mxu3  ;;  %v9001_v58 = vld [vmem:[%s16156_s1 + $0x1250] sm:$0xf0] }
 0x167   :  { %5495 = vmatpush.bf16.msra.mxu3 %v9036_v45  ;;  %v10513_v50 = vld [vmem:[%s16156_s1 + $0x1244] sm:$0xf]  ;;  %5458 = vmatmul.bf16.vlgmr.msra.gmra.mxu0 %v11684_v18  ;;  %v13087_v45 = vpop.f32.mrf.mxu0  ;;  %v9177_v60 = vld [vmem:[%s16156_s1 + $0x13b0] sm:$0xf0]  ;;  %v5222_v2 = vadd.f32 %v5221_v57, %v5208_v55  ;;  %v8876_v39 = vor.u32 %v10481_v51, %v8873_v24 }
 0x168   :  { %5506 = vmatpush.bf16.msrb.mxu0 %v9212_v5  ;;  %16176 = vst [vmem:[#allocation15_spill] sm:$0xff] %v13087_v45  ;;  %v10557_v59 = vld [vmem:[%s16156_s1 + $0x13a4] sm:$0xf]  ;;  %v8748_v5 = vor.u32 %v10449_v32, %v8745_v46  ;;  %v8729_v11 = vld [vmem:[%s16156_s1 + $0x1030] sm:$0xf0]  ;;  %v9004_v15 = vor.u32 %v10513_v50, %v9001_v58 }
 0x169   :  { %5468 = vmatpush.bf16.msra.mxu1 %v8764_v56  ;;  %v10445_v48 = vld [vmem:[%s16156_s1 + $0x1024] sm:$0xf]  ;;  %v9180_v20 = vor.u32 %v10557_v59, %v9177_v60  ;;  %v8857_v28 = vld [vmem:[%s16156_s1 + $0x1130] sm:$0xf0] }
 0x16a   :  { %5482 = vmatpush.bf16.msra.mxu2 %v8892_v16  ;;  %v10477_v25 = vld [vmem:[%s16156_s1 + $0x1124] sm:$0xf]  ;;  %v8985_v16 = vld [vmem:[%s16156_s1 + $0x1230] sm:$0xf0] }
 0x16b   :  { %5496 = vmatpush.bf16.msra.mxu3 %v9020_v49  ;;  %v10509_v56 = vld [vmem:[%s16156_s1 + $0x1224] sm:$0xf]  ;;  %v9161_v46 = vld [vmem:[%s16156_s1 + $0x1390] sm:$0xf0]  ;;  %v8732_v49 = vor.u32 %v10445_v48, %v8729_v11  ;;  %v8860_v1 = vor.u32 %v10477_v25, %v8857_v28 }
 0x16c   :  { %5507 = vmatpush.bf16.msrb.mxu0 %v9196_v21  ;;  %v10553_v32 = vld [vmem:[%s16156_s1 + $0x1384] sm:$0xf]  ;;  %v8713_v51 = vld [vmem:[%s16156_s1 + $0x1010] sm:$0xf0]  ;;  %v8988_v50 = vor.u32 %v10509_v56, %v8985_v16 }
 0x16d   :  { %5469 = vmatpush.bf16.msra.mxu1 %v8748_v5  ;;  %v10441_v21 = vld [vmem:[%s16156_s1 + $0x1004] sm:$0xf]  ;;  %v9164_v55 = vor.u32 %v10553_v32, %v9161_v46  ;;  %v8841_v57 = vld [vmem:[%s16156_s1 + $0x1110] sm:$0xf0] }
 0x16e   :  { %5483 = vmatpush.bf16.msra.mxu2 %v8876_v39  ;;  %v10473_v24 = vld [vmem:[%s16156_s1 + $0x1104] sm:$0xf]  ;;  %v8969_v59 = vld [vmem:[%s16156_s1 + $0x1210] sm:$0xf0]  ;;  %v8716_v28 = vor.u32 %v10441_v21, %v8713_v51 }
 0x16f   :  { %5497 = vmatpush.bf16.msra.mxu3 %v9004_v15  ;;  %v10505_v58 = vld [vmem:[%s16156_s1 + $0x1204] sm:$0xf]  ;;  %v9145_v5 = vld [vmem:[%s16156_s1 + $0x1370] sm:$0xf0]  ;;  %v5235_v48 = vpop.f32.mrf.mxu0  ;;  %v8844_v56 = vor.u32 %v10473_v24, %v8841_v57 }
 0x170   :  { %5508 = vmatpush.bf16.msrb.mxu0 %v9180_v20  ;;  %v10549_v60 = vld [vmem:[%s16156_s1 + $0x1364] sm:$0xf]  ;;  %v9337_v11 = vld [vmem:[%s16156_s1 + $0x14f0] sm:$0xf0]  ;;  %v13158_v25 = vadd.f32 %v5235_v48, %v5222_v2  ;;  %v8972_v46 = vor.u32 %v10505_v58, %v8969_v59 }
 0x171   :  { %v10597_v39 = vld [vmem:[%s16156_s1 + $0x14e4] sm:$0xf]  ;;  %v9465_v20 = vld [vmem:[%s16156_s1 + $0x15f0] sm:$0xf0]  ;;  %5470 = vmatpush.bf16.msra.mxu1 %v8732_v49  ;;  %v9148_v45 = vor.u32 %v10549_v60, %v9145_v5 }
 0x172   :  { %v10629_v15 = vld [vmem:[%s16156_s1 + $0x15e4] sm:$0xf]  ;;  %5484 = vmatpush.bf16.msra.mxu2 %v8860_v1  ;;  %16177 = vst [vmem:[#allocation16_spill] sm:$0xff] %v13158_v25  ;;  %v9593_v32 = vld [vmem:[%s16156_s1 + $0x16f0] sm:$0xf0]  ;;  %v9340_v12 = vor.u32 %v10597_v39, %v9337_v11  ;;  %v13199_v11 = vpop.f32.mrf.mxu1 }
 0x173   :  { %v10661_v16 = vld [vmem:[%s16156_s1 + $0x16e4] sm:$0xf]  ;;  %5498 = vmatpush.bf16.msra.mxu3 %v8988_v50  ;;  %v9468_v4 = vor.u32 %v10629_v15, %v9465_v20  ;;  %v9129_v49 = vld [vmem:[%s16156_s1 + $0x1350] sm:$0xf0]  ;;  %16178 = vst [vmem:[#allocation17_spill] sm:$0xff] %v13199_v11 }
 0x174   :  { %5509 = vmatpush.bf16.msrb.mxu0 %v9164_v55  ;;  %v10545_v2 = vld [vmem:[%s16156_s1 + $0x1344] sm:$0xf]  ;;  %v9596_v21 = vor.u32 %v10661_v16, %v9593_v32  ;;  %v9321_v51 = vld [vmem:[%s16156_s1 + $0x14d0] sm:$0xf0] }
 0x175   :  { %v10593_v1 = vld [vmem:[%s16156_s1 + $0x14c4] sm:$0xf]  ;;  %v9449_v50 = vld [vmem:[%s16156_s1 + $0x15d0] sm:$0xf0]  ;;  %5471 = vmatpush.bf16.msra.mxu1 %v8716_v28  ;;  %v9132_v58 = vor.u32 %v10545_v2, %v9129_v49 }
 0x176   :  { %v10625_v24 = vld [vmem:[%s16156_s1 + $0x15c4] sm:$0xf]  ;;  %5485 = vmatpush.bf16.msra.mxu2 %v8844_v56  ;;  %v9577_v57 = vld [vmem:[%s16156_s1 + $0x16d0] sm:$0xf0]  ;;  %v9324_v59 = vor.u32 %v10593_v1, %v9321_v51  ;;  %v13234_v51 = vpop.f32.mrf.mxu2 }
 0x177   :  { %v10657_v55 = vld [vmem:[%s16156_s1 + $0x16c4] sm:$0xf]  ;;  %5499 = vmatpush.bf16.msra.mxu3 %v8972_v46  ;;  %v9452_v60 = vor.u32 %v10625_v24, %v9449_v50  ;;  %v9113_v39 = vld [vmem:[%s16156_s1 + $0x1330] sm:$0xf0]  ;;  %16179 = vst [vmem:[#allocation18_spill] sm:$0xff] %v13234_v51 }
 0x178   :  { %5510 = vmatpush.bf16.msrb.mxu0 %v9148_v45  ;;  %v10541_v5 = vld [vmem:[%s16156_s1 + $0x1324] sm:$0xf]  ;;  %5472 = vmatmul.bf16.vlgmr.msra.gmra.mxu1 %v11903_v31  ;;  %v9433_v15 = vld [vmem:[%s16156_s1 + $0x15b0] sm:$0xf0] }
 0x179   :  { %5520 = vmatpush.bf16.msrb.mxu1 %v9340_v12  ;;  %v10589_v48 = vld [vmem:[%s16156_s1 + $0x14a4] sm:$0xf]  ;;  %v9305_v12 = vld [vmem:[%s16156_s1 + $0x14b0] sm:$0xf0]  ;;  %5486 = vmatmul.bf16.vlgmr.msra.gmra.mxu2 %v11913_v38  ;;  %v9116_v56 = vor.u32 %v10541_v5, %v9113_v39  ;;  %v13257_v39 = vpop.f32.mrf.mxu3 }
 0x17a   :  { %5534 = vmatpush.bf16.msrb.mxu2 %v9468_v4  ;;  %v9580_v4 = vor.u32 %v10657_v55, %v9577_v57  ;;  %v10621_v45 = vld [vmem:[%s16156_s1 + $0x15a4] sm:$0xf]  ;;  %5500 = vmatmul.bf16.vlgmr.msra.gmra.mxu3 %v11911_v37  ;;  %v9561_v28 = vld [vmem:[%s16156_s1 + $0x16b0] sm:$0xf0]  ;;  %v9308_v46 = vor.u32 %v10589_v48, %v9305_v12  ;;  %16180 = vst [vmem:[#allocation19_spill] sm:$0xff] %v13257_v39 }
 0x17b   :  { %5548 = vmatpush.bf16.msrb.mxu3 %v9596_v21  ;;  %v10653_v20 = vld [vmem:[%s16156_s1 + $0x16a4] sm:$0xf]  ;;  %v9097_v32 = vld [vmem:[%s16156_s1 + $0x1310] sm:$0xf0]  ;;  %v9436_v2 = vor.u32 %v10621_v45, %v9433_v15 }
 0x17c   :  { %5511 = vmatpush.bf16.msrb.mxu0 %v9132_v58  ;;  %v10537_v16 = vld [vmem:[%s16156_s1 + $0x1304] sm:$0xf]  ;;  %v9289_v1 = vld [vmem:[%s16156_s1 + $0x1490] sm:$0xf0]  ;;  %v9564_v24 = vor.u32 %v10653_v20, %v9561_v28 }
 0x17d   :  { %5521 = vmatpush.bf16.msrb.mxu1 %v9324_v59  ;;  %v10585_v49 = vld [vmem:[%s16156_s1 + $0x1484] sm:$0xf]  ;;  %v9417_v50 = vld [vmem:[%s16156_s1 + $0x1590] sm:$0xf0]  ;;  %v9100_v48 = vor.u32 %v10537_v16, %v9097_v32 }
 0x17e   :  { %5535 = vmatpush.bf16.msrb.mxu2 %v9452_v60  ;;  %v10617_v21 = vld [vmem:[%s16156_s1 + $0x1584] sm:$0xf]  ;;  %v9545_v57 = vld [vmem:[%s16156_s1 + $0x1690] sm:$0xf0]  ;;  %v13254_v60 = vld [vmem:[%s16157_s2] sm:$0xf] }
 0x17f   :  { %5549 = vmatpush.bf16.msrb.mxu3 %v9580_v4  ;;  %v10649_v55 = vld [vmem:[%s16156_s1 + $0x1684] sm:$0xf]  ;;  %v9721_v59 = vld [vmem:[%s16156_s1 + $0x17f0] sm:$0xf0]  ;;  %v16162_v5 = vperm.slane %v13254_v60, 1  ;;  %v9292_v4 = vor.u32 %v10585_v49, %v9289_v1  ;;  %v9420_v12 = vor.u32 %v10617_v21, %v9417_v50 }
 0x180   :  { %v10693_v58 = vld [vmem:[%s16156_s1 + $0x17e4] sm:$0xf]  ;;  %5512 = vmatpush.bf16.msrb.mxu0 %v9116_v56  ;;  %v9273_v15 = vld [vmem:[%s16156_s1 + $0x1470] sm:$0xf0]  ;;  %v9548_v20 = vor.u32 %v10649_v55, %v9545_v57 }
 0x181   :  { %5522 = vmatpush.bf16.msrb.mxu1 %v9308_v46  ;;  %v10581_v45 = vld [vmem:[%s16156_s1 + $0x1464] sm:$0xf]  ;;  %v9724_v28 = vor.u32 %v10693_v58, %v9721_v59  ;;  %v9401_v16 = vld [vmem:[%s16156_s1 + $0x1570] sm:$0xf0]  ;;  %v5249_v46 = vpop.f32.mrf.mxu1 }
 0x182   :  { %5536 = vmatpush.bf16.msrb.mxu2 %v9436_v2  ;;  %v10613_v56 = vld [vmem:[%s16156_s1 + $0x1564] sm:$0xf]  ;;  %v9529_v2 = vld [vmem:[%s16156_s1 + $0x1670] sm:$0xf0]  ;;  %v5250_v21 = vadd.f32 %v5249_v46, %v16162_v5  ;;  %v9276_v50 = vor.u32 %v10581_v45, %v9273_v15  ;;  %v5263_v45 = vpop.f32.mrf.mxu2 }
 0x183   :  { %5550 = vmatpush.bf16.msrb.mxu3 %v9564_v24  ;;  %v10645_v32 = vld [vmem:[%s16156_s1 + $0x1664] sm:$0xf]  ;;  %v9705_v1 = vld [vmem:[%s16156_s1 + $0x17d0] sm:$0xf0]  ;;  %v13285_v24 = vpop.f32.mrf.mxu0  ;;  %v9404_v55 = vor.u32 %v10613_v56, %v9401_v16  ;;  %v5277_v16 = vpop.f32.mrf.mxu3 }
 0x184   :  { %v10689_v49 = vld [vmem:[%s16156_s1 + $0x17c4] sm:$0xf]  ;;  %16181 = vst [vmem:[#allocation20_spill] sm:$0xff] %v13285_v24  ;;  %5513 = vmatpush.bf16.msrb.mxu0 %v9100_v48  ;;  %v9257_v58 = vld [vmem:[%s16156_s1 + $0x1450] sm:$0xf0]  ;;  %v9532_v59 = vor.u32 %v10645_v32, %v9529_v2  ;;  %v5264_v56 = vadd.f32 %v5263_v45, %v5250_v21 }
 0x185   :  { %5523 = vmatpush.bf16.msrb.mxu1 %v9292_v4  ;;  %v10577_v57 = vld [vmem:[%s16156_s1 + $0x1444] sm:$0xf]  ;;  %v9708_v25 = vor.u32 %v10689_v49, %v9705_v1  ;;  %v9385_v4 = vld [vmem:[%s16156_s1 + $0x1550] sm:$0xf0] }
 0x186   :  { %5537 = vmatpush.bf16.msrb.mxu2 %v9420_v12  ;;  %v10609_v48 = vld [vmem:[%s16156_s1 + $0x1544] sm:$0xf]  ;;  %v9513_v15 = vld [vmem:[%s16156_s1 + $0x1650] sm:$0xf0]  ;;  %v9260_v32 = vor.u32 %v10577_v57, %v9257_v58  ;;  %v5278_v1 = vadd.f32 %v5277_v16, %v5264_v56 }
 0x187   :  { %5551 = vmatpush.bf16.msrb.mxu3 %v9548_v20  ;;  %v10641_v12 = vld [vmem:[%s16156_s1 + $0x1644] sm:$0xf]  ;;  %5514 = vmatmul.bf16.vlgmr.msrb.gmra.mxu0 %v11918_v43  ;;  %v9388_v46 = vor.u32 %v10609_v48, %v9385_v4  ;;  %v9241_v49 = vld [vmem:[%s16156_s1 + $0x1430] sm:$0xf0] }
 0x188   :  { %5562 = vmatpush.bf16.msra.mxu0 %v9724_v28  ;;  %v10685_v20 = vld [vmem:[%s16156_s1 + $0x17a4] sm:$0xf]  ;;  %v9689_v28 = vld [vmem:[%s16156_s1 + $0x17b0] sm:$0xf0]  ;;  %v9516_v5 = vor.u32 %v10641_v12, %v9513_v15 }
 0x189   :  { %5524 = vmatpush.bf16.msrb.mxu1 %v9276_v50  ;;  %v10573_v2 = vld [vmem:[%s16156_s1 + $0x1424] sm:$0xf]  ;;  %v9692_v24 = vor.u32 %v10685_v20, %v9689_v28  ;;  %v9369_v50 = vld [vmem:[%s16156_s1 + $0x1530] sm:$0xf0]  ;;  %v13380_v11 = vpop.f32.mrf.mxu1 }
 0x18a   :  { %5538 = vmatpush.bf16.msrb.mxu2 %v9404_v55  ;;  %v10605_v21 = vld [vmem:[%s16156_s1 + $0x1524] sm:$0xf]  ;;  %v9497_v57 = vld [vmem:[%s16156_s1 + $0x1630] sm:$0xf0]  ;;  %v9244_v48 = vor.u32 %v10573_v2, %v9241_v49 }
 0x18b   :  { %5552 = vmatpush.bf16.msrb.mxu3 %v9532_v59  ;;  %v10637_v55 = vld [vmem:[%s16156_s1 + $0x1624] sm:$0xf]  ;;  %v9673_v58 = vld [vmem:[%s16156_s1 + $0x1790] sm:$0xf0]  ;;  %v5291_v59 = vpop.f32.mrf.mxu0  ;;  %v9372_v4 = vor.u32 %v10605_v21, %v9369_v50  ;;  %v9960_v21 = vld [vmem:[%s16156_s1 + $0xf4] sm:$0xf0] }
 0x18c   :  { %5563 = vmatpush.bf16.msra.mxu0 %v9708_v25  ;;  %v10681_v25 = vld [vmem:[%s16156_s1 + $0x1784] sm:$0xf]  ;;  %v9225_v45 = vld [vmem:[%s16156_s1 + $0x1410] sm:$0xf0]  ;;  %v13345_v20 = vadd.f32 %v5291_v59, %v5278_v1  ;;  %v9500_v28 = vor.u32 %v10637_v55, %v9497_v57  ;;  %v6783_v1 = vld [vmem:[%s16156_s1 + $0xe8] sm:$0xf] }
 0x18d   :  { %5525 = vmatpush.bf16.msrb.mxu1 %v9260_v32  ;;  %v10569_v12 = vld [vmem:[%s16156_s1 + $0x1404] sm:$0xf]  ;;  %v9676_v56 = vor.u32 %v10681_v25, %v9673_v58  ;;  %v9353_v16 = vld [vmem:[%s16156_s1 + $0x1510] sm:$0xf0]  ;;  %v6911_v57 = vld [vmem:[%s16156_s1 + $0x1e8] sm:$0xf]  ;;  %v6784_v51 = vor.u32 %v9960_v21, %v6783_v1 }
 0x18e   :  { %5539 = vmatpush.bf16.msrb.mxu2 %v9388_v46  ;;  %v10601_v15 = vld [vmem:[%s16156_s1 + $0x1504] sm:$0xf]  ;;  %v9481_v46 = vld [vmem:[%s16156_s1 + $0x1610] sm:$0xf0]  ;;  %v9228_v50 = vor.u32 %v10569_v12, %v9225_v45  ;;  %v9992_v25 = vld [vmem:[%s16156_s1 + $0x1f4] sm:$0xf0] }
 0x18f   :  { %5553 = vmatpush.bf16.msrb.mxu3 %v9516_v5  ;;  %v10633_v32 = vld [vmem:[%s16156_s1 + $0x1604] sm:$0xf]  ;;  %v9657_v5 = vld [vmem:[%s16156_s1 + $0x1770] sm:$0xf0]  ;;  %v9356_v55 = vor.u32 %v10601_v15, %v9353_v16  ;;  %v6912_v45 = vor.u32 %v9992_v25, %v6911_v57  ;;  %v6895_v16 = vld [vmem:[%s16156_s1 + $0x1c8] sm:$0xf] }
 0x190   :  { %5564 = vmatpush.bf16.msra.mxu0 %v9692_v24  ;;  %v10677_v2 = vld [vmem:[%s16156_s1 + $0x1764] sm:$0xf]  ;;  %v9785_v49 = vld [vmem:[%s16156_s1 + $0x1870] sm:$0xf0]  ;;  %v9484_v58 = vor.u32 %v10633_v32, %v9481_v46  ;;  %v9988_v32 = vld [vmem:[%s16156_s1 + $0x1d4] sm:$0xf0] }
 0x191   :  { %v10709_v24 = vld [vmem:[%s16156_s1 + $0x1864] sm:$0xf]  ;;  %5526 = vmatpush.bf16.msrb.mxu1 %v9244_v48  ;;  %v9660_v59 = vor.u32 %v10677_v2, %v9657_v5  ;;  %v9769_v15 = vld [vmem:[%s16156_s1 + $0x1850] sm:$0xf0]  ;;  %v6896_v21 = vor.u32 %v9988_v32, %v6895_v16  ;;  %v9984_v57 = vld [vmem:[%s16156_s1 + $0x1b4] sm:$0xf0] }
 0x192   :  { %5540 = vmatpush.bf16.msrb.mxu2 %v9372_v4  ;;  %v9788_v39 = vor.u32 %v10709_v24, %v9785_v49  ;;  %v10673_v48 = vld [vmem:[%s16156_s1 + $0x1744] sm:$0xf]  ;;  %v9641_v4 = vld [vmem:[%s16156_s1 + $0x1750] sm:$0xf0]  ;;  %v6735_v16 = vld [vmem:[%s16156_s1 + $0x88] sm:$0xf] }
 0x193   :  { %5554 = vmatpush.bf16.msrb.mxu3 %v9500_v28  ;;  %v10705_v12 = vld [vmem:[%s16156_s1 + $0x1844] sm:$0xf]  ;;  %v6767_v28 = vld [vmem:[%s16156_s1 + $0xc8] sm:$0xf]  ;;  %v9644_v46 = vor.u32 %v10673_v48, %v9641_v4  ;;  %v9625_v49 = vld [vmem:[%s16156_s1 + $0x1730] sm:$0xf0]  ;;  %v13474_v6 = vpop.f32.mrf.mxu0 }
 0x194   :  { %5565 = vmatpush.bf16.msra.mxu0 %v9676_v56  ;;  %v9956_v56 = vld [vmem:[%s16156_s1 + $0xd4] sm:$0xf0]  ;;  %v9772_v2 = vor.u32 %v10705_v12, %v9769_v15  ;;  %v10669_v24 = vld [vmem:[%s16156_s1 + $0x1724] sm:$0xf]  ;;  %v9609_v12 = vld [vmem:[%s16156_s1 + $0x1710] sm:$0xf0] }
 0x195   :  { %5527 = vmatpush.bf16.msrb.mxu1 %v9228_v50  ;;  %v6768_v5 = vor.u32 %v9956_v56, %v6767_v28  ;;  %v10701_v1 = vld [vmem:[%s16156_s1 + $0x1824] sm:$0xf]  ;;  %v9952_v50 = vld [vmem:[%s16156_s1 + $0xb4] sm:$0xf0]  ;;  %v9628_v25 = vor.u32 %v10669_v24, %v9625_v49  ;;  %v9737_v15 = vld [vmem:[%s16156_s1 + $0x1810] sm:$0xf0]  ;;  %v13447_v56 = vpop.f32.mrf.mxu3 }
 0x196   :  { %5541 = vmatpush.bf16.msrb.mxu2 %v9356_v55  ;;  %v6879_v55 = vld [vmem:[%s16156_s1 + $0x1a8] sm:$0xf]  ;;  %v9948_v32 = vld [vmem:[%s16156_s1 + $0x94] sm:$0xf0] }
 0x197   :  { %5555 = vmatpush.bf16.msrb.mxu3 %v9484_v58  ;;  %v13433_v58 = vpop.f32.mrf.mxu2  ;;  %v6880_v28 = vor.u32 %v9984_v57, %v6879_v55  ;;  %v7039_v24 = vld [vmem:[%s16156_s1 + $0x2e8] sm:$0xf]  ;;  %v10024_v49 = vld [vmem:[%s16156_s1 + $0x2f4] sm:$0xf0]  ;;  %v6736_v55 = vor.u32 %v9948_v32, %v6735_v16 }
 0x198   :  { %5566 = vmatpush.bf16.msra.mxu0 %v9660_v59  ;;  %5528 = vmatmul.bf16.vlgmr.msrb.gmra.mxu1 %v12031_v52  ;;  %v10665_v59 = vld [vmem:[%s16156_s1 + $0x1704] sm:$0xf]  ;;  %v7040_v63 = vor.u32 %v10024_v49, %v7039_v24  ;;  %v9940_v24 = vld [vmem:[%s16156_s1 + $0x54] sm:$0xf0]  ;;  %v6831_v49 = vld [vmem:[%s16156_s1 + $0x148] sm:$0xf] }
 0x199   :  { %5580 = vmatpush.bf16.msra.mxu1 %v9788_v39  ;;  %v6751_v39 = vld [vmem:[%s16156_s1 + $0xa8] sm:$0xf]  ;;  %5542 = vmatmul.bf16.vlgmr.msrb.gmra.mxu2 %v12051_v61 }
 0x19a   :  { %5590 = vmatpush.bf16.msra.mxu2 %v6784_v51  ;;  %v9753_v51 = vld [vmem:[%s16156_s1 + $0x1830] sm:$0xf0]  ;;  %5556 = vmatmul.bf16.vlgmr.msrb.gmra.mxu3 %v12033_v53  ;;  %v6752_v4 = vor.u32 %v9952_v50, %v6751_v39  ;;  %v10056_v39 = vld [vmem:[%s16156_s1 + $0x3f4] sm:$0xf0] }
 0x19b   :  { %5604 = vmatpush.bf16.msra.mxu3 %v6912_v45  ;;  %v9756_v48 = vor.u32 %v10701_v1, %v9753_v51  ;;  %v10697_v45 = vld [vmem:[%s16156_s1 + $0x1804] sm:$0xf]  ;;  %v7167_v51 = vld [vmem:[%s16156_s1 + $0x3e8] sm:$0xf] }
 0x19c   :  { %5567 = vmatpush.bf16.msra.mxu0 %v9644_v46  ;;  %v6863_v46 = vld [vmem:[%s16156_s1 + $0x188] sm:$0xf]  ;;  %v9740_v50 = vor.u32 %v10697_v45, %v9737_v15  ;;  %v10020_v45 = vld [vmem:[%s16156_s1 + $0x2d4] sm:$0xf0] }
 0x19d   :  { %5581 = vmatpush.bf16.msra.mxu1 %v9772_v2  ;;  %v5305_v2 = vpop.f32.mrf.mxu1  ;;  %v7151_v15 = vld [vmem:[%s16156_s1 + $0x3c8] sm:$0xf] }
 0x19e   :  { %5591 = vmatpush.bf16.msra.mxu2 %v6768_v5  ;;  %v9980_v5 = vld [vmem:[%s16156_s1 + $0x194] sm:$0xf0]  ;;  %v5306_v1 = vadd.f32 %v5305_v2, %v13345_v20  ;;  %v6719_v20 = vld [vmem:[%s16156_s1 + $0x68] sm:$0xf] }
 0x19f   :  { %5605 = vmatpush.bf16.msra.mxu3 %v6896_v21  ;;  %v9612_v21 = vor.u32 %v10665_v59, %v9609_v12  ;;  %v6864_v57 = vor.u32 %v9980_v5, %v6863_v46  ;;  %v6847_v59 = vld [vmem:[%s16156_s1 + $0x168] sm:$0xf]  ;;  %v5319_v46 = vpop.f32.mrf.mxu2 }
 0x1a0   :  { %5568 = vmatpush.bf16.msra.mxu0 %v9628_v25  ;;  %v9944_v25 = vld [vmem:[%s16156_s1 + $0x74] sm:$0xf0]  ;;  %v7023_v12 = vld [vmem:[%s16156_s1 + $0x2c8] sm:$0xf] }
 0x1a1   :  { %5582 = vmatpush.bf16.msra.mxu1 %v9756_v48  ;;  %v7168_v48 = vor.u32 %v10056_v39, %v7167_v51  ;;  %v6720_v16 = vor.u32 %v9944_v25, %v6719_v20  ;;  %v7024_v2 = vor.u32 %v10020_v45, %v7023_v12  ;;  %v6703_v5 = vld [vmem:[%s16156_s1 + $0x48] sm:$0xf]  ;;  %v9972_v51 = vld [vmem:[%s16156_s1 + $0x154] sm:$0xf0] }
 0x1a2   :  { %5592 = vmatpush.bf16.msra.mxu2 %v6752_v4  ;;  %v9976_v4 = vld [vmem:[%s16156_s1 + $0x174] sm:$0xf0]  ;;  %v7007_v39 = vld [vmem:[%s16156_s1 + $0x2a8] sm:$0xf]  ;;  %v6704_v25 = vor.u32 %v9940_v24, %v6703_v5 }
 0x1a3   :  { %5606 = vmatpush.bf16.msra.mxu3 %v6880_v28  ;;  %v10052_v28 = vld [vmem:[%s16156_s1 + $0x3d4] sm:$0xf0]  ;;  %v6848_v32 = vor.u32 %v9976_v4, %v6847_v59  ;;  %v6832_v59 = vor.u32 %v9972_v51, %v6831_v49  ;;  %v6687_v4 = vld [vmem:[%s16156_s1 + $0x28] sm:$0xf] }
 0x1a4   :  { %5569 = vmatpush.bf16.msra.mxu0 %v9612_v21  ;;  %v5320_v21 = vadd.f32 %v5319_v46, %v5306_v1  ;;  %v10048_v1 = vld [vmem:[%s16156_s1 + $0x3b4] sm:$0xf0]  ;;  %v6815_v45 = vld [vmem:[%s16156_s1 + $0x128] sm:$0xf]  ;;  %v10747_v46 = vld [vmem:[#allocation1] sm:$0xff] }
 0x1a5   :  { %5583 = vmatpush.bf16.msra.mxu1 %v9740_v50  ;;  %v10016_v50 = vld [vmem:[%s16156_s1 + $0x2b4] sm:$0xf0]  ;;  %v7119_v5 = vld [vmem:[%s16156_s1 + $0x388] sm:$0xf] }
 0x1a6   :  { %5593 = vmatpush.bf16.msra.mxu2 %v6736_v55  ;;  %v5333_v55 = vpop.f32.mrf.mxu3  ;;  %v9936_v12 = vld [vmem:[%s16156_s1 + $0x34] sm:$0xf0] }
 0x1a7   :  { %5607 = vmatpush.bf16.msra.mxu3 %v6864_v57  ;;  %5570 = vmatmul.bf16.vlgmr.msra.gmra.mxu0 %v12053_v62  ;;  %v7135_v57 = vld [vmem:[%s16156_s1 + $0x3a8] sm:$0xf]  ;;  %v5334_v20 = vadd.f32 %v5333_v55, %v5320_v21  ;;  %v10044_v24 = vld [vmem:[%s16156_s1 + $0x394] sm:$0xf0]  ;;  %v6688_v21 = vor.u32 %v9936_v12, %v6687_v4 }
 0x1a8   :  { %5618 = vmatpush.bf16.msrb.mxu0 %v7040_v63  ;;  %v7152_v63 = vor.u32 %v10052_v28, %v7151_v15  ;;  %v7136_v15 = vor.u32 %v10048_v1, %v7135_v57  ;;  %v9968_v28 = vld [vmem:[%s16156_s1 + $0x134] sm:$0xf0]  ;;  %9798 = vmatmul.msk.bf16.vlgmr.msra.gmra.mxu1 %vm4887_vm0, %v10747_v46  ;;  %v6799_v55 = vld [vmem:[%s16156_s1 + $0x108] sm:$0xf]  ;;  %v7120_v1 = vor.u32 %v10044_v24, %v7119_v5 }
 0x1a9   :  { %5632 = vmatpush.bf16.msrb.mxu1 %v7168_v48  ;;  %v7008_v48 = vor.u32 %v10016_v50, %v7007_v39  ;;  %v6816_v51 = vor.u32 %v9968_v28, %v6815_v45  ;;  %v9932_v50 = vld [vmem:[%s16156_s1 + $0x14] sm:$0xf0]  ;;  %v7295_v4 = vld [vmem:[%s16156_s1 + $0x4e8] sm:$0xf] }
 0x1aa   :  { %5594 = vmatpush.bf16.msra.mxu2 %v6720_v16  ;;  %v6991_v16 = vld [vmem:[%s16156_s1 + $0x288] sm:$0xf]  ;;  %v9964_v57 = vld [vmem:[%s16156_s1 + $0x114] sm:$0xf0] }
 0x1ab   :  { %5608 = vmatpush.bf16.msra.mxu3 %v6848_v32  ;;  %v10012_v32 = vld [vmem:[%s16156_s1 + $0x294] sm:$0xf0]  ;;  %v6959_v5 = vld [vmem:[%s16156_s1 + $0x248] sm:$0xf] }
 0x1ac   :  { %5619 = vmatpush.bf16.msrb.mxu0 %v7024_v2  ;;  %v5347_v2 = vpop.f32.mrf.mxu0  ;;  %v6992_v39 = vor.u32 %v10012_v32, %v6991_v16  ;;  %v10088_v12 = vld [vmem:[%s16156_s1 + $0x4f4] sm:$0xf0]  ;;  %v6800_v16 = vor.u32 %v9964_v57, %v6799_v55  ;;  %v13606_v55 = vpop.f32.mrf.mxu1  ;;  %v7407_v57 = vld [vmem:[%s16156_s1 + $0x5c8] sm:$0xf] }
 0x1ad   :  { %5633 = vmatpush.bf16.msrb.mxu1 %v7152_v63  ;;  %v13550_v49 = vadd.f32 %v5347_v2, %v5334_v20  ;;  %v6671_v63 = vld [vmem:[%s16156_s1 + $0x8] sm:$0xf]  ;;  %v10120_v28 = vld [vmem:[%s16156_s1 + $0x5f4] sm:$0xf0]  ;;  %v7296_v2 = vor.u32 %v10088_v12, %v7295_v4 }
 0x1ae   :  { %5595 = vmatpush.bf16.msra.mxu2 %v6704_v25  ;;  %v6975_v20 = vld [vmem:[%s16156_s1 + $0x268] sm:$0xf]  ;;  %v10008_v25 = vld [vmem:[%s16156_s1 + $0x274] sm:$0xf0]  ;;  %v6672_v45 = vor.u32 %v9932_v50, %v6671_v63 }
 0x1af   :  { %5609 = vmatpush.bf16.msra.mxu3 %v6832_v59  ;;  %v7103_v59 = vld [vmem:[%s16156_s1 + $0x368] sm:$0xf]  ;;  %v6976_v32 = vor.u32 %v10008_v25, %v6975_v20  ;;  %v10004_v24 = vld [vmem:[%s16156_s1 + $0x254] sm:$0xf0] }
 0x1b0   :  { %5620 = vmatpush.bf16.msrb.mxu0 %v7008_v48  ;;  %v10040_v48 = vld [vmem:[%s16156_s1 + $0x374] sm:$0xf0]  ;;  %v6960_v20 = vor.u32 %v10004_v24, %v6959_v5  ;;  %v7071_v12 = vld [vmem:[%s16156_s1 + $0x328] sm:$0xf] }
 0x1b1   :  { %5634 = vmatpush.bf16.msrb.mxu1 %v7136_v15  ;;  %v7423_v15 = vld [vmem:[%s16156_s1 + $0x5e8] sm:$0xf]  ;;  %v7104_v46 = vor.u32 %v10040_v48, %v7103_v59  ;;  %v10084_v50 = vld [vmem:[%s16156_s1 + $0x4d4] sm:$0xf0] }
 0x1b2   :  { %5596 = vmatpush.bf16.msra.mxu2 %v6688_v21  ;;  %v7087_v21 = vld [vmem:[%s16156_s1 + $0x348] sm:$0xf]  ;;  %v7424_v63 = vor.u32 %v10120_v28, %v7423_v15  ;;  %v10000_v4 = vld [vmem:[%s16156_s1 + $0x234] sm:$0xf0] }
 0x1b3   :  { %5610 = vmatpush.bf16.msra.mxu3 %v6816_v51  ;;  %v10036_v51 = vld [vmem:[%s16156_s1 + $0x354] sm:$0xf0]  ;;  %v6943_v48 = vld [vmem:[%s16156_s1 + $0x228] sm:$0xf] }
 0x1b4   :  { %5621 = vmatpush.bf16.msrb.mxu0 %v6992_v39  ;;  %v7279_v39 = vld [vmem:[%s16156_s1 + $0x4c8] sm:$0xf]  ;;  %v7088_v25 = vor.u32 %v10036_v51, %v7087_v21  ;;  %v10032_v15 = vld [vmem:[%s16156_s1 + $0x334] sm:$0xf0] }
 0x1b5   :  { %5635 = vmatpush.bf16.msrb.mxu1 %v7120_v1  ;;  %v10116_v1 = vld [vmem:[%s16156_s1 + $0x5d4] sm:$0xf0]  ;;  %v7280_v59 = vor.u32 %v10084_v50, %v7279_v39  ;;  %v7263_v28 = vld [vmem:[%s16156_s1 + $0x4a8] sm:$0xf]  ;;  %v7072_v24 = vor.u32 %v10032_v15, %v7071_v12  ;;  %v13652_v50 = vpop.f32.mrf.mxu2 }
 0x1b6   :  { %5597 = vmatpush.bf16.msra.mxu2 %v6672_v45  ;;  %v7408_v45 = vor.u32 %v10116_v1, %v7407_v57  ;;  %v6927_v5 = vld [vmem:[%s16156_s1 + $0x208] sm:$0xf]  ;;  %v10028_v39 = vld [vmem:[%s16156_s1 + $0x314] sm:$0xf0]  ;;  %16182 = vst [vmem:[#allocation21_spill] sm:$0xff] %v13652_v50  ;;  %v13654_v57 = vpop.f32.mrf.mxu3 }
 0x1b7   :  { %5611 = vmatpush.bf16.msra.mxu3 %v6800_v16  ;;  %v10080_v16 = vld [vmem:[%s16156_s1 + $0x4b4] sm:$0xf0]  ;;  %v7055_v51 = vld [vmem:[%s16156_s1 + $0x308] sm:$0xf]  ;;  %16183 = vst [vmem:[#allocation22_spill] sm:$0xff] %v13654_v57 }
 0x1b8   :  { %5622 = vmatpush.bf16.msrb.mxu0 %v6976_v32  ;;  %v7391_v32 = vld [vmem:[%s16156_s1 + $0x5a8] sm:$0xf]  ;;  %v7264_v21 = vor.u32 %v10080_v16, %v7263_v28 }
 0x1b9   :  { %5636 = vmatpush.bf16.msrb.mxu1 %v7104_v46  ;;  %5598 = vmatmul.bf16.vlgmr.msra.gmra.mxu2 %v11135_v41  ;;  %v10112_v46 = vld [vmem:[%s16156_s1 + $0x5b4] sm:$0xf0]  ;;  %v7551_v12 = vld [vmem:[%s16156_s1 + $0x6e8] sm:$0xf] }
 0x1ba   :  { %5646 = vmatpush.bf16.msrb.mxu2 %v7296_v2  ;;  %5612 = vmatmul.bf16.vlgmr.msra.gmra.mxu3 %v11139_v44  ;;  %v6944_v2 = vor.u32 %v10000_v4, %v6943_v48  ;;  %v7392_v1 = vor.u32 %v10112_v46, %v7391_v32  ;;  %v5361_v48 = vpop.f32.mrf.mxu1  ;;  %v10108_v4 = vld [vmem:[%s16156_s1 + $0x594] sm:$0xf0]  ;;  %v7679_v16 = vld [vmem:[%s16156_s1 + $0x7e8] sm:$0xf]  ;;  %v7056_v46 = vor.u32 %v10028_v39, %v7055_v51  ;;  %v13699_v39 = vpop.f32.mrf.mxu0 }
 0x1bb   :  { %5660 = vmatpush.bf16.msrb.mxu3 %v7424_v63  ;;  %v9996_v63 = vld [vmem:[%s16156_s1 + $0x214] sm:$0xf0]  ;;  %v5362_v15 = vadd.f32 %v5361_v48, %v13550_v49  ;;  %v7231_v49 = vld [vmem:[%s16156_s1 + $0x468] sm:$0xf]  ;;  %16184 = vst [vmem:[#allocation23_spill] sm:$0xff] %v13699_v39 }
 0x1bc   :  { %5623 = vmatpush.bf16.msrb.mxu0 %v6960_v20  ;;  %v7247_v20 = vld [vmem:[%s16156_s1 + $0x488] sm:$0xf]  ;;  %v6928_v28 = vor.u32 %v9996_v63, %v6927_v5  ;;  %v10184_v32 = vld [vmem:[%s16156_s1 + $0x7f4] sm:$0xf0] }
 0x1bd   :  { %5637 = vmatpush.bf16.msrb.mxu1 %v7088_v25  ;;  %v10076_v25 = vld [vmem:[%s16156_s1 + $0x494] sm:$0xf0]  ;;  %v7359_v5 = vld [vmem:[%s16156_s1 + $0x568] sm:$0xf]  ;;  %v7680_v63 = vor.u32 %v10184_v32, %v7679_v16  ;;  %v5375_v48 = vpop.f32.mrf.mxu2 }
 0x1be   :  { %5647 = vmatpush.bf16.msrb.mxu2 %v7280_v59  ;;  %v7375_v59 = vld [vmem:[%s16156_s1 + $0x588] sm:$0xf]  ;;  %v7248_v57 = vor.u32 %v10076_v25, %v7247_v20  ;;  %v10148_v51 = vld [vmem:[%s16156_s1 + $0x6d4] sm:$0xf0] }
 0x1bf   :  { %5661 = vmatpush.bf16.msrb.mxu3 %v7408_v45  ;;  %v10152_v45 = vld [vmem:[%s16156_s1 + $0x6f4] sm:$0xf0]  ;;  %v7376_v3 = vor.u32 %v10108_v4, %v7375_v59  ;;  %v7343_v16 = vld [vmem:[%s16156_s1 + $0x548] sm:$0xf] }
 0x1c0   :  { %5624 = vmatpush.bf16.msrb.mxu0 %v6944_v2  ;;  %v7552_v50 = vor.u32 %v10152_v45, %v7551_v12  ;;  %v10072_v2 = vld [vmem:[%s16156_s1 + $0x474] sm:$0xf0]  ;;  %v5389_v12 = vpop.f32.mrf.mxu3  ;;  %v7215_v45 = vld [vmem:[%s16156_s1 + $0x448] sm:$0xf] }
 0x1c1   :  { %5638 = vmatpush.bf16.msrb.mxu1 %v7072_v24  ;;  %v10104_v24 = vld [vmem:[%s16156_s1 + $0x574] sm:$0xf0]  ;;  %v7232_v25 = vor.u32 %v10072_v2, %v7231_v49  ;;  %v7519_v32 = vld [vmem:[%s16156_s1 + $0x6a8] sm:$0xf] }
 0x1c2   :  { %5648 = vmatpush.bf16.msrb.mxu2 %v7264_v21  ;;  %v7535_v21 = vld [vmem:[%s16156_s1 + $0x6c8] sm:$0xf]  ;;  %v10180_v20 = vld [vmem:[%s16156_s1 + $0x7d4] sm:$0xf0]  ;;  %v7360_v59 = vor.u32 %v10104_v24, %v7359_v5 }
 0x1c3   :  { %5662 = vmatpush.bf16.msrb.mxu3 %v7392_v1  ;;  %v7663_v1 = vld [vmem:[%s16156_s1 + $0x7c8] sm:$0xf]  ;;  %v7536_v4 = vor.u32 %v10148_v51, %v7535_v21  ;;  %v10064_v51 = vld [vmem:[%s16156_s1 + $0x434] sm:$0xf0] }
 0x1c4   :  { %5625 = vmatpush.bf16.msrb.mxu0 %v6928_v28  ;;  %v10068_v28 = vld [vmem:[%s16156_s1 + $0x454] sm:$0xf0]  ;;  %v7647_v49 = vld [vmem:[%s16156_s1 + $0x7a8] sm:$0xf] }
 0x1c5   :  { %5639 = vmatpush.bf16.msrb.mxu1 %v7056_v46  ;;  %v10144_v46 = vld [vmem:[%s16156_s1 + $0x6b4] sm:$0xf0]  ;;  %v7216_v5 = vor.u32 %v10068_v28, %v7215_v45  ;;  %v7199_v21 = vld [vmem:[%s16156_s1 + $0x428] sm:$0xf] }
 0x1c6   :  { %5649 = vmatpush.bf16.msrb.mxu2 %v7248_v57  ;;  %v5376_v57 = vadd.f32 %v5375_v48, %v5362_v15  ;;  %v10176_v15 = vld [vmem:[%s16156_s1 + $0x7b4] sm:$0xf0]  ;;  %v7520_v24 = vor.u32 %v10144_v46, %v7519_v32  ;;  %v7311_v46 = vld [vmem:[%s16156_s1 + $0x508] sm:$0xf] }
 0x1c7   :  { %5663 = vmatpush.bf16.msrb.mxu3 %v7376_v3  ;;  %v7664_v3 = vor.u32 %v10180_v20, %v7663_v1  ;;  %5626 = vmatmul.bf16.vlgmr.msrb.gmra.mxu0 %v11137_v42  ;;  %v7327_v1 = vld [vmem:[%s16156_s1 + $0x528] sm:$0xf]  ;;  %v7648_v20 = vor.u32 %v10176_v15, %v7647_v49  ;;  %v10140_v48 = vld [vmem:[%s16156_s1 + $0x694] sm:$0xf0] }
 0x1c8   :  { %5674 = vmatpush.bf16.msra.mxu0 %v7552_v50  ;;  %v10100_v50 = vld [vmem:[%s16156_s1 + $0x554] sm:$0xf0]  ;;  %5640 = vmatmul.bf16.vlgmr.msrb.gmra.mxu1 %v11150_v47  ;;  %v5390_v2 = vadd.f32 %v5389_v12, %v5376_v57  ;;  %v7631_v12 = vld [vmem:[%s16156_s1 + $0x788] sm:$0xf] }
 0x1c9   :  { %5688 = vmatpush.bf16.msra.mxu1 %v7680_v63  ;;  %v7344_v63 = vor.u32 %v10100_v50, %v7343_v16  ;;  %v10172_v45 = vld [vmem:[%s16156_s1 + $0x794] sm:$0xf0]  ;;  %v7200_v16 = vor.u32 %v10064_v51, %v7199_v21  ;;  %v7183_v57 = vld [vmem:[%s16156_s1 + $0x408] sm:$0xf] }
 0x1ca   :  { %5650 = vmatpush.bf16.msrb.mxu2 %v7232_v25  ;;  %v10096_v25 = vld [vmem:[%s16156_s1 + $0x534] sm:$0xf0]  ;;  %v7632_v15 = vor.u32 %v10172_v45, %v7631_v12  ;;  %v7807_v21 = vld [vmem:[%s16156_s1 + $0x8e8] sm:$0xf] }
 0x1cb   :  { %5664 = vmatpush.bf16.msrb.mxu3 %v7360_v59  ;;  %v7503_v59 = vld [vmem:[%s16156_s1 + $0x688] sm:$0xf]  ;;  %v10060_v32 = vld [vmem:[%s16156_s1 + $0x414] sm:$0xf0] }
 0x1cc   :  { %5675 = vmatpush.bf16.msra.mxu0 %v7536_v4  ;;  %v5403_v4 = vpop.f32.mrf.mxu0  ;;  %v7504_v50 = vor.u32 %v10140_v48, %v7503_v59  ;;  %v10092_v49 = vld [vmem:[%s16156_s1 + $0x514] sm:$0xf0]  ;;  %v7471_v45 = vld [vmem:[%s16156_s1 + $0x648] sm:$0xf] }
 0x1cd   :  { %5689 = vmatpush.bf16.msra.mxu1 %v7664_v3  ;;  %v13757_v28 = vadd.f32 %v5403_v4, %v5390_v2  ;;  %v7328_v3 = vor.u32 %v10096_v25, %v7327_v1  ;;  %v7487_v2 = vld [vmem:[%s16156_s1 + $0x668] sm:$0xf]  ;;  %v10216_v51 = vld [vmem:[%s16156_s1 + $0x8f4] sm:$0xf0]  ;;  %v7184_v1 = vor.u32 %v10060_v32, %v7183_v57  ;;  %v7312_v59 = vor.u32 %v10092_v49, %v7311_v46  ;;  %v13813_v49 = vpop.f32.mrf.mxu1 }
 0x1ce   :  { %5651 = vmatpush.bf16.msrb.mxu2 %v7216_v5  ;;  %v10136_v5 = vld [vmem:[%s16156_s1 + $0x674] sm:$0xf0]  ;;  %v7808_v12 = vor.u32 %v10216_v51, %v7807_v21  ;;  %v7599_v57 = vld [vmem:[%s16156_s1 + $0x748] sm:$0xf]  ;;  %16185 = vst [vmem:[#allocation24_spill] sm:$0xff] %v13813_v49 }
 0x1cf   :  { %5665 = vmatpush.bf16.msrb.mxu3 %v7344_v63  ;;  %v7615_v63 = vld [vmem:[%s16156_s1 + $0x768] sm:$0xf]  ;;  %v10248_v25 = vld [vmem:[%s16156_s1 + $0x9f4] sm:$0xf0]  ;;  %v7488_v48 = vor.u32 %v10136_v5, %v7487_v2 }
 0x1d0   :  { %5676 = vmatpush.bf16.msra.mxu0 %v7520_v24  ;;  %v10168_v24 = vld [vmem:[%s16156_s1 + $0x774] sm:$0xf0]  ;;  %v7455_v21 = vld [vmem:[%s16156_s1 + $0x628] sm:$0xf] }
 0x1d1   :  { %5690 = vmatpush.bf16.msra.mxu1 %v7648_v20  ;;  %v7935_v20 = vld [vmem:[%s16156_s1 + $0x9e8] sm:$0xf]  ;;  %v7616_v4 = vor.u32 %v10168_v24, %v7615_v63  ;;  %v10212_v46 = vld [vmem:[%s16156_s1 + $0x8d4] sm:$0xf0] }
 0x1d2   :  { %5652 = vmatpush.bf16.msrb.mxu2 %v7200_v16  ;;  %v10132_v16 = vld [vmem:[%s16156_s1 + $0x654] sm:$0xf0]  ;;  %v7936_v32 = vor.u32 %v10248_v25, %v7935_v20 }
 0x1d3   :  { %5666 = vmatpush.bf16.msrb.mxu3 %v7328_v3  ;;  %v10164_v3 = vld [vmem:[%s16156_s1 + $0x754] sm:$0xf0]  ;;  %v7472_v5 = vor.u32 %v10132_v16, %v7471_v45  ;;  %v7439_v16 = vld [vmem:[%s16156_s1 + $0x608] sm:$0xf] }
 0x1d4   :  { %5677 = vmatpush.bf16.msra.mxu0 %v7504_v50  ;;  %v7791_v50 = vld [vmem:[%s16156_s1 + $0x8c8] sm:$0xf]  ;;  %v10244_v2 = vld [vmem:[%s16156_s1 + $0x9d4] sm:$0xf0]  ;;  %v7600_v63 = vor.u32 %v10164_v3, %v7599_v57 }
 0x1d5   :  { %5691 = vmatpush.bf16.msra.mxu1 %v7632_v15  ;;  %v7919_v15 = vld [vmem:[%s16156_s1 + $0x9c8] sm:$0xf]  ;;  %v7792_v24 = vor.u32 %v10212_v46, %v7791_v50  ;;  %v10128_v51 = vld [vmem:[%s16156_s1 + $0x634] sm:$0xf0] }
 0x1d6   :  { %5653 = vmatpush.bf16.msrb.mxu2 %v7184_v1  ;;  %v7583_v1 = vld [vmem:[%s16156_s1 + $0x728] sm:$0xf]  ;;  %v7920_v20 = vor.u32 %v10244_v2, %v7919_v15  ;;  %v10160_v25 = vld [vmem:[%s16156_s1 + $0x734] sm:$0xf0]  ;;  %v7456_v45 = vor.u32 %v10128_v51, %v7455_v21  ;;  %v13859_v15 = vpop.f32.mrf.mxu2  ;;  %v13861_v2 = vpop.f32.mrf.mxu3 }
 0x1d7   :  { %5667 = vmatpush.bf16.msrb.mxu3 %v7312_v59  ;;  %v7775_v59 = vld [vmem:[%s16156_s1 + $0x8a8] sm:$0xf]  ;;  %v7584_v57 = vor.u32 %v10160_v25, %v7583_v1  ;;  %v10124_v3 = vld [vmem:[%s16156_s1 + $0x614] sm:$0xf0]  ;;  %16186 = vst [vmem:[#allocation25_spill] sm:$0xff] %v13859_v15  ;;  %v5417_v51 = vpop.f32.mrf.mxu1 }
 0x1d8   :  { %5678 = vmatpush.bf16.msra.mxu0 %v7488_v48  ;;  %v10208_v48 = vld [vmem:[%s16156_s1 + $0x8b4] sm:$0xf0]  ;;  %v7567_v50 = vld [vmem:[%s16156_s1 + $0x708] sm:$0xf]  ;;  %16187 = vst [vmem:[#allocation26_spill] sm:$0xff] %v13861_v2 }
 0x1d9   :  { %5692 = vmatpush.bf16.msra.mxu1 %v7616_v4  ;;  %5654 = vmatmul.bf16.vlgmr.msrb.gmra.mxu2 %v11225_v23  ;;  %v7903_v4 = vld [vmem:[%s16156_s1 + $0x9a8] sm:$0xf]  ;;  %v10156_v46 = vld [vmem:[%s16156_s1 + $0x714] sm:$0xf0] }
 0x1da   :  { %5702 = vmatpush.bf16.msra.mxu2 %v7808_v12  ;;  %5668 = vmatmul.bf16.vlgmr.msrb.gmra.mxu3 %v11253_v34  ;;  %v10240_v12 = vld [vmem:[%s16156_s1 + $0x9b4] sm:$0xf0]  ;;  %v7887_v21 = vld [vmem:[%s16156_s1 + $0x988] sm:$0xf]  ;;  %v7568_v2 = vor.u32 %v10156_v46, %v7567_v50  ;;  %v13906_v46 = vpop.f32.mrf.mxu0 }
 0x1db   :  { %5716 = vmatpush.bf16.msra.mxu3 %v7936_v32  ;;  %v7776_v32 = vor.u32 %v10208_v48, %v7775_v59  ;;  %v10236_v1 = vld [vmem:[%s16156_s1 + $0x994] sm:$0xf0]  ;;  %v5418_v59 = vadd.f32 %v5417_v51, %v13757_v28  ;;  %v7440_v48 = vor.u32 %v10124_v3, %v7439_v16  ;;  %v7743_v28 = vld [vmem:[%s16156_s1 + $0x868] sm:$0xf]  ;;  %16188 = vst [vmem:[#allocation27_spill] sm:$0xff] %v13906_v46 }
 0x1dc   :  { %5679 = vmatpush.bf16.msra.mxu0 %v7472_v5  ;;  %v7904_v5 = vor.u32 %v10240_v12, %v7903_v4  ;;  %v10280_v25 = vld [vmem:[%s16156_s1 + $0xaf4] sm:$0xf0]  ;;  %v8191_v4 = vld [vmem:[%s16156_s1 + $0xbe8] sm:$0xf]  ;;  %v7888_v49 = vor.u32 %v10236_v1, %v7887_v21 }
 0x1dd   :  { %5693 = vmatpush.bf16.msra.mxu1 %v7600_v63  ;;  %v7759_v63 = vld [vmem:[%s16156_s1 + $0x888] sm:$0xf]  ;;  %v10312_v12 = vld [vmem:[%s16156_s1 + $0xbf4] sm:$0xf0] }
 0x1de   :  { %5703 = vmatpush.bf16.msra.mxu2 %v7792_v24  ;;  %v10204_v24 = vld [vmem:[%s16156_s1 + $0x894] sm:$0xf0]  ;;  %v7871_v16 = vld [vmem:[%s16156_s1 + $0x968] sm:$0xf]  ;;  %v8192_v3 = vor.u32 %v10312_v12, %v8191_v4  ;;  %v5431_v51 = vpop.f32.mrf.mxu2 }
 0x1df   :  { %5717 = vmatpush.bf16.msra.mxu3 %v7920_v20  ;;  %v8063_v20 = vld [vmem:[%s16156_s1 + $0xae8] sm:$0xf]  ;;  %v7760_v15 = vor.u32 %v10204_v24, %v7759_v63  ;;  %v10276_v50 = vld [vmem:[%s16156_s1 + $0xad4] sm:$0xf0] }
 0x1e0   :  { %5680 = vmatpush.bf16.msra.mxu0 %v7456_v45  ;;  %v8064_v39 = vor.u32 %v10280_v25, %v8063_v20  ;;  %v10200_v45 = vld [vmem:[%s16156_s1 + $0x874] sm:$0xf0]  ;;  %v5445_v20 = vpop.f32.mrf.mxu3  ;;  %v7727_v25 = vld [vmem:[%s16156_s1 + $0x848] sm:$0xf] }
 0x1e1   :  { %5694 = vmatpush.bf16.msra.mxu1 %v7584_v57  ;;  %v10232_v57 = vld [vmem:[%s16156_s1 + $0x974] sm:$0xf0]  ;;  %v7744_v24 = vor.u32 %v10200_v45, %v7743_v28  ;;  %v8031_v4 = vld [vmem:[%s16156_s1 + $0xaa8] sm:$0xf] }
 0x1e2   :  { %5704 = vmatpush.bf16.msra.mxu2 %v7776_v32  ;;  %v8047_v32 = vld [vmem:[%s16156_s1 + $0xac8] sm:$0xf]  ;;  %v10308_v63 = vld [vmem:[%s16156_s1 + $0xbd4] sm:$0xf0]  ;;  %v7872_v21 = vor.u32 %v10232_v57, %v7871_v16 }
 0x1e3   :  { %5718 = vmatpush.bf16.msra.mxu3 %v7904_v5  ;;  %v8175_v5 = vld [vmem:[%s16156_s1 + $0xbc8] sm:$0xf]  ;;  %v8048_v1 = vor.u32 %v10276_v50, %v8047_v32  ;;  %v10272_v12 = vld [vmem:[%s16156_s1 + $0xab4] sm:$0xf0] }
 0x1e4   :  { %5681 = vmatpush.bf16.msra.mxu0 %v7440_v48  ;;  %v10196_v48 = vld [vmem:[%s16156_s1 + $0x854] sm:$0xf0]  ;;  %v8159_v28 = vld [vmem:[%s16156_s1 + $0xba8] sm:$0xf]  ;;  %v8032_v57 = vor.u32 %v10272_v12, %v8031_v4 }
 0x1e5   :  { %5695 = vmatpush.bf16.msra.mxu1 %v7568_v2  ;;  %v7855_v2 = vld [vmem:[%s16156_s1 + $0x948] sm:$0xf]  ;;  %v7728_v16 = vor.u32 %v10196_v48, %v7727_v25  ;;  %v10192_v50 = vld [vmem:[%s16156_s1 + $0x834] sm:$0xf0] }
 0x1e6   :  { %5705 = vmatpush.bf16.msra.mxu2 %v7760_v15  ;;  %v10228_v15 = vld [vmem:[%s16156_s1 + $0x954] sm:$0xf0]  ;;  %v7711_v32 = vld [vmem:[%s16156_s1 + $0x828] sm:$0xf] }
 0x1e7   :  { %5719 = vmatpush.bf16.msra.mxu3 %v7888_v49  ;;  %5682 = vmatmul.bf16.vlgmr.msra.gmra.mxu0 %v11251_v33  ;;  %v8176_v49 = vor.u32 %v10308_v63, %v8175_v5  ;;  %v7839_v5 = vld [vmem:[%s16156_s1 + $0x928] sm:$0xf]  ;;  %v10300_v25 = vld [vmem:[%s16156_s1 + $0xb94] sm:$0xf0] }
 0x1e8   :  { %5730 = vmatpush.bf16.msrb.mxu0 %v8064_v39  ;;  %v5432_v39 = vadd.f32 %v5431_v51, %v5418_v59  ;;  %5696 = vmatmul.bf16.vlgmr.msra.gmra.mxu1 %v11255_v36  ;;  %v10304_v59 = vld [vmem:[%s16156_s1 + $0xbb4] sm:$0xf0]  ;;  %v7823_v12 = vld [vmem:[%s16156_s1 + $0x908] sm:$0xf] }
 0x1e9   :  { %5744 = vmatpush.bf16.msrb.mxu1 %v8192_v3  ;;  %v7856_v3 = vor.u32 %v10228_v15, %v7855_v2  ;;  %v8160_v63 = vor.u32 %v10304_v59, %v8159_v28  ;;  %v10268_v51 = vld [vmem:[%s16156_s1 + $0xa94] sm:$0xf0]  ;;  %v7712_v2 = vor.u32 %v10192_v50, %v7711_v32  ;;  %v8319_v32 = vld [vmem:[%s16156_s1 + $0xce8] sm:$0xf] }
 0x1ea   :  { %5706 = vmatpush.bf16.msra.mxu2 %v7744_v24  ;;  %v5446_v45 = vadd.f32 %v5445_v20, %v5432_v39  ;;  %v10224_v24 = vld [vmem:[%s16156_s1 + $0x934] sm:$0xf0]  ;;  %v8143_v20 = vld [vmem:[%s16156_s1 + $0xb88] sm:$0xf] }
 0x1eb   :  { %5720 = vmatpush.bf16.msra.mxu3 %v7872_v21  ;;  %v8015_v21 = vld [vmem:[%s16156_s1 + $0xa88] sm:$0xf]  ;;  %v10188_v4 = vld [vmem:[%s16156_s1 + $0x814] sm:$0xf0]  ;;  %v8144_v59 = vor.u32 %v10300_v25, %v8143_v20 }
 0x1ec   :  { %5731 = vmatpush.bf16.msrb.mxu0 %v8048_v1  ;;  %v5459_v1 = vpop.f32.mrf.mxu0  ;;  %v7695_v39 = vld [vmem:[%s16156_s1 + $0x808] sm:$0xf]  ;;  %v8016_v15 = vor.u32 %v10268_v51, %v8015_v21  ;;  %v10220_v28 = vld [vmem:[%s16156_s1 + $0x914] sm:$0xf0] }
 0x1ed   :  { %5745 = vmatpush.bf16.msrb.mxu1 %v8176_v49  ;;  %v13964_v48 = vadd.f32 %v5459_v1, %v5446_v45  ;;  %v7840_v49 = vor.u32 %v10224_v24, %v7839_v5  ;;  %v7999_v45 = vld [vmem:[%s16156_s1 + $0xa68] sm:$0xf]  ;;  %v10344_v50 = vld [vmem:[%s16156_s1 + $0xcf4] sm:$0xf0]  ;;  %v7696_v5 = vor.u32 %v10188_v4, %v7695_v39  ;;  %v7824_v21 = vor.u32 %v10220_v28, %v7823_v12  ;;  %v14020_v28 = vpop.f32.mrf.mxu1 }
 0x1ee   :  { %5707 = vmatpush.bf16.msra.mxu2 %v7728_v16  ;;  %v10264_v16 = vld [vmem:[%s16156_s1 + $0xa74] sm:$0xf0]  ;;  %v8320_v20 = vor.u32 %v10344_v50, %v8319_v32  ;;  %v7983_v25 = vld [vmem:[%s16156_s1 + $0xa48] sm:$0xf]  ;;  %16189 = vst [vmem:[#allocation28_spill] sm:$0xff] %v14020_v28 }
 0x1ef   :  { %5721 = vmatpush.bf16.msra.mxu3 %v7856_v3  ;;  %v8127_v3 = vld [vmem:[%s16156_s1 + $0xb68] sm:$0xf]  ;;  %v10376_v24 = vld [vmem:[%s16156_s1 + $0xdf4] sm:$0xf0]  ;;  %v8000_v51 = vor.u32 %v10264_v16, %v7999_v45 }
 0x1f0   :  { %5732 = vmatpush.bf16.msrb.mxu0 %v8032_v57  ;;  %v10296_v57 = vld [vmem:[%s16156_s1 + $0xb74] sm:$0xf0]  ;;  %v8111_v39 = vld [vmem:[%s16156_s1 + $0xb48] sm:$0xf] }
 0x1f1   :  { %5746 = vmatpush.bf16.msrb.mxu1 %v8160_v63  ;;  %v8447_v63 = vld [vmem:[%s16156_s1 + $0xde8] sm:$0xf]  ;;  %v8128_v1 = vor.u32 %v10296_v57, %v8127_v3  ;;  %v10340_v12 = vld [vmem:[%s16156_s1 + $0xcd4] sm:$0xf0] }
 0x1f2   :  { %5708 = vmatpush.bf16.msra.mxu2 %v7712_v2  ;;  %v10260_v2 = vld [vmem:[%s16156_s1 + $0xa54] sm:$0xf0]  ;;  %v8448_v4 = vor.u32 %v10376_v24, %v8447_v63  ;;  %v7967_v32 = vld [vmem:[%s16156_s1 + $0xa28] sm:$0xf] }
 0x1f3   :  { %5722 = vmatpush.bf16.msra.mxu3 %v7840_v49  ;;  %v10292_v49 = vld [vmem:[%s16156_s1 + $0xb54] sm:$0xf0]  ;;  %v7984_v16 = vor.u32 %v10260_v2, %v7983_v25  ;;  %v7951_v2 = vld [vmem:[%s16156_s1 + $0xa08] sm:$0xf] }
 0x1f4   :  { %5733 = vmatpush.bf16.msrb.mxu0 %v8016_v15  ;;  %v8303_v15 = vld [vmem:[%s16156_s1 + $0xcc8] sm:$0xf]  ;;  %v10372_v45 = vld [vmem:[%s16156_s1 + $0xdd4] sm:$0xf0]  ;;  %v8112_v3 = vor.u32 %v10292_v49, %v8111_v39 }
 0x1f5   :  { %5747 = vmatpush.bf16.msrb.mxu1 %v8144_v59  ;;  %v8431_v59 = vld [vmem:[%s16156_s1 + $0xdc8] sm:$0xf]  ;;  %v8304_v57 = vor.u32 %v10340_v12, %v8303_v15  ;;  %v10256_v50 = vld [vmem:[%s16156_s1 + $0xa34] sm:$0xf0] }
 0x1f6   :  { %5709 = vmatpush.bf16.msra.mxu2 %v7696_v5  ;;  %v8095_v5 = vld [vmem:[%s16156_s1 + $0xb28] sm:$0xf]  ;;  %v8432_v63 = vor.u32 %v10372_v45, %v8431_v59  ;;  %v10288_v24 = vld [vmem:[%s16156_s1 + $0xb34] sm:$0xf0]  ;;  %v7968_v25 = vor.u32 %v10256_v50, %v7967_v32  ;;  %v14066_v59 = vpop.f32.mrf.mxu2  ;;  %v14068_v45 = vpop.f32.mrf.mxu3 }
 0x1f7   :  { %5723 = vmatpush.bf16.msra.mxu3 %v7824_v21  ;;  %v8287_v21 = vld [vmem:[%s16156_s1 + $0xca8] sm:$0xf]  ;;  %v8096_v39 = vor.u32 %v10288_v24, %v8095_v5  ;;  %v10252_v49 = vld [vmem:[%s16156_s1 + $0xa14] sm:$0xf0]  ;;  %16190 = vst [vmem:[#allocation29_spill] sm:$0xff] %v14066_v59  ;;  %v5473_v50 = vpop.f32.mrf.mxu1 }
 0x1f8   :  { %5734 = vmatpush.bf16.msrb.mxu0 %v8000_v51  ;;  %v10336_v51 = vld [vmem:[%s16156_s1 + $0xcb4] sm:$0xf0]  ;;  %v8079_v15 = vld [vmem:[%s16156_s1 + $0xb08] sm:$0xf]  ;;  %16191 = vst [vmem:[#allocation30_spill] sm:$0xff] %v14068_v45 }
 0x1f9   :  { %5748 = vmatpush.bf16.msrb.mxu1 %v8128_v1  ;;  %5710 = vmatmul.bf16.vlgmr.msra.gmra.mxu2 %v11471_v22  ;;  %v8415_v1 = vld [vmem:[%s16156_s1 + $0xda8] sm:$0xf]  ;;  %v10284_v12 = vld [vmem:[%s16156_s1 + $0xb14] sm:$0xf0] }
 0x1fa   :  { %5758 = vmatpush.bf16.msrb.mxu2 %v8320_v20  ;;  %5724 = vmatmul.bf16.vlgmr.msra.gmra.mxu3 %v11481_v27  ;;  %v10368_v20 = vld [vmem:[%s16156_s1 + $0xdb4] sm:$0xf0]  ;;  %v8399_v32 = vld [vmem:[%s16156_s1 + $0xd88] sm:$0xf]  ;;  %v8080_v45 = vor.u32 %v10284_v12, %v8079_v15  ;;  %v14113_v12 = vpop.f32.mrf.mxu0 }
 0x1fb   :  { %5772 = vmatpush.bf16.msrb.mxu3 %v8448_v4  ;;  %v8288_v4 = vor.u32 %v10336_v51, %v8287_v21  ;;  %v10364_v5 = vld [vmem:[%s16156_s1 + $0xd94] sm:$0xf0]  ;;  %v5474_v21 = vadd.f32 %v5473_v50, %v13964_v48  ;;  %v7952_v51 = vor.u32 %v10252_v49, %v7951_v2  ;;  %v8255_v48 = vld [vmem:[%s16156_s1 + $0xc68] sm:$0xf]  ;;  %16192 = vst [vmem:[#allocation31_spill] sm:$0xff] %v14113_v12 }
 0x1fc   :  { %5735 = vmatpush.bf16.msrb.mxu0 %v7984_v16  ;;  %v8416_v16 = vor.u32 %v10368_v20, %v8415_v1  ;;  %v10408_v24 = vld [vmem:[%s16156_s1 + $0xef4] sm:$0xf0]  ;;  %v8703_v1 = vld [vmem:[%s16156_s1 + $0xfe8] sm:$0xf]  ;;  %v8400_v28 = vor.u32 %v10364_v5, %v8399_v32 }
 0x1fd   :  { %5749 = vmatpush.bf16.msrb.mxu1 %v8112_v3  ;;  %v8271_v3 = vld [vmem:[%s16156_s1 + $0xc88] sm:$0xf]  ;;  %v10440_v20 = vld [vmem:[%s16156_s1 + $0xff4] sm:$0xf0] }
 0x1fe   :  { %5759 = vmatpush.bf16.msrb.mxu2 %v8304_v57  ;;  %v10332_v57 = vld [vmem:[%s16156_s1 + $0xc94] sm:$0xf0]  ;;  %v8383_v2 = vld [vmem:[%s16156_s1 + $0xd68] sm:$0xf]  ;;  %v8704_v49 = vor.u32 %v10440_v20, %v8703_v1  ;;  %v5487_v50 = vpop.f32.mrf.mxu2 }
 0x1ff   :  { %5773 = vmatpush.bf16.msrb.mxu3 %v8432_v63  ;;  %v8575_v63 = vld [vmem:[%s16156_s1 + $0xee8] sm:$0xf]  ;;  %v8272_v59 = vor.u32 %v10332_v57, %v8271_v3  ;;  %v10404_v15 = vld [vmem:[%s16156_s1 + $0xed4] sm:$0xf0] }
 0x200   :  { %5736 = vmatpush.bf16.msrb.mxu0 %v7968_v25  ;;  %v8576_v46 = vor.u32 %v10408_v24, %v8575_v63  ;;  %v10328_v25 = vld [vmem:[%s16156_s1 + $0xc74] sm:$0xf0]  ;;  %v5501_v63 = vpop.f32.mrf.mxu3  ;;  %v8239_v24 = vld [vmem:[%s16156_s1 + $0xc48] sm:$0xf] }
 0x201   :  { %5750 = vmatpush.bf16.msrb.mxu1 %v8096_v39  ;;  %v10360_v39 = vld [vmem:[%s16156_s1 + $0xd74] sm:$0xf0]  ;;  %v8256_v57 = vor.u32 %v10328_v25, %v8255_v48  ;;  %v8543_v1 = vld [vmem:[%s16156_s1 + $0xea8] sm:$0xf] }
 0x202   :  { %5760 = vmatpush.bf16.msrb.mxu2 %v8288_v4  ;;  %v8559_v4 = vld [vmem:[%s16156_s1 + $0xec8] sm:$0xf]  ;;  %v10436_v3 = vld [vmem:[%s16156_s1 + $0xfd4] sm:$0xf0]  ;;  %v8384_v32 = vor.u32 %v10360_v39, %v8383_v2 }
 0x203   :  { %5774 = vmatpush.bf16.msrb.mxu3 %v8416_v16  ;;  %v8687_v16 = vld [vmem:[%s16156_s1 + $0xfc8] sm:$0xf]  ;;  %v8560_v5 = vor.u32 %v10404_v15, %v8559_v4  ;;  %v10400_v20 = vld [vmem:[%s16156_s1 + $0xeb4] sm:$0xf0] }
 0x204   :  { %5737 = vmatpush.bf16.msrb.mxu0 %v7952_v51  ;;  %v10324_v51 = vld [vmem:[%s16156_s1 + $0xc54] sm:$0xf0]  ;;  %v8671_v48 = vld [vmem:[%s16156_s1 + $0xfa8] sm:$0xf]  ;;  %v8544_v39 = vor.u32 %v10400_v20, %v8543_v1 }
 0x205   :  { %5751 = vmatpush.bf16.msrb.mxu1 %v8080_v45  ;;  %v8367_v45 = vld [vmem:[%s16156_s1 + $0xd48] sm:$0xf]  ;;  %v8240_v2 = vor.u32 %v10324_v51, %v8239_v24  ;;  %v10320_v15 = vld [vmem:[%s16156_s1 + $0xc34] sm:$0xf0] }
 0x206   :  { %5761 = vmatpush.bf16.msrb.mxu2 %v8272_v59  ;;  %v10356_v59 = vld [vmem:[%s16156_s1 + $0xd54] sm:$0xf0]  ;;  %v8223_v4 = vld [vmem:[%s16156_s1 + $0xc28] sm:$0xf] }
 0x207   :  { %5775 = vmatpush.bf16.msrb.mxu3 %v8400_v28  ;;  %5738 = vmatmul.bf16.vlgmr.msrb.gmra.mxu0 %v11479_v26  ;;  %v8688_v28 = vor.u32 %v10436_v3, %v8687_v16  ;;  %v8351_v16 = vld [vmem:[%s16156_s1 + $0xd28] sm:$0xf]  ;;  %v10428_v24 = vld [vmem:[%s16156_s1 + $0xf94] sm:$0xf0] }
 0x208   :  { %5786 = vmatpush.bf16.msra.mxu0 %v8576_v46  ;;  %v5488_v46 = vadd.f32 %v5487_v50, %v5474_v21  ;;  %5752 = vmatmul.bf16.vlgmr.msrb.gmra.mxu1 %v11486_v30  ;;  %v10432_v21 = vld [vmem:[%s16156_s1 + $0xfb4] sm:$0xf0]  ;;  %v8335_v20 = vld [vmem:[%s16156_s1 + $0xd08] sm:$0xf] }
 0x209   :  { %5800 = vmatpush.bf16.msra.mxu1 %v8704_v49  ;;  %v8368_v49 = vor.u32 %v10356_v59, %v8367_v45  ;;  %v8672_v3 = vor.u32 %v10432_v21, %v8671_v48  ;;  %v10396_v50 = vld [vmem:[%s16156_s1 + $0xe94] sm:$0xf0]  ;;  %v8224_v45 = vor.u32 %v10320_v15, %v8223_v4  ;;  %v8831_v4 = vld [vmem:[%s16156_s1 + $0x10e8] sm:$0xf] }
 0x20a   :  { %5762 = vmatpush.bf16.msrb.mxu2 %v8256_v57  ;;  %v5502_v25 = vadd.f32 %v5501_v63, %v5488_v46  ;;  %v10352_v57 = vld [vmem:[%s16156_s1 + $0xd34] sm:$0xf0]  ;;  %v8655_v63 = vld [vmem:[%s16156_s1 + $0xf88] sm:$0xf] }
 0x20b   :  { %5776 = vmatpush.bf16.msrb.mxu3 %v8384_v32  ;;  %v8527_v32 = vld [vmem:[%s16156_s1 + $0xe88] sm:$0xf]  ;;  %v10316_v1 = vld [vmem:[%s16156_s1 + $0xc14] sm:$0xf0]  ;;  %v8656_v21 = vor.u32 %v10428_v24, %v8655_v63 }
 0x20c   :  { %5787 = vmatpush.bf16.msra.mxu0 %v8560_v5  ;;  %v5515_v5 = vpop.f32.mrf.mxu0  ;;  %v8207_v46 = vld [vmem:[%s16156_s1 + $0xc08] sm:$0xf]  ;;  %v8528_v59 = vor.u32 %v10396_v50, %v8527_v32  ;;  %v10348_v48 = vld [vmem:[%s16156_s1 + $0xd14] sm:$0xf0] }
 0x20d   :  { %5801 = vmatpush.bf16.msra.mxu1 %v8688_v28  ;;  %v14171_v51 = vadd.f32 %v5515_v5, %v5502_v25  ;;  %v8352_v28 = vor.u32 %v10352_v57, %v8351_v16  ;;  %v8511_v25 = vld [vmem:[%s16156_s1 + $0xe68] sm:$0xf]  ;;  %v10472_v15 = vld [vmem:[%s16156_s1 + $0x10f4] sm:$0xf0]  ;;  %v8208_v16 = vor.u32 %v10316_v1, %v8207_v46  ;;  %v8336_v32 = vor.u32 %v10348_v48, %v8335_v20  ;;  %v14227_v48 = vpop.f32.mrf.mxu1 }
 0x20e   :  { %5763 = vmatpush.bf16.msrb.mxu2 %v8240_v2  ;;  %v10392_v2 = vld [vmem:[%s16156_s1 + $0xe74] sm:$0xf0]  ;;  %v8832_v63 = vor.u32 %v10472_v15, %v8831_v4  ;;  %v8495_v24 = vld [vmem:[%s16156_s1 + $0xe48] sm:$0xf]  ;;  %16193 = vst [vmem:[#allocation32_spill] sm:$0xff] %v14227_v48 }
 0x20f   :  { %5777 = vmatpush.bf16.msrb.mxu3 %v8368_v49  ;;  %v8639_v49 = vld [vmem:[%s16156_s1 + $0xf68] sm:$0xf]  ;;  %v10504_v57 = vld [vmem:[%s16156_s1 + $0x11f4] sm:$0xf0]  ;;  %v8512_v50 = vor.u32 %v10392_v2, %v8511_v25 }
 0x210   :  { %5788 = vmatpush.bf16.msra.mxu0 %v8544_v39  ;;  %v10424_v39 = vld [vmem:[%s16156_s1 + $0xf74] sm:$0xf0]  ;;  %v8623_v46 = vld [vmem:[%s16156_s1 + $0xf48] sm:$0xf] }
 0x211   :  { %5802 = vmatpush.bf16.msra.mxu1 %v8672_v3  ;;  %v8959_v3 = vld [vmem:[%s16156_s1 + $0x11e8] sm:$0xf]  ;;  %v8640_v5 = vor.u32 %v10424_v39, %v8639_v49  ;;  %v10468_v20 = vld [vmem:[%s16156_s1 + $0x10d4] sm:$0xf0] }
 0x212   :  { %5764 = vmatpush.bf16.msrb.mxu2 %v8224_v45  ;;  %v10388_v45 = vld [vmem:[%s16156_s1 + $0xe54] sm:$0xf0]  ;;  %v8960_v1 = vor.u32 %v10504_v57, %v8959_v3  ;;  %v8479_v4 = vld [vmem:[%s16156_s1 + $0xe28] sm:$0xf] }
 0x213   :  { %5778 = vmatpush.bf16.msrb.mxu3 %v8352_v28  ;;  %v10420_v28 = vld [vmem:[%s16156_s1 + $0xf54] sm:$0xf0]  ;;  %v8496_v2 = vor.u32 %v10388_v45, %v8495_v24  ;;  %v8463_v45 = vld [vmem:[%s16156_s1 + $0xe08] sm:$0xf] }
 0x214   :  { %5789 = vmatpush.bf16.msra.mxu0 %v8528_v59  ;;  %v8815_v59 = vld [vmem:[%s16156_s1 + $0x10c8] sm:$0xf]  ;;  %v10500_v25 = vld [vmem:[%s16156_s1 + $0x11d4] sm:$0xf0]  ;;  %v8624_v49 = vor.u32 %v10420_v28, %v8623_v46 }
 0x215   :  { %5803 = vmatpush.bf16.msra.mxu1 %v8656_v21  ;;  %v8943_v21 = vld [vmem:[%s16156_s1 + $0x11c8] sm:$0xf]  ;;  %v8816_v39 = vor.u32 %v10468_v20, %v8815_v59  ;;  %v10384_v15 = vld [vmem:[%s16156_s1 + $0xe34] sm:$0xf0] }
 0x216   :  { %5765 = vmatpush.bf16.msrb.mxu2 %v8208_v16  ;;  %v8607_v16 = vld [vmem:[%s16156_s1 + $0xf28] sm:$0xf]  ;;  %v8944_v3 = vor.u32 %v10500_v25, %v8943_v21  ;;  %v10416_v57 = vld [vmem:[%s16156_s1 + $0xf34] sm:$0xf0]  ;;  %v8480_v24 = vor.u32 %v10384_v15, %v8479_v4  ;;  %v14273_v21 = vpop.f32.mrf.mxu2  ;;  %v14275_v25 = vpop.f32.mrf.mxu3 }
 0x217   :  { %5779 = vmatpush.bf16.msrb.mxu3 %v8336_v32  ;;  %v8799_v32 = vld [vmem:[%s16156_s1 + $0x10a8] sm:$0xf]  ;;  %v8608_v46 = vor.u32 %v10416_v57, %v8607_v16  ;;  %v10380_v28 = vld [vmem:[%s16156_s1 + $0xe14] sm:$0xf0]  ;;  %16194 = vst [vmem:[#allocation33_spill] sm:$0xff] %v14273_v21  ;;  %v5529_v15 = vpop.f32.mrf.mxu1 }
 0x218   :  { %5790 = vmatpush.bf16.msra.mxu0 %v8512_v50  ;;  %v10464_v50 = vld [vmem:[%s16156_s1 + $0x10b4] sm:$0xf0]  ;;  %v8591_v59 = vld [vmem:[%s16156_s1 + $0xf08] sm:$0xf]  ;;  %16195 = vst [vmem:[#allocation34_spill] sm:$0xff] %v14275_v25 }
 0x219   :  { %5804 = vmatpush.bf16.msra.mxu1 %v8640_v5  ;;  %5766 = vmatmul.bf16.vlgmr.msrb.gmra.mxu2 %v11660_v8  ;;  %v8927_v5 = vld [vmem:[%s16156_s1 + $0x11a8] sm:$0xf]  ;;  %v10412_v20 = vld [vmem:[%s16156_s1 + $0xf14] sm:$0xf0] }
 0x21a   :  { %5814 = vmatpush.bf16.msra.mxu2 %v8832_v63  ;;  %5780 = vmatmul.bf16.vlgmr.msrb.gmra.mxu3 %v11673_v14  ;;  %v10496_v63 = vld [vmem:[%s16156_s1 + $0x11b4] sm:$0xf0]  ;;  %v8911_v4 = vld [vmem:[%s16156_s1 + $0x1188] sm:$0xf]  ;;  %v8592_v25 = vor.u32 %v10412_v20, %v8591_v59  ;;  %v14320_v20 = vpop.f32.mrf.mxu0 }
 0x21b   :  { %5828 = vmatpush.bf16.msra.mxu3 %v8960_v1  ;;  %v8800_v1 = vor.u32 %v10464_v50, %v8799_v32  ;;  %v10492_v16 = vld [vmem:[%s16156_s1 + $0x1194] sm:$0xf0]  ;;  %v5530_v32 = vadd.f32 %v5529_v15, %v14171_v51  ;;  %v8464_v50 = vor.u32 %v10380_v28, %v8463_v45  ;;  %v8767_v51 = vld [vmem:[%s16156_s1 + $0x1068] sm:$0xf]  ;;  %16196 = vst [vmem:[#allocation35_spill] sm:$0xff] %v14320_v20 }
 0x21c   :  { %5791 = vmatpush.bf16.msra.mxu0 %v8496_v2  ;;  %v8928_v2 = vor.u32 %v10496_v63, %v8927_v5  ;;  %v10536_v57 = vld [vmem:[%s16156_s1 + $0x12f4] sm:$0xf0]  ;;  %v9215_v5 = vld [vmem:[%s16156_s1 + $0x13e8] sm:$0xf]  ;;  %v8912_v48 = vor.u32 %v10492_v16, %v8911_v4 }
 0x21d   :  { %5805 = vmatpush.bf16.msra.mxu1 %v8624_v49  ;;  %v8783_v49 = vld [vmem:[%s16156_s1 + $0x1088] sm:$0xf]  ;;  %v10568_v63 = vld [vmem:[%s16156_s1 + $0x13f4] sm:$0xf0] }
 0x21e   :  { %5815 = vmatpush.bf16.msra.mxu2 %v8816_v39  ;;  %v10460_v39 = vld [vmem:[%s16156_s1 + $0x1094] sm:$0xf0]  ;;  %v8895_v45 = vld [vmem:[%s16156_s1 + $0x1168] sm:$0xf]  ;;  %v9216_v28 = vor.u32 %v10568_v63, %v9215_v5  ;;  %v5543_v15 = vpop.f32.mrf.mxu2 }
 0x21f   :  { %5829 = vmatpush.bf16.msra.mxu3 %v8944_v3  ;;  %v9087_v3 = vld [vmem:[%s16156_s1 + $0x12e8] sm:$0xf]  ;;  %v8784_v21 = vor.u32 %v10460_v39, %v8783_v49  ;;  %v10532_v59 = vld [vmem:[%s16156_s1 + $0x12d4] sm:$0xf0] }
 0x220   :  { %5792 = vmatpush.bf16.msra.mxu0 %v8480_v24  ;;  %v9088_v12 = vor.u32 %v10536_v57, %v9087_v3  ;;  %v10456_v24 = vld [vmem:[%s16156_s1 + $0x1074] sm:$0xf0]  ;;  %v5557_v3 = vpop.f32.mrf.mxu3  ;;  %v8751_v57 = vld [vmem:[%s16156_s1 + $0x1048] sm:$0xf] }
 0x221   :  { %5806 = vmatpush.bf16.msra.mxu1 %v8608_v46  ;;  %v10488_v46 = vld [vmem:[%s16156_s1 + $0x1174] sm:$0xf0]  ;;  %v8768_v39 = vor.u32 %v10456_v24, %v8767_v51  ;;  %v9055_v63 = vld [vmem:[%s16156_s1 + $0x12a8] sm:$0xf] }
 0x222   :  { %5816 = vmatpush.bf16.msra.mxu2 %v8800_v1  ;;  %v9071_v1 = vld [vmem:[%s16156_s1 + $0x12c8] sm:$0xf]  ;;  %v10564_v49 = vld [vmem:[%s16156_s1 + $0x13d4] sm:$0xf0]  ;;  %v8896_v4 = vor.u32 %v10488_v46, %v8895_v45 }
 0x223   :  { %5830 = vmatpush.bf16.msra.mxu3 %v8928_v2  ;;  %v9199_v2 = vld [vmem:[%s16156_s1 + $0x13c8] sm:$0xf]  ;;  %v9072_v16 = vor.u32 %v10532_v59, %v9071_v1  ;;  %v10484_v5 = vld [vmem:[%s16156_s1 + $0x1154] sm:$0xf0] }
 0x224   :  { %5793 = vmatpush.bf16.msra.mxu0 %v8464_v50  ;;  %v10452_v50 = vld [vmem:[%s16156_s1 + $0x1054] sm:$0xf0]  ;;  %v8735_v59 = vld [vmem:[%s16156_s1 + $0x1028] sm:$0xf] }
 0x225   :  { %5807 = vmatpush.bf16.msra.mxu1 %v8592_v25  ;;  %v8879_v25 = vld [vmem:[%s16156_s1 + $0x1148] sm:$0xf]  ;;  %v10528_v51 = vld [vmem:[%s16156_s1 + $0x12b4] sm:$0xf0] }
 0x226   :  { %5817 = vmatpush.bf16.msra.mxu2 %v8784_v21  ;;  %v14338_v21 = vpop.f32.mrf.mxu1  ;;  %v10560_v24 = vld [vmem:[%s16156_s1 + $0x13b4] sm:$0xf0]  ;;  %v8880_v46 = vor.u32 %v10484_v5, %v8879_v25  ;;  %v9056_v1 = vor.u32 %v10528_v51, %v9055_v63 }
 0x227   :  { %5831 = vmatpush.bf16.msra.mxu3 %v8912_v48  ;;  %5794 = vmatmul.bf16.vlgmr.msra.gmra.mxu0 %v11671_v13  ;;  %v9200_v48 = vor.u32 %v10564_v49, %v9199_v2  ;;  %16197 = vst [vmem:[#allocation36_spill] sm:$0xff] %v14338_v21  ;;  %v10448_v2 = vld [vmem:[%s16156_s1 + $0x1034] sm:$0xf0]  ;;  %v8863_v49 = vld [vmem:[%s16156_s1 + $0x1128] sm:$0xf] }
 0x228   :  { %5842 = vmatpush.bf16.msrb.mxu0 %v9088_v12  ;;  %v5544_v12 = vadd.f32 %v5543_v15, %v5530_v32  ;;  %5808 = vmatmul.bf16.vlgmr.msra.gmra.mxu1 %v11684_v18  ;;  %v9183_v32 = vld [vmem:[%s16156_s1 + $0x13a8] sm:$0xf]  ;;  %v10444_v51 = vld [vmem:[%s16156_s1 + $0x1014] sm:$0xf0] }
 0x229   :  { %5856 = vmatpush.bf16.msrb.mxu1 %v9216_v28  ;;  %v8752_v28 = vor.u32 %v10452_v50, %v8751_v57  ;;  %v9039_v15 = vld [vmem:[%s16156_s1 + $0x1288] sm:$0xf]  ;;  %v10556_v50 = vld [vmem:[%s16156_s1 + $0x1394] sm:$0xf0] }
 0x22a   :  { %5818 = vmatpush.bf16.msra.mxu2 %v8768_v39  ;;  %v5558_v45 = vadd.f32 %v5557_v3, %v5544_v12  ;;  %v9184_v39 = vor.u32 %v10560_v24, %v9183_v32  ;;  %v5571_v3 = vpop.f32.mrf.mxu0  ;;  %v9167_v57 = vld [vmem:[%s16156_s1 + $0x1388] sm:$0xf]  ;;  %v8736_v12 = vor.u32 %v10448_v2, %v8735_v59  ;;  %v10476_v24 = vld [vmem:[%s16156_s1 + $0x1114] sm:$0xf0] }
 0x22b   :  { %5832 = vmatpush.bf16.msra.mxu3 %v8896_v4  ;;  %v10480_v4 = vld [vmem:[%s16156_s1 + $0x1134] sm:$0xf0]  ;;  %v8847_v32 = vld [vmem:[%s16156_s1 + $0x1108] sm:$0xf] }
 0x22c   :  { %5843 = vmatpush.bf16.msrb.mxu0 %v9072_v16  ;;  %v10524_v16 = vld [vmem:[%s16156_s1 + $0x1294] sm:$0xf0]  ;;  %v5572_v25 = vadd.f32 %v5571_v3, %v5558_v45  ;;  %v8864_v5 = vor.u32 %v10480_v4, %v8863_v49  ;;  %v9168_v45 = vor.u32 %v10556_v50, %v9167_v57  ;;  %v9343_v2 = vld [vmem:[%s16156_s1 + $0x14e8] sm:$0xf]  ;;  %v8848_v57 = vor.u32 %v10476_v24, %v8847_v32 }
 0x22d   :  { %5857 = vmatpush.bf16.msrb.mxu1 %v9200_v48  ;;  %v8719_v48 = vld [vmem:[%s16156_s1 + $0x1008] sm:$0xf]  ;;  %v9040_v63 = vor.u32 %v10524_v16, %v9039_v15  ;;  %v10552_v59 = vld [vmem:[%s16156_s1 + $0x1374] sm:$0xf0] }
 0x22e   :  { %5819 = vmatpush.bf16.msra.mxu2 %v8752_v28  ;;  %v9023_v28 = vld [vmem:[%s16156_s1 + $0x1268] sm:$0xf]  ;;  %v10600_v49 = vld [vmem:[%s16156_s1 + $0x14f4] sm:$0xf0]  ;;  %v8720_v4 = vor.u32 %v10444_v51, %v8719_v48 }
 0x22f   :  { %5833 = vmatpush.bf16.msra.mxu3 %v8880_v46  ;;  %v10520_v46 = vld [vmem:[%s16156_s1 + $0x1274] sm:$0xf0]  ;;  %v9471_v15 = vld [vmem:[%s16156_s1 + $0x15e8] sm:$0xf]  ;;  %v9344_v20 = vor.u32 %v10600_v49, %v9343_v2 }
 0x230   :  { %5844 = vmatpush.bf16.msrb.mxu0 %v9056_v1  ;;  %v9151_v1 = vld [vmem:[%s16156_s1 + $0x1368] sm:$0xf]  ;;  %v10632_v16 = vld [vmem:[%s16156_s1 + $0x15f4] sm:$0xf0]  ;;  %v9024_v50 = vor.u32 %v10520_v46, %v9023_v28 }
 0x231   :  { %5858 = vmatpush.bf16.msrb.mxu1 %v9184_v39  ;;  %v5585_v39 = vpop.f32.mrf.mxu1  ;;  %v9152_v21 = vor.u32 %v10552_v59, %v9151_v1  ;;  %v10516_v48 = vld [vmem:[%s16156_s1 + $0x1254] sm:$0xf0]  ;;  %v9327_v51 = vld [vmem:[%s16156_s1 + $0x14c8] sm:$0xf] }
 0x232   :  { %5820 = vmatpush.bf16.msra.mxu2 %v8736_v12  ;;  %v14416_v3 = vadd.f32 %v5585_v39, %v5572_v25  ;;  %v9007_v12 = vld [vmem:[%s16156_s1 + $0x1248] sm:$0xf]  ;;  %v10548_v25 = vld [vmem:[%s16156_s1 + $0x1354] sm:$0xf0] }
 0x233   :  { %5834 = vmatpush.bf16.msra.mxu3 %v8864_v5  ;;  %v9135_v5 = vld [vmem:[%s16156_s1 + $0x1348] sm:$0xf]  ;;  %v10596_v32 = vld [vmem:[%s16156_s1 + $0x14d4] sm:$0xf0]  ;;  %v9008_v28 = vor.u32 %v10516_v48, %v9007_v12 }
 0x234   :  { %5845 = vmatpush.bf16.msrb.mxu0 %v9040_v63  ;;  %16198 = vst [vmem:[#allocation37_spill] sm:$0xff] %v14416_v3  ;;  %v9472_v63 = vor.u32 %v10632_v16, %v9471_v15  ;;  %v9455_v24 = vld [vmem:[%s16156_s1 + $0x15c8] sm:$0xf]  ;;  %v9136_v46 = vor.u32 %v10548_v25, %v9135_v5  ;;  %v9328_v1 = vor.u32 %v10596_v32, %v9327_v51  ;;  %v10512_v2 = vld [vmem:[%s16156_s1 + $0x1234] sm:$0xf0] }
 0x235   :  { %5859 = vmatpush.bf16.msrb.mxu1 %v9168_v45  ;;  %v10628_v45 = vld [vmem:[%s16156_s1 + $0x15d4] sm:$0xf0]  ;;  %v8991_v59 = vld [vmem:[%s16156_s1 + $0x1228] sm:$0xf] }
 0x236   :  { %5821 = vmatpush.bf16.msra.mxu2 %v8720_v4  ;;  %v9119_v49 = vld [vmem:[%s16156_s1 + $0x1328] sm:$0xf]  ;;  %v9456_v39 = vor.u32 %v10628_v45, %v9455_v24  ;;  %v10592_v4 = vld [vmem:[%s16156_s1 + $0x14b4] sm:$0xf0] }
 0x237   :  { %5835 = vmatpush.bf16.msra.mxu3 %v8848_v57  ;;  %v9439_v15 = vld [vmem:[%s16156_s1 + $0x15a8] sm:$0xf]  ;;  %v10624_v16 = vld [vmem:[%s16156_s1 + $0x15b4] sm:$0xf0]  ;;  %v8992_v57 = vor.u32 %v10512_v2, %v8991_v59 }
 0x238   :  { %5846 = vmatpush.bf16.msrb.mxu0 %v9024_v50  ;;  %v8975_v50 = vld [vmem:[%s16156_s1 + $0x1208] sm:$0xf]  ;;  %v10508_v5 = vld [vmem:[%s16156_s1 + $0x1214] sm:$0xf0]  ;;  %v9440_v51 = vor.u32 %v10624_v16, %v9439_v15 }
 0x239   :  { %5860 = vmatpush.bf16.msrb.mxu1 %v9152_v21  ;;  %5822 = vmatmul.bf16.vlgmr.msra.gmra.mxu2 %v11903_v31  ;;  %v9311_v21 = vld [vmem:[%s16156_s1 + $0x14a8] sm:$0xf]  ;;  %v10540_v25 = vld [vmem:[%s16156_s1 + $0x1314] sm:$0xf0]  ;;  %v8976_v59 = vor.u32 %v10508_v5, %v8975_v50 }
 0x23a   :  { %5870 = vmatpush.bf16.msrb.mxu2 %v9344_v20  ;;  %v10544_v20 = vld [vmem:[%s16156_s1 + $0x1334] sm:$0xf0]  ;;  %5836 = vmatmul.bf16.vlgmr.msra.gmra.mxu3 %v11913_v38  ;;  %v9312_v48 = vor.u32 %v10592_v4, %v9311_v21  ;;  %v9295_v32 = vld [vmem:[%s16156_s1 + $0x1488] sm:$0xf] }
 0x23b   :  { %5884 = vmatpush.bf16.msrb.mxu3 %v9472_v63  ;;  %v9120_v12 = vor.u32 %v10544_v20, %v9119_v49  ;;  %v9103_v63 = vld [vmem:[%s16156_s1 + $0x1308] sm:$0xf]  ;;  %v10588_v24 = vld [vmem:[%s16156_s1 + $0x1494] sm:$0xf0] }
 0x23c   :  { %5847 = vmatpush.bf16.msrb.mxu0 %v9008_v28  ;;  %v9423_v45 = vld [vmem:[%s16156_s1 + $0x1588] sm:$0xf]  ;;  %v10620_v28 = vld [vmem:[%s16156_s1 + $0x1594] sm:$0xf0]  ;;  %v9296_v20 = vor.u32 %v10588_v24, %v9295_v32 }
 0x23d   :  { %5861 = vmatpush.bf16.msrb.mxu1 %v9136_v46  ;;  %v9599_v46 = vld [vmem:[%s16156_s1 + $0x16e8] sm:$0xf]  ;;  %v10696_v49 = vld [vmem:[%s16156_s1 + $0x17f4] sm:$0xf0]  ;;  %v9424_v21 = vor.u32 %v10620_v28, %v9423_v45 }
 0x23e   :  { %5871 = vmatpush.bf16.msrb.mxu2 %v9328_v1  ;;  %v10664_v1 = vld [vmem:[%s16156_s1 + $0x16f4] sm:$0xf0]  ;;  %v9727_v2 = vld [vmem:[%s16156_s1 + $0x17e8] sm:$0xf] }
 0x23f   :  { %5885 = vmatpush.bf16.msrb.mxu3 %v9456_v39  ;;  %v9104_v39 = vor.u32 %v10540_v25, %v9103_v63  ;;  %v9600_v4 = vor.u32 %v10664_v1, %v9599_v46  ;;  %v9279_v15 = vld [vmem:[%s16156_s1 + $0x1468] sm:$0xf]  ;;  %v10584_v16 = vld [vmem:[%s16156_s1 + $0x1474] sm:$0xf0]  ;;  %v9728_v50 = vor.u32 %v10696_v49, %v9727_v2 }
 0x240   :  { %5848 = vmatpush.bf16.msrb.mxu0 %v8992_v57  ;;  %v9407_v57 = vld [vmem:[%s16156_s1 + $0x1568] sm:$0xf]  ;;  %v10660_v5 = vld [vmem:[%s16156_s1 + $0x16d4] sm:$0xf0] }
 0x241   :  { %5862 = vmatpush.bf16.msrb.mxu1 %v9120_v12  ;;  %v10616_v12 = vld [vmem:[%s16156_s1 + $0x1574] sm:$0xf0]  ;;  %v9711_v63 = vld [vmem:[%s16156_s1 + $0x17c8] sm:$0xf] }
 0x242   :  { %5872 = vmatpush.bf16.msrb.mxu2 %v9312_v48  ;;  %v9583_v48 = vld [vmem:[%s16156_s1 + $0x16c8] sm:$0xf]  ;;  %v10692_v25 = vld [vmem:[%s16156_s1 + $0x17d4] sm:$0xf0]  ;;  %v9408_v32 = vor.u32 %v10616_v12, %v9407_v57 }
 0x243   :  { %5886 = vmatpush.bf16.msrb.mxu3 %v9440_v51  ;;  %v9280_v51 = vor.u32 %v10584_v16, %v9279_v15  ;;  %v9584_v24 = vor.u32 %v10660_v5, %v9583_v48  ;;  %v9263_v45 = vld [vmem:[%s16156_s1 + $0x1448] sm:$0xf]  ;;  %v10580_v28 = vld [vmem:[%s16156_s1 + $0x1454] sm:$0xf0]  ;;  %v9712_v1 = vor.u32 %v10692_v25, %v9711_v63 }
 0x244   :  { %5849 = vmatpush.bf16.msrb.mxu0 %v8976_v59  ;;  %v9391_v46 = vld [vmem:[%s16156_s1 + $0x1548] sm:$0xf]  ;;  %v10612_v59 = vld [vmem:[%s16156_s1 + $0x1554] sm:$0xf0] }
 0x245   :  { %5863 = vmatpush.bf16.msrb.mxu1 %v9104_v39  ;;  %v9567_v2 = vld [vmem:[%s16156_s1 + $0x16a8] sm:$0xf]  ;;  %v10656_v49 = vld [vmem:[%s16156_s1 + $0x16b4] sm:$0xf0] }
 0x246   :  { %5873 = vmatpush.bf16.msrb.mxu2 %v9296_v20  ;;  %v9695_v39 = vld [vmem:[%s16156_s1 + $0x17a8] sm:$0xf]  ;;  %v10688_v20 = vld [vmem:[%s16156_s1 + $0x17b4] sm:$0xf0]  ;;  %v9568_v15 = vor.u32 %v10656_v49, %v9567_v2 }
 0x247   :  { %5887 = vmatpush.bf16.msrb.mxu3 %v9424_v21  ;;  %5850 = vmatmul.bf16.vlgmr.msrb.gmra.mxu0 %v11911_v37  ;;  %v9264_v21 = vor.u32 %v10580_v28, %v9263_v45  ;;  %v9247_v16 = vld [vmem:[%s16156_s1 + $0x1428] sm:$0xf]  ;;  %v10576_v57 = vld [vmem:[%s16156_s1 + $0x1434] sm:$0xf0]  ;;  %v9696_v12 = vor.u32 %v10688_v20, %v9695_v39 }
 0x248   :  { %5898 = vmatpush.bf16.msra.mxu0 %v9600_v4  ;;  %5864 = vmatmul.bf16.vlgmr.msrb.gmra.mxu1 %v11918_v43  ;;  %v9392_v4 = vor.u32 %v10612_v59, %v9391_v46  ;;  %v10608_v48 = vld [vmem:[%s16156_s1 + $0x1534] sm:$0xf0]  ;;  %v9551_v5 = vld [vmem:[%s16156_s1 + $0x1688] sm:$0xf] }
 0x249   :  { %5912 = vmatpush.bf16.msra.mxu1 %v9728_v50  ;;  %v9375_v50 = vld [vmem:[%s16156_s1 + $0x1528] sm:$0xf]  ;;  %v10652_v63 = vld [vmem:[%s16156_s1 + $0x1694] sm:$0xf0] }
 0x24a   :  { %5874 = vmatpush.bf16.msrb.mxu2 %v9280_v51  ;;  %v9679_v25 = vld [vmem:[%s16156_s1 + $0x1788] sm:$0xf]  ;;  %v10684_v51 = vld [vmem:[%s16156_s1 + $0x1794] sm:$0xf0]  ;;  %v9376_v45 = vor.u32 %v10608_v48, %v9375_v50  ;;  %v9552_v28 = vor.u32 %v10652_v63, %v9551_v5  ;;  %v6785_v50 = vld [vmem:[%s16156_s1 + $0xf8] sm:$0xf0] }
 0x24b   :  { %5888 = vmatpush.bf16.msrb.mxu3 %v9408_v32  ;;  %v9248_v32 = vor.u32 %v10576_v57, %v9247_v16  ;;  %v10572_v46 = vld [vmem:[%s16156_s1 + $0x1414] sm:$0xf0]  ;;  %v9680_v2 = vor.u32 %v10684_v51, %v9679_v25  ;;  %v9535_v49 = vld [vmem:[%s16156_s1 + $0x1668] sm:$0xf]  ;;  %v9958_v57 = vld [vmem:[%s16156_s1 + $0xec] sm:$0xf] }
 0x24c   :  { %5899 = vmatpush.bf16.msra.mxu0 %v9584_v24  ;;  %v9231_v24 = vld [vmem:[%s16156_s1 + $0x1408] sm:$0xf]  ;;  %v10604_v59 = vld [vmem:[%s16156_s1 + $0x1514] sm:$0xf0] }
 0x24d   :  { %5913 = vmatpush.bf16.msra.mxu1 %v9712_v1  ;;  %v9359_v1 = vld [vmem:[%s16156_s1 + $0x1508] sm:$0xf]  ;;  %v10648_v39 = vld [vmem:[%s16156_s1 + $0x1674] sm:$0xf0]  ;;  %v9232_v16 = vor.u32 %v10572_v46, %v9231_v24  ;;  %v6788_v24 = vor.u32 %v9958_v57, %v6785_v50 }
 0x24e   :  { %5875 = vmatpush.bf16.msrb.mxu2 %v9264_v21  ;;  %v9663_v20 = vld [vmem:[%s16156_s1 + $0x1768] sm:$0xf]  ;;  %v10680_v21 = vld [vmem:[%s16156_s1 + $0x1774] sm:$0xf0]  ;;  %v9536_v48 = vor.u32 %v10648_v39, %v9535_v49 }
 0x24f   :  { %5889 = vmatpush.bf16.msrb.mxu3 %v9392_v4  ;;  %v9791_v4 = vld [vmem:[%s16156_s1 + $0x1868] sm:$0xf]  ;;  %v9664_v5 = vor.u32 %v10680_v21, %v9663_v20  ;;  %v10644_v51 = vld [vmem:[%s16156_s1 + $0x1654] sm:$0xf0] }
 0x250   :  { %5900 = vmatpush.bf16.msra.mxu0 %v9568_v15  ;;  %v10712_v15 = vld [vmem:[%s16156_s1 + $0x1874] sm:$0xf0]  ;;  %v9519_v25 = vld [vmem:[%s16156_s1 + $0x1648] sm:$0xf] }
 0x251   :  { %5914 = vmatpush.bf16.msra.mxu1 %v9696_v12  ;;  %v9360_v12 = vor.u32 %v10604_v59, %v9359_v1  ;;  %v9792_v63 = vor.u32 %v10712_v15, %v9791_v4  ;;  %v10708_v46 = vld [vmem:[%s16156_s1 + $0x1854] sm:$0xf0]  ;;  %v9954_v1 = vld [vmem:[%s16156_s1 + $0xcc] sm:$0xf]  ;;  %v6769_v59 = vld [vmem:[%s16156_s1 + $0xd8] sm:$0xf0] }
 0x252   :  { %5876 = vmatpush.bf16.msrb.mxu2 %v9248_v32  ;;  %v9647_v32 = vld [vmem:[%s16156_s1 + $0x1748] sm:$0xf]  ;;  %v10640_v21 = vld [vmem:[%s16156_s1 + $0x1634] sm:$0xf0]  ;;  %v6772_v15 = vor.u32 %v9954_v1, %v6769_v59  ;;  %v9946_v59 = vld [vmem:[%s16156_s1 + $0x8c] sm:$0xf] }
 0x253   :  { %5890 = vmatpush.bf16.msrb.mxu3 %v9376_v45  ;;  %v10676_v45 = vld [vmem:[%s16156_s1 + $0x1754] sm:$0xf0]  ;;  %v9503_v20 = vld [vmem:[%s16156_s1 + $0x1628] sm:$0xf] }
 0x254   :  { %5901 = vmatpush.bf16.msra.mxu0 %v9552_v28  ;;  %v9775_v28 = vld [vmem:[%s16156_s1 + $0x1848] sm:$0xf]  ;;  %v9648_v49 = vor.u32 %v10676_v45, %v9647_v32  ;;  %v10704_v50 = vld [vmem:[%s16156_s1 + $0x1834] sm:$0xf0] }
 0x255   :  { %5915 = vmatpush.bf16.msra.mxu1 %v9680_v2  ;;  %v9520_v2 = vor.u32 %v10644_v51, %v9519_v25  ;;  %v9776_v39 = vor.u32 %v10708_v46, %v9775_v28  ;;  %v9631_v4 = vld [vmem:[%s16156_s1 + $0x1728] sm:$0xf]  ;;  %v10636_v25 = vld [vmem:[%s16156_s1 + $0x1614] sm:$0xf0] }
 0x256   :  { %5877 = vmatpush.bf16.msrb.mxu2 %v9232_v16  ;;  %v10672_v16 = vld [vmem:[%s16156_s1 + $0x1734] sm:$0xf0]  ;;  %v9759_v57 = vld [vmem:[%s16156_s1 + $0x1828] sm:$0xf] }
 0x257   :  { %5891 = vmatpush.bf16.msrb.mxu3 %v9360_v12  ;;  %v9950_v12 = vld [vmem:[%s16156_s1 + $0xac] sm:$0xf]  ;;  %v9632_v51 = vor.u32 %v10672_v16, %v9631_v4  ;;  %v9760_v32 = vor.u32 %v10704_v50, %v9759_v57  ;;  %v10668_v45 = vld [vmem:[%s16156_s1 + $0x1714] sm:$0xf0]  ;;  %v9743_v28 = vld [vmem:[%s16156_s1 + $0x1808] sm:$0xf] }
 0x258   :  { %5902 = vmatpush.bf16.msra.mxu0 %v9536_v48  ;;  %v6753_v48 = vld [vmem:[%s16156_s1 + $0xb8] sm:$0xf0]  ;;  %v10700_v1 = vld [vmem:[%s16156_s1 + $0x1814] sm:$0xf0] }
 0x259   :  { %5916 = vmatpush.bf16.msra.mxu1 %v9664_v5  ;;  %5878 = vmatmul.bf16.vlgmr.msrb.gmra.mxu2 %v12031_v52  ;;  %v9504_v5 = vor.u32 %v10640_v21, %v9503_v20  ;;  %v6756_v46 = vor.u32 %v9950_v12, %v6753_v48  ;;  %v10022_v20 = vld [vmem:[%s16156_s1 + $0x2ec] sm:$0xf]  ;;  %v7041_v4 = vld [vmem:[%s16156_s1 + $0x2f8] sm:$0xf0]  ;;  %v9744_v50 = vor.u32 %v10700_v1, %v9743_v28 }
 0x25a   :  { %5930 = vmatpush.bf16.msra.mxu2 %v9792_v63  ;;  %5892 = vmatmul.bf16.vlgmr.msrb.gmra.mxu3 %v12051_v61  ;;  %v9487_v63 = vld [vmem:[%s16156_s1 + $0x1608] sm:$0xf]  ;;  %v7169_v16 = vld [vmem:[%s16156_s1 + $0x3f8] sm:$0xf0]  ;;  %v10050_v28 = vld [vmem:[%s16156_s1 + $0x3cc] sm:$0xf] }
 0x25b   :  { %5940 = vmatpush.bf16.msra.mxu3 %v6788_v24  ;;  %v9615_v24 = vld [vmem:[%s16156_s1 + $0x1708] sm:$0xf]  ;;  %v9488_v21 = vor.u32 %v10636_v25, %v9487_v63  ;;  %v6721_v63 = vld [vmem:[%s16156_s1 + $0x78] sm:$0xf0]  ;;  %v7044_v25 = vor.u32 %v10022_v20, %v7041_v4 }
 0x25c   :  { %5903 = vmatpush.bf16.msra.mxu0 %v9520_v2  ;;  %v6737_v2 = vld [vmem:[%s16156_s1 + $0x98] sm:$0xf0]  ;;  %v9616_v57 = vor.u32 %v10668_v45, %v9615_v24  ;;  %v10018_v24 = vld [vmem:[%s16156_s1 + $0x2cc] sm:$0xf] }
 0x25d   :  { %5917 = vmatpush.bf16.msra.mxu1 %v9648_v49  ;;  %v9990_v49 = vld [vmem:[%s16156_s1 + $0x1ec] sm:$0xf]  ;;  %v6740_v12 = vor.u32 %v9946_v59, %v6737_v2  ;;  %v7025_v45 = vld [vmem:[%s16156_s1 + $0x2d8] sm:$0xf0] }
 0x25e   :  { %5931 = vmatpush.bf16.msra.mxu2 %v9776_v39  ;;  %v6913_v39 = vld [vmem:[%s16156_s1 + $0x1f8] sm:$0xf0]  ;;  %v9938_v2 = vld [vmem:[%s16156_s1 + $0x4c] sm:$0xf] }
 0x25f   :  { %5941 = vmatpush.bf16.msra.mxu3 %v6772_v15  ;;  %v10054_v15 = vld [vmem:[%s16156_s1 + $0x3ec] sm:$0xf]  ;;  %v6916_v48 = vor.u32 %v9990_v49, %v6913_v39  ;;  %v6705_v49 = vld [vmem:[%s16156_s1 + $0x58] sm:$0xf0]  ;;  %v7028_v39 = vor.u32 %v10018_v24, %v7025_v45  ;;  %v10748_v45 = vld [vmem:[#allocation1] sm:$0xff] }
 0x260   :  { %5904 = vmatpush.bf16.msra.mxu0 %v9504_v5  ;;  %v9942_v5 = vld [vmem:[%s16156_s1 + $0x6c] sm:$0xf]  ;;  %v7172_v3 = vor.u32 %v10054_v15, %v7169_v16  ;;  %v6881_v4 = vld [vmem:[%s16156_s1 + $0x1b8] sm:$0xf0] }
 0x261   :  { %5918 = vmatpush.bf16.msra.mxu1 %v9632_v51  ;;  %v9986_v51 = vld [vmem:[%s16156_s1 + $0x1cc] sm:$0xf]  ;;  %v6724_v1 = vor.u32 %v9942_v5, %v6721_v63  ;;  %v6689_v5 = vld [vmem:[%s16156_s1 + $0x38] sm:$0xf0] }
 0x262   :  { %5932 = vmatpush.bf16.msra.mxu2 %v9760_v32  ;;  %v6897_v32 = vld [vmem:[%s16156_s1 + $0x1d8] sm:$0xf0]  ;;  %v10014_v15 = vld [vmem:[%s16156_s1 + $0x2ac] sm:$0xf] }
 0x263   :  { %5942 = vmatpush.bf16.msra.mxu3 %v6756_v46  ;;  %v7153_v46 = vld [vmem:[%s16156_s1 + $0x3d8] sm:$0xf0]  ;;  %v6900_v59 = vor.u32 %v9986_v51, %v6897_v32  ;;  %v10046_v16 = vld [vmem:[%s16156_s1 + $0x3ac] sm:$0xf] }
 0x264   :  { %5905 = vmatpush.bf16.msra.mxu0 %v9488_v21  ;;  %v7156_v20 = vor.u32 %v10050_v28, %v7153_v46  ;;  %v9982_v21 = vld [vmem:[%s16156_s1 + $0x1ac] sm:$0xf]  ;;  %v6865_v32 = vld [vmem:[%s16156_s1 + $0x198] sm:$0xf0] }
 0x265   :  { %5919 = vmatpush.bf16.msra.mxu1 %v9616_v57  ;;  %v7137_v57 = vld [vmem:[%s16156_s1 + $0x3b8] sm:$0xf0]  ;;  %v9978_v51 = vld [vmem:[%s16156_s1 + $0x18c] sm:$0xf] }
 0x266   :  { %5933 = vmatpush.bf16.msra.mxu2 %v9744_v50  ;;  %v6708_v50 = vor.u32 %v9938_v2, %v6705_v49  ;;  %v10010_v24 = vld [vmem:[%s16156_s1 + $0x28c] sm:$0xf]  ;;  %v6993_v28 = vld [vmem:[%s16156_s1 + $0x298] sm:$0xf0]  ;;  %v6868_v2 = vor.u32 %v9978_v51, %v6865_v32 }
 0x267   :  { %5943 = vmatpush.bf16.msra.mxu3 %v6740_v12  ;;  %5906 = vmatmul.bf16.vlgmr.msra.gmra.mxu0 %v12033_v53  ;;  %v6884_v12 = vor.u32 %v9982_v21, %v6881_v4  ;;  %v10042_v46 = vld [vmem:[%s16156_s1 + $0x38c] sm:$0xf] }
 0x268   :  { %5954 = vmatpush.bf16.msrb.mxu0 %v6916_v48  ;;  %5920 = vmatmul.bf16.vlgmr.msra.gmra.mxu1 %v12053_v62  ;;  %v9934_v48 = vld [vmem:[%s16156_s1 + $0x2c] sm:$0xf] }
 0x269   :  { %5968 = vmatpush.bf16.msrb.mxu1 %v7044_v25  ;;  %v7140_v25 = vor.u32 %v10046_v16, %v7137_v57  ;;  %9799 = vmatmul.msk.bf16.vlgmr.msra.gmra.mxu2 %vm4887_vm0, %v10748_v45  ;;  %v9930_v49 = vld [vmem:[%s16156_s1 + $0xc] sm:$0xf]  ;;  %v6977_v16 = vld [vmem:[%s16156_s1 + $0x278] sm:$0xf0] }
 0x26a   :  { %5982 = vmatpush.bf16.msrb.mxu2 %v7172_v3  ;;  %v7009_v3 = vld [vmem:[%s16156_s1 + $0x2b8] sm:$0xf0]  ;;  %v9974_v4 = vld [vmem:[%s16156_s1 + $0x16c] sm:$0xf] }
 0x26b   :  { %5944 = vmatpush.bf16.msra.mxu3 %v6724_v1  ;;  %v7012_v63 = vor.u32 %v10014_v15, %v7009_v3  ;;  %v7121_v1 = vld [vmem:[%s16156_s1 + $0x398] sm:$0xf0]  ;;  %v10006_v3 = vld [vmem:[%s16156_s1 + $0x26c] sm:$0xf] }
 0x26c   :  { %5955 = vmatpush.bf16.msrb.mxu0 %v6900_v59  ;;  %v6692_v59 = vor.u32 %v9934_v48, %v6689_v5  ;;  %v7124_v21 = vor.u32 %v10042_v46, %v7121_v1  ;;  %v6849_v15 = vld [vmem:[%s16156_s1 + $0x178] sm:$0xf0]  ;;  %v10038_v57 = vld [vmem:[%s16156_s1 + $0x36c] sm:$0xf] }
 0x26d   :  { %5969 = vmatpush.bf16.msrb.mxu1 %v7028_v39  ;;  %v6673_v39 = vld [vmem:[%s16156_s1 + $0x18] sm:$0xf0]  ;;  %v9970_v32 = vld [vmem:[%s16156_s1 + $0x14c] sm:$0xf] }
 0x26e   :  { %5983 = vmatpush.bf16.msrb.mxu2 %v7156_v20  ;;  %v6996_v20 = vor.u32 %v10010_v24, %v6993_v28  ;;  %v7297_v48 = vld [vmem:[%s16156_s1 + $0x4f8] sm:$0xf0]  ;;  %v6676_v5 = vor.u32 %v9930_v49, %v6673_v39  ;;  %v10002_v45 = vld [vmem:[%s16156_s1 + $0x24c] sm:$0xf] }
 0x26f   :  { %5945 = vmatpush.bf16.msra.mxu3 %v6708_v50  ;;  %v7105_v50 = vld [vmem:[%s16156_s1 + $0x378] sm:$0xf0]  ;;  %v10034_v1 = vld [vmem:[%s16156_s1 + $0x34c] sm:$0xf] }
 0x270   :  { %5956 = vmatpush.bf16.msrb.mxu0 %v6884_v12  ;;  %v10086_v12 = vld [vmem:[%s16156_s1 + $0x4ec] sm:$0xf]  ;;  %v7108_v51 = vor.u32 %v10038_v57, %v7105_v50  ;;  %v6833_v24 = vld [vmem:[%s16156_s1 + $0x158] sm:$0xf0] }
 0x271   :  { %5970 = vmatpush.bf16.msrb.mxu1 %v7012_v63  ;;  %v6852_v63 = vor.u32 %v9974_v4, %v6849_v15  ;;  %v7300_v28 = vor.u32 %v10086_v12, %v7297_v48  ;;  %v6961_v46 = vld [vmem:[%s16156_s1 + $0x258] sm:$0xf0]  ;;  %v6836_v39 = vor.u32 %v9970_v32, %v6833_v24  ;;  %v9966_v4 = vld [vmem:[%s16156_s1 + $0x12c] sm:$0xf] }
 0x272   :  { %5984 = vmatpush.bf16.msrb.mxu2 %v7140_v25  ;;  %v6980_v25 = vor.u32 %v10006_v3, %v6977_v16  ;;  %v7281_v49 = vld [vmem:[%s16156_s1 + $0x4d8] sm:$0xf0]  ;;  %v9998_v3 = vld [vmem:[%s16156_s1 + $0x22c] sm:$0xf] }
 0x273   :  { %5946 = vmatpush.bf16.msra.mxu3 %v6692_v59  ;;  %v7089_v59 = vld [vmem:[%s16156_s1 + $0x358] sm:$0xf0]  ;;  %v10030_v50 = vld [vmem:[%s16156_s1 + $0x32c] sm:$0xf] }
 0x274   :  { %5957 = vmatpush.bf16.msrb.mxu0 %v6868_v2  ;;  %v10082_v2 = vld [vmem:[%s16156_s1 + $0x4cc] sm:$0xf]  ;;  %v6817_v15 = vld [vmem:[%s16156_s1 + $0x138] sm:$0xf0] }
 0x275   :  { %5971 = vmatpush.bf16.msrb.mxu1 %v6996_v20  ;;  %v6964_v20 = vor.u32 %v10002_v45, %v6961_v46  ;;  %v7284_v16 = vor.u32 %v10082_v2, %v7281_v49  ;;  %v6945_v57 = vld [vmem:[%s16156_s1 + $0x238] sm:$0xf0]  ;;  %v10078_v48 = vld [vmem:[%s16156_s1 + $0x4ac] sm:$0xf] }
 0x276   :  { %5985 = vmatpush.bf16.msrb.mxu2 %v7124_v21  ;;  %v7092_v21 = vor.u32 %v10034_v1, %v7089_v59  ;;  %v7073_v12 = vld [vmem:[%s16156_s1 + $0x338] sm:$0xf0]  ;;  %v6948_v32 = vor.u32 %v9998_v3, %v6945_v57  ;;  %v9994_v45 = vld [vmem:[%s16156_s1 + $0x20c] sm:$0xf] }
 0x277   :  { %5947 = vmatpush.bf16.msra.mxu3 %v6676_v5  ;;  %v7265_v5 = vld [vmem:[%s16156_s1 + $0x4b8] sm:$0xf0]  ;;  %v7076_v24 = vor.u32 %v10030_v50, %v7073_v12  ;;  %v10074_v59 = vld [vmem:[%s16156_s1 + $0x48c] sm:$0xf] }
 0x278   :  { %5958 = vmatpush.bf16.msrb.mxu0 %v6852_v63  ;;  %v6820_v63 = vor.u32 %v9966_v4, %v6817_v15  ;;  %v7268_v46 = vor.u32 %v10078_v48, %v7265_v5  ;;  %v7057_v1 = vld [vmem:[%s16156_s1 + $0x318] sm:$0xf0]  ;;  %v10118_v49 = vld [vmem:[%s16156_s1 + $0x5ec] sm:$0xf] }
 0x279   :  { %5972 = vmatpush.bf16.msrb.mxu1 %v6980_v25  ;;  %v9962_v25 = vld [vmem:[%s16156_s1 + $0x10c] sm:$0xf]  ;;  %v7249_v2 = vld [vmem:[%s16156_s1 + $0x498] sm:$0xf0] }
 0x27a   :  { %5986 = vmatpush.bf16.msrb.mxu2 %v7108_v51  ;;  %5948 = vmatmul.bf16.vlgmr.msra.gmra.mxu3 %v11135_v41  ;;  %v6801_v51 = vld [vmem:[%s16156_s1 + $0x118] sm:$0xf0]  ;;  %v10182_v15 = vld [vmem:[%s16156_s1 + $0x7ec] sm:$0xf]  ;;  %v7252_v50 = vor.u32 %v10074_v59, %v7249_v2 }
 0x27b   :  { %5996 = vmatpush.bf16.msrb.mxu3 %v7300_v28  ;;  %v6929_v41 = vld [vmem:[%s16156_s1 + $0x218] sm:$0xf0]  ;;  %v10026_v28 = vld [vmem:[%s16156_s1 + $0x30c] sm:$0xf] }
 0x27c   :  { %5959 = vmatpush.bf16.msrb.mxu0 %v6836_v39  ;;  %v7425_v39 = vld [vmem:[%s16156_s1 + $0x5f8] sm:$0xf0]  ;;  %v7060_v57 = vor.u32 %v10026_v28, %v7057_v1  ;;  %v10070_v48 = vld [vmem:[%s16156_s1 + $0x46c] sm:$0xf] }
 0x27d   :  { %5973 = vmatpush.bf16.msrb.mxu1 %v6964_v20  ;;  %v10150_v20 = vld [vmem:[%s16156_s1 + $0x6ec] sm:$0xf]  ;;  %v7553_v4 = vld [vmem:[%s16156_s1 + $0x6f8] sm:$0xf0]  ;;  %v7428_v12 = vor.u32 %v10118_v49, %v7425_v39 }
 0x27e   :  { %5987 = vmatpush.bf16.msrb.mxu2 %v7092_v21  ;;  %v6804_v21 = vor.u32 %v9962_v25, %v6801_v51  ;;  %v7681_v3 = vld [vmem:[%s16156_s1 + $0x7f8] sm:$0xf0]  ;;  %v10114_v51 = vld [vmem:[%s16156_s1 + $0x5cc] sm:$0xf] }
 0x27f   :  { %5997 = vmatpush.bf16.msrb.mxu3 %v7284_v16  ;;  %v6932_v16 = vor.u32 %v9994_v45, %v6929_v41  ;;  %v7233_v5 = vld [vmem:[%s16156_s1 + $0x478] sm:$0xf0]  ;;  %v7684_v25 = vor.u32 %v10182_v15, %v7681_v3  ;;  %v10178_v41 = vld [vmem:[%s16156_s1 + $0x7cc] sm:$0xf] }
 0x280   :  { %5960 = vmatpush.bf16.msrb.mxu0 %v6820_v63  ;;  %v7556_v63 = vor.u32 %v10150_v20, %v7553_v4  ;;  %v7537_v45 = vld [vmem:[%s16156_s1 + $0x6d8] sm:$0xf0]  ;;  %v10066_v59 = vld [vmem:[%s16156_s1 + $0x44c] sm:$0xf] }
 0x281   :  { %5974 = vmatpush.bf16.msrb.mxu1 %v6948_v32  ;;  %v7409_v32 = vld [vmem:[%s16156_s1 + $0x5d8] sm:$0xf0]  ;;  %v10110_v20 = vld [vmem:[%s16156_s1 + $0x5ac] sm:$0xf] }
 0x282   :  { %5988 = vmatpush.bf16.msrb.mxu2 %v7076_v24  ;;  %v10146_v24 = vld [vmem:[%s16156_s1 + $0x6cc] sm:$0xf]  ;;  %v7665_v28 = vld [vmem:[%s16156_s1 + $0x7d8] sm:$0xf0]  ;;  %v7412_v1 = vor.u32 %v10114_v51, %v7409_v32 }
 0x283   :  { %5998 = vmatpush.bf16.msrb.mxu3 %v7268_v46  ;;  %v7236_v46 = vor.u32 %v10070_v48, %v7233_v5  ;;  %v7217_v2 = vld [vmem:[%s16156_s1 + $0x458] sm:$0xf0]  ;;  %v7540_v49 = vor.u32 %v10146_v24, %v7537_v45  ;;  %v7668_v39 = vor.u32 %v10178_v41, %v7665_v28  ;;  %v10142_v4 = vld [vmem:[%s16156_s1 + $0x6ac] sm:$0xf] }
 0x284   :  { %5961 = vmatpush.bf16.msrb.mxu0 %v6804_v21  ;;  %v7393_v21 = vld [vmem:[%s16156_s1 + $0x5b8] sm:$0xf0]  ;;  %v10174_v3 = vld [vmem:[%s16156_s1 + $0x7ac] sm:$0xf] }
 0x285   :  { %5975 = vmatpush.bf16.msrb.mxu1 %v6932_v16  ;;  %v7521_v15 = vld [vmem:[%s16156_s1 + $0x6b8] sm:$0xf0]  ;;  %v10170_v51 = vld [vmem:[%s16156_s1 + $0x78c] sm:$0xf] }
 0x286   :  { %5989 = vmatpush.bf16.msrb.mxu2 %v7060_v57  ;;  %v7649_v16 = vld [vmem:[%s16156_s1 + $0x7b8] sm:$0xf0]  ;;  %v7220_v57 = vor.u32 %v10066_v59, %v7217_v2  ;;  %v7524_v5 = vor.u32 %v10142_v4, %v7521_v15  ;;  %v10058_v41 = vld [vmem:[%s16156_s1 + $0x40c] sm:$0xf] }
 0x287   :  { %5999 = vmatpush.bf16.msrb.mxu3 %v7252_v50  ;;  %5962 = vmatmul.bf16.vlgmr.msrb.gmra.mxu0 %v11139_v44  ;;  %v7396_v50 = vor.u32 %v10110_v20, %v7393_v21  ;;  %v7201_v48 = vld [vmem:[%s16156_s1 + $0x438] sm:$0xf0]  ;;  %v10102_v59 = vld [vmem:[%s16156_s1 + $0x56c] sm:$0xf] }
 0x288   :  { %6010 = vmatpush.bf16.msra.mxu0 %v7428_v12  ;;  %5976 = vmatmul.bf16.vlgmr.msrb.gmra.mxu1 %v11137_v42  ;;  %v10062_v12 = vld [vmem:[%s16156_s1 + $0x42c] sm:$0xf]  ;;  %v7377_v44 = vld [vmem:[%s16156_s1 + $0x598] sm:$0xf0] }
 0x289   :  { %6024 = vmatpush.bf16.msra.mxu1 %v7556_v63  ;;  %5990 = vmatmul.bf16.vlgmr.msrb.gmra.mxu2 %v11150_v47  ;;  %v7652_v47 = vor.u32 %v10174_v3, %v7649_v16  ;;  %v10106_v42 = vld [vmem:[%s16156_s1 + $0x58c] sm:$0xf]  ;;  %v7633_v32 = vld [vmem:[%s16156_s1 + $0x798] sm:$0xf0]  ;;  %v7204_v24 = vor.u32 %v10062_v12, %v7201_v48 }
 0x28a   :  { %6038 = vmatpush.bf16.msra.mxu2 %v7684_v25  ;;  %v10138_v63 = vld [vmem:[%s16156_s1 + $0x68c] sm:$0xf]  ;;  %v7505_v25 = vld [vmem:[%s16156_s1 + $0x698] sm:$0xf0]  ;;  %v7380_v45 = vor.u32 %v10106_v42, %v7377_v44 }
 0x28b   :  { %6000 = vmatpush.bf16.msrb.mxu3 %v7236_v46  ;;  %v7185_v28 = vld [vmem:[%s16156_s1 + $0x418] sm:$0xf0]  ;;  %v7508_v46 = vor.u32 %v10138_v63, %v7505_v25  ;;  %v10166_v20 = vld [vmem:[%s16156_s1 + $0x76c] sm:$0xf] }
 0x28c   :  { %6011 = vmatpush.bf16.msra.mxu0 %v7412_v1  ;;  %v7636_v1 = vor.u32 %v10170_v51, %v7633_v32  ;;  %v7361_v2 = vld [vmem:[%s16156_s1 + $0x578] sm:$0xf0]  ;;  %v10214_v4 = vld [vmem:[%s16156_s1 + $0x8ec] sm:$0xf]  ;;  %v7188_v3 = vor.u32 %v10058_v41, %v7185_v28 }
 0x28d   :  { %6025 = vmatpush.bf16.msra.mxu1 %v7540_v49  ;;  %v10134_v49 = vld [vmem:[%s16156_s1 + $0x66c] sm:$0xf]  ;;  %v7617_v21 = vld [vmem:[%s16156_s1 + $0x778] sm:$0xf0]  ;;  %v7364_v16 = vor.u32 %v10102_v59, %v7361_v2 }
 0x28e   :  { %6039 = vmatpush.bf16.msra.mxu2 %v7668_v39  ;;  %v7489_v39 = vld [vmem:[%s16156_s1 + $0x678] sm:$0xf0]  ;;  %v10098_v12 = vld [vmem:[%s16156_s1 + $0x54c] sm:$0xf] }
 0x28f   :  { %6001 = vmatpush.bf16.msrb.mxu3 %v7220_v57  ;;  %v7809_v15 = vld [vmem:[%s16156_s1 + $0x8f8] sm:$0xf0]  ;;  %v7492_v57 = vor.u32 %v10134_v49, %v7489_v39  ;;  %v10162_v44 = vld [vmem:[%s16156_s1 + $0x74c] sm:$0xf] }
 0x290   :  { %6012 = vmatpush.bf16.msra.mxu0 %v7396_v50  ;;  %v7620_v50 = vor.u32 %v10166_v20, %v7617_v21  ;;  %v7345_v48 = vld [vmem:[%s16156_s1 + $0x558] sm:$0xf0]  ;;  %v10210_v25 = vld [vmem:[%s16156_s1 + $0x8cc] sm:$0xf] }
 0x291   :  { %6026 = vmatpush.bf16.msra.mxu1 %v7524_v5  ;;  %v10130_v5 = vld [vmem:[%s16156_s1 + $0x64c] sm:$0xf]  ;;  %v7473_v42 = vld [vmem:[%s16156_s1 + $0x658] sm:$0xf0]  ;;  %v7348_v32 = vor.u32 %v10098_v12, %v7345_v48 }
 0x292   :  { %6040 = vmatpush.bf16.msra.mxu2 %v7652_v47  ;;  %v7812_v47 = vor.u32 %v10214_v4, %v7809_v15  ;;  %v7601_v63 = vld [vmem:[%s16156_s1 + $0x758] sm:$0xf0]  ;;  %v10094_v41 = vld [vmem:[%s16156_s1 + $0x52c] sm:$0xf] }
 0x293   :  { %6002 = vmatpush.bf16.msrb.mxu3 %v7204_v24  ;;  %v7793_v51 = vld [vmem:[%s16156_s1 + $0x8d8] sm:$0xf0]  ;;  %v7476_v24 = vor.u32 %v10130_v5, %v7473_v42  ;;  %v10158_v2 = vld [vmem:[%s16156_s1 + $0x72c] sm:$0xf] }
 0x294   :  { %6013 = vmatpush.bf16.msra.mxu0 %v7380_v45  ;;  %v7604_v45 = vor.u32 %v10162_v44, %v7601_v63  ;;  %v7329_v28 = vld [vmem:[%s16156_s1 + $0x538] sm:$0xf0]  ;;  %v10206_v39 = vld [vmem:[%s16156_s1 + $0x8ac] sm:$0xf] }
 0x295   :  { %6027 = vmatpush.bf16.msra.mxu1 %v7508_v46  ;;  %v10126_v46 = vld [vmem:[%s16156_s1 + $0x62c] sm:$0xf]  ;;  %v7457_v59 = vld [vmem:[%s16156_s1 + $0x638] sm:$0xf0]  ;;  %v7332_v21 = vor.u32 %v10094_v41, %v7329_v28 }
 0x296   :  { %6041 = vmatpush.bf16.msra.mxu2 %v7636_v1  ;;  %v7796_v1 = vor.u32 %v10210_v25, %v7793_v51  ;;  %v7585_v49 = vld [vmem:[%s16156_s1 + $0x738] sm:$0xf0]  ;;  %v10090_v4 = vld [vmem:[%s16156_s1 + $0x50c] sm:$0xf] }
 0x297   :  { %6003 = vmatpush.bf16.msrb.mxu3 %v7188_v3  ;;  %v7777_v20 = vld [vmem:[%s16156_s1 + $0x8b8] sm:$0xf0]  ;;  %v7588_v3 = vor.u32 %v10158_v2, %v7585_v49  ;;  %v10202_v5 = vld [vmem:[%s16156_s1 + $0x88c] sm:$0xf] }
 0x298   :  { %6014 = vmatpush.bf16.msra.mxu0 %v7364_v16  ;;  %v7313_v15 = vld [vmem:[%s16156_s1 + $0x518] sm:$0xf0]  ;;  %v10122_v16 = vld [vmem:[%s16156_s1 + $0x60c] sm:$0xf]  ;;  %v7780_v12 = vor.u32 %v10206_v39, %v7777_v20 }
 0x299   :  { %6028 = vmatpush.bf16.msra.mxu1 %v7492_v57  ;;  %v7441_v57 = vld [vmem:[%s16156_s1 + $0x618] sm:$0xf0]  ;;  %v10246_v42 = vld [vmem:[%s16156_s1 + $0x9ec] sm:$0xf]  ;;  %v7316_v25 = vor.u32 %v10090_v4, %v7313_v15 }
 0x29a   :  { %6042 = vmatpush.bf16.msra.mxu2 %v7620_v50  ;;  %6004 = vmatmul.bf16.vlgmr.msrb.gmra.mxu3 %v11225_v23  ;;  %v7460_v23 = vor.u32 %v10126_v46, %v7457_v59  ;;  %v10154_v50 = vld [vmem:[%s16156_s1 + $0x70c] sm:$0xf]  ;;  %v7569_v48 = vld [vmem:[%s16156_s1 + $0x718] sm:$0xf0] }
 0x29b   :  { %6052 = vmatpush.bf16.msra.mxu3 %v7812_v47  ;;  %v7761_v47 = vld [vmem:[%s16156_s1 + $0x898] sm:$0xf0]  ;;  %v10278_v63 = vld [vmem:[%s16156_s1 + $0xaec] sm:$0xf]  ;;  %v7572_v41 = vor.u32 %v10154_v50, %v7569_v48 }
 0x29c   :  { %6015 = vmatpush.bf16.msra.mxu0 %v7348_v32  ;;  %v7937_v44 = vld [vmem:[%s16156_s1 + $0x9f8] sm:$0xf0]  ;;  %v10310_v32 = vld [vmem:[%s16156_s1 + $0xbec] sm:$0xf]  ;;  %v7764_v28 = vor.u32 %v10202_v5, %v7761_v47 }
 0x29d   :  { %6029 = vmatpush.bf16.msra.mxu1 %v7476_v24  ;;  %v8065_v51 = vld [vmem:[%s16156_s1 + $0xaf8] sm:$0xf0]  ;;  %v7940_v46 = vor.u32 %v10246_v42, %v7937_v44  ;;  %v10242_v39 = vld [vmem:[%s16156_s1 + $0x9cc] sm:$0xf] }
 0x29e   :  { %6043 = vmatpush.bf16.msra.mxu2 %v7604_v45  ;;  %v8193_v24 = vld [vmem:[%s16156_s1 + $0xbf8] sm:$0xf0]  ;;  %v7444_v45 = vor.u32 %v10122_v16, %v7441_v57  ;;  %v8068_v2 = vor.u32 %v10278_v63, %v8065_v51  ;;  %v10306_v15 = vld [vmem:[%s16156_s1 + $0xbcc] sm:$0xf] }
 0x29f   :  { %6053 = vmatpush.bf16.msra.mxu3 %v7796_v1  ;;  %v10198_v1 = vld [vmem:[%s16156_s1 + $0x86c] sm:$0xf]  ;;  %v7745_v59 = vld [vmem:[%s16156_s1 + $0x878] sm:$0xf0]  ;;  %v8196_v49 = vor.u32 %v10310_v32, %v8193_v24 }
 0x2a0   :  { %6016 = vmatpush.bf16.msra.mxu0 %v7332_v21  ;;  %v7921_v20 = vld [vmem:[%s16156_s1 + $0x9d8] sm:$0xf0]  ;;  %v10274_v21 = vld [vmem:[%s16156_s1 + $0xacc] sm:$0xf] }
 0x2a1   :  { %6030 = vmatpush.bf16.msra.mxu1 %v7460_v23  ;;  %v8049_v4 = vld [vmem:[%s16156_s1 + $0xad8] sm:$0xf0]  ;;  %v7924_v16 = vor.u32 %v10242_v39, %v7921_v20  ;;  %v10194_v57 = vld [vmem:[%s16156_s1 + $0x84c] sm:$0xf] }
 0x2a2   :  { %6044 = vmatpush.bf16.msra.mxu2 %v7588_v3  ;;  %v8177_v23 = vld [vmem:[%s16156_s1 + $0xbd8] sm:$0xf0]  ;;  %v7748_v3 = vor.u32 %v10198_v1, %v7745_v59  ;;  %v10238_v5 = vld [vmem:[%s16156_s1 + $0x9ac] sm:$0xf] }
 0x2a3   :  { %6054 = vmatpush.bf16.msra.mxu3 %v7780_v12  ;;  %v7729_v50 = vld [vmem:[%s16156_s1 + $0x858] sm:$0xf0]  ;;  %v8052_v12 = vor.u32 %v10274_v21, %v8049_v4  ;;  %v8180_v48 = vor.u32 %v10306_v15, %v8177_v23  ;;  %v10270_v42 = vld [vmem:[%s16156_s1 + $0xaac] sm:$0xf]  ;;  %v15179_v21 = vpop.f32.mrf.mxu2 }
 0x2a4   :  { %6017 = vmatpush.bf16.msra.mxu0 %v7316_v25  ;;  %v7905_v47 = vld [vmem:[%s16156_s1 + $0x9b8] sm:$0xf0]  ;;  %v10302_v63 = vld [vmem:[%s16156_s1 + $0xbac] sm:$0xf]  ;;  %v7732_v51 = vor.u32 %v10194_v57, %v7729_v50  ;;  %16199 = vst [vmem:[#allocation38_spill] sm:$0xff] %v15179_v21 }
 0x2a5   :  { %6031 = vmatpush.bf16.msra.mxu1 %v7444_v45  ;;  %v8033_v44 = vld [vmem:[%s16156_s1 + $0xab8] sm:$0xf0]  ;;  %v10298_v1 = vld [vmem:[%s16156_s1 + $0xb8c] sm:$0xf] }
 0x2a6   :  { %6045 = vmatpush.bf16.msra.mxu2 %v7572_v41  ;;  %v8161_v25 = vld [vmem:[%s16156_s1 + $0xbb8] sm:$0xf0]  ;;  %v8036_v24 = vor.u32 %v10270_v42, %v8033_v44  ;;  %v10186_v39 = vld [vmem:[%s16156_s1 + $0x80c] sm:$0xf] }
 0x2a7   :  { %6055 = vmatpush.bf16.msra.mxu3 %v7764_v28  ;;  %6018 = vmatmul.bf16.vlgmr.msra.gmra.mxu0 %v11253_v34  ;;  %v7908_v34 = vor.u32 %v10238_v5, %v7905_v47  ;;  %v7713_v32 = vld [vmem:[%s16156_s1 + $0x838] sm:$0xf0]  ;;  %v8164_v45 = vor.u32 %v10302_v63, %v8161_v25  ;;  %v10266_v28 = vld [vmem:[%s16156_s1 + $0xa8c] sm:$0xf] }
 0x2a8   :  { %6066 = vmatpush.bf16.msrb.mxu0 %v7940_v46  ;;  %6032 = vmatmul.bf16.vlgmr.msra.gmra.mxu1 %v11251_v33  ;;  %v10234_v33 = vld [vmem:[%s16156_s1 + $0x98c] sm:$0xf]  ;;  %v7889_v41 = vld [vmem:[%s16156_s1 + $0x998] sm:$0xf0] }
 0x2a9   :  { %6080 = vmatpush.bf16.msrb.mxu1 %v8068_v2  ;;  %6046 = vmatmul.bf16.vlgmr.msra.gmra.mxu2 %v11255_v36  ;;  %v10190_v36 = vld [vmem:[%s16156_s1 + $0x82c] sm:$0xf]  ;;  %v8017_v46 = vld [vmem:[%s16156_s1 + $0xa98] sm:$0xf0] }
 0x2aa   :  { %6094 = vmatpush.bf16.msrb.mxu2 %v8196_v49  ;;  %v8145_v59 = vld [vmem:[%s16156_s1 + $0xb98] sm:$0xf0]  ;;  %v7716_v2 = vor.u32 %v10190_v36, %v7713_v32  ;;  %v7892_v49 = vor.u32 %v10234_v33, %v7889_v41  ;;  %v8020_v4 = vor.u32 %v10266_v28, %v8017_v46  ;;  %v10230_v23 = vld [vmem:[%s16156_s1 + $0x96c] sm:$0xf] }
 0x2ab   :  { %6056 = vmatpush.bf16.msra.mxu3 %v7748_v3  ;;  %v7697_v20 = vld [vmem:[%s16156_s1 + $0x818] sm:$0xf0]  ;;  %v8148_v15 = vor.u32 %v10298_v1, %v8145_v59  ;;  %v10294_v50 = vld [vmem:[%s16156_s1 + $0xb6c] sm:$0xf]  ;;  %v15229_v46 = vpop.f32.mrf.mxu2 }
 0x2ac   :  { %6067 = vmatpush.bf16.msrb.mxu0 %v7924_v16  ;;  %v7873_v3 = vld [vmem:[%s16156_s1 + $0x978] sm:$0xf0]  ;;  %v10262_v16 = vld [vmem:[%s16156_s1 + $0xa6c] sm:$0xf]  ;;  %v7700_v47 = vor.u32 %v10186_v39, %v7697_v20 }
 0x2ad   :  { %6081 = vmatpush.bf16.msrb.mxu1 %v8052_v12  ;;  %v8001_v57 = vld [vmem:[%s16156_s1 + $0xa78] sm:$0xf0]  ;;  %v7876_v42 = vor.u32 %v10230_v23, %v7873_v3  ;;  %v10226_v25 = vld [vmem:[%s16156_s1 + $0x94c] sm:$0xf] }
 0x2ae   :  { %6095 = vmatpush.bf16.msrb.mxu2 %v8180_v48  ;;  %v8129_v12 = vld [vmem:[%s16156_s1 + $0xb78] sm:$0xf0]  ;;  %v10342_v48 = vld [vmem:[%s16156_s1 + $0xcec] sm:$0xf]  ;;  %v8004_v44 = vor.u32 %v10262_v16, %v8001_v57 }
 0x2af   :  { %6057 = vmatpush.bf16.msra.mxu3 %v7732_v51  ;;  %v8321_v5 = vld [vmem:[%s16156_s1 + $0xcf8] sm:$0xf0]  ;;  %v8132_v63 = vor.u32 %v10294_v50, %v8129_v12  ;;  %v10338_v33 = vld [vmem:[%s16156_s1 + $0xccc] sm:$0xf] }
 0x2b0   :  { %6068 = vmatpush.bf16.msrb.mxu0 %v7908_v34  ;;  %v7857_v51 = vld [vmem:[%s16156_s1 + $0x958] sm:$0xf0]  ;;  %v10258_v34 = vld [vmem:[%s16156_s1 + $0xa4c] sm:$0xf]  ;;  %v8324_v36 = vor.u32 %v10342_v48, %v8321_v5  ;;  %v15262_v48 = vpop.f32.mrf.mxu3 }
 0x2b1   :  { %6082 = vmatpush.bf16.msrb.mxu1 %v8036_v24  ;;  %v7985_v32 = vld [vmem:[%s16156_s1 + $0xa58] sm:$0xf0]  ;;  %v10290_v24 = vld [vmem:[%s16156_s1 + $0xb4c] sm:$0xf]  ;;  %v7860_v28 = vor.u32 %v10226_v25, %v7857_v51  ;;  %16200 = vst [vmem:[#allocation39_spill] sm:$0xff] %v15262_v48 }
 0x2b2   :  { %6096 = vmatpush.bf16.msrb.mxu2 %v8164_v45  ;;  %v8113_v45 = vld [vmem:[%s16156_s1 + $0xb58] sm:$0xf0]  ;;  %v7988_v1 = vor.u32 %v10258_v34, %v7985_v32  ;;  %v10254_v39 = vld [vmem:[%s16156_s1 + $0xa2c] sm:$0xf] }
 0x2b3   :  { %6058 = vmatpush.bf16.msra.mxu3 %v7716_v2  ;;  %v8305_v41 = vld [vmem:[%s16156_s1 + $0xcd8] sm:$0xf0]  ;;  %v8116_v59 = vor.u32 %v10290_v24, %v8113_v45  ;;  %v10222_v2 = vld [vmem:[%s16156_s1 + $0x92c] sm:$0xf] }
 0x2b4   :  { %6069 = vmatpush.bf16.msrb.mxu0 %v7892_v49  ;;  %v7841_v49 = vld [vmem:[%s16156_s1 + $0x938] sm:$0xf0]  ;;  %v8308_v20 = vor.u32 %v10338_v33, %v8305_v41  ;;  %v10334_v3 = vld [vmem:[%s16156_s1 + $0xcac] sm:$0xf] }
 0x2b5   :  { %6083 = vmatpush.bf16.msrb.mxu1 %v8020_v4  ;;  %v7969_v4 = vld [vmem:[%s16156_s1 + $0xa38] sm:$0xf0]  ;;  %v7844_v57 = vor.u32 %v10222_v2, %v7841_v49  ;;  %v10218_v50 = vld [vmem:[%s16156_s1 + $0x90c] sm:$0xf] }
 0x2b6   :  { %6097 = vmatpush.bf16.msrb.mxu2 %v8148_v15  ;;  %v10286_v15 = vld [vmem:[%s16156_s1 + $0xb2c] sm:$0xf]  ;;  %v8097_v23 = vld [vmem:[%s16156_s1 + $0xb38] sm:$0xf0] }
 0x2b7   :  { %6059 = vmatpush.bf16.msra.mxu3 %v7700_v47  ;;  %v8289_v16 = vld [vmem:[%s16156_s1 + $0xcb8] sm:$0xf0]  ;;  %v8100_v5 = vor.u32 %v10286_v15, %v8097_v23  ;;  %v10250_v47 = vld [vmem:[%s16156_s1 + $0xa0c] sm:$0xf]  ;;  %v15308_v15 = vpop.f32.mrf.mxu1  ;;  %v15310_v23 = vpop.f32.mrf.mxu2 }
 0x2b8   :  { %6070 = vmatpush.bf16.msrb.mxu0 %v7876_v42  ;;  %v7825_v12 = vld [vmem:[%s16156_s1 + $0x918] sm:$0xf0]  ;;  %v10330_v51 = vld [vmem:[%s16156_s1 + $0xc8c] sm:$0xf]  ;;  %16202 = vst [vmem:[#allocation41_spill] sm:$0xff] %v15308_v15 }
 0x2b9   :  { %6084 = vmatpush.bf16.msrb.mxu1 %v8004_v44  ;;  %v7953_v42 = vld [vmem:[%s16156_s1 + $0xa18] sm:$0xf0]  ;;  %v10282_v44 = vld [vmem:[%s16156_s1 + $0xb0c] sm:$0xf]  ;;  %v7828_v33 = vor.u32 %v10218_v50, %v7825_v12 }
 0x2ba   :  { %6098 = vmatpush.bf16.msrb.mxu2 %v8132_v63  ;;  %6060 = vmatmul.bf16.vlgmr.msra.gmra.mxu3 %v11471_v22  ;;  %v7972_v22 = vor.u32 %v10254_v39, %v7969_v4  ;;  %v8292_v63 = vor.u32 %v10334_v3, %v8289_v16  ;;  %v8081_v25 = vld [vmem:[%s16156_s1 + $0xb18] sm:$0xf0]  ;;  %v10374_v32 = vld [vmem:[%s16156_s1 + $0xdec] sm:$0xf] }
 0x2bb   :  { %6108 = vmatpush.bf16.msrb.mxu3 %v8324_v36  ;;  %v8273_v34 = vld [vmem:[%s16156_s1 + $0xc98] sm:$0xf0]  ;;  %v15282_v36 = vpop.f32.mrf.mxu0  ;;  %v10406_v45 = vld [vmem:[%s16156_s1 + $0xeec] sm:$0xf]  ;;  %v8084_v2 = vor.u32 %v10282_v44, %v8081_v25 }
 0x2bc   :  { %6071 = vmatpush.bf16.msrb.mxu0 %v7860_v28  ;;  %16201 = vst [vmem:[#allocation40_spill] sm:$0xff] %v15282_v36  ;;  %v8449_v24 = vld [vmem:[%s16156_s1 + $0xdf8] sm:$0xf0]  ;;  %v10438_v28 = vld [vmem:[%s16156_s1 + $0xfec] sm:$0xf]  ;;  %v8276_v49 = vor.u32 %v10330_v51, %v8273_v34 }
 0x2bd   :  { %6085 = vmatpush.bf16.msrb.mxu1 %v7988_v1  ;;  %v8577_v41 = vld [vmem:[%s16156_s1 + $0xef8] sm:$0xf0]  ;;  %v8452_v39 = vor.u32 %v10374_v32, %v8449_v24  ;;  %v10402_v12 = vld [vmem:[%s16156_s1 + $0xecc] sm:$0xf] }
 0x2be   :  { %6099 = vmatpush.bf16.msrb.mxu2 %v8116_v59  ;;  %v8705_v1 = vld [vmem:[%s16156_s1 + $0xff8] sm:$0xf0]  ;;  %v7956_v59 = vor.u32 %v10250_v47, %v7953_v42  ;;  %v8580_v3 = vor.u32 %v10406_v45, %v8577_v41  ;;  %v15330_v42 = vpop.f32.mrf.mxu3  ;;  %v10322_v25 = vld [vmem:[%s16156_s1 + $0xc4c] sm:$0xf] }
 0x2bf   :  { %6109 = vmatpush.bf16.msrb.mxu3 %v8308_v20  ;;  %v10326_v20 = vld [vmem:[%s16156_s1 + $0xc6c] sm:$0xf]  ;;  %v8257_v4 = vld [vmem:[%s16156_s1 + $0xc78] sm:$0xf0]  ;;  %v8708_v16 = vor.u32 %v10438_v28, %v8705_v1 }
 0x2c0   :  { %6072 = vmatpush.bf16.msrb.mxu0 %v7844_v57  ;;  %v10370_v57 = vld [vmem:[%s16156_s1 + $0xdcc] sm:$0xf]  ;;  %v8433_v50 = vld [vmem:[%s16156_s1 + $0xdd8] sm:$0xf0]  ;;  %v8260_v44 = vor.u32 %v10326_v20, %v8257_v4 }
 0x2c1   :  { %6086 = vmatpush.bf16.msrb.mxu1 %v7972_v22  ;;  %v8561_v22 = vld [vmem:[%s16156_s1 + $0xed8] sm:$0xf0]  ;;  %v10366_v45 = vld [vmem:[%s16156_s1 + $0xdac] sm:$0xf] }
 0x2c2   :  { %6100 = vmatpush.bf16.msrb.mxu2 %v8100_v5  ;;  %v10434_v5 = vld [vmem:[%s16156_s1 + $0xfcc] sm:$0xf]  ;;  %v8689_v47 = vld [vmem:[%s16156_s1 + $0xfd8] sm:$0xf0]  ;;  %v8564_v32 = vor.u32 %v10402_v12, %v8561_v22  ;;  %v15387_v22 = vpop.f32.mrf.mxu2 }
 0x2c3   :  { %6110 = vmatpush.bf16.msrb.mxu3 %v8292_v63  ;;  %v8436_v63 = vor.u32 %v10370_v57, %v8433_v50  ;;  %v8241_v51 = vld [vmem:[%s16156_s1 + $0xc58] sm:$0xf0]  ;;  %v15338_v34 = vpop.f32.mrf.mxu0  ;;  %v8692_v24 = vor.u32 %v10434_v5, %v8689_v47  ;;  %v10398_v41 = vld [vmem:[%s16156_s1 + $0xeac] sm:$0xf] }
 0x2c4   :  { %6073 = vmatpush.bf16.msrb.mxu0 %v7828_v33  ;;  %v8417_v33 = vld [vmem:[%s16156_s1 + $0xdb8] sm:$0xf0]  ;;  %v10430_v1 = vld [vmem:[%s16156_s1 + $0xfac] sm:$0xf] }
 0x2c5   :  { %6087 = vmatpush.bf16.msrb.mxu1 %v7956_v59  ;;  %v8545_v28 = vld [vmem:[%s16156_s1 + $0xeb8] sm:$0xf0]  ;;  %v10426_v50 = vld [vmem:[%s16156_s1 + $0xf8c] sm:$0xf] }
 0x2c6   :  { %6101 = vmatpush.bf16.msrb.mxu2 %v8084_v2  ;;  %v8673_v59 = vld [vmem:[%s16156_s1 + $0xfb8] sm:$0xf0]  ;;  %v8244_v2 = vor.u32 %v10322_v25, %v8241_v51  ;;  %v8548_v20 = vor.u32 %v10398_v41, %v8545_v28  ;;  %v15395_v25 = vpop.f32.mrf.mxu3  ;;  %v10422_v28 = vld [vmem:[%s16156_s1 + $0xf6c] sm:$0xf] }
 0x2c7   :  { %6111 = vmatpush.bf16.msrb.mxu3 %v8276_v49  ;;  %6074 = vmatmul.bf16.vlgmr.msrb.gmra.mxu0 %v11481_v27  ;;  %v8420_v27 = vor.u32 %v10366_v45, %v8417_v33  ;;  %v8225_v49 = vld [vmem:[%s16156_s1 + $0xc38] sm:$0xf0]  ;;  %v8676_v4 = vor.u32 %v10430_v1, %v8673_v59  ;;  %v10390_v33 = vld [vmem:[%s16156_s1 + $0xe6c] sm:$0xf] }
 0x2c8   :  { %6122 = vmatpush.bf16.msra.mxu0 %v8452_v39  ;;  %6088 = vmatmul.bf16.vlgmr.msrb.gmra.mxu1 %v11479_v26  ;;  %v15367_v39 = vpop.f32.mrf.mxu1  ;;  %v10362_v26 = vld [vmem:[%s16156_s1 + $0xd8c] sm:$0xf]  ;;  %v8529_v57 = vld [vmem:[%s16156_s1 + $0xe98] sm:$0xf0] }
 0x2c9   :  { %6136 = vmatpush.bf16.msra.mxu1 %v8580_v3  ;;  %6102 = vmatmul.bf16.vlgmr.msrb.gmra.mxu2 %v11486_v30  ;;  %v10318_v30 = vld [vmem:[%s16156_s1 + $0xc2c] sm:$0xf]  ;;  %v8401_v3 = vld [vmem:[%s16156_s1 + $0xd98] sm:$0xf0] }
 0x2ca   :  { %6150 = vmatpush.bf16.msra.mxu2 %v8708_v16  ;;  %v10394_v16 = vld [vmem:[%s16156_s1 + $0xe8c] sm:$0xf]  ;;  %v8657_v12 = vld [vmem:[%s16156_s1 + $0xf98] sm:$0xf0]  ;;  %v8228_v5 = vor.u32 %v10318_v30, %v8225_v49  ;;  %v8404_v47 = vor.u32 %v10362_v26, %v8401_v3 }
 0x2cb   :  { %6112 = vmatpush.bf16.msrb.mxu3 %v8260_v44  ;;  %v10314_v44 = vld [vmem:[%s16156_s1 + $0xc0c] sm:$0xf]  ;;  %v8532_v51 = vor.u32 %v10394_v16, %v8529_v57  ;;  %v8385_v45 = vld [vmem:[%s16156_s1 + $0xd78] sm:$0xf0]  ;;  %v15415_v59 = vpop.f32.mrf.mxu0 }
 0x2cc   :  { %6123 = vmatpush.bf16.msra.mxu0 %v8436_v63  ;;  %v8209_v63 = vld [vmem:[%s16156_s1 + $0xc18] sm:$0xf0]  ;;  %v10354_v26 = vld [vmem:[%s16156_s1 + $0xd4c] sm:$0xf] }
 0x2cd   :  { %6137 = vmatpush.bf16.msra.mxu1 %v8564_v32  ;;  %v8660_v32 = vor.u32 %v10426_v50, %v8657_v12  ;;  %v8513_v41 = vld [vmem:[%s16156_s1 + $0xe78] sm:$0xf0]  ;;  %v8212_v30 = vor.u32 %v10314_v44, %v8209_v63  ;;  %v10386_v16 = vld [vmem:[%s16156_s1 + $0xe4c] sm:$0xf] }
 0x2ce   :  { %6151 = vmatpush.bf16.msra.mxu2 %v8692_v24  ;;  %v10358_v24 = vld [vmem:[%s16156_s1 + $0xd6c] sm:$0xf]  ;;  %v8641_v1 = vld [vmem:[%s16156_s1 + $0xf78] sm:$0xf0] }
 0x2cf   :  { %6113 = vmatpush.bf16.msrb.mxu3 %v8244_v2  ;;  %v10470_v2 = vld [vmem:[%s16156_s1 + $0x10ec] sm:$0xf]  ;;  %v8388_v49 = vor.u32 %v10358_v24, %v8385_v45  ;;  %v8369_v3 = vld [vmem:[%s16156_s1 + $0xd58] sm:$0xf0] }
 0x2d0   :  { %6124 = vmatpush.bf16.msra.mxu0 %v8420_v27  ;;  %v8833_v27 = vld [vmem:[%s16156_s1 + $0x10f8] sm:$0xf0]  ;;  %v10418_v12 = vld [vmem:[%s16156_s1 + $0xf4c] sm:$0xf] }
 0x2d1   :  { %6138 = vmatpush.bf16.msra.mxu1 %v8548_v20  ;;  %v8516_v20 = vor.u32 %v10390_v33, %v8513_v41  ;;  %v8836_v57 = vor.u32 %v10470_v2, %v8833_v27  ;;  %v8497_v50 = vld [vmem:[%s16156_s1 + $0xe58] sm:$0xf0]  ;;  %v10466_v44 = vld [vmem:[%s16156_s1 + $0x10cc] sm:$0xf] }
 0x2d2   :  { %6152 = vmatpush.bf16.msra.mxu2 %v8676_v4  ;;  %v8644_v4 = vor.u32 %v10422_v28, %v8641_v1  ;;  %v8817_v63 = vld [vmem:[%s16156_s1 + $0x10d8] sm:$0xf0]  ;;  %v8500_v24 = vor.u32 %v10386_v16, %v8497_v50  ;;  %v10350_v33 = vld [vmem:[%s16156_s1 + $0xd2c] sm:$0xf] }
 0x2d3   :  { %6114 = vmatpush.bf16.msrb.mxu3 %v8228_v5  ;;  %v8625_v5 = vld [vmem:[%s16156_s1 + $0xf58] sm:$0xf0]  ;;  %v10382_v28 = vld [vmem:[%s16156_s1 + $0xe2c] sm:$0xf]  ;;  %v8820_v1 = vor.u32 %v10466_v44, %v8817_v63 }
 0x2d4   :  { %6125 = vmatpush.bf16.msra.mxu0 %v8404_v47  ;;  %v15441_v47 = vpop.f32.mrf.mxu1  ;;  %v8628_v45 = vor.u32 %v10418_v12, %v8625_v5  ;;  %v8353_v41 = vld [vmem:[%s16156_s1 + $0xd38] sm:$0xf0]  ;;  %v10414_v27 = vld [vmem:[%s16156_s1 + $0xf2c] sm:$0xf] }
 0x2d5   :  { %6139 = vmatpush.bf16.msra.mxu1 %v8532_v51  ;;  %v8372_v51 = vor.u32 %v10354_v26, %v8369_v3  ;;  %v8481_v2 = vld [vmem:[%s16156_s1 + $0xe38] sm:$0xf0]  ;;  %v8356_v26 = vor.u32 %v10350_v33, %v8353_v41  ;;  %v10346_v3 = vld [vmem:[%s16156_s1 + $0xd0c] sm:$0xf] }
 0x2d6   :  { %6153 = vmatpush.bf16.msra.mxu2 %v8660_v32  ;;  %v15449_v32 = vpop.f32.mrf.mxu2  ;;  %v8337_v16 = vld [vmem:[%s16156_s1 + $0xd18] sm:$0xf0]  ;;  %v10378_v12 = vld [vmem:[%s16156_s1 + $0xe0c] sm:$0xf] }
 0x2d7   :  { %6115 = vmatpush.bf16.msrb.mxu3 %v8212_v30  ;;  %v8609_v30 = vld [vmem:[%s16156_s1 + $0xf38] sm:$0xf0]  ;;  %v10410_v44 = vld [vmem:[%s16156_s1 + $0xf0c] sm:$0xf] }
 0x2d8   :  { %6126 = vmatpush.bf16.msra.mxu0 %v8388_v49  ;;  %v15469_v49 = vpop.f32.mrf.mxu3  ;;  %v8612_v50 = vor.u32 %v10414_v27, %v8609_v30  ;;  %v8465_v5 = vld [vmem:[%s16156_s1 + $0xe18] sm:$0xf0]  ;;  %v10502_v33 = vld [vmem:[%s16156_s1 + $0x11ec] sm:$0xf] }
 0x2d9   :  { %6140 = vmatpush.bf16.msra.mxu1 %v8516_v20  ;;  %v10462_v20 = vld [vmem:[%s16156_s1 + $0x10ac] sm:$0xf]  ;;  %v8961_v41 = vld [vmem:[%s16156_s1 + $0x11f8] sm:$0xf0] }
 0x2da   :  { %6154 = vmatpush.bf16.msra.mxu2 %v8644_v4  ;;  %6116 = vmatmul.bf16.vlgmr.msrb.gmra.mxu3 %v11660_v8  ;;  %v8801_v4 = vld [vmem:[%s16156_s1 + $0x10b8] sm:$0xf0]  ;;  %v8484_v8 = vor.u32 %v10382_v28, %v8481_v2  ;;  %v10534_v28 = vld [vmem:[%s16156_s1 + $0x12ec] sm:$0xf]  ;;  %v8964_v15 = vor.u32 %v10502_v33, %v8961_v41  ;;  %v15558_v33 = vld [vmem:[%s16157_s2] sm:$0xf] }
 0x2db   :  { %6164 = vmatpush.bf16.msra.mxu3 %v8836_v57  ;;  %v15484_v57 = vpop.f32.mrf.mxu0  ;;  %v8804_v63 = vor.u32 %v10462_v20, %v8801_v4  ;;  %v9089_v2 = vld [vmem:[%s16156_s1 + $0x12f8] sm:$0xf0]  ;;  %v10566_v27 = vld [vmem:[%s16156_s1 + $0x13ec] sm:$0xf]  ;;  %v841_v41 = vperm.slane %v15558_v33, 2 }
 0x2dc   :  { %6127 = vmatpush.bf16.msra.mxu0 %v8372_v51  ;;  %v8593_v51 = vld [vmem:[%s16156_s1 + $0xf18] sm:$0xf0]  ;;  %v15522_v20 = vpop.f32.mrf.mxu1  ;;  %v10454_v36 = vld [vmem:[%s16156_s1 + $0x106c] sm:$0xf]  ;;  %v9092_v21 = vor.u32 %v10534_v28, %v9089_v2 }
 0x2dd   :  { %6141 = vmatpush.bf16.msra.mxu1 %v8500_v24  ;;  %v10458_v24 = vld [vmem:[%s16156_s1 + $0x108c] sm:$0xf]  ;;  %v9217_v30 = vld [vmem:[%s16156_s1 + $0x13f8] sm:$0xf0] }
 0x2de   :  { %6155 = vmatpush.bf16.msra.mxu2 %v8628_v45  ;;  %v8785_v45 = vld [vmem:[%s16156_s1 + $0x1098] sm:$0xf0]  ;;  %v15524_v4 = vpop.f32.mrf.mxu2  ;;  %v9220_v62 = vor.u32 %v10566_v27, %v9217_v30 }
 0x2df   :  { %6165 = vmatpush.bf16.msra.mxu3 %v8820_v1  ;;  %v8340_v1 = vor.u32 %v10346_v3, %v8337_v16  ;;  %v8596_v3 = vor.u32 %v10410_v44, %v8593_v51  ;;  %v8788_v16 = vor.u32 %v10458_v24, %v8785_v45  ;;  %v8769_v48 = vld [vmem:[%s16156_s1 + $0x1078] sm:$0xf0]  ;;  %v10562_v44 = vld [vmem:[%s16156_s1 + $0x13cc] sm:$0xf]  ;;  %v16203_v51 = vperm.slane %v12014_v40, 0 }
 0x2e0   :  { %6128 = vmatpush.bf16.msra.mxu0 %v8356_v26  ;;  %v8468_v26 = vor.u32 %v10378_v12, %v8465_v5  ;;  %v10530_v12 = vld [vmem:[%s16156_s1 + $0x12cc] sm:$0xf]  ;;  %v9073_v5 = vld [vmem:[%s16156_s1 + $0x12d8] sm:$0xf0]  ;;  %v15553_v45 = vpop.f32.mrf.mxu3  ;;  %v8772_v28 = vor.u32 %v10454_v36, %v8769_v48 }
 0x2e1   :  { %6142 = vmatpush.bf16.msra.mxu1 %v8484_v8  ;;  %v10498_v8 = vld [vmem:[%s16156_s1 + $0x11cc] sm:$0xf]  ;;  %v4902_v24 = vadd.f32 %v12138_v10, %v16203_v51  ;;  %v8753_v10 = vld [vmem:[%s16156_s1 + $0x1058] sm:$0xf0]  ;;  %v9076_v27 = vor.u32 %v10530_v12, %v9073_v5 }
 0x2e2   :  { %6156 = vmatpush.bf16.msra.mxu2 %v8612_v50  ;;  %v8945_v50 = vld [vmem:[%s16156_s1 + $0x11d8] sm:$0xf0]  ;;  %v10450_v40 = vld [vmem:[%s16156_s1 + $0x104c] sm:$0xf] }
 0x2e3   :  { %6166 = vmatpush.bf16.msra.mxu3 %v8804_v63  ;;  %v9201_v63 = vld [vmem:[%s16156_s1 + $0x13d8] sm:$0xf0]  ;;  %v15567_v2 = vpop.f32.mrf.mxu0  ;;  %v10526_v36 = vld [vmem:[%s16156_s1 + $0x12ac] sm:$0xf] }
 0x2e4   :  { %6129 = vmatpush.bf16.msra.mxu0 %v8340_v1  ;;  %v8948_v1 = vor.u32 %v10498_v8, %v8945_v50  ;;  %v9204_v30 = vor.u32 %v10562_v44, %v9201_v63  ;;  %v8929_v48 = vld [vmem:[%s16156_s1 + $0x11b8] sm:$0xf0]  ;;  %v5600_v50 = vadd.f32 %v15229_v46, %v841_v41  ;;  %v15598_v12 = vpop.f32.mrf.mxu1  ;;  %v10490_v44 = vld [vmem:[%s16156_s1 + $0x118c] sm:$0xf] }
 0x2e5   :  { %6143 = vmatpush.bf16.msra.mxu1 %v8468_v26  ;;  %v9185_v26 = vld [vmem:[%s16156_s1 + $0x13b8] sm:$0xf0]  ;;  %v10522_v46 = vld [vmem:[%s16156_s1 + $0x128c] sm:$0xf] }
 0x2e6   :  { %6157 = vmatpush.bf16.msra.mxu2 %v8596_v3  ;;  %v4916_v3 = vadd.f32 %v12155_v19, %v4902_v24  ;;  %v8737_v8 = vld [vmem:[%s16156_s1 + $0x1038] sm:$0xf0]  ;;  %v15600_v5 = vpop.f32.mrf.mxu2  ;;  %v10554_v24 = vld [vmem:[%s16156_s1 + $0x138c] sm:$0xf] }
 0x2e7   :  { %6167 = vmatpush.bf16.msra.mxu3 %v8788_v16  ;;  %6130 = vmatmul.bf16.vlgmr.msra.gmra.mxu0 %v11673_v14  ;;  %v8756_v14 = vor.u32 %v10450_v40, %v8753_v10  ;;  %v10446_v16 = vld [vmem:[%s16156_s1 + $0x102c] sm:$0xf]  ;;  %v8913_v63 = vld [vmem:[%s16156_s1 + $0x1198] sm:$0xf0]  ;;  %v5602_v10 = vadd.f32 %v15310_v23, %v841_v41 }
 0x2e8   :  { %6178 = vmatpush.bf16.msrb.mxu0 %v8964_v15  ;;  %v10494_v15 = vld [vmem:[%s16156_s1 + $0x11ac] sm:$0xf]  ;;  %6144 = vmatmul.bf16.vlgmr.msra.gmra.mxu1 %v11671_v13  ;;  %v9041_v51 = vld [vmem:[%s16156_s1 + $0x1298] sm:$0xf0]  ;;  %v15621_v40 = vpop.f32.mrf.mxu3 }
 0x2e9   :  { %6192 = vmatpush.bf16.msrb.mxu1 %v9092_v21  ;;  %6158 = vmatmul.bf16.vlgmr.msra.gmra.mxu2 %v11684_v18  ;;  %v10558_v21 = vld [vmem:[%s16156_s1 + $0x13ac] sm:$0xf]  ;;  %v8932_v18 = vor.u32 %v10494_v15, %v8929_v48  ;;  %v8721_v48 = vld [vmem:[%s16156_s1 + $0x1018] sm:$0xf0] }
 0x2ea   :  { %6206 = vmatpush.bf16.msrb.mxu2 %v9220_v62  ;;  %v9057_v62 = vld [vmem:[%s16156_s1 + $0x12b8] sm:$0xf0]  ;;  %v9188_v19 = vor.u32 %v10558_v21, %v9185_v26  ;;  %v10442_v15 = vld [vmem:[%s16156_s1 + $0x100c] sm:$0xf] }
 0x2eb   :  { %6168 = vmatpush.bf16.msra.mxu3 %v8772_v28  ;;  %v9060_v13 = vor.u32 %v10526_v36, %v9057_v62  ;;  %v9169_v28 = vld [vmem:[%s16156_s1 + $0x1398] sm:$0xf0]  ;;  %v5614_v36 = vadd.f32 %v15330_v42, %v5600_v50  ;;  %v15631_v62 = vpop.f32.mrf.mxu0  ;;  %v10486_v41 = vld [vmem:[%s16156_s1 + $0x116c] sm:$0xf] }
 0x2ec   :  { %6179 = vmatpush.bf16.msrb.mxu0 %v8948_v1  ;;  %v4930_v1 = vadd.f32 %v12185_v54, %v4916_v3  ;;  %v9044_v54 = vor.u32 %v10522_v46, %v9041_v51  ;;  %v9172_v23 = vor.u32 %v10554_v24, %v9169_v28  ;;  %v8897_v21 = vld [vmem:[%s16156_s1 + $0x1178] sm:$0xf0]  ;;  %v10518_v26 = vld [vmem:[%s16156_s1 + $0x126c] sm:$0xf]  ;;  %v15663_v46 = vpop.f32.mrf.mxu1 }
 0x2ed   :  { %6193 = vmatpush.bf16.msrb.mxu1 %v9076_v27  ;;  %v8740_v27 = vor.u32 %v10446_v16, %v8737_v8  ;;  %v9025_v42 = vld [vmem:[%s16156_s1 + $0x1278] sm:$0xf0]  ;;  %v10550_v3 = vld [vmem:[%s16156_s1 + $0x136c] sm:$0xf]  ;;  %v16204_v16 = vperm.slane %v13254_v60, 1 }
 0x2ee   :  { %6207 = vmatpush.bf16.msrb.mxu2 %v9204_v30  ;;  %v8916_v30 = vor.u32 %v10490_v44, %v8913_v63  ;;  %v10598_v50 = vld [vmem:[%s16156_s1 + $0x14ec] sm:$0xf]  ;;  %v8724_v44 = vor.u32 %v10442_v15, %v8721_v48  ;;  %v8900_v63 = vor.u32 %v10486_v41, %v8897_v21  ;;  %v15665_v60 = vpop.f32.mrf.mxu2  ;;  %v9329_v48 = vld [vmem:[%s16156_s1 + $0x14d8] sm:$0xf0] }
 0x2ef   :  { %6169 = vmatpush.bf16.msra.mxu3 %v8756_v14  ;;  %v9153_v14 = vld [vmem:[%s16156_s1 + $0x1378] sm:$0xf0]  ;;  %v5252_v8 = vadd.f32 %v13380_v11, %v16204_v16  ;;  %v9028_v11 = vor.u32 %v10518_v26, %v9025_v42  ;;  %v10482_v24 = vld [vmem:[%s16156_s1 + $0x114c] sm:$0xf] }
 0x2f0   :  { %6180 = vmatpush.bf16.msrb.mxu0 %v8932_v18  ;;  %v4944_v18 = vadd.f32 %v12217_v9, %v4930_v1  ;;  %v5628_v9 = vadd.f32 %v15338_v34, %v5614_v36  ;;  %v9156_v51 = vor.u32 %v10550_v3, %v9153_v14  ;;  %v10514_v34 = vld [vmem:[%s16156_s1 + $0x124c] sm:$0xf]  ;;  %v9009_v1 = vld [vmem:[%s16156_s1 + $0x1258] sm:$0xf0]  ;;  %v15695_v21 = vpop.f32.mrf.mxu3 }
 0x2f1   :  { %6194 = vmatpush.bf16.msrb.mxu1 %v9060_v13  ;;  %v9345_v13 = vld [vmem:[%s16156_s1 + $0x14f8] sm:$0xf0]  ;;  %v10594_v15 = vld [vmem:[%s16156_s1 + $0x14cc] sm:$0xf]  ;;  %v5266_v36 = vadd.f32 %v13433_v58, %v5252_v8 }
 0x2f2   :  { %6208 = vmatpush.bf16.msrb.mxu2 %v9188_v19  ;;  %v5616_v19 = vadd.f32 %v15395_v25, %v5602_v10  ;;  %v8881_v25 = vld [vmem:[%s16156_s1 + $0x1158] sm:$0xf0]  ;;  %v9348_v28 = vor.u32 %v10598_v50, %v9345_v13  ;;  %v10546_v10 = vld [vmem:[%s16156_s1 + $0x134c] sm:$0xf]  ;;  %v5642_v41 = vadd.f32 %v15367_v39, %v5628_v9  ;;  %v9332_v39 = vor.u32 %v10594_v15, %v9329_v48 }
 0x2f3   :  { %6170 = vmatpush.bf16.msra.mxu3 %v8740_v27  ;;  %v9137_v27 = vld [vmem:[%s16156_s1 + $0x1358] sm:$0xf0]  ;;  %v10478_v42 = vld [vmem:[%s16156_s1 + $0x112c] sm:$0xf]  ;;  %v15715_v16 = vpop.f32.mrf.mxu0 }
 0x2f4   :  { %6181 = vmatpush.bf16.msrb.mxu0 %v8916_v30  ;;  %v4958_v30 = vadd.f32 %v12354_v29, %v4944_v18  ;;  %v9012_v29 = vor.u32 %v10514_v34, %v9009_v1  ;;  %v9140_v26 = vor.u32 %v10546_v10, %v9137_v27  ;;  %v8865_v58 = vld [vmem:[%s16156_s1 + $0x1138] sm:$0xf0]  ;;  %v10542_v14 = vld [vmem:[%s16156_s1 + $0x132c] sm:$0xf]  ;;  %v15754_v27 = vpop.f32.mrf.mxu1 }
 0x2f5   :  { %6195 = vmatpush.bf16.msrb.mxu1 %v9044_v54  ;;  %v5630_v54 = vadd.f32 %v15415_v59, %v5616_v19  ;;  %v10510_v59 = vld [vmem:[%s16156_s1 + $0x122c] sm:$0xf]  ;;  %v8993_v3 = vld [vmem:[%s16156_s1 + $0x1238] sm:$0xf0]  ;;  %v5280_v19 = vadd.f32 %v13447_v56, %v5266_v36 }
 0x2f6   :  { %6209 = vmatpush.bf16.msrb.mxu2 %v9172_v23  ;;  %v8884_v23 = vor.u32 %v10482_v24, %v8881_v25  ;;  %v9121_v18 = vld [vmem:[%s16156_s1 + $0x1338] sm:$0xf0]  ;;  %v10590_v8 = vld [vmem:[%s16156_s1 + $0x14ac] sm:$0xf]  ;;  %v4972_v13 = vadd.f32 %v12362_v35, %v4958_v30  ;;  %v15756_v30 = vpop.f32.mrf.mxu2 }
 0x2f7   :  { %6171 = vmatpush.bf16.msra.mxu3 %v8724_v44  ;;  %v9313_v50 = vld [vmem:[%s16156_s1 + $0x14b8] sm:$0xf0]  ;;  %v5644_v44 = vadd.f32 %v15441_v47, %v5630_v54  ;;  %v9124_v35 = vor.u32 %v10542_v14, %v9121_v18  ;;  %v10506_v56 = vld [vmem:[%s16156_s1 + $0x120c] sm:$0xf]  ;;  %v5294_v36 = vadd.f32 %v13474_v6, %v5280_v19 }
 0x2f8   :  { %6182 = vmatpush.bf16.msrb.mxu0 %v8900_v63  ;;  %v8868_v63 = vor.u32 %v10478_v42, %v8865_v58  ;;  %v8849_v9 = vld [vmem:[%s16156_s1 + $0x1118] sm:$0xf0]  ;;  %v10538_v24 = vld [vmem:[%s16156_s1 + $0x130c] sm:$0xf]  ;;  %v4986_v10 = vadd.f32 %v12403_v7, %v4972_v13 }
 0x2f9   :  { %6196 = vmatpush.bf16.msrb.mxu1 %v9028_v11  ;;  %v5656_v11 = vadd.f32 %v15387_v22, %v5642_v41  ;;  %v8977_v47 = vld [vmem:[%s16156_s1 + $0x1218] sm:$0xf0]  ;;  %v5658_v25 = vadd.f32 %v15449_v32, %v5644_v44  ;;  %v9316_v22 = vor.u32 %v10590_v8, %v9313_v50  ;;  %v10630_v32 = vld [vmem:[%s16156_s1 + $0x15ec] sm:$0xf] }
 0x2fa   :  { %6210 = vmatpush.bf16.msrb.mxu2 %v9156_v51  ;;  %6172 = vmatmul.bf16.vlgmr.msra.gmra.mxu3 %v11903_v31  ;;  %v10474_v31 = vld [vmem:[%s16156_s1 + $0x110c] sm:$0xf]  ;;  %v8996_v51 = vor.u32 %v10510_v59, %v8993_v3  ;;  %v9105_v34 = vld [vmem:[%s16156_s1 + $0x1318] sm:$0xf0]  ;;  %v8980_v6 = vor.u32 %v10506_v56, %v8977_v47 }
 0x2fb   :  { %6220 = vmatpush.bf16.msrb.mxu3 %v9348_v28  ;;  %v10586_v28 = vld [vmem:[%s16156_s1 + $0x148c] sm:$0xf]  ;;  %v9297_v1 = vld [vmem:[%s16156_s1 + $0x1498] sm:$0xf0]  ;;  %v8852_v7 = vor.u32 %v10474_v31, %v8849_v9  ;;  %v9108_v42 = vor.u32 %v10538_v24, %v9105_v34  ;;  %v5672_v58 = vadd.f32 %v15553_v45, %v5658_v25  ;;  %v15788_v18 = vpop.f32.mrf.mxu0 }
 0x2fc   :  { %6183 = vmatpush.bf16.msrb.mxu0 %v8884_v23  ;;  %v9473_v15 = vld [vmem:[%s16156_s1 + $0x15f8] sm:$0xf0]  ;;  %v10662_v48 = vld [vmem:[%s16156_s1 + $0x16ec] sm:$0xf]  ;;  %v9300_v59 = vor.u32 %v10586_v28, %v9297_v1  ;;  %v15819_v25 = vpop.f32.mrf.mxu1 }
 0x2fd   :  { %6197 = vmatpush.bf16.msrb.mxu1 %v9012_v29  ;;  %v9601_v54 = vld [vmem:[%s16156_s1 + $0x16f8] sm:$0xf0]  ;;  %v10694_v23 = vld [vmem:[%s16156_s1 + $0x17ec] sm:$0xf]  ;;  %v5670_v29 = vadd.f32 %v15469_v49, %v5656_v11  ;;  %v5000_v49 = vadd.f32 %v12414_v17, %v4986_v10  ;;  %v5686_v44 = vadd.f32 %v15567_v2, %v5672_v58  ;;  %v5308_v11 = vadd.f32 %v13606_v55, %v5294_v36  ;;  %v16206_v36 = vld [vmem:[#allocation4_spill] sm:$0xff] }
 0x2fe   :  { %6211 = vmatpush.bf16.msrb.mxu2 %v9140_v26  ;;  %v9729_v41 = vld [vmem:[%s16156_s1 + $0x17f8] sm:$0xf0]  ;;  %v15778_v26 = vpop.f32.mrf.mxu3  ;;  %v10582_v3 = vld [vmem:[%s16156_s1 + $0x146c] sm:$0xf]  ;;  %v9604_v8 = vor.u32 %v10662_v48, %v9601_v54  ;;  %v15821_v55 = vpop.f32.mrf.mxu2 }
 0x2ff   :  { %6221 = vmatpush.bf16.msrb.mxu3 %v9332_v39  ;;  %v9476_v39 = vor.u32 %v10630_v32, %v9473_v15  ;;  %v9281_v14 = vld [vmem:[%s16156_s1 + $0x1478] sm:$0xf0]  ;;  %v9732_v50 = vor.u32 %v10694_v23, %v9729_v41  ;;  %v10626_v45 = vld [vmem:[%s16156_s1 + $0x15cc] sm:$0xf]  ;;  %v5014_v9 = vadd.f32 %v12561_v0, %v5000_v49  ;;  %v5700_v10 = vadd.f32 %v15598_v12, %v5686_v44 }
 0x300   :  { %6184 = vmatpush.bf16.msrb.mxu0 %v8868_v63  ;;  %v9457_v13 = vld [vmem:[%s16156_s1 + $0x15d8] sm:$0xf0]  ;;  %v10658_v19 = vld [vmem:[%s16156_s1 + $0x16cc] sm:$0xf]  ;;  %v9284_v2 = vor.u32 %v10582_v3, %v9281_v14 }
 0x301   :  { %6198 = vmatpush.bf16.msrb.mxu1 %v8996_v51  ;;  %v9585_v17 = vld [vmem:[%s16156_s1 + $0x16d8] sm:$0xf0]  ;;  %v10690_v63 = vld [vmem:[%s16156_s1 + $0x17cc] sm:$0xf]  ;;  %v5684_v51 = vadd.f32 %v15484_v57, %v5670_v29  ;;  %v16207_v29 = vld [vmem:[#allocation22_spill] sm:$0xff] }
 0x302   :  { %6212 = vmatpush.bf16.msrb.mxu2 %v9124_v35  ;;  %v9713_v31 = vld [vmem:[%s16156_s1 + $0x17d8] sm:$0xf0]  ;;  %v9460_v35 = vor.u32 %v10626_v45, %v9457_v13  ;;  %v10578_v56 = vld [vmem:[%s16156_s1 + $0x144c] sm:$0xf]  ;;  %v9588_v57 = vor.u32 %v10658_v19, %v9585_v17 }
 0x303   :  { %6222 = vmatpush.bf16.msrb.mxu3 %v9316_v22  ;;  %v9265_v47 = vld [vmem:[%s16156_s1 + $0x1458] sm:$0xf0]  ;;  %v16205_v24 = vld [vmem:[#allocation21_spill] sm:$0xff]  ;;  %v9716_v22 = vor.u32 %v10690_v63, %v9713_v31  ;;  %v5698_v12 = vadd.f32 %v15522_v20, %v5684_v51  ;;  %v15878_v19 = vpop.f32.mrf.mxu0 }
 0x304   :  { %6185 = vmatpush.bf16.msrb.mxu0 %v8852_v7  ;;  %v5322_v0 = vadd.f32 %v16205_v24, %v5308_v11  ;;  %v10622_v34 = vld [vmem:[%s16156_s1 + $0x15ac] sm:$0xf]  ;;  %v9441_v28 = vld [vmem:[%s16156_s1 + $0x15b8] sm:$0xf0]  ;;  %v5028_v7 = vadd.f32 %v16206_v36, %v5014_v9  ;;  %v16210_v9 = vld [vmem:[#allocation24_spill] sm:$0xff] }
 0x305   :  { %6199 = vmatpush.bf16.msrb.mxu1 %v8980_v6  ;;  %v10654_v1 = vld [vmem:[%s16156_s1 + $0x16ac] sm:$0xf]  ;;  %v9569_v32 = vld [vmem:[%s16156_s1 + $0x16b8] sm:$0xf0]  ;;  %v9444_v54 = vor.u32 %v10622_v34, %v9441_v28  ;;  %v16211_v34 = vld [vmem:[#allocation6_spill] sm:$0xff] }
 0x306   :  { %6213 = vmatpush.bf16.msrb.mxu2 %v9108_v42  ;;  %v10686_v15 = vld [vmem:[%s16156_s1 + $0x17ac] sm:$0xf]  ;;  %v9697_v48 = vld [vmem:[%s16156_s1 + $0x17b8] sm:$0xf0]  ;;  %v5336_v6 = vadd.f32 %v16207_v29, %v5322_v0  ;;  %v15855_v42 = vpop.f32.mrf.mxu3 }
 0x307   :  { %6223 = vmatpush.bf16.msrb.mxu3 %v9300_v59  ;;  %6186 = vmatmul.bf16.vlgmr.msrb.gmra.mxu0 %v11913_v38  ;;  %v5714_v38 = vadd.f32 %v15600_v5, %v5700_v10  ;;  %v10574_v23 = vld [vmem:[%s16156_s1 + $0x142c] sm:$0xf]  ;;  %v9249_v41 = vld [vmem:[%s16156_s1 + $0x1438] sm:$0xf0]  ;;  %v9700_v20 = vor.u32 %v10686_v15, %v9697_v48 }
 0x308   :  { %6234 = vmatpush.bf16.msra.mxu0 %v9476_v39  ;;  %6200 = vmatmul.bf16.vlgmr.msrb.gmra.mxu1 %v11911_v37  ;;  %v9572_v37 = vor.u32 %v10654_v1, %v9569_v32  ;;  %v10618_v5 = vld [vmem:[%s16156_s1 + $0x158c] sm:$0xf]  ;;  %v9425_v58 = vld [vmem:[%s16156_s1 + $0x1598] sm:$0xf0]  ;;  %v5712_v39 = vadd.f32 %v15524_v4, %v5698_v12  ;;  %v9252_v44 = vor.u32 %v10574_v23, %v9249_v41  ;;  %v15910_v32 = vpop.f32.mrf.mxu1 }
 0x309   :  { %6248 = vmatpush.bf16.msra.mxu1 %v9604_v8  ;;  %6214 = vmatmul.bf16.vlgmr.msrb.gmra.mxu2 %v11918_v43  ;;  %v9268_v43 = vor.u32 %v10578_v56, %v9265_v47  ;;  %v10650_v59 = vld [vmem:[%s16156_s1 + $0x168c] sm:$0xf]  ;;  %v9553_v3 = vld [vmem:[%s16156_s1 + $0x1698] sm:$0xf0]  ;;  %v5728_v4 = vadd.f32 %v15695_v21, %v5714_v38  ;;  %v9428_v17 = vor.u32 %v10618_v5, %v9425_v58 }
 0x30a   :  { %6262 = vmatpush.bf16.msra.mxu2 %v9732_v50  ;;  %v10682_v14 = vld [vmem:[%s16156_s1 + $0x178c] sm:$0xf]  ;;  %v9681_v49 = vld [vmem:[%s16156_s1 + $0x1798] sm:$0xf0]  ;;  %v9556_v51 = vor.u32 %v10650_v59, %v9553_v3  ;;  %v5726_v47 = vadd.f32 %v15621_v40, %v5712_v39  ;;  %v15912_v40 = vpop.f32.mrf.mxu2  ;;  %v16214_v59 = vld [vmem:[#allocation26_spill] sm:$0xff] }
 0x30b   :  { %6224 = vmatpush.bf16.msrb.mxu3 %v9284_v2  ;;  %v16208_v8 = vld [vmem:[#allocation5_spill] sm:$0xff]  ;;  %v16209_v45 = vld [vmem:[#allocation23_spill] sm:$0xff]  ;;  %v9684_v2 = vor.u32 %v10682_v14, %v9681_v49  ;;  %v5742_v24 = vadd.f32 %v15715_v16, %v5728_v4  ;;  %v15944_v3 = vpop.f32.mrf.mxu0 }
 0x30c   :  { %6235 = vmatpush.bf16.msra.mxu0 %v9460_v35  ;;  %v5042_v50 = vadd.f32 %v16208_v8, %v5028_v7  ;;  %v5350_v13 = vadd.f32 %v16209_v45, %v5336_v6  ;;  %v10570_v63 = vld [vmem:[%s16156_s1 + $0x140c] sm:$0xf]  ;;  %v9233_v31 = vld [vmem:[%s16156_s1 + $0x1418] sm:$0xf0]  ;;  %v5740_v48 = vadd.f32 %v15631_v62, %v5726_v47 }
 0x30d   :  { %6249 = vmatpush.bf16.msra.mxu1 %v9588_v57  ;;  %v10614_v21 = vld [vmem:[%s16156_s1 + $0x156c] sm:$0xf]  ;;  %v9409_v35 = vld [vmem:[%s16156_s1 + $0x1578] sm:$0xf0]  ;;  %v9236_v36 = vor.u32 %v10570_v63, %v9233_v31  ;;  %v5756_v6 = vadd.f32 %v15754_v27, %v5742_v24 }
 0x30e   :  { %6263 = vmatpush.bf16.msra.mxu2 %v9716_v22  ;;  %v5364_v11 = vadd.f32 %v16210_v9, %v5350_v13  ;;  %v10646_v56 = vld [vmem:[%s16156_s1 + $0x166c] sm:$0xf]  ;;  %v9537_v0 = vld [vmem:[%s16156_s1 + $0x1678] sm:$0xf0]  ;;  %v5056_v28 = vadd.f32 %v16211_v34, %v5042_v50  ;;  %v9412_v7 = vor.u32 %v10614_v21, %v9409_v35  ;;  %v15921_v12 = vpop.f32.mrf.mxu3  ;;  %v5754_v49 = vadd.f32 %v15663_v46, %v5740_v48  ;;  %v16217_v35 = vld [vmem:[#allocation28_spill] sm:$0xff] }
 0x30f   :  { %6225 = vmatpush.bf16.msrb.mxu3 %v9268_v43  ;;  %v10678_v57 = vld [vmem:[%s16156_s1 + $0x176c] sm:$0xf]  ;;  %v9665_v22 = vld [vmem:[%s16156_s1 + $0x1778] sm:$0xf0]  ;;  %v9540_v38 = vor.u32 %v10646_v56, %v9537_v0  ;;  %v5770_v8 = vadd.f32 %v15756_v30, %v5756_v6  ;;  %v16216_v30 = vld [vmem:[#allocation8_spill] sm:$0xff] }
 0x310   :  { %6236 = vmatpush.bf16.msra.mxu0 %v9444_v54  ;;  %v16212_v1 = vld [vmem:[#allocation25_spill] sm:$0xff]  ;;  %v9793_v15 = vld [vmem:[%s16156_s1 + $0x1878] sm:$0xf0]  ;;  %v9668_v43 = vor.u32 %v10678_v57, %v9665_v22  ;;  %v5768_v9 = vadd.f32 %v15665_v60, %v5754_v49  ;;  %v15976_v47 = vpop.f32.mrf.mxu1 }
 0x311   :  { %6250 = vmatpush.bf16.msra.mxu1 %v9572_v37  ;;  %v5378_v10 = vadd.f32 %v16212_v1, %v5364_v11  ;;  %v10710_v16 = vld [vmem:[%s16156_s1 + $0x186c] sm:$0xf]  ;;  %v9393_v23 = vld [vmem:[%s16156_s1 + $0x1558] sm:$0xf0]  ;;  %v5784_v34 = vadd.f32 %v15855_v42, %v5770_v8 }
 0x312   :  { %6264 = vmatpush.bf16.msra.mxu2 %v9700_v20  ;;  %v10610_v54 = vld [vmem:[%s16156_s1 + $0x154c] sm:$0xf]  ;;  %v16213_v41 = vld [vmem:[#allocation7_spill] sm:$0xff]  ;;  %v9796_v37 = vor.u32 %v10710_v16, %v9793_v15  ;;  %v15978_v24 = vpop.f32.mrf.mxu2 }
 0x313   :  { %6226 = vmatpush.bf16.msrb.mxu3 %v9252_v44  ;;  %v10642_v62 = vld [vmem:[%s16156_s1 + $0x164c] sm:$0xf]  ;;  %v5070_v29 = vadd.f32 %v16213_v41, %v5056_v28  ;;  %v9521_v20 = vld [vmem:[%s16156_s1 + $0x1658] sm:$0xf0]  ;;  %v5392_v39 = vadd.f32 %v16214_v59, %v5378_v10  ;;  %v9396_v50 = vor.u32 %v10610_v54, %v9393_v23  ;;  %v16220_v41 = vld [vmem:[#allocation10_spill] sm:$0xff] }
 0x314   :  { %6237 = vmatpush.bf16.msra.mxu0 %v9428_v17  ;;  %v10674_v5 = vld [vmem:[%s16156_s1 + $0x174c] sm:$0xf]  ;;  %v9649_v58 = vld [vmem:[%s16156_s1 + $0x1758] sm:$0xf0]  ;;  %v9524_v4 = vor.u32 %v10642_v62, %v9521_v20  ;;  %v16221_v20 = vld [vmem:[#allocation30_spill] sm:$0xff] }
 0x315   :  { %6251 = vmatpush.bf16.msra.mxu1 %v9556_v51  ;;  %v10706_v27 = vld [vmem:[%s16156_s1 + $0x184c] sm:$0xf]  ;;  %v9777_v14 = vld [vmem:[%s16156_s1 + $0x1858] sm:$0xf0]  ;;  %v9652_v44 = vor.u32 %v10674_v5, %v9649_v58  ;;  %v5084_v31 = vadd.f32 %v16216_v30, %v5070_v29  ;;  %v5853_v58 = vpop.f32.mrf.mxu0 }
 0x316   :  { %6265 = vmatpush.bf16.msra.mxu2 %v9684_v2  ;;  %v16215_v45 = vld [vmem:[#allocation27_spill] sm:$0xff]  ;;  %v10606_v17 = vld [vmem:[%s16156_s1 + $0x152c] sm:$0xf]  ;;  %v9780_v11 = vor.u32 %v10706_v27, %v9777_v14  ;;  %v5839_v62 = vpop.f32.mrf.mxu3 }
 0x317   :  { %6227 = vmatpush.bf16.msrb.mxu3 %v9236_v36  ;;  %v5406_v13 = vadd.f32 %v16215_v45, %v5392_v39  ;;  %v9377_v63 = vld [vmem:[%s16156_s1 + $0x1538] sm:$0xf0]  ;;  %v10638_v46 = vld [vmem:[%s16156_s1 + $0x162c] sm:$0xf]  ;;  %v5782_v36 = vadd.f32 %v15778_v26, %v5768_v9  ;;  %v10719_v9 = vld [vmem:[%s16158_s3 + $0x30] sm:$0xff] }
 0x318   :  { %6238 = vmatpush.bf16.msra.mxu0 %v9412_v7  ;;  %v9505_v51 = vld [vmem:[%s16156_s1 + $0x1638] sm:$0xf0]  ;;  %v10670_v2 = vld [vmem:[%s16156_s1 + $0x172c] sm:$0xf]  ;;  %v9380_v28 = vor.u32 %v10606_v17, %v9377_v63  ;;  %v5798_v7 = vadd.f32 %v15878_v19, %v5784_v34  ;;  %v16224_v17 = vld [vmem:[#allocation32_spill] sm:$0xff] }
 0x319   :  { %6252 = vmatpush.bf16.msra.mxu1 %v9540_v38  ;;  %v9633_v21 = vld [vmem:[%s16156_s1 + $0x1738] sm:$0xf0]  ;;  %v5420_v56 = vadd.f32 %v16217_v35, %v5406_v13  ;;  %v10702_v60 = vld [vmem:[%s16156_s1 + $0x182c] sm:$0xf]  ;;  %v9508_v16 = vor.u32 %v10638_v46, %v9505_v51  ;;  %v5796_v26 = vadd.f32 %v15788_v18, %v5782_v36  ;;  %v5867_v46 = vpop.f32.mrf.mxu1 }
 0x31a   :  { %6266 = vmatpush.bf16.msra.mxu2 %v9668_v43  ;;  %6228 = vmatmul.bf16.vlgmr.msrb.gmra.mxu3 %v12031_v52  ;;  %v9761_v0 = vld [vmem:[%s16156_s1 + $0x1838] sm:$0xf0]  ;;  %v16218_v57 = vld [vmem:[#allocation9_spill] sm:$0xff]  ;;  %v9636_v52 = vor.u32 %v10670_v2, %v9633_v21  ;;  %v5812_v27 = vadd.f32 %v15910_v32, %v5798_v7  ;;  %v5881_v30 = vpop.f32.mrf.mxu2 }
 0x31b   :  { %6280 = vmatpush.bf16.msra.mxu3 %v9796_v37  ;;  %v5098_v22 = vadd.f32 %v16218_v57, %v5084_v31  ;;  %v16219_v1 = vld [vmem:[#allocation29_spill] sm:$0xff]  ;;  %v9361_v48 = vld [vmem:[%s16156_s1 + $0x1518] sm:$0xf0]  ;;  %v9764_v38 = vor.u32 %v10702_v60, %v9761_v0  ;;  %v5810_v32 = vadd.f32 %v15819_v25, %v5796_v26  ;;  %v10727_v25 = vld [vmem:[%s16158_s3 + $0x70] sm:$0xff] }
 0x31c   :  { %6239 = vmatpush.bf16.msra.mxu0 %v9396_v50  ;;  %v5434_v10 = vadd.f32 %v16219_v1, %v5420_v56  ;;  %v10602_v15 = vld [vmem:[%s16156_s1 + $0x150c] sm:$0xf]  ;;  %v9489_v43 = vld [vmem:[%s16156_s1 + $0x1618] sm:$0xf0]  ;;  %v16229_v1 = vld [vmem:[#allocation34_spill] sm:$0xff] }
 0x31d   :  { %6253 = vmatpush.bf16.msra.mxu1 %v9524_v4  ;;  %v10634_v42 = vld [vmem:[%s16156_s1 + $0x160c] sm:$0xf]  ;;  %v9617_v23 = vld [vmem:[%s16156_s1 + $0x1718] sm:$0xf0]  ;;  %v5112_v29 = vadd.f32 %v16220_v41, %v5098_v22  ;;  %v9364_v19 = vor.u32 %v10602_v15, %v9361_v48  ;;  %v5824_v31 = vadd.f32 %v15821_v55, %v5810_v32  ;;  %v10735_v55 = vld [vmem:[%s16158_s3 + $0xb0] sm:$0xff]  ;;  %v5907_v0 = vpop.f32.mrf.mxu0 }
 0x31e   :  { %6267 = vmatpush.bf16.msra.mxu2 %v9652_v44  ;;  %v10666_v54 = vld [vmem:[%s16156_s1 + $0x170c] sm:$0xf]  ;;  %v9745_v37 = vld [vmem:[%s16156_s1 + $0x1818] sm:$0xf0]  ;;  %v5448_v5 = vadd.f32 %v16221_v20, %v5434_v10  ;;  %v9492_v59 = vor.u32 %v10634_v42, %v9489_v43  ;;  %v5826_v44 = vadd.f32 %v15912_v40, %v5812_v27  ;;  %v16225_v40 = vld [vmem:[#allocation12_spill] sm:$0xff]  ;;  %v5893_v21 = vpop.f32.mrf.mxu3 }
 0x31f   :  { %6281 = vmatpush.bf16.msra.mxu3 %v9780_v11  ;;  %v10698_v6 = vld [vmem:[%s16156_s1 + $0x180c] sm:$0xf]  ;;  %v9620_v39 = vor.u32 %v10666_v54, %v9617_v23  ;;  %v10720_v18 = vld [vmem:[%s16158_s3 + $0x38] sm:$0xff]  ;;  %v5838_v22 = vadd.f32 %v15921_v12, %v5824_v31  ;;  %v10750_v10 = vld [vmem:[#allocation1] sm:$0xff] }
 0x320   :  { %6240 = vmatpush.bf16.msra.mxu0 %v9380_v28  ;;  %v10728_v14 = vld [vmem:[%s16158_s3 + $0x78] sm:$0xff]  ;;  %v9748_v4 = vor.u32 %v10698_v6, %v9745_v37  ;;  %v16226_v51 = vld [vmem:[#allocation33_spill] sm:$0xff]  ;;  %v5840_v35 = vadd.f32 %v5839_v62, %v5826_v44  ;;  %v10725_v43 = vld [vmem:[%s16158_s3 + $0x60] sm:$0xff] }
 0x321   :  { %6254 = vmatpush.bf16.msra.mxu1 %v9508_v16  ;;  %v16222_v49 = vld [vmem:[#allocation11_spill] sm:$0xff]  ;;  %v16227_v56 = vld [vmem:[#allocation13_spill] sm:$0xff]  ;;  %v5852_v16 = vadd.f32 %v15944_v3, %v5838_v22  ;;  %v5921_v36 = vpop.f32.mrf.mxu1  ;;  %v16233_v62 = vld [vmem:[#allocation36_spill] sm:$0xff] }
 0x322   :  { %6268 = vmatpush.bf16.msra.mxu2 %v9636_v52  ;;  %v5126_v8 = vadd.f32 %v16222_v49, %v5112_v29  ;;  %v16223_v50 = vld [vmem:[#allocation31_spill] sm:$0xff]  ;;  %v5854_v34 = vadd.f32 %v5853_v58, %v5840_v35  ;;  %v10718_v28 = vld [vmem:[%s16158_s3 + $0x28] sm:$0xff]  ;;  %v16230_v52 = vld [vmem:[#allocation14_spill] sm:$0xff]  ;;  %v5935_v41 = vpop.f32.mrf.mxu2 }
 0x323   :  { %6282 = vmatpush.bf16.msra.mxu3 %v9764_v38  ;;  %v5462_v45 = vadd.f32 %v16223_v50, %v5448_v5  ;;  %v10736_v13 = vld [vmem:[%s16158_s3 + $0xb8] sm:$0xff]  ;;  %v10734_v12 = vld [vmem:[%s16158_s3 + $0xa8] sm:$0xff]  ;;  %v10717_v38 = vld [vmem:[%s16158_s3 + $0x20] sm:$0xff]  ;;  %v5866_v26 = vadd.f32 %v15976_v47, %v5852_v16 }
 0x324   :  { %6241 = vmatpush.bf16.msra.mxu0 %v9364_v19  ;;  %v5140_v11 = vadd.f32 %v16225_v40, %v5126_v8  ;;  %v16228_v57 = vld [vmem:[#allocation3_spill] sm:$0xff]  ;;  %v5868_v7 = vadd.f32 %v5867_v46, %v5854_v34  ;;  %v10733_v29 = vld [vmem:[%s16158_s3 + $0xa0] sm:$0xff]  ;;  %v16234_v6 = vld [vmem:[#allocation38_spill] sm:$0xff] }
 0x325   :  { %v5476_v63 = vadd.f32 %v16224_v17, %v5462_v45  ;;  %6255 = vmatpush.bf16.msra.mxu1 %v9492_v59  ;;  %v16231_v48 = vld [vmem:[#allocation35_spill] sm:$0xff]  ;;  %v5880_v5 = vadd.f32 %v15978_v24, %v5866_v26  ;;  %v16236_v24 = vld [vmem:[#allocation18_spill] sm:$0xff]  ;;  %v16238_v44 = vld [vmem:[#allocation40_spill] sm:$0xff] }
 0x326   :  { %6269 = vmatpush.bf16.msra.mxu2 %v9620_v39  ;;  %v5154_v60 = vadd.f32 %v16227_v56, %v5140_v11  ;;  %v16232_v54 = vld [vmem:[#allocation15_spill] sm:$0xff]  ;;  %v5882_v19 = vadd.f32 %v5881_v30, %v5868_v7  ;;  %v5895_v20 = vpop.f32.mrf.mxu3  ;;  %v16235_v39 = vld [vmem:[#allocation17_spill] sm:$0xff]  ;;  %v10723_v32 = vld [vmem:[%s16158_s3 + $0x50] sm:$0xff] }
 0x327   :  { %v5490_v2 = vadd.f32 %v16226_v51, %v5476_v63  ;;  %6283 = vmatpush.bf16.msra.mxu3 %v9748_v4  ;;  %6242 = vmatmul.bf16.vlgmr.msra.gmra.mxu0 %v12051_v61  ;;  %v10726_v61 = vld [vmem:[%s16158_s3 + $0x68] sm:$0xff]  ;;  %v10716_v58 = vld [vmem:[%s16158_s3 + $0x18] sm:$0xff]  ;;  %v5894_v45 = vadd.f32 %v5893_v21, %v5880_v5  ;;  %v10715_v4 = vld [vmem:[%s16158_s3 + $0x10] sm:$0xff] }
 0x328   :  { %6562 = vmatpush.bf16.msrb.mxu0 %v10720_v18  ;;  %6256 = vmatmul.bf16.vlgmr.msra.gmra.mxu1 %v12033_v53  ;;  %v5168_v15 = vadd.f32 %v16230_v52, %v5154_v60  ;;  %v10724_v59 = vld [vmem:[%s16158_s3 + $0x58] sm:$0xff]  ;;  %v5909_v18 = vpop.f32.mrf.mxu0  ;;  %v10731_v46 = vld [vmem:[%s16158_s3 + $0x90] sm:$0xff]  ;;  %v10714_v11 = vld [vmem:[%s16158_s3 + $0x8] sm:$0xff] }
 0x329   :  { %6576 = vmatpush.bf16.msrb.mxu1 %v10728_v14  ;;  %6270 = vmatmul.bf16.vlgmr.msra.gmra.mxu2 %v16228_v57  ;;  %v5504_v53 = vadd.f32 %v16229_v1, %v5490_v2  ;;  %v10732_v47 = vld [vmem:[%s16158_s3 + $0x98] sm:$0xff]  ;;  %v5896_v14 = vadd.f32 %v5895_v20, %v5882_v19  ;;  %v5923_v63 = vpop.f32.mrf.mxu1  ;;  %v5908_v30 = vadd.f32 %v5907_v0, %v5894_v45  ;;  %v10722_v51 = vld [vmem:[%s16158_s3 + $0x48] sm:$0xff]  ;;  %v16240_v2 = vld [vmem:[#allocation20_spill] sm:$0xff] }
 0x32a   :  { %6590 = vmatpush.bf16.msrb.mxu2 %v10736_v13  ;;  %9800 = vmatmul.msk.bf16.vlgmr.msra.gmra.mxu3 %vm4887_vm0, %v10750_v10  ;;  %v5182_v23 = vadd.f32 %v16232_v54, %v5168_v15  ;;  %v16237_v8 = vld [vmem:[#allocation39_spill] sm:$0xff]  ;;  %v10730_v56 = vld [vmem:[%s16158_s3 + $0x88] sm:$0xff]  ;;  %v10713_v22 = vld [vmem:[%s16158_s3] sm:$0xff] }
 0x32b   :  { %v5518_v42 = vadd.f32 %v16231_v48, %v5504_v53  ;;  %v5910_v13 = vadd.f32 %v5909_v18, %v5896_v14  ;;  %v16239_v31 = vld [vmem:[#allocation19_spill] sm:$0xff]  ;;  %v5922_v60 = vadd.f32 %v5921_v36, %v5908_v30  ;;  %v10721_v34 = vld [vmem:[%s16158_s3 + $0x40] sm:$0xff]  ;;  %v16243_v16 = vld [vmem:[#allocation37_spill] sm:$0xff] }
 0x32c   :  { %6563 = vmatpush.bf16.msrb.mxu0 %v10719_v9  ;;  %v5196_v27 = vadd.f32 %v16235_v39, %v5182_v23  ;;  %v10729_v1 = vld [vmem:[%s16158_s3 + $0x80] sm:$0xff]  ;;  %v6291_v52 = vmax.f32 %v16243_v16, 0.0 }
 0x32d   :  { %6577 = vmatpush.bf16.msrb.mxu1 %v10727_v25  ;;  %v5532_v3 = vadd.f32 %v16233_v62, %v5518_v42  ;;  %v5937_v25 = vpop.f32.mrf.mxu2  ;;  %v5924_v40 = vadd.f32 %v5923_v63, %v5910_v13  ;;  %v5936_v57 = vadd.f32 %v5935_v41, %v5922_v60  ;;  %v16242_v10 = vld [vmem:[#allocation16_spill] sm:$0xff] }
 0x32e   :  { %6591 = vmatpush.bf16.msrb.mxu2 %v10735_v55  ;;  %v5210_v49 = vadd.f32 %v16236_v24, %v5196_v27  ;;  %v16241_v55 = vld [vmem:[#allocation41_spill] sm:$0xff]  ;;  %v5949_v48 = vpop.f32.mrf.mxu3 }
 0x32f   :  { %v5546_v37 = vadd.f32 %v16234_v6, %v5532_v3  ;;  %v5938_v0 = vadd.f32 %v5937_v25, %v5924_v40  ;;  %v6292_v15 = vmax.f32 %v5936_v57, 0.0 }
 0x330   :  { %6564 = vmatpush.bf16.msrb.mxu0 %v10718_v28  ;;  %v5224_v9 = vadd.f32 %v16239_v31, %v5210_v49 }
 0x331   :  { %6578 = vmatpush.bf16.msrb.mxu1 %v10726_v61  ;;  %v5560_v50 = vadd.f32 %v16237_v8, %v5546_v37  ;;  %v6296_v53 = vmax.f32 %v5938_v0, 0.0  ;;  %v5977_v54 = vpop.f32.mrf.mxu1 }
 0x332   :  { %6592 = vmatpush.bf16.msrb.mxu2 %v10734_v12  ;;  %v5238_v21 = vadd.f32 %v16240_v2, %v5224_v9  ;;  %v6290_v12 = vmax.f32 %v16242_v10, 0.0 }
 0x333   :  { %v5574_v17 = vadd.f32 %v16238_v44, %v5560_v50  ;;  %v6300_v7 = vpack.c.bf16 %v6296_v53, %v6292_v15 }
 0x334   :  { %6565 = vmatpush.bf16.msrb.mxu0 %v10717_v38  ;;  %v6294_v28 = vmax.f32 %v5238_v21, 0.0  ;;  %v5963_v38 = vpop.f32.mrf.mxu0  ;;  %v10742_v21 = vld [vmem:[%s16158_s3 + $0xe8] sm:$0xff] }
 0x335   :  { %6579 = vmatpush.bf16.msrb.mxu1 %v10725_v43  ;;  %v5588_v35 = vadd.f32 %v16241_v55, %v5574_v17  ;;  %v5991_v23 = vpop.f32.mrf.mxu2 }
 0x336   :  { %6593 = vmatpush.bf16.msrb.mxu2 %v10733_v29  ;;  %v6298_v42 = vpack.c.bf16 %v6294_v28, %v6290_v12  ;;  %v5951_v43 = vpop.f32.mrf.mxu3 }
 0x337   :  { %v6295_v61 = vmax.f32 %v5588_v35, 0.0 }
 0x338   :  { %6566 = vmatpush.bf16.msrb.mxu0 %v10716_v58  ;;  %v842_v58 = vperm.slane %v15558_v33, 3  ;;  %v10744_v33 = vld [vmem:[%s16158_s3 + $0xf8] sm:$0xff] }
 0x339   :  { %6580 = vmatpush.bf16.msrb.mxu1 %v10724_v59  ;;  %v6299_v36 = vpack.c.bf16 %v6295_v61, %v6291_v52  ;;  %v5979_v41 = vpop.f32.mrf.mxu1  ;;  %6604 = vmatpush.bf16.msrb.mxu3 %v10744_v33  ;;  %v10739_v52 = vld [vmem:[%s16158_s3 + $0xd0] sm:$0xff] }
 0x33a   :  { %6594 = vmatpush.bf16.msrb.mxu2 %v10732_v47  ;;  %v5950_v39 = vadd.f32 %v5949_v48, %v842_v58  ;;  %v5952_v50 = vadd.f32 %v5951_v43, %v842_v58 }
 0x33c   :  { %6567 = vmatpush.bf16.msrb.mxu0 %v10715_v4  ;;  %v5965_v62 = vpop.f32.mrf.mxu0  ;;  %v5964_v47 = vadd.f32 %v5963_v38, %v5950_v39  ;;  %v10738_v38 = vld [vmem:[%s16158_s3 + $0xc8] sm:$0xff] }
 0x33d   :  { %6581 = vmatpush.bf16.msrb.mxu1 %v10723_v32  ;;  %v5993_v29 = vpop.f32.mrf.mxu2  ;;  %v5966_v32 = vadd.f32 %v5965_v62, %v5952_v50 }
 0x33e   :  { %6595 = vmatpush.bf16.msrb.mxu2 %v10731_v46  ;;  %v6005_v3 = vpop.f32.mrf.mxu3  ;;  %v5978_v49 = vadd.f32 %v5977_v54, %v5964_v47  ;;  %v10743_v46 = vld [vmem:[%s16158_s3 + $0xf0] sm:$0xff] }
 0x33f   :  { %v5980_v63 = vadd.f32 %v5979_v41, %v5966_v32  ;;  %6605 = vmatpush.bf16.msrb.mxu3 %v10743_v46  ;;  %v10737_v41 = vld [vmem:[%s16158_s3 + $0xc0] sm:$0xff] }
 0x340   :  { %6568 = vmatpush.bf16.msrb.mxu0 %v10714_v11  ;;  %v5992_v45 = vadd.f32 %v5991_v23, %v5978_v49 }
 0x341   :  { %6582 = vmatpush.bf16.msrb.mxu1 %v10722_v51  ;;  %v6033_v6 = vpop.f32.mrf.mxu1  ;;  %v5994_v25 = vadd.f32 %v5993_v29, %v5980_v63 }
 0x342   :  { %6596 = vmatpush.bf16.msrb.mxu2 %v10730_v56  ;;  %v6006_v17 = vadd.f32 %v6005_v3, %v5992_v45  ;;  %v10741_v56 = vld [vmem:[%s16158_s3 + $0xe0] sm:$0xff] }
 0x343   :  { %6606 = vmatpush.bf16.msrb.mxu3 %v10742_v21 }
 0x344   :  { %6569 = vmatpush.bf16.msrb.mxu0 %v10713_v22  ;;  %v6019_v26 = vpop.f32.mrf.mxu0 }
 0x345   :  { %6583 = vmatpush.bf16.msrb.mxu1 %v10721_v34  ;;  %v6047_v37 = vpop.f32.mrf.mxu2  ;;  %v6020_v31 = vadd.f32 %v6019_v26, %v6006_v17 }
 0x346   :  { %6597 = vmatpush.bf16.msrb.mxu2 %v10729_v1  ;;  %v6007_v19 = vpop.f32.mrf.mxu3  ;;  %v10740_v1 = vld [vmem:[%s16158_s3 + $0xd8] sm:$0xff] }
 0x347   :  { %6570 = vmatmul.bf16.vlgmr.msrb.gmra.mxu0 %v6298_v42  ;;  %v6008_v51 = vadd.f32 %v6007_v19, %v5994_v25  ;;  %v6034_v2 = vadd.f32 %v6033_v6, %v6020_v31  ;;  %6607 = vmatpush.bf16.msrb.mxu3 %v10741_v56 }
 0x348   :  { %6584 = vmatmul.bf16.vlgmr.msrb.gmra.mxu1 %v6299_v36 }
 0x349   :  { %6598 = vmatmul.bf16.vlgmr.msrb.gmra.mxu2 %v6300_v7  ;;  %v6035_v59 = vpop.f32.mrf.mxu1  ;;  %v6048_v60 = vadd.f32 %v6047_v37, %v6034_v2 }
 0x34b   :  { %6608 = vmatpush.bf16.msrb.mxu3 %v10740_v1 }
 0x34c   :  { %v6021_v20 = vpop.f32.mrf.mxu0 }
 0x34d   :  { %v6049_v27 = vpop.f32.mrf.mxu2  ;;  %v6022_v55 = vadd.f32 %v6021_v20, %v6008_v51 }
 0x34e   :  { %v6061_v5 = vpop.f32.mrf.mxu3 }
 0x34f   :  { %v6036_v0 = vadd.f32 %v6035_v59, %v6022_v55  ;;  %v6062_v57 = vadd.f32 %v6061_v5, %v6048_v60  ;;  %6609 = vmatpush.bf16.msrb.mxu3 %v10739_v52 }
 0x351   :  { %v6089_v24 = vpop.f32.mrf.mxu1  ;;  %v6050_v28 = vadd.f32 %v6049_v27, %v6036_v0 }
 0x353   :  { %6610 = vmatpush.bf16.msrb.mxu3 %v10738_v38 }
 0x354   :  { %v6075_v18 = vpop.f32.mrf.mxu0 }
 0x355   :  { %v6103_v8 = vpop.f32.mrf.mxu2  ;;  %v6076_v61 = vadd.f32 %v6075_v18, %v6062_v57  ;;  %v10745_v57 = vld [vmem:[%s16159_s4] ss:$0 sm:$0xff] }
 0x356   :  { %v6063_v14 = vpop.f32.mrf.mxu3 }
 0x357   :  { %v6064_v10 = vadd.f32 %v6063_v14, %v6050_v28  ;;  %v6090_v12 = vadd.f32 %v6089_v24, %v6076_v61  ;;  %6611 = vmatpush.bf16.msrb.mxu3 %v10737_v41 }
 0x359   :  { %v6091_v44 = vpop.f32.mrf.mxu1  ;;  %v6104_v48 = vadd.f32 %v6103_v8, %v6090_v12 }
 0x35c   :  { %v6077_v13 = vpop.f32.mrf.mxu0 }
 0x35d   :  { %v6105_v30 = vpop.f32.mrf.mxu2  ;;  %v6078_v16 = vadd.f32 %v6077_v13, %v6064_v10 }
 0x35e   :  { %v6117_v4 = vpop.f32.mrf.mxu3 }
 0x35f   :  { %v6092_v36 = vadd.f32 %v6091_v44, %v6078_v16  ;;  %v6118_v7 = vadd.f32 %v6117_v4, %v6104_v48 }
 0x361   :  { %v6106_v23 = vadd.f32 %v6105_v30, %v6092_v36 }
 0x364   :  { %v6131_v9 = vpop.f32.mrf.mxu0 }
 0x365   :  { %v6145_v11 = vpop.f32.mrf.mxu1  ;;  %v6132_v62 = vadd.f32 %v6131_v9, %v6118_v7 }
 0x366   :  { %v6119_v40 = vpop.f32.mrf.mxu3 }
 0x367   :  { %v6120_v3 = vadd.f32 %v6119_v40, %v6106_v23  ;;  %v6146_v26 = vadd.f32 %v6145_v11, %v6132_v62 }
 0x36c   :  { %v6159_v35 = vpop.f32.mrf.mxu2  ;;  %v6133_v22 = vpop.f32.mrf.mxu0 }
 0x36d   :  { %v6147_v53 = vpop.f32.mrf.mxu1  ;;  %v6134_v19 = vadd.f32 %v6133_v22, %v6120_v3  ;;  %v6160_v6 = vadd.f32 %v6159_v35, %v6146_v26 }
 0x36f   :  { %v6148_v5 = vadd.f32 %v6147_v53, %v6134_v19 }
 0x374   :  { %v6161_v15 = vpop.f32.mrf.mxu2 }
 0x375   :  { %v6162_v39 = vadd.f32 %v6161_v15, %v6148_v5 }
 0x37d   :  { %v6173_v34 = vpop.f32.mrf.mxu3 }
 0x37e   :  { %v6174_v58 = vadd.f32 %v6173_v34, %v6160_v6 }
 0x384   :  { %v6187_v42 = vpop.f32.mrf.mxu0 }
 0x385   :  { %v6175_v43 = vpop.f32.mrf.mxu3  ;;  %v6201_v54 = vpop.f32.mrf.mxu1  ;;  %v6188_v27 = vadd.f32 %v6187_v42, %v6174_v58 }
 0x386   :  { %v6176_v18 = vadd.f32 %v6175_v43, %v6162_v39 }
 0x387   :  { %v6202_v14 = vadd.f32 %v6201_v54, %v6188_v27 }
 0x38c   :  { %v6215_v29 = vpop.f32.mrf.mxu2  ;;  %v6189_v37 = vpop.f32.mrf.mxu0 }
 0x38d   :  { %v6203_v59 = vpop.f32.mrf.mxu1  ;;  %v6190_v24 = vadd.f32 %v6189_v37, %v6176_v18  ;;  %v6216_v50 = vadd.f32 %v6215_v29, %v6202_v14 }
 0x38f   :  { %v6204_v13 = vadd.f32 %v6203_v59, %v6190_v24 }
 0x394   :  { %v6217_v47 = vpop.f32.mrf.mxu2 }
 0x395   :  { %v6218_v32 = vadd.f32 %v6217_v47, %v6204_v13 }
 0x39d   :  { %v6229_v20 = vpop.f32.mrf.mxu3 }
 0x39e   :  { %v6230_v4 = vadd.f32 %v6229_v20, %v6216_v50 }
 0x3a4   :  { %v6243_v49 = vpop.f32.mrf.mxu0 }
 0x3a5   :  { %v6231_v8 = vpop.f32.mrf.mxu3  ;;  %v6257_v45 = vpop.f32.mrf.mxu1  ;;  %v6244_v44 = vadd.f32 %v6243_v49, %v6230_v4 }
 0x3a6   :  { %v6232_v33 = vadd.f32 %v6231_v8, %v6218_v32 }
 0x3a7   :  { %v6258_v30 = vadd.f32 %v6257_v45, %v6244_v44 }
 0x3ac   :  { %v6271_v17 = vpop.f32.mrf.mxu2  ;;  %v6245_v63 = vpop.f32.mrf.mxu0 }
 0x3ad   :  { %v6285_v46 = vpop.f32.mrf.mxu3  ;;  %v6246_v31 = vadd.f32 %v6245_v63, %v6232_v33  ;;  %v6272_v9 = vadd.f32 %v6271_v17, %v6258_v30  ;;  %v6259_v25 = vpop.f32.mrf.mxu1 }
 0x3af   :  { %v6260_v40 = vadd.f32 %v6259_v25, %v6246_v31  ;;  %v6286_v51 = vadd.f32 %v6285_v46, %v6272_v9 }
 0x3b1   :  { %v6293_v35 = vmax.f32 %v6286_v51, 0.0 }
 0x3b4   :  { %v6273_v11 = vpop.f32.mrf.mxu2 }
 0x3b5   :  { %v6274_v2 = vadd.f32 %v6273_v11, %v6260_v40  ;;  %v6287_v21 = vpop.f32.mrf.mxu3 }
 0x3b7   :  { %v6288_v55 = vadd.f32 %v6287_v21, %v6274_v2 }
 0x3b9   :  { %v6297_v56 = vmax.f32 %v6288_v55, 0.0 }
 0x3bb   :  { %v6301_v60 = vpack.c.bf16 %v6297_v56, %v6293_v35 }
 0x3bd   :  { %6612 = vmatmul.bf16.vlgmr.msrb.gmra.mxu3 %v6301_v60 }
 0x3c4   :  { %v6571_v0 = vpop.f32.mrf.mxu0 }
 0x3c5   :  { %v6572_v22 = vadd.f32 %v10745_v57, %v6571_v0  ;;  %v6585_v34 = vpop.f32.mrf.mxu1 }
 0x3c7   :  { %v6586_v61 = vadd.f32 %v6585_v34, %v6572_v22 }
 0x3cc   :  { %v6599_v28 = vpop.f32.mrf.mxu2  ;;  %v6573_v1 = vpop.f32.mrf.mxu0 }
 0x3cd   :  { %v6600_v53 = vadd.f32 %v6599_v28, %v6586_v61  ;;  %v6587_v16 = vpop.f32.mrf.mxu1 }
 0x3d4   :  { %v6601_v52 = vpop.f32.mrf.mxu2 }
 0x440   :  { %v6613_v10 = vpop.f32.mrf.mxu3 }
 0x441   :  { %v6614_v12 = vadd.f32 %v6613_v10, %v6600_v53 }
 0x443   :  { %6618 = vst [vmem:[#allocation2] sm:$0xff] %v6614_v12 }
 0x448   :  { %v6615_v15 = vpop.f32.mrf.mxu3 }
 0x44a   :  { %v6638_v48 = vld [vmem:[#allocation2] sm:$0x3] }
 0x44b   :  { %6639 = vst [vmem:[%s16160_s5] sm:$0x3] %v6638_v48 }

</bundles_post_ra>
